<compile_context>
chip_gen: v6e
topology: v6e:2x2x1
jax: 0.10.0
libtpu: 0.0.40
codegen_flags: <defaults>
</compile_context>

<pallas_src>
import functools

import jax
import jax.numpy as jnp
import numpy as np
from jax.experimental import pallas as pl
from jax.experimental.pallas import tpu as pltpu


def _round_up(x, m):
    return ((x + m - 1) // m) * m


# ----------------------------------------------------------------------------
# Generic fused matmul:  out = act((X @ W) * scale + shift)
# bf16 inputs on the MXU, f32 accumulation and epilogue, bf16/f32 output.
# ----------------------------------------------------------------------------
def _mm_kernel_single(x_ref, w_ref, s_ref, t_ref, o_ref, *, activation):
    y = jnp.dot(x_ref[...], w_ref[...], preferred_element_type=jnp.float32)
    y = y * s_ref[...] + t_ref[...]
    if activation == "relu":
        y = jnp.maximum(y, 0.0)
    elif activation == "tanh":
        y = jnp.tanh(y)
    o_ref[...] = y.astype(o_ref.dtype)


def _mm_kernel_multi(x_ref, w_ref, s_ref, t_ref, o_ref, acc_ref, *, activation):
    @pl.when(pl.program_id(2) == 0)
    def _():
        acc_ref[...] = jnp.zeros_like(acc_ref)

    acc_ref[...] += jnp.dot(x_ref[...], w_ref[...],
                            preferred_element_type=jnp.float32)

    @pl.when(pl.program_id(2) == pl.num_programs(2) - 1)
    def _():
        y = acc_ref[...] * s_ref[...] + t_ref[...]
        if activation == "relu":
            y = jnp.maximum(y, 0.0)
        elif activation == "tanh":
            y = jnp.tanh(y)
        o_ref[...] = y.astype(o_ref.dtype)


def fused_matmul(x, w, scale=None, shift=None, activation="none",
                 out_dtype=jnp.bfloat16):
    """x:(M,K) @ w:(K,N) with per-output-channel scale/shift + activation."""
    M, K = x.shape
    K2, N = w.shape
    assert K == K2

    x = x.astype(jnp.bfloat16)
    w = w.astype(jnp.bfloat16)
    if scale is None:
        scale = jnp.ones((N,), jnp.float32)
    if shift is None:
        shift = jnp.zeros((N,), jnp.float32)
    scale = scale.astype(jnp.float32)
    shift = shift.astype(jnp.float32)

    # Adaptive tiling: keep small dims un-padded (full block = no dead bytes).
    Mp = _round_up(M, 8)
    tm = Mp if Mp <= 256 else 256
    Mp = _round_up(M, tm)

    if N <= 512:
        tn, Np = N, N
    else:
        tn = 512
        Np = _round_up(N, tn)

    Kp = _round_up(K, 8)
    if Kp <= 1024:
        tk = Kp
    else:
        tk = 512
        Kp = _round_up(K, tk)

    if (Mp, Kp) != (M, K):
        x = jnp.pad(x, ((0, Mp - M), (0, Kp - K)))
    if (Kp, Np) != (K, N):
        w = jnp.pad(w, ((0, Kp - K), (0, Np - N)))
    if Np != N:
        scale = jnp.pad(scale, (0, Np - N))
        shift = jnp.pad(shift, (0, Np - N))
    scale = scale.reshape(1, Np)
    shift = shift.reshape(1, Np)

    nk = Kp // tk
    if nk == 1:
        out = pl.pallas_call(
            functools.partial(_mm_kernel_single, activation=activation),
            out_shape=jax.ShapeDtypeStruct((Mp, Np), out_dtype),
            grid_spec=pltpu.PrefetchScalarGridSpec(
                num_scalar_prefetch=0,
                grid=(Mp // tm, Np // tn),
                in_specs=[
                    pl.BlockSpec((tm, tk), lambda i, j: (i, 0)),
                    pl.BlockSpec((tk, tn), lambda i, j: (0, j)),
                    pl.BlockSpec((1, tn), lambda i, j: (0, j)),
                    pl.BlockSpec((1, tn), lambda i, j: (0, j)),
                ],
                out_specs=pl.BlockSpec((tm, tn), lambda i, j: (i, j)),
            ),
            compiler_params=pltpu.CompilerParams(
                dimension_semantics=("parallel", "parallel")),
        )(x, w, scale, shift)
    else:
        out = pl.pallas_call(
            functools.partial(_mm_kernel_multi, activation=activation),
            out_shape=jax.ShapeDtypeStruct((Mp, Np), out_dtype),
            grid_spec=pltpu.PrefetchScalarGridSpec(
                num_scalar_prefetch=0,
                grid=(Mp // tm, Np // tn, nk),
                in_specs=[
                    pl.BlockSpec((tm, tk), lambda i, j, k: (i, k)),
                    pl.BlockSpec((tk, tn), lambda i, j, k: (k, j)),
                    pl.BlockSpec((1, tn), lambda i, j, k: (0, j)),
                    pl.BlockSpec((1, tn), lambda i, j, k: (0, j)),
                ],
                out_specs=pl.BlockSpec((tm, tn), lambda i, j, k: (i, j)),
                scratch_shapes=[pltpu.VMEM((tm, tn), jnp.float32)],
            ),
            compiler_params=pltpu.CompilerParams(
                dimension_semantics=("parallel", "parallel", "arbitrary")),
        )(x, w, scale, shift)

    if (Mp, Np) != (M, N):
        out = out[:M, :N]
    return out


# ----------------------------------------------------------------------------
# ConvTranspose2d(k=4, s=2, p=1) + folded BatchNorm(eval) + ReLU
# All 4 output parities come from ONE matmul over a shared 2x2-patch im2col.
# ----------------------------------------------------------------------------
def conv_transpose_4x4_s2(x, w_big, scale_big, shift_big):
    # x: (B, H, W, Cin) bf16 NHWC; w_big: (4*Cin, 4*Cout) bf16
    B, H, W, Cin = x.shape
    Cout = w_big.shape[1] // 4
    xp = jnp.pad(x, ((0, 0), (1, 1), (1, 1), (0, 0)))
    # 2x2 patches over the (H+1)x(W+1) padded patch grid (shared by parities).
    cols = [xp[:, t:t + H + 1, s:s + W + 1, :] for t in (0, 1) for s in (0, 1)]
    xcol = jnp.concatenate(cols, axis=-1).reshape(B * (H + 1) * (W + 1), 4 * Cin)
    o = fused_matmul(xcol, w_big, scale_big, shift_big, activation="relu")
    o = o.reshape(B, H + 1, W + 1, 2, 2, Cout)
    # out[b, 2m+py, 2n+px, c] = o[b, m+py, n+px, py, px, c]
    o00 = o[:, 0:H, 0:W, 0, 0, :]
    o01 = o[:, 0:H, 1:W + 1, 0, 1, :]
    o10 = o[:, 1:H + 1, 0:W, 1, 0, :]
    o11 = o[:, 1:H + 1, 1:W + 1, 1, 1, :]
    y = jnp.stack([jnp.stack([o00, o01], axis=3),
                   jnp.stack([o10, o11], axis=3)], axis=2)
    return y.reshape(B, 2 * H, 2 * W, Cout)


# ----------------------------------------------------------------------------
# Bilinear upsample (align_corners=True) -> channel-major output (C,B,Hout,Wout)
# ----------------------------------------------------------------------------
def _interp_matrix(in_size, out_size):
    i = np.arange(out_size)
    src = i * (in_size - 1) / max(out_size - 1, 1)
    i0 = np.floor(src).astype(np.int64)
    i1 = np.minimum(i0 + 1, in_size - 1)
    w1 = (src - i0).astype(np.float32)
    w0 = 1.0 - w1
    L = np.zeros((out_size, in_size), np.float32)
    L[i, i0] += w0
    L[i, i1] += w1
    return L


def bilinear_upsample_to_channel_major(x, ly, lxt):
    # x: (B, Hin, Win, C) bf16  ->  (C, B, Hout, Wout) bf16
    B, Hin, Win, C = x.shape
    Hout, Wout = ly.shape[0], lxt.shape[1]
    # H interpolation: (Hout, Hin) @ (Hin, B*Win*C)
    a = jnp.transpose(x, (1, 0, 2, 3)).reshape(Hin, B * Win * C)
    y = fused_matmul(ly, a)                                   # (Hout, B*Win*C)
    # W interpolation, emitting channel-major: (C*B*Hout, Win) @ (Win, Wout)
    y = y.reshape(Hout, B, Win, C)
    y = jnp.transpose(y, (3, 1, 0, 2)).reshape(C * B * Hout, Win)
    z = fused_matmul(y, lxt)                                  # (C*B*Hout, Wout)
    return z.reshape(C, B, Hout, Wout)


# ----------------------------------------------------------------------------
# Final Conv2d 3x3 (pad=1) + Tanh + mask compose, transposed lane-dense matmul:
#   out(c, p) = tanh( W(c,:) @ XcolT(:, p) + b(c) ) * mask(p) + img(c, p)
# ----------------------------------------------------------------------------
def _conv3x3_compose_kernel(w_ref, x_ref, b_ref, m_ref, img_ref, o_ref):
    y = jnp.dot(w_ref[...], x_ref[...], preferred_element_type=jnp.float32)
    y = jnp.tanh(y[:3, :] + b_ref[...])
    o_ref[...] = (y * m_ref[...] + img_ref[...]).astype(o_ref.dtype)


def conv3x3_tanh_compose(u_cm, w_mat, bias, mask, masked_image):
    # u_cm: (Cin, B, H, W) bf16; w_mat: (8, 9*Cin) bf16 (rows 3..7 zero)
    Cin, B, H, W = u_cm.shape
    npix = B * H * W
    K = 9 * Cin
    up = jnp.pad(u_cm, ((0, 0), (0, 0), (1, 1), (1, 1)))
    # TODO(synk): the 9-tap channel-major im2col slab could be removed entirely
    # with a manual-DMA kernel reading shifted windows of `up`; kept in bf16.
    taps = [up[:, :, dy:dy + H, dx:dx + W].reshape(Cin, npix)
            for dy in range(3) for dx in range(3)]
    xcol = jnp.concatenate(taps, axis=0).astype(jnp.bfloat16)  # (9*Cin, npix)

    m = mask.astype(jnp.float32).reshape(1, npix)
    img = jnp.transpose(masked_image.astype(jnp.float32),
                        (1, 0, 2, 3)).reshape(3, npix)

    tn = None
    for cand in (4096, 2048, 1024, 512, 256, 128):
        if npix % cand == 0:
            tn = cand
            break
    assert tn is not None, "B*H*W must be a multiple of 128"

    out = pl.pallas_call(
        _conv3x3_compose_kernel,
        out_shape=jax.ShapeDtypeStruct((3, npix), jnp.float32),
        grid_spec=pltpu.PrefetchScalarGridSpec(
            num_scalar_prefetch=0,
            grid=(npix // tn,),
            in_specs=[
                pl.BlockSpec((8, K), lambda j: (0, 0)),
                pl.BlockSpec((K, tn), lambda j: (0, j)),
                pl.BlockSpec((3, 1), lambda j: (0, 0)),
                pl.BlockSpec((1, tn), lambda j: (0, j)),
                pl.BlockSpec((3, tn), lambda j: (0, j)),
            ],
            out_specs=pl.BlockSpec((3, tn), lambda j: (0, j)),
        ),
        compiler_params=pltpu.CompilerParams(
            dimension_semantics=("parallel",)),
    )(w_mat.astype(jnp.bfloat16), xcol, bias, m, img)
    return out.reshape(3, B, H, W).transpose(1, 0, 2, 3)       # (B,3,H,W) f32


# ----------------------------------------------------------------------------
# One-time parameter preparation (BN fold, attention fold, bf16 pre-cast)
# ----------------------------------------------------------------------------
def _prep_deconv(wt, bias, gamma, beta, mean, var, eps=1e-5):
    # wt: (Cin, Cout, 4, 4) PyTorch ConvTranspose2d layout
    s = gamma / jnp.sqrt(var + eps)
    sh = bias * s + (beta - mean * s)
    blocks = []
    for py in (0, 1):
        for px in (0, 1):
            rows = [wt[:, :, 3 - py - 2 * t, 3 - px - 2 * u]
                    for t in (0, 1) for u in (0, 1)]
            blocks.append(jnp.concatenate(rows, axis=0))       # (4*Cin, Cout)
    w_big = jnp.concatenate(blocks, axis=1)                    # (4*Cin, 4*Cout)
    return (w_big.astype(jnp.bfloat16),
            jnp.concatenate([s] * 4).astype(jnp.float32),
            jnp.concatenate([sh] * 4).astype(jnp.float32))


def prepare_params(params, eps=1e-5):
    p = {}
    # With sequence length 1, MultiheadAttention's softmax is over a single
    # logit (exactly 1.0), so attn_out == out_proj(v_proj(key)) and is
    # independent of q/k (and of z).  Fold byol_proj -> v_proj -> out_proj
    # into one exact linear.
    w_vo = params["wv"] @ params["wo"]
    b_vo = params["bv"] @ params["wo"] + params["bo"]
    p["latent_w"] = (params["byol_w"] @ w_vo).astype(jnp.bfloat16)
    p["latent_b"] = (params["byol_b"] @ w_vo + b_vo).astype(jnp.float32)
    p["fc_w"] = params["fc_w"].astype(jnp.bfloat16)
    p["fc_b"] = params["fc_b"].astype(jnp.float32)

    n_dec = 0
    while f"ct{n_dec}_w" in params:
        n_dec += 1
    for l in range(n_dec):
        w_big, sc, sh = _prep_deconv(params[f"ct{l}_w"], params[f"ct{l}_b"],
                                     params[f"bn{l}_gamma"], params[f"bn{l}_beta"],
                                     params[f"bn{l}_mean"], params[f"bn{l}_var"],
                                     eps)
        p[f"ct{l}_w"], p[f"ct{l}_scale"], p[f"ct{l}_shift"] = w_big, sc, sh

    # Final 3x3 conv in transposed (channel-major) matmul form.
    wc = params["conv_w"]                                      # (3, Cin, 3, 3)
    cin = wc.shape[1]
    w_mat = jnp.transpose(wc, (0, 2, 3, 1)).reshape(3, 9 * cin)
    p["conv_w"] = jnp.pad(w_mat, ((0, 5), (0, 0))).astype(jnp.bfloat16)
    p["conv_b"] = params["conv_b"].astype(jnp.float32).reshape(3, 1)

    # Bilinear interpolation matrices (decoder output is 4 * 2**n_dec -> 224).
    hin = 4 * (2 ** n_dec)
    p["up_ly"] = jnp.asarray(_interp_matrix(hin, 224), jnp.bfloat16)
    p["up_lxt"] = jnp.asarray(_interp_matrix(hin, 224).T, jnp.bfloat16)
    return p


# ----------------------------------------------------------------------------
# Generator forward
# ----------------------------------------------------------------------------
def generator_forward(prep, z, byol_embedding, mask, masked_image):
    del z  # seq-len-1 attention output is provably independent of the query z
    B = byol_embedding.shape[0]
    C8 = prep["fc_b"].shape[0] // 16                           # channels * 8

    latent = fused_matmul(byol_embedding, prep["latent_w"], None, prep["latent_b"])
    x = fused_matmul(latent, prep["fc_w"], None, prep["fc_b"])  # (B, 4*4*C8)
    x = x.reshape(B, C8, 4, 4).transpose(0, 2, 3, 1)            # NHWC (B,4,4,C8)

    for l in range(5):
        x = conv_transpose_4x4_s2(x, prep[f"ct{l}_w"],
                                  prep[f"ct{l}_scale"], prep[f"ct{l}_shift"])

    u = bilinear_upsample_to_channel_major(x, prep["up_ly"], prep["up_lxt"])
    return conv3x3_tanh_compose(u, prep["conv_w"], prep["conv_b"],
                                mask, masked_image)


# ----------------------------------------------------------------------------
# Deterministic synthetic parameters (shapes from Generator.__init__)
# ----------------------------------------------------------------------------
def init_params(key, latent_dim=256, channels=64, byol_output_dim=512):
    ks = iter(jax.random.split(key, 64))

    def nrm(shape, std):
        return std * jax.random.normal(next(ks), shape, jnp.float32)

    E = latent_dim
    p = {}
    p["byol_w"] = nrm((byol_output_dim, E), byol_output_dim ** -0.5)
    p["byol_b"] = nrm((E,), 0.02)
    for name in ("q", "k", "v", "o"):                 # q/k unused (seq len 1)
        p[f"w{name}"] = nrm((E, E), E ** -0.5)
        p[f"b{name}"] = nrm((E,), 0.02)
    p["fc_w"] = nrm((E, 4 * 4 * channels * 8), E ** -0.5)
    p["fc_b"] = nrm((4 * 4 * channels * 8,), 0.02)

    chans = [channels * 8, channels * 8, channels * 4, channels * 2,
             channels, channels]
    for l in range(5):
        cin, cout = chans[l], chans[l + 1]
        p[f"ct{l}_w"] = nrm((cin, cout, 4, 4), (4.0 * cin) ** -0.5)
        p[f"ct{l}_b"] = nrm((cout,), 0.02)
        p[f"bn{l}_gamma"] = 1.0 + nrm((cout,), 0.1)
        p[f"bn{l}_beta"] = nrm((cout,), 0.1)
        p[f"bn{l}_mean"] = nrm((cout,), 0.1)
        p[f"bn{l}_var"] = 1.0 + jnp.abs(nrm((cout,), 0.1))

    p["conv_w"] = nrm((3, channels, 3, 3), (9.0 * channels) ** -0.5)
    p["conv_b"] = nrm((3,), 0.02)
    return p


if __name__ == "__main__":
    key = jax.random.PRNGKey(0)
    kp, kz, kb, km, ki = jax.random.split(key, 5)

    # Small configuration (module architecture fixes spatial 4 -> 128 -> 224).
    LATENT, CH, BYOL, B = 64, 16, 128, 2
    params = init_params(kp, latent_dim=LATENT, channels=CH, byol_output_dim=BYOL)
    prep = prepare_params(params)

    z = jax.random.normal(kz, (B, LATENT), jnp.float32)
    byol_embedding = jax.random.normal(kb, (B, BYOL), jnp.float32)
    mask = (jax.random.uniform(km, (B, 1, 224, 224)) > 0.5).astype(jnp.float32)
    masked_image = jax.random.normal(ki, (B, 3, 224, 224), jnp.float32) * (1.0 - mask)

    fwd = jax.jit(generator_forward)
    out = fwd(prep, z, byol_embedding, mask, masked_image)
    out = jax.block_until_ready(out)

    assert out.shape == (B, 3, 224, 224), out.shape
    assert bool(jnp.all(jnp.isfinite(out)))
    print("KERNEL_OK")
</pallas_src>

<mosaic_0001>
module attributes {stable_mosaic.version = 11 : i64} {
  func.func @_mm_kernel_single(%arg0: i32, %arg1: i32, %arg2: memref<8x128xbf16, #tpu.memory_space<vmem>>, %arg3: memref<128x64xbf16, #tpu.memory_space<vmem>>, %arg4: memref<1x64xf32, #tpu.memory_space<vmem>>, %arg5: memref<1x64xf32, #tpu.memory_space<vmem>>, %arg6: memref<8x64xbf16, #tpu.memory_space<vmem>>) attributes {dimension_semantics = [#tpu.dimension_semantics<parallel>, #tpu.dimension_semantics<parallel>], iteration_bounds = array<i64: 1, 1>, scalar_prefetch = 0 : i64, scratch_operands = 0 : i64, tpu.core_type = #tpu.core_type<tc>, window_params = [{transform_indices = @transform_0, window_bounds = array<i64: 8, 128>}, {transform_indices = @transform_1, window_bounds = array<i64: 128, 64>}, {transform_indices = @transform_2, window_bounds = array<i64: 1, 64>}, {transform_indices = @transform_3, window_bounds = array<i64: 1, 64>}, {transform_indices = @transform_4, window_bounds = array<i64: 8, 64>}]} {
    %c0 = arith.constant 0 : index
    %c0_0 = arith.constant 0 : index
    %0 = vector.load %arg2[%c0, %c0_0] : memref<8x128xbf16, #tpu.memory_space<vmem>>, vector<8x128xbf16>
    %c0_1 = arith.constant 0 : index
    %c0_2 = arith.constant 0 : index
    %1 = vector.load %arg3[%c0_1, %c0_2] : memref<128x64xbf16, #tpu.memory_space<vmem>>, vector<128x64xbf16>
    %cst = arith.constant dense<0.000000e+00> : vector<8x64xf32>
    %2 = tpu.matmul %0, %1, %cst {dimension_numbers = #tpu.dot_dimension_numbers<[1], [0], [0], [1], [0, 0, 1, 1], [], []>} : vector<8x128xbf16>, vector<128x64xbf16>, vector<8x64xf32> -> vector<8x64xf32>
    %c0_3 = arith.constant 0 : index
    %c0_4 = arith.constant 0 : index
    %3 = vector.load %arg4[%c0_3, %c0_4] : memref<1x64xf32, #tpu.memory_space<vmem>>, vector<1x64xf32>
    %4 = vector.broadcast %3 : vector<1x64xf32> to vector<8x64xf32>
    %5 = arith.mulf %2, %4 : vector<8x64xf32>
    %c0_5 = arith.constant 0 : index
    %c0_6 = arith.constant 0 : index
    %6 = vector.load %arg5[%c0_5, %c0_6] : memref<1x64xf32, #tpu.memory_space<vmem>>, vector<1x64xf32>
    %7 = vector.broadcast %6 : vector<1x64xf32> to vector<8x64xf32>
    %8 = arith.addf %5, %7 : vector<8x64xf32>
    %9 = arith.truncf %8 : vector<8x64xf32> to vector<8x64xbf16>
    %c0_7 = arith.constant 0 : index
    %c0_8 = arith.constant 0 : index
    %10 = vector.load %arg6[%c0_7, %c0_8] : memref<8x64xbf16, #tpu.memory_space<vmem>>, vector<8x64xbf16>
    tpu.vector_store %arg6[%c0_7, %c0_8], %9 {strides = array<i32>} : memref<8x64xbf16, #tpu.memory_space<vmem>>, vector<8x64xbf16>,
    return
  }
  func.func @transform_0(%arg0: i32, %arg1: i32) -> (i32, i32) {
    %c0_i32 = arith.constant 0 : i32
    %c0_i32_0 = arith.constant 0 : i32
    return %arg0, %c0_i32 : i32, i32
  }
  func.func @transform_1(%arg0: i32, %arg1: i32) -> (i32, i32) {
    %c0_i32 = arith.constant 0 : i32
    %c0_i32_0 = arith.constant 0 : i32
    return %c0_i32, %arg1 : i32, i32
  }
  func.func @transform_2(%arg0: i32, %arg1: i32) -> (i32, i32) {
    %c0_i32 = arith.constant 0 : i32
    %c0_i32_0 = arith.constant 0 : i32
    return %c0_i32, %arg1 : i32, i32
  }
  func.func @transform_3(%arg0: i32, %arg1: i32) -> (i32, i32) {
    %c0_i32 = arith.constant 0 : i32
    %c0_i32_0 = arith.constant 0 : i32
    return %c0_i32, %arg1 : i32, i32
  }
  func.func @transform_4(%arg0: i32, %arg1: i32) -> (i32, i32) {
    %c0_i32 = arith.constant 0 : i32
    return %arg0, %arg1 : i32, i32
  }
}

module attributes {stable_mosaic.version = 11 : i64} {
  func.func @_mm_kernel_single(%arg0: i32, %arg1: i32, %arg2: memref<8x64xbf16, #tpu.memory_space<vmem>>, %arg3: memref<64x512xbf16, #tpu.memory_space<vmem>>, %arg4: memref<1x512xf32, #tpu.memory_space<vmem>>, %arg5: memref<1x512xf32, #tpu.memory_space<vmem>>, %arg6: memref<8x512xbf16, #tpu.memory_space<vmem>>) attributes {dimension_semantics = [#tpu.dimension_semantics<parallel>, #tpu.dimension_semantics<parallel>], iteration_bounds = array<i64: 1, 4>, scalar_prefetch = 0 : i64, scratch_operands = 0 : i64, tpu.core_type = #tpu.core_type<tc>, window_params = [{transform_indices = @transform_0, window_bounds = array<i64: 8, 64>}, {transform_indices = @transform_1, window_bounds = array<i64: 64, 512>}, {transform_indices = @transform_2, window_bounds = array<i64: 1, 512>}, {transform_indices = @transform_3, window_bounds = array<i64: 1, 512>}, {transform_indices = @transform_4, window_bounds = array<i64: 8, 512>}]} {
    %c0 = arith.constant 0 : index
    %c0_0 = arith.constant 0 : index
    %0 = vector.load %arg2[%c0, %c0_0] : memref<8x64xbf16, #tpu.memory_space<vmem>>, vector<8x64xbf16>
    %c0_1 = arith.constant 0 : index
    %c0_2 = arith.constant 0 : index
    %1 = vector.load %arg3[%c0_1, %c0_2] : memref<64x512xbf16, #tpu.memory_space<vmem>>, vector<64x512xbf16>
    %cst = arith.constant dense<0.000000e+00> : vector<8x512xf32>
    %2 = tpu.matmul %0, %1, %cst {dimension_numbers = #tpu.dot_dimension_numbers<[1], [0], [0], [1], [0, 0, 1, 1], [], []>} : vector<8x64xbf16>, vector<64x512xbf16>, vector<8x512xf32> -> vector<8x512xf32>
    %c0_3 = arith.constant 0 : index
    %c0_4 = arith.constant 0 : index
    %3 = vector.load %arg4[%c0_3, %c0_4] : memref<1x512xf32, #tpu.memory_space<vmem>>, vector<1x512xf32>
    %4 = vector.broadcast %3 : vector<1x512xf32> to vector<8x512xf32>
    %5 = arith.mulf %2, %4 : vector<8x512xf32>
    %c0_5 = arith.constant 0 : index
    %c0_6 = arith.constant 0 : index
    %6 = vector.load %arg5[%c0_5, %c0_6] : memref<1x512xf32, #tpu.memory_space<vmem>>, vector<1x512xf32>
    %7 = vector.broadcast %6 : vector<1x512xf32> to vector<8x512xf32>
    %8 = arith.addf %5, %7 : vector<8x512xf32>
    %9 = arith.truncf %8 : vector<8x512xf32> to vector<8x512xbf16>
    %c0_7 = arith.constant 0 : index
    %c0_8 = arith.constant 0 : index
    %10 = vector.load %arg6[%c0_7, %c0_8] : memref<8x512xbf16, #tpu.memory_space<vmem>>, vector<8x512xbf16>
    tpu.vector_store %arg6[%c0_7, %c0_8], %9 {strides = array<i32>} : memref<8x512xbf16, #tpu.memory_space<vmem>>, vector<8x512xbf16>,
    return
  }
  func.func @transform_0(%arg0: i32, %arg1: i32) -> (i32, i32) {
    %c0_i32 = arith.constant 0 : i32
    %c0_i32_0 = arith.constant 0 : i32
    return %arg0, %c0_i32 : i32, i32
  }
  func.func @transform_1(%arg0: i32, %arg1: i32) -> (i32, i32) {
    %c0_i32 = arith.constant 0 : i32
    %c0_i32_0 = arith.constant 0 : i32
    return %c0_i32, %arg1 : i32, i32
  }
  func.func @transform_2(%arg0: i32, %arg1: i32) -> (i32, i32) {
    %c0_i32 = arith.constant 0 : i32
    %c0_i32_0 = arith.constant 0 : i32
    return %c0_i32, %arg1 : i32, i32
  }
  func.func @transform_3(%arg0: i32, %arg1: i32) -> (i32, i32) {
    %c0_i32 = arith.constant 0 : i32
    %c0_i32_0 = arith.constant 0 : i32
    return %c0_i32, %arg1 : i32, i32
  }
  func.func @transform_4(%arg0: i32, %arg1: i32) -> (i32, i32) {
    %c0_i32 = arith.constant 0 : i32
    return %arg0, %arg1 : i32, i32
  }
}

module attributes {stable_mosaic.version = 11 : i64} {
  func.func @_mm_kernel_single(%arg0: i32, %arg1: i32, %arg2: memref<56x512xbf16, #tpu.memory_space<vmem>>, %arg3: memref<512x512xbf16, #tpu.memory_space<vmem>>, %arg4: memref<1x512xf32, #tpu.memory_space<vmem>>, %arg5: memref<1x512xf32, #tpu.memory_space<vmem>>, %arg6: memref<56x512xbf16, #tpu.memory_space<vmem>>) attributes {dimension_semantics = [#tpu.dimension_semantics<parallel>, #tpu.dimension_semantics<parallel>], iteration_bounds = array<i64: 1, 1>, scalar_prefetch = 0 : i64, scratch_operands = 0 : i64, tpu.core_type = #tpu.core_type<tc>, window_params = [{transform_indices = @transform_0, window_bounds = array<i64: 56, 512>}, {transform_indices = @transform_1, window_bounds = array<i64: 512, 512>}, {transform_indices = @transform_2, window_bounds = array<i64: 1, 512>}, {transform_indices = @transform_3, window_bounds = array<i64: 1, 512>}, {transform_indices = @transform_4, window_bounds = array<i64: 56, 512>}]} {
    %c0 = arith.constant 0 : index
    %c0_0 = arith.constant 0 : index
    %0 = vector.load %arg2[%c0, %c0_0] : memref<56x512xbf16, #tpu.memory_space<vmem>>, vector<56x512xbf16>
    %c0_1 = arith.constant 0 : index
    %c0_2 = arith.constant 0 : index
    %1 = vector.load %arg3[%c0_1, %c0_2] : memref<512x512xbf16, #tpu.memory_space<vmem>>, vector<512x512xbf16>
    %cst = arith.constant dense<0.000000e+00> : vector<56x512xf32>
    %2 = tpu.matmul %0, %1, %cst {dimension_numbers = #tpu.dot_dimension_numbers<[1], [0], [0], [1], [0, 0, 1, 1], [], []>} : vector<56x512xbf16>, vector<512x512xbf16>, vector<56x512xf32> -> vector<56x512xf32>
    %c0_3 = arith.constant 0 : index
    %c0_4 = arith.constant 0 : index
    %3 = vector.load %arg4[%c0_3, %c0_4] : memref<1x512xf32, #tpu.memory_space<vmem>>, vector<1x512xf32>
    %4 = vector.broadcast %3 : vector<1x512xf32> to vector<56x512xf32>
    %5 = arith.mulf %2, %4 : vector<56x512xf32>
    %c0_5 = arith.constant 0 : index
    %c0_6 = arith.constant 0 : index
    %6 = vector.load %arg5[%c0_5, %c0_6] : memref<1x512xf32, #tpu.memory_space<vmem>>, vector<1x512xf32>
    %7 = vector.broadcast %6 : vector<1x512xf32> to vector<56x512xf32>
    %8 = arith.addf %5, %7 : vector<56x512xf32>
    %cst_7 = arith.constant 0.000000e+00 : f32
    %9 = vector.broadcast %cst_7 : f32 to vector<56x512xf32>
    %10 = arith.maximumf %8, %9 : vector<56x512xf32>
    %11 = arith.truncf %10 : vector<56x512xf32> to vector<56x512xbf16>
    %c0_8 = arith.constant 0 : index
    %c0_9 = arith.constant 0 : index
    %12 = vector.load %arg6[%c0_8, %c0_9] : memref<56x512xbf16, #tpu.memory_space<vmem>>, vector<56x512xbf16>
    tpu.vector_store %arg6[%c0_8, %c0_9], %11 {strides = array<i32>} : memref<56x512xbf16, #tpu.memory_space<vmem>>, vector<56x512xbf16>,
    return
  }
  func.func @transform_0(%arg0: i32, %arg1: i32) -> (i32, i32) {
    %c0_i32 = arith.constant 0 : i32
    %c0_i32_0 = arith.constant 0 : i32
    return %arg0, %c0_i32 : i32, i32
  }
  func.func @transform_1(%arg0: i32, %arg1: i32) -> (i32, i32) {
    %c0_i32 = arith.constant 0 : i32
    %c0_i32_0 = arith.constant 0 : i32
    return %c0_i32, %arg1 : i32, i32
  }
  func.func @transform_2(%arg0: i32, %arg1: i32) -> (i32, i32) {
    %c0_i32 = arith.constant 0 : i32
    %c0_i32_0 = arith.constant 0 : i32
    return %c0_i32, %arg1 : i32, i32
  }
  func.func @transform_3(%arg0: i32, %arg1: i32) -> (i32, i32) {
    %c0_i32 = arith.constant 0 : i32
    %c0_i32_0 = arith.constant 0 : i32
    return %c0_i32, %arg1 : i32, i32
  }
  func.func @transform_4(%arg0: i32, %arg1: i32) -> (i32, i32) {
    %c0_i32 = arith.constant 0 : i32
    return %arg0, %arg1 : i32, i32
  }
}

module attributes {stable_mosaic.version = 11 : i64} {
  func.func @_mm_kernel_single(%arg0: i32, %arg1: i32, %arg2: memref<168x512xbf16, #tpu.memory_space<vmem>>, %arg3: memref<512x256xbf16, #tpu.memory_space<vmem>>, %arg4: memref<1x256xf32, #tpu.memory_space<vmem>>, %arg5: memref<1x256xf32, #tpu.memory_space<vmem>>, %arg6: memref<168x256xbf16, #tpu.memory_space<vmem>>) attributes {dimension_semantics = [#tpu.dimension_semantics<parallel>, #tpu.dimension_semantics<parallel>], iteration_bounds = array<i64: 1, 1>, scalar_prefetch = 0 : i64, scratch_operands = 0 : i64, tpu.core_type = #tpu.core_type<tc>, window_params = [{transform_indices = @transform_0, window_bounds = array<i64: 168, 512>}, {transform_indices = @transform_1, window_bounds = array<i64: 512, 256>}, {transform_indices = @transform_2, window_bounds = array<i64: 1, 256>}, {transform_indices = @transform_3, window_bounds = array<i64: 1, 256>}, {transform_indices = @transform_4, window_bounds = array<i64: 168, 256>}]} {
    %c0 = arith.constant 0 : index
    %c0_0 = arith.constant 0 : index
    %0 = vector.load %arg2[%c0, %c0_0] : memref<168x512xbf16, #tpu.memory_space<vmem>>, vector<168x512xbf16>
    %c0_1 = arith.constant 0 : index
    %c0_2 = arith.constant 0 : index
    %1 = vector.load %arg3[%c0_1, %c0_2] : memref<512x256xbf16, #tpu.memory_space<vmem>>, vector<512x256xbf16>
    %cst = arith.constant dense<0.000000e+00> : vector<168x256xf32>
    %2 = tpu.matmul %0, %1, %cst {dimension_numbers = #tpu.dot_dimension_numbers<[1], [0], [0], [1], [0, 0, 1, 1], [], []>} : vector<168x512xbf16>, vector<512x256xbf16>, vector<168x256xf32> -> vector<168x256xf32>
    %c0_3 = arith.constant 0 : index
    %c0_4 = arith.constant 0 : index
    %3 = vector.load %arg4[%c0_3, %c0_4] : memref<1x256xf32, #tpu.memory_space<vmem>>, vector<1x256xf32>
    %4 = vector.broadcast %3 : vector<1x256xf32> to vector<168x256xf32>
    %5 = arith.mulf %2, %4 : vector<168x256xf32>
    %c0_5 = arith.constant 0 : index
    %c0_6 = arith.constant 0 : index
    %6 = vector.load %arg5[%c0_5, %c0_6] : memref<1x256xf32, #tpu.memory_space<vmem>>, vector<1x256xf32>
    %7 = vector.broadcast %6 : vector<1x256xf32> to vector<168x256xf32>
    %8 = arith.addf %5, %7 : vector<168x256xf32>
    %cst_7 = arith.constant 0.000000e+00 : f32
    %9 = vector.broadcast %cst_7 : f32 to vector<168x256xf32>
    %10 = arith.maximumf %8, %9 : vector<168x256xf32>
    %11 = arith.truncf %10 : vector<168x256xf32> to vector<168x256xbf16>
    %c0_8 = arith.constant 0 : index
    %c0_9 = arith.constant 0 : index
    %12 = vector.load %arg6[%c0_8, %c0_9] : memref<168x256xbf16, #tpu.memory_space<vmem>>, vector<168x256xbf16>
    tpu.vector_store %arg6[%c0_8, %c0_9], %11 {strides = array<i32>} : memref<168x256xbf16, #tpu.memory_space<vmem>>, vector<168x256xbf16>,
    return
  }
  func.func @transform_0(%arg0: i32, %arg1: i32) -> (i32, i32) {
    %c0_i32 = arith.constant 0 : i32
    %c0_i32_0 = arith.constant 0 : i32
    return %arg0, %c0_i32 : i32, i32
  }
  func.func @transform_1(%arg0: i32, %arg1: i32) -> (i32, i32) {
    %c0_i32 = arith.constant 0 : i32
    %c0_i32_0 = arith.constant 0 : i32
    return %c0_i32, %arg1 : i32, i32
  }
  func.func @transform_2(%arg0: i32, %arg1: i32) -> (i32, i32) {
    %c0_i32 = arith.constant 0 : i32
    %c0_i32_0 = arith.constant 0 : i32
    return %c0_i32, %arg1 : i32, i32
  }
  func.func @transform_3(%arg0: i32, %arg1: i32) -> (i32, i32) {
    %c0_i32 = arith.constant 0 : i32
    %c0_i32_0 = arith.constant 0 : i32
    return %c0_i32, %arg1 : i32, i32
  }
  func.func @transform_4(%arg0: i32, %arg1: i32) -> (i32, i32) {
    %c0_i32 = arith.constant 0 : i32
    return %arg0, %arg1 : i32, i32
  }
}

module attributes {stable_mosaic.version = 11 : i64} {
  func.func @_mm_kernel_single(%arg0: i32, %arg1: i32, %arg2: memref<256x256xbf16, #tpu.memory_space<vmem>>, %arg3: memref<256x128xbf16, #tpu.memory_space<vmem>>, %arg4: memref<1x128xf32, #tpu.memory_space<vmem>>, %arg5: memref<1x128xf32, #tpu.memory_space<vmem>>, %arg6: memref<256x128xbf16, #tpu.memory_space<vmem>>) attributes {dimension_semantics = [#tpu.dimension_semantics<parallel>, #tpu.dimension_semantics<parallel>], iteration_bounds = array<i64: 3, 1>, scalar_prefetch = 0 : i64, scratch_operands = 0 : i64, tpu.core_type = #tpu.core_type<tc>, window_params = [{transform_indices = @transform_0, window_bounds = array<i64: 256, 256>}, {transform_indices = @transform_1, window_bounds = array<i64: 256, 128>}, {transform_indices = @transform_2, window_bounds = array<i64: 1, 128>}, {transform_indices = @transform_3, window_bounds = array<i64: 1, 128>}, {transform_indices = @transform_4, window_bounds = array<i64: 256, 128>}]} {
    %c0 = arith.constant 0 : index
    %c0_0 = arith.constant 0 : index
    %0 = vector.load %arg2[%c0, %c0_0] : memref<256x256xbf16, #tpu.memory_space<vmem>>, vector<256x256xbf16>
    %c0_1 = arith.constant 0 : index
    %c0_2 = arith.constant 0 : index
    %1 = vector.load %arg3[%c0_1, %c0_2] : memref<256x128xbf16, #tpu.memory_space<vmem>>, vector<256x128xbf16>
    %cst = arith.constant dense<0.000000e+00> : vector<256x128xf32>
    %2 = tpu.matmul %0, %1, %cst {dimension_numbers = #tpu.dot_dimension_numbers<[1], [0], [0], [1], [0, 0, 1, 1], [], []>} : vector<256x256xbf16>, vector<256x128xbf16>, vector<256x128xf32> -> vector<256x128xf32>
    %c0_3 = arith.constant 0 : index
    %c0_4 = arith.constant 0 : index
    %3 = vector.load %arg4[%c0_3, %c0_4] : memref<1x128xf32, #tpu.memory_space<vmem>>, vector<1x128xf32>
    %4 = vector.broadcast %3 : vector<1x128xf32> to vector<256x128xf32>
    %5 = arith.mulf %2, %4 : vector<256x128xf32>
    %c0_5 = arith.constant 0 : index
    %c0_6 = arith.constant 0 : index
    %6 = vector.load %arg5[%c0_5, %c0_6] : memref<1x128xf32, #tpu.memory_space<vmem>>, vector<1x128xf32>
    %7 = vector.broadcast %6 : vector<1x128xf32> to vector<256x128xf32>
    %8 = arith.addf %5, %7 : vector<256x128xf32>
    %cst_7 = arith.constant 0.000000e+00 : f32
    %9 = vector.broadcast %cst_7 : f32 to vector<256x128xf32>
    %10 = arith.maximumf %8, %9 : vector<256x128xf32>
    %11 = arith.truncf %10 : vector<256x128xf32> to vector<256x128xbf16>
    %c0_8 = arith.constant 0 : index
    %c0_9 = arith.constant 0 : index
    %12 = vector.load %arg6[%c0_8, %c0_9] : memref<256x128xbf16, #tpu.memory_space<vmem>>, vector<256x128xbf16>
    tpu.vector_store %arg6[%c0_8, %c0_9], %11 {strides = array<i32>} : memref<256x128xbf16, #tpu.memory_space<vmem>>, vector<256x128xbf16>,
    return
  }
  func.func @transform_0(%arg0: i32, %arg1: i32) -> (i32, i32) {
    %c0_i32 = arith.constant 0 : i32
    %c0_i32_0 = arith.constant 0 : i32
    return %arg0, %c0_i32 : i32, i32
  }
  func.func @transform_1(%arg0: i32, %arg1: i32) -> (i32, i32) {
    %c0_i32 = arith.constant 0 : i32
    %c0_i32_0 = arith.constant 0 : i32
    return %c0_i32, %arg1 : i32, i32
  }
  func.func @transform_2(%arg0: i32, %arg1: i32) -> (i32, i32) {
    %c0_i32 = arith.constant 0 : i32
    %c0_i32_0 = arith.constant 0 : i32
    return %c0_i32, %arg1 : i32, i32
  }
  func.func @transform_3(%arg0: i32, %arg1: i32) -> (i32, i32) {
    %c0_i32 = arith.constant 0 : i32
    %c0_i32_0 = arith.constant 0 : i32
    return %c0_i32, %arg1 : i32, i32
  }
  func.func @transform_4(%arg0: i32, %arg1: i32) -> (i32, i32) {
    %c0_i32 = arith.constant 0 : i32
    return %arg0, %arg1 : i32, i32
  }
}

module attributes {stable_mosaic.version = 11 : i64} {
  func.func @_mm_kernel_single(%arg0: i32, %arg1: i32, %arg2: memref<256x128xbf16, #tpu.memory_space<vmem>>, %arg3: memref<128x64xbf16, #tpu.memory_space<vmem>>, %arg4: memref<1x64xf32, #tpu.memory_space<vmem>>, %arg5: memref<1x64xf32, #tpu.memory_space<vmem>>, %arg6: memref<256x64xbf16, #tpu.memory_space<vmem>>) attributes {dimension_semantics = [#tpu.dimension_semantics<parallel>, #tpu.dimension_semantics<parallel>], iteration_bounds = array<i64: 9, 1>, scalar_prefetch = 0 : i64, scratch_operands = 0 : i64, tpu.core_type = #tpu.core_type<tc>, window_params = [{transform_indices = @transform_0, window_bounds = array<i64: 256, 128>}, {transform_indices = @transform_1, window_bounds = array<i64: 128, 64>}, {transform_indices = @transform_2, window_bounds = array<i64: 1, 64>}, {transform_indices = @transform_3, window_bounds = array<i64: 1, 64>}, {transform_indices = @transform_4, window_bounds = array<i64: 256, 64>}]} {
    %c0 = arith.constant 0 : index
    %c0_0 = arith.constant 0 : index
    %0 = vector.load %arg2[%c0, %c0_0] : memref<256x128xbf16, #tpu.memory_space<vmem>>, vector<256x128xbf16>
    %c0_1 = arith.constant 0 : index
    %c0_2 = arith.constant 0 : index
    %1 = vector.load %arg3[%c0_1, %c0_2] : memref<128x64xbf16, #tpu.memory_space<vmem>>, vector<128x64xbf16>
    %cst = arith.constant dense<0.000000e+00> : vector<256x64xf32>
    %2 = tpu.matmul %0, %1, %cst {dimension_numbers = #tpu.dot_dimension_numbers<[1], [0], [0], [1], [0, 0, 1, 1], [], []>} : vector<256x128xbf16>, vector<128x64xbf16>, vector<256x64xf32> -> vector<256x64xf32>
    %c0_3 = arith.constant 0 : index
    %c0_4 = arith.constant 0 : index
    %3 = vector.load %arg4[%c0_3, %c0_4] : memref<1x64xf32, #tpu.memory_space<vmem>>, vector<1x64xf32>
    %4 = vector.broadcast %3 : vector<1x64xf32> to vector<256x64xf32>
    %5 = arith.mulf %2, %4 : vector<256x64xf32>
    %c0_5 = arith.constant 0 : index
    %c0_6 = arith.constant 0 : index
    %6 = vector.load %arg5[%c0_5, %c0_6] : memref<1x64xf32, #tpu.memory_space<vmem>>, vector<1x64xf32>
    %7 = vector.broadcast %6 : vector<1x64xf32> to vector<256x64xf32>
    %8 = arith.addf %5, %7 : vector<256x64xf32>
    %cst_7 = arith.constant 0.000000e+00 : f32
    %9 = vector.broadcast %cst_7 : f32 to vector<256x64xf32>
    %10 = arith.maximumf %8, %9 : vector<256x64xf32>
    %11 = arith.truncf %10 : vector<256x64xf32> to vector<256x64xbf16>
    %c0_8 = arith.constant 0 : index
    %c0_9 = arith.constant 0 : index
    %12 = vector.load %arg6[%c0_8, %c0_9] : memref<256x64xbf16, #tpu.memory_space<vmem>>, vector<256x64xbf16>
    tpu.vector_store %arg6[%c0_8, %c0_9], %11 {strides = array<i32>} : memref<256x64xbf16, #tpu.memory_space<vmem>>, vector<256x64xbf16>,
    return
  }
  func.func @transform_0(%arg0: i32, %arg1: i32) -> (i32, i32) {
    %c0_i32 = arith.constant 0 : i32
    %c0_i32_0 = arith.constant 0 : i32
    return %arg0, %c0_i32 : i32, i32
  }
  func.func @transform_1(%arg0: i32, %arg1: i32) -> (i32, i32) {
    %c0_i32 = arith.constant 0 : i32
    %c0_i32_0 = arith.constant 0 : i32
    return %c0_i32, %arg1 : i32, i32
  }
  func.func @transform_2(%arg0: i32, %arg1: i32) -> (i32, i32) {
    %c0_i32 = arith.constant 0 : i32
    %c0_i32_0 = arith.constant 0 : i32
    return %c0_i32, %arg1 : i32, i32
  }
  func.func @transform_3(%arg0: i32, %arg1: i32) -> (i32, i32) {
    %c0_i32 = arith.constant 0 : i32
    %c0_i32_0 = arith.constant 0 : i32
    return %c0_i32, %arg1 : i32, i32
  }
  func.func @transform_4(%arg0: i32, %arg1: i32) -> (i32, i32) {
    %c0_i32 = arith.constant 0 : i32
    return %arg0, %arg1 : i32, i32
  }
}

module attributes {stable_mosaic.version = 11 : i64} {
  func.func @_mm_kernel_single(%arg0: i32, %arg1: i32, %arg2: memref<256x64xbf16, #tpu.memory_space<vmem>>, %arg3: memref<64x64xbf16, #tpu.memory_space<vmem>>, %arg4: memref<1x64xf32, #tpu.memory_space<vmem>>, %arg5: memref<1x64xf32, #tpu.memory_space<vmem>>, %arg6: memref<256x64xbf16, #tpu.memory_space<vmem>>) attributes {dimension_semantics = [#tpu.dimension_semantics<parallel>, #tpu.dimension_semantics<parallel>], iteration_bounds = array<i64: 34, 1>, scalar_prefetch = 0 : i64, scratch_operands = 0 : i64, tpu.core_type = #tpu.core_type<tc>, window_params = [{transform_indices = @transform_0, window_bounds = array<i64: 256, 64>}, {transform_indices = @transform_1, window_bounds = array<i64: 64, 64>}, {transform_indices = @transform_2, window_bounds = array<i64: 1, 64>}, {transform_indices = @transform_3, window_bounds = array<i64: 1, 64>}, {transform_indices = @transform_4, window_bounds = array<i64: 256, 64>}]} {
    %c0 = arith.constant 0 : index
    %c0_0 = arith.constant 0 : index
    %0 = vector.load %arg2[%c0, %c0_0] : memref<256x64xbf16, #tpu.memory_space<vmem>>, vector<256x64xbf16>
    %c0_1 = arith.constant 0 : index
    %c0_2 = arith.constant 0 : index
    %1 = vector.load %arg3[%c0_1, %c0_2] : memref<64x64xbf16, #tpu.memory_space<vmem>>, vector<64x64xbf16>
    %cst = arith.constant dense<0.000000e+00> : vector<256x64xf32>
    %2 = tpu.matmul %0, %1, %cst {dimension_numbers = #tpu.dot_dimension_numbers<[1], [0], [0], [1], [0, 0, 1, 1], [], []>} : vector<256x64xbf16>, vector<64x64xbf16>, vector<256x64xf32> -> vector<256x64xf32>
    %c0_3 = arith.constant 0 : index
    %c0_4 = arith.constant 0 : index
    %3 = vector.load %arg4[%c0_3, %c0_4] : memref<1x64xf32, #tpu.memory_space<vmem>>, vector<1x64xf32>
    %4 = vector.broadcast %3 : vector<1x64xf32> to vector<256x64xf32>
    %5 = arith.mulf %2, %4 : vector<256x64xf32>
    %c0_5 = arith.constant 0 : index
    %c0_6 = arith.constant 0 : index
    %6 = vector.load %arg5[%c0_5, %c0_6] : memref<1x64xf32, #tpu.memory_space<vmem>>, vector<1x64xf32>
    %7 = vector.broadcast %6 : vector<1x64xf32> to vector<256x64xf32>
    %8 = arith.addf %5, %7 : vector<256x64xf32>
    %cst_7 = arith.constant 0.000000e+00 : f32
    %9 = vector.broadcast %cst_7 : f32 to vector<256x64xf32>
    %10 = arith.maximumf %8, %9 : vector<256x64xf32>
    %11 = arith.truncf %10 : vector<256x64xf32> to vector<256x64xbf16>
    %c0_8 = arith.constant 0 : index
    %c0_9 = arith.constant 0 : index
    %12 = vector.load %arg6[%c0_8, %c0_9] : memref<256x64xbf16, #tpu.memory_space<vmem>>, vector<256x64xbf16>
    tpu.vector_store %arg6[%c0_8, %c0_9], %11 {strides = array<i32>} : memref<256x64xbf16, #tpu.memory_space<vmem>>, vector<256x64xbf16>,
    return
  }
  func.func @transform_0(%arg0: i32, %arg1: i32) -> (i32, i32) {
    %c0_i32 = arith.constant 0 : i32
    %c0_i32_0 = arith.constant 0 : i32
    return %arg0, %c0_i32 : i32, i32
  }
  func.func @transform_1(%arg0: i32, %arg1: i32) -> (i32, i32) {
    %c0_i32 = arith.constant 0 : i32
    %c0_i32_0 = arith.constant 0 : i32
    return %c0_i32, %arg1 : i32, i32
  }
  func.func @transform_2(%arg0: i32, %arg1: i32) -> (i32, i32) {
    %c0_i32 = arith.constant 0 : i32
    %c0_i32_0 = arith.constant 0 : i32
    return %c0_i32, %arg1 : i32, i32
  }
  func.func @transform_3(%arg0: i32, %arg1: i32) -> (i32, i32) {
    %c0_i32 = arith.constant 0 : i32
    %c0_i32_0 = arith.constant 0 : i32
    return %c0_i32, %arg1 : i32, i32
  }
  func.func @transform_4(%arg0: i32, %arg1: i32) -> (i32, i32) {
    %c0_i32 = arith.constant 0 : i32
    return %arg0, %arg1 : i32, i32
  }
}

module attributes {stable_mosaic.version = 11 : i64} {
  func.func @_mm_kernel_single(%arg0: i32, %arg1: i32, %arg2: memref<224x128xbf16, #tpu.memory_space<vmem>>, %arg3: memref<128x512xbf16, #tpu.memory_space<vmem>>, %arg4: memref<1x512xf32, #tpu.memory_space<vmem>>, %arg5: memref<1x512xf32, #tpu.memory_space<vmem>>, %arg6: memref<224x512xbf16, #tpu.memory_space<vmem>>) attributes {dimension_semantics = [#tpu.dimension_semantics<parallel>, #tpu.dimension_semantics<parallel>], iteration_bounds = array<i64: 1, 8>, scalar_prefetch = 0 : i64, scratch_operands = 0 : i64, tpu.core_type = #tpu.core_type<tc>, window_params = [{transform_indices = @transform_0, window_bounds = array<i64: 224, 128>}, {transform_indices = @transform_1, window_bounds = array<i64: 128, 512>}, {transform_indices = @transform_2, window_bounds = array<i64: 1, 512>}, {transform_indices = @transform_3, window_bounds = array<i64: 1, 512>}, {transform_indices = @transform_4, window_bounds = array<i64: 224, 512>}]} {
    %c0 = arith.constant 0 : index
    %c0_0 = arith.constant 0 : index
    %0 = vector.load %arg2[%c0, %c0_0] : memref<224x128xbf16, #tpu.memory_space<vmem>>, vector<224x128xbf16>
    %c0_1 = arith.constant 0 : index
    %c0_2 = arith.constant 0 : index
    %1 = vector.load %arg3[%c0_1, %c0_2] : memref<128x512xbf16, #tpu.memory_space<vmem>>, vector<128x512xbf16>
    %cst = arith.constant dense<0.000000e+00> : vector<224x512xf32>
    %2 = tpu.matmul %0, %1, %cst {dimension_numbers = #tpu.dot_dimension_numbers<[1], [0], [0], [1], [0, 0, 1, 1], [], []>} : vector<224x128xbf16>, vector<128x512xbf16>, vector<224x512xf32> -> vector<224x512xf32>
    %c0_3 = arith.constant 0 : index
    %c0_4 = arith.constant 0 : index
    %3 = vector.load %arg4[%c0_3, %c0_4] : memref<1x512xf32, #tpu.memory_space<vmem>>, vector<1x512xf32>
    %4 = vector.broadcast %3 : vector<1x512xf32> to vector<224x512xf32>
    %5 = arith.mulf %2, %4 : vector<224x512xf32>
    %c0_5 = arith.constant 0 : index
    %c0_6 = arith.constant 0 : index
    %6 = vector.load %arg5[%c0_5, %c0_6] : memref<1x512xf32, #tpu.memory_space<vmem>>, vector<1x512xf32>
    %7 = vector.broadcast %6 : vector<1x512xf32> to vector<224x512xf32>
    %8 = arith.addf %5, %7 : vector<224x512xf32>
    %9 = arith.truncf %8 : vector<224x512xf32> to vector<224x512xbf16>
    %c0_7 = arith.constant 0 : index
    %c0_8 = arith.constant 0 : index
    %10 = vector.load %arg6[%c0_7, %c0_8] : memref<224x512xbf16, #tpu.memory_space<vmem>>, vector<224x512xbf16>
    tpu.vector_store %arg6[%c0_7, %c0_8], %9 {strides = array<i32>} : memref<224x512xbf16, #tpu.memory_space<vmem>>, vector<224x512xbf16>,
    return
  }
  func.func @transform_0(%arg0: i32, %arg1: i32) -> (i32, i32) {
    %c0_i32 = arith.constant 0 : i32
    %c0_i32_0 = arith.constant 0 : i32
    return %arg0, %c0_i32 : i32, i32
  }
  func.func @transform_1(%arg0: i32, %arg1: i32) -> (i32, i32) {
    %c0_i32 = arith.constant 0 : i32
    %c0_i32_0 = arith.constant 0 : i32
    return %c0_i32, %arg1 : i32, i32
  }
  func.func @transform_2(%arg0: i32, %arg1: i32) -> (i32, i32) {
    %c0_i32 = arith.constant 0 : i32
    %c0_i32_0 = arith.constant 0 : i32
    return %c0_i32, %arg1 : i32, i32
  }
  func.func @transform_3(%arg0: i32, %arg1: i32) -> (i32, i32) {
    %c0_i32 = arith.constant 0 : i32
    %c0_i32_0 = arith.constant 0 : i32
    return %c0_i32, %arg1 : i32, i32
  }
  func.func @transform_4(%arg0: i32, %arg1: i32) -> (i32, i32) {
    %c0_i32 = arith.constant 0 : i32
    return %arg0, %arg1 : i32, i32
  }
}

module attributes {stable_mosaic.version = 11 : i64} {
  func.func @_mm_kernel_single(%arg0: i32, %arg1: i32, %arg2: memref<256x128xbf16, #tpu.memory_space<vmem>>, %arg3: memref<128x224xbf16, #tpu.memory_space<vmem>>, %arg4: memref<1x224xf32, #tpu.memory_space<vmem>>, %arg5: memref<1x224xf32, #tpu.memory_space<vmem>>, %arg6: memref<256x224xbf16, #tpu.memory_space<vmem>>) attributes {dimension_semantics = [#tpu.dimension_semantics<parallel>, #tpu.dimension_semantics<parallel>], iteration_bounds = array<i64: 28, 1>, scalar_prefetch = 0 : i64, scratch_operands = 0 : i64, tpu.core_type = #tpu.core_type<tc>, window_params = [{transform_indices = @transform_0, window_bounds = array<i64: 256, 128>}, {transform_indices = @transform_1, window_bounds = array<i64: 128, 224>}, {transform_indices = @transform_2, window_bounds = array<i64: 1, 224>}, {transform_indices = @transform_3, window_bounds = array<i64: 1, 224>}, {transform_indices = @transform_4, window_bounds = array<i64: 256, 224>}]} {
    %c0 = arith.constant 0 : index
    %c0_0 = arith.constant 0 : index
    %0 = vector.load %arg2[%c0, %c0_0] : memref<256x128xbf16, #tpu.memory_space<vmem>>, vector<256x128xbf16>
    %c0_1 = arith.constant 0 : index
    %c0_2 = arith.constant 0 : index
    %1 = vector.load %arg3[%c0_1, %c0_2] : memref<128x224xbf16, #tpu.memory_space<vmem>>, vector<128x224xbf16>
    %cst = arith.constant dense<0.000000e+00> : vector<256x224xf32>
    %2 = tpu.matmul %0, %1, %cst {dimension_numbers = #tpu.dot_dimension_numbers<[1], [0], [0], [1], [0, 0, 1, 1], [], []>} : vector<256x128xbf16>, vector<128x224xbf16>, vector<256x224xf32> -> vector<256x224xf32>
    %c0_3 = arith.constant 0 : index
    %c0_4 = arith.constant 0 : index
    %3 = vector.load %arg4[%c0_3, %c0_4] : memref<1x224xf32, #tpu.memory_space<vmem>>, vector<1x224xf32>
    %4 = vector.broadcast %3 : vector<1x224xf32> to vector<256x224xf32>
    %5 = arith.mulf %2, %4 : vector<256x224xf32>
    %c0_5 = arith.constant 0 : index
    %c0_6 = arith.constant 0 : index
    %6 = vector.load %arg5[%c0_5, %c0_6] : memref<1x224xf32, #tpu.memory_space<vmem>>, vector<1x224xf32>
    %7 = vector.broadcast %6 : vector<1x224xf32> to vector<256x224xf32>
    %8 = arith.addf %5, %7 : vector<256x224xf32>
    %9 = arith.truncf %8 : vector<256x224xf32> to vector<256x224xbf16>
    %c0_7 = arith.constant 0 : index
    %c0_8 = arith.constant 0 : index
    %10 = vector.load %arg6[%c0_7, %c0_8] : memref<256x224xbf16, #tpu.memory_space<vmem>>, vector<256x224xbf16>
    tpu.vector_store %arg6[%c0_7, %c0_8], %9 {strides = array<i32>} : memref<256x224xbf16, #tpu.memory_space<vmem>>, vector<256x224xbf16>,
    return
  }
  func.func @transform_0(%arg0: i32, %arg1: i32) -> (i32, i32) {
    %c0_i32 = arith.constant 0 : i32
    %c0_i32_0 = arith.constant 0 : i32
    return %arg0, %c0_i32 : i32, i32
  }
  func.func @transform_1(%arg0: i32, %arg1: i32) -> (i32, i32) {
    %c0_i32 = arith.constant 0 : i32
    %c0_i32_0 = arith.constant 0 : i32
    return %c0_i32, %arg1 : i32, i32
  }
  func.func @transform_2(%arg0: i32, %arg1: i32) -> (i32, i32) {
    %c0_i32 = arith.constant 0 : i32
    %c0_i32_0 = arith.constant 0 : i32
    return %c0_i32, %arg1 : i32, i32
  }
  func.func @transform_3(%arg0: i32, %arg1: i32) -> (i32, i32) {
    %c0_i32 = arith.constant 0 : i32
    %c0_i32_0 = arith.constant 0 : i32
    return %c0_i32, %arg1 : i32, i32
  }
  func.func @transform_4(%arg0: i32, %arg1: i32) -> (i32, i32) {
    %c0_i32 = arith.constant 0 : i32
    return %arg0, %arg1 : i32, i32
  }
}

module attributes {stable_mosaic.version = 11 : i64} {
  func.func @_conv3x3_compose_kernel(%arg0: i32, %arg1: memref<8x144xbf16, #tpu.memory_space<vmem>>, %arg2: memref<144x2048xbf16, #tpu.memory_space<vmem>>, %arg3: memref<3x1xf32, #tpu.memory_space<vmem>>, %arg4: memref<1x2048xf32, #tpu.memory_space<vmem>>, %arg5: memref<3x2048xf32, #tpu.memory_space<vmem>>, %arg6: memref<3x2048xf32, #tpu.memory_space<vmem>>) attributes {dimension_semantics = [#tpu.dimension_semantics<parallel>], iteration_bounds = array<i64: 49>, scalar_prefetch = 0 : i64, scratch_operands = 0 : i64, tpu.core_type = #tpu.core_type<tc>, window_params = [{pipeline_mode = #tpu.pipeline_mode<synchronous>, transform_indices = @transform_0, window_bounds = array<i64: 8, 144>}, {transform_indices = @transform_1, window_bounds = array<i64: 144, 2048>}, {pipeline_mode = #tpu.pipeline_mode<synchronous>, transform_indices = @transform_2, window_bounds = array<i64: 3, 1>}, {transform_indices = @transform_3, window_bounds = array<i64: 1, 2048>}, {transform_indices = @transform_4, window_bounds = array<i64: 3, 2048>}, {transform_indices = @transform_5, window_bounds = array<i64: 3, 2048>}]} {
    %c0 = arith.constant 0 : index
    %c0_0 = arith.constant 0 : index
    %0 = vector.load %arg1[%c0, %c0_0] : memref<8x144xbf16, #tpu.memory_space<vmem>>, vector<8x144xbf16>
    %c0_1 = arith.constant 0 : index
    %c0_2 = arith.constant 0 : index
    %1 = vector.load %arg2[%c0_1, %c0_2] : memref<144x2048xbf16, #tpu.memory_space<vmem>>, vector<144x2048xbf16>
    %cst = arith.constant dense<0.000000e+00> : vector<8x2048xf32>
    %2 = tpu.matmul %0, %1, %cst {dimension_numbers = #tpu.dot_dimension_numbers<[1], [0], [0], [1], [0, 0, 1, 1], [], []>} : vector<8x144xbf16>, vector<144x2048xbf16>, vector<8x2048xf32> -> vector<8x2048xf32>
    %3 = vector.extract_strided_slice %2 {offsets = [0, 0], sizes = [3, 2048], strides = [1, 1]} : vector<8x2048xf32> to vector<3x2048xf32>
    %c0_3 = arith.constant 0 : index
    %c0_4 = arith.constant 0 : index
    %4 = vector.load %arg3[%c0_3, %c0_4] : memref<3x1xf32, #tpu.memory_space<vmem>>, vector<3x1xf32>
    %5 = vector.broadcast %4 : vector<3x1xf32> to vector<3x2048xf32>
    %6 = arith.addf %3, %5 : vector<3x2048xf32>
    %7 = math.tanh %6 : vector<3x2048xf32>
    %c0_5 = arith.constant 0 : index
    %c0_6 = arith.constant 0 : index
    %8 = vector.load %arg4[%c0_5, %c0_6] : memref<1x2048xf32, #tpu.memory_space<vmem>>, vector<1x2048xf32>
    %9 = vector.broadcast %8 : vector<1x2048xf32> to vector<3x2048xf32>
    %10 = arith.mulf %7, %9 : vector<3x2048xf32>
    %c0_7 = arith.constant 0 : index
    %c0_8 = arith.constant 0 : index
    %11 = vector.load %arg5[%c0_7, %c0_8] : memref<3x2048xf32, #tpu.memory_space<vmem>>, vector<3x2048xf32>
    %12 = arith.addf %10, %11 : vector<3x2048xf32>
    %c0_9 = arith.constant 0 : index
    %c0_10 = arith.constant 0 : index
    %13 = vector.load %arg6[%c0_9, %c0_10] : memref<3x2048xf32, #tpu.memory_space<vmem>>, vector<3x2048xf32>
    tpu.vector_store %arg6[%c0_9, %c0_10], %12 {strides = array<i32>} : memref<3x2048xf32, #tpu.memory_space<vmem>>, vector<3x2048xf32>,
    return
  }
  func.func @transform_0(%arg0: i32) -> (i32, i32) {
    %c0_i32 = arith.constant 0 : i32
    %c0_i32_0 = arith.constant 0 : i32
    %c0_i32_1 = arith.constant 0 : i32
    return %c0_i32, %c0_i32_0 : i32, i32
  }
  func.func @transform_1(%arg0: i32) -> (i32, i32) {
    %c0_i32 = arith.constant 0 : i32
    %c0_i32_0 = arith.constant 0 : i32
    return %c0_i32, %arg0 : i32, i32
  }
  func.func @transform_2(%arg0: i32) -> (i32, i32) {
    %c0_i32 = arith.constant 0 : i32
    %c0_i32_0 = arith.constant 0 : i32
    %c0_i32_1 = arith.constant 0 : i32
    return %c0_i32, %c0_i32_0 : i32, i32
  }
  func.func @transform_3(%arg0: i32) -> (i32, i32) {
    %c0_i32 = arith.constant 0 : i32
    %c0_i32_0 = arith.constant 0 : i32
    return %c0_i32, %arg0 : i32, i32
  }
  func.func @transform_4(%arg0: i32) -> (i32, i32) {
    %c0_i32 = arith.constant 0 : i32
    %c0_i32_0 = arith.constant 0 : i32
    return %c0_i32, %arg0 : i32, i32
  }
  func.func @transform_5(%arg0: i32) -> (i32, i32) {
    %c0_i32 = arith.constant 0 : i32
    %c0_i32_0 = arith.constant 0 : i32
    return %c0_i32, %arg0 : i32, i32
  }
}

</mosaic_0001>

<bundles_post_ra>
// kernel: generator_forward.10
= control target key start
LH: loop header
LB: loop body
LE: loop exit
PB: predicated region body
PF: predicated region fallthrough
CT: control target
= control target key end

     0   :  { %9 = vsyncpa [#allocation3], 0  ;;  %s231_s15 = smov [#allocation2]   ;;  %s295_s0 = inlined_call_operand.vmem [shape: bf16[8,128], index: 0, kind: input, shape index: {}]   ;;  %s296_s1 = inlined_call_operand.vmem [shape: bf16[128,64], index: 1, kind: input, shape index: {}]   ;;  %s297_s2 = inlined_call_operand.vmem [shape: f32[1,64], index: 2, kind: input, shape index: {}]   ;;  %s298_s3 = inlined_call_operand.hbm [shape: f32[1,64], index: 3, kind: input, shape index: {}]   ;;  %s299_s4 = inlined_call_operand.vmem [shape: bf16[8,64], index: 4, kind: output, shape index: {}]  }
   0x1   :  { %s22_s16 = sshll.u32 %s231_s15, 4  ;;  %s23_s16 = int_to_ptr.vmem [resolvable:$true] %s22_s16 }
   0x2   :  { %s217_s17 = scalar_lea.vmem %s23_s16, 16  ;;  %s221_s18 = scalar_lea.vmem %s23_s16, 32 }
   0x3   :  { %p218_p0 = scmp.ne.s32.totalorder %s23_s16, %s217_s17  ;;  %p222_p1 = scmp.lt.s32.totalorder %s23_s16, %s23_s16 }
   0x4   :  { %p223_p2 = scmp.lt.s32.totalorder %s221_s18, %s217_s17 }
   0x6   :  { %p224_p3 = por %p223_p2, %p222_p1 }
   0x8   :  { %p225_p4 = pnand %p224_p3, %p218_p0 }
   0xa   :  { %228 = shalt.err (!%p225_p4)
}
   0xb   :  { %25 = dma.hbm_to_vmem [thread:$0]  %s298_s3, 16, %s23_s16, [#allocation3]  }
   0xc   :  { %229 = dma.done.wait [#allocation3], 16  }
   0xd   :  { %230 = vsyncadd [#allocation3], 4294967280  ;;  %v232_v0 = vmov 0.0   ;;  %vm233_vm0 = vmmov 0   ;;  %v201_v1 = vld [vmem:[%s296_s1 + $0x38] sm:$0xff]   ;;  %v202_v2 = vld [vmem:[%s296_s1 + $0x30] sm:$0xff]  }
   0xe   :  { %178 = vmatprep.subr.bf16.mxu0 %v232_v0  ;;  %194 = vmatprep.mubr.msk.bf16.mxu0 %vm233_vm0, %v232_v0  ;;  %v203_v3 = vld [vmem:[%s296_s1 + $0x28] sm:$0xff]   ;;  %v204_v4 = vld [vmem:[%s296_s1 + $0x20] sm:$0xff]   ;;  %v205_v5 = vld [vmem:[%s296_s1 + $0x18] sm:$0xff]   ;;  %vm152_vm1 = vcmask 519168  }
   0xf   :  { %179 = vmatpush3.bf16.msra.mxu0 %v201_v1  ;;  %v206_v6 = vld [vmem:[%s296_s1 + $0x10] sm:$0xff]   ;;  %v207_v7 = vld [vmem:[%s296_s1 + $0x8] sm:$0xff]   ;;  %v208_v8 = vld [vmem:[%s296_s1] sm:$0xff]  }
  0x10   :  { %180 = vmatprep.subr.bf16.mxu0 %v232_v0  ;;  %v30_v9 = vld [vmem:[%s295_s0] sm:$0xf] }
  0x11   :  { %v167_v10 = vld [vmem:[%s297_s2] ss:$0 sm:$0xff] }
  0x12   :  { %v168_v12 = vld [vmem:[#allocation2] ss:$0 sm:$0xff] }
  0x13   :  { %181 = vmatpush3.bf16.msra.mxu0 %v202_v2 }
  0x14   :  { %182 = vmatprep.subr.bf16.mxu0 %v232_v0 }
  0x17   :  { %183 = vmatpush3.bf16.msra.mxu0 %v203_v3 }
  0x18   :  { %184 = vmatprep.subr.bf16.mxu0 %v232_v0 }
  0x1b   :  { %185 = vmatpush3.bf16.msra.mxu0 %v204_v4 }
  0x1c   :  { %186 = vmatprep.subr.bf16.mxu0 %v232_v0 }
  0x1f   :  { %187 = vmatpush3.bf16.msra.mxu0 %v205_v5 }
  0x20   :  { %188 = vmatprep.subr.bf16.mxu0 %v232_v0 }
  0x23   :  { %189 = vmatpush3.bf16.msra.mxu0 %v206_v6 }
  0x24   :  { %190 = vmatprep.subr.bf16.mxu0 %v232_v0 }
  0x27   :  { %191 = vmatpush3.bf16.msra.mxu0 %v207_v7 }
  0x28   :  { %192 = vmatprep.subr.bf16.mxu0 %v232_v0 }
  0x2b   :  { %193 = vmatpush3.bf16.msra.mxu0 %v208_v8 }
  0x2e   :  { %195 = vmatmul.mubr.bf16.vlgmr.msra.gmra.mxu0 %v30_v9 }
  0xee   :  { %v129_v11 = vpop.f32.mrf.mxu0 }
  0xef   :  { %v142_v13 = vmul.f32 %v167_v10, %v129_v11 }
  0xf0   :  { %v196_v14 = vpop.f32.mrf.mxu0 }
  0xf1   :  { %v150_v15 = vadd.f32 %v168_v12, %v142_v13 }
  0xf2   :  { %v132_v16 = vpop.f32.mrf.mxu0 }
  0xf3   :  { %v151_v17 = vpack.c.bf16 %v150_v15, %v150_v15 }
  0xf4   :  { %v197_v18 = vpop.f32.mrf.mxu0 }
  0xf5   :  { %153 = vst.msk [vmem:[%s299_s4] sm:$0xf] %vm152_vm1, %v151_v17 }
  0xf6   :  { %158 = vsyncpa [#allocation3], 1 }

// kernel: generator_forward.11
= control target key start
LH: loop header
LB: loop body
LE: loop exit
PB: predicated region body
PF: predicated region fallthrough
CT: control target
= control target key end

     0   :  { %9 = vsyncpa [#allocation3], 0  ;;  %s1140_s0 = inlined_call_operand.vmem [shape: bf16[8,64], index: 0, kind: input, shape index: {}]   ;;  %s1141_s1 = inlined_call_operand.hbm [shape: bf16[64,2048], index: 1, kind: input, shape index: {}]   ;;  %s1142_s2 = inlined_call_operand.vmem [shape: f32[1,2048], index: 2, kind: input, shape index: {}]   ;;  %s1143_s3 = inlined_call_operand.hbm [shape: f32[1,2048], index: 3, kind: input, shape index: {}]   ;;  %s1144_s4 = inlined_call_operand.vmem [shape: bf16[8,2048], index: 4, kind: output, shape index: {}]  }
   0x1   :  { %11 = vsyncpa [#allocation3 + $0x1], 0 }
   0x2   :  { %12 = vsyncpa [#allocation5], 0 }
   0x3   :  { %14 = vsyncpa [#allocation5 + $0x1], 0  ;;  %s984_s15 = smov 0   ;;  %s986_s16 = smov 0  }
   0x4   :  { %s988_s17 = smov 0   ;;  %s990_s18 = smov 0  }
   0x5   :  { %s992_s19 = smov 0   ;;  %s994_s20 = smov 0  }
   0x6 LB: > { %s710_s21 = sadd.s32 4294967295, %s951_s20   ;;  %s29_s22 = sadd.s32 1, %s947_s19  ;;  %s951_s20 = sphi %s994_s20, %s20_s20   ;;  %s947_s19 = sphi %s992_s19, %s1153_s19   ;;  %s943_s18 = sphi %s990_s18, %s1152_s18   ;;  %s939_s17 = sphi %s988_s17, %s1151_s17   ;;  %s935_s16 = sphi %s986_s16, %s1150_s16   ;;  %s931_s15 = sphi %s984_s15, %s1149_s15  }
   0x7   : > { %p30_p0 = scmp.ge.s32.totalorder %s29_s22, 4  ;;  %s65_s23 = sadd.s32 1, %s939_s17 }
   0x8   : > { %p72_p1 = scmp.ne.s32.totalorder %s939_s17, %s935_s16  ;;  %p73_p2 = scmp.eq.s32.totalorder %s951_s20, 0 }
   0x9   : > { %s1155_s22 = smov (%p30_p0, %s29_s22), 0  ;;  %p78_p4 = scmp.ne.s32.totalorder %s935_s16, %s931_s15 }
   0xa   : > { %p1020_p3 = por %p73_p2, %p72_p1  ;;  %s62_s25 = ssub.s32 %s947_s19, %s1155_s22 }
   0xb   : > { %p79_p5 = scmp.eq.s32.totalorder %s710_s21, 0  ;;  %p63_p6 = scmp.eq.s32.totalorder %s62_s25, 0 }
   0xc   : > { %p764_p8 = scmp.lt.s32.totalorder %s951_s20, 4  ;;  %s1036_s28 = sand.u32 1, %s939_s17  }
   0xd   : > { %p1027_p7 = por %p79_p5, %p78_p4  ;;  %s749_s29 = sshll.u32 %s947_s19, 8 }
   0xe   : > { %s1033_s27 = scalar_select %p63_p6, %s939_s17, %s65_s23  }
   0xf   : > { %s715_s30 = sshll.u32 %s1036_s28, 7  ;;  %s199_s7 = scalar_lea.hbm %s1141_s1, %s749_s29 }
  0x10   : > { %s193_s8 = scalar_lea.vmem [#allocation2], %s715_s30  ;;  %p1045_p9 = pnand %p764_p8, %p1020_p3 }
  0x11   : > { %s200_s9 = sshll.u32 %s193_s8, 4  ;;  %p721_p10 = scmp.ge.s32.totalorder %s951_s20, 1  ;;  %s201_s9 = int_to_ptr.vmem [resolvable:$true] %s200_s9 }
  0x12   : > { %s190_s11 = scalar_lea.sflag [#allocation3], %s1036_s28  ;;  %p843_p11 = pneg %p1045_p9 }
  0x13   : > { %s854_s12 = scalar_lea.vmem %s201_s9, 2048  ;;  %s953_s13 = smov [#allocation2]  }
  0x14   : > { %p855_p12 = scmp.ne.s32.totalorder %s201_s9, %s854_s12  ;;  %s859_s14 = sshll.u32 %s953_s13, 4  ;;  %s860_s14 = int_to_ptr.vmem [resolvable:$false] %s859_s14 }
  0x15   : > { %s861_s15 = scalar_lea.vmem %s860_s14, 4096  ;;  %p862_p1 = scmp.lt.s32.totalorder %s201_s9, %s860_s14 }
  0x16   : > { %p857_p13 = pnand %p855_p12, %p843_p11  ;;  %p863_p2 = scmp.lt.s32.totalorder %s861_s15, %s854_s12 }
  0x18   : > { %p858_p0 = pneg %p857_p13  ;;  %p864_p3 = por %p863_p2, %p862_p1 }
  0x1a   : > { %p865_p4 = pnand %p864_p3, %p858_p0 }
  0x1c   : > { %868 = shalt.err (!%p865_p4)
}
  0x1d   : > { %s954_s21 = smov 1024   ;;  %s955_s23 = smov 256  }
  0x1e   : > { %s956_s24 = smov 16   ;;  %p235_p5 = scmp.lt.s32.totalorder %s951_s20, 5 }
  0x1f   : > { %760 = dma.hbm_to_vmem [thread:$0]  (!%p1045_p9), %s199_s7, 2048, %s201_s9, %s190_s11, %s954_s21, %s955_s23, %s956_s24  }
  0x20   : > { %s718_s25 = sshll.u32 %s1036_s28, 2  ;;  %s750_s29 = sshll.u32 %s947_s19, 6 }
  0x21   : > { %p1063_p6 = pnand %p721_p10, %p235_p5  ;;  %s228_s8 = scalar_lea.hbm %s1143_s3, %s750_s29 }
  0x22   : > { %s222_s12 = scalar_lea.vmem [#allocation4], %s718_s25  ;;  %s219_s14 = scalar_lea.sflag [#allocation5], %s1036_s28 }
  0x23   : > { %s230_s13 = sshll.u32 %s222_s12, 4  ;;  %s957_s7 = smov [#allocation4]   ;;  %s231_s13 = int_to_ptr.vmem [resolvable:$true] %s230_s13 }
  0x24   : > { %s882_s15 = scalar_lea.vmem %s231_s13, 64  ;;  %s887_s9 = sshll.u32 %s957_s7, 4  ;;  %s888_s9 = int_to_ptr.vmem [resolvable:$false] %s887_s9 }
  0x25   : > { %p883_p8 = scmp.ne.s32.totalorder %s231_s13, %s882_s15  ;;  %s889_s11 = scalar_lea.vmem %s888_s9, 128 }
  0x26   : > { %p890_p10 = scmp.lt.s32.totalorder %s231_s13, %s888_s9  ;;  %p891_p0 = scmp.lt.s32.totalorder %s889_s11, %s882_s15 }
  0x27   : > { %p885_p12 = pnand %p883_p8, %p843_p11 }
  0x28   : > { %p892_p1 = por %p891_p0, %p890_p10 }
  0x29   : > { %p886_p13 = pneg %p885_p12 }
  0x2b   : > { %p893_p2 = pnand %p892_p1, %p886_p13 }
  0x2d   : > { %896 = shalt.err (!%p893_p2)
}
  0x2e   : > { %763 = dma.hbm_to_vmem [thread:$0]  (!%p1045_p9), %s228_s8, 64, %s231_s13, %s219_s14  }
  0x2f   : > { %239 = sbr.rel (%p1063_p6) target bundleno = 276 (0x114), region = 36  ;;  %s241_s28 = sand.u32 (!%p1063_p6), 1, %s935_s16  }
  0x30   : > { %s722_s21 = sshll.u32 (!%p1063_p6), %s241_s28, 7  ;;  %s242_s23 = scalar_lea.sflag (!%p1063_p6), [#allocation3], %s241_s28 }
  0x31   : > { %s1079_s24 = scalar_lea.vmem (!%p1063_p6), [#allocation2], %s722_s21 }
  0x34   : > { %922 = dma.done.wait (%p1027_p7), %s242_s23, 2048  }
  0x35   : > { %924 = vsyncadd (%p1027_p7), %s242_s23, 4294965248  ;;  %s723_s25 = sshll.u32 %s241_s28, 2  ;;  %s251_s29 = scalar_lea.sflag [#allocation5], %s241_s28 }
  0x36   : > { %s1085_s10 = scalar_lea.vmem [#allocation4], %s723_s25 }
  0x37   : > { %926 = dma.done.wait (%p1027_p7), %s251_s29, 64  }
  0x38   : > { %928 = vsyncadd (%p1027_p7), %s251_s29, 4294967232  ;;  %v958_v0 = vmov 0   ;;  %v817_v1 = vld [vmem:[%s1079_s24 + $0x64] ss:$16 sps:$4 sm:$0xff]   ;;  %v819_v2 = vld [vmem:[%s1079_s24 + $0x6c] ss:$16 sps:$4 sm:$0xff]   ;;  %v503_v18 = vlaneseq }
  0x39   : > { %451 = vmatprep.mubr.bf16.mxu0 %v958_v0  ;;  %492 = vmatprep.mubr.bf16.mxu1 %v958_v0  ;;  %v821_v3 = vld [vmem:[%s1079_s24 + $0x60] ss:$16 sps:$4 sm:$0xff]   ;;  %v822_v4 = vld [vmem:[%s1079_s24 + $0x68] ss:$16 sps:$4 sm:$0xff]   ;;  %v823_v5 = vld [vmem:[%s1079_s24 + $0x44] ss:$16 sps:$4 sm:$0xff]  }
  0x3a   : > { %427 = vmatprep.subr.bf16.mxu0 %v817_v1  ;;  %468 = vmatprep.subr.bf16.mxu1 %v819_v2  ;;  %v825_v6 = vld [vmem:[%s1079_s24 + $0x4c] ss:$16 sps:$4 sm:$0xff]   ;;  %v827_v7 = vld [vmem:[%s1079_s24 + $0x40] ss:$16 sps:$4 sm:$0xff]   ;;  %v828_v8 = vld [vmem:[%s1079_s24 + $0x48] ss:$16 sps:$4 sm:$0xff]  }
  0x3b   : > { %428 = vmatpush1.bf16.msra.mxu0 %v821_v3  ;;  %469 = vmatpush1.bf16.msra.mxu1 %v822_v4  ;;  %v829_v9 = vld [vmem:[%s1079_s24 + $0x24] ss:$16 sps:$4 sm:$0xff]   ;;  %v831_v10 = vld [vmem:[%s1079_s24 + $0x2c] ss:$16 sps:$4 sm:$0xff]   ;;  %v833_v11 = vld [vmem:[%s1079_s24 + $0x20] ss:$16 sps:$4 sm:$0xff]  }
  0x3c   : > { %429 = vmatprep.subr.bf16.mxu0 %v823_v5  ;;  %470 = vmatprep.subr.bf16.mxu1 %v825_v6  ;;  %v834_v12 = vld [vmem:[%s1079_s24 + $0x28] ss:$16 sps:$4 sm:$0xff]   ;;  %v835_v13 = vld [vmem:[%s1079_s24 + $0x4] ss:$16 sps:$4 sm:$0xff]   ;;  %v837_v14 = vld [vmem:[%s1079_s24 + $0xc] ss:$16 sps:$4 sm:$0xff]  }
  0x3d   : > { %v839_v15 = vld [vmem:[%s1079_s24] ss:$16 sps:$4 sm:$0xff]   ;;  %v840_v16 = vld [vmem:[%s1079_s24 + $0x8] ss:$16 sps:$4 sm:$0xff]   ;;  %vm415_vm0 = vcmask 523264   ;;  %s724_s5 = sshll.u32 %s943_s18, 2 }
  0x3e   : > { %v318_v17 = vld [vmem:[%s1140_s0] sm:$0xf]  ;;  %p302_p7 = scmp.lt.s32.totalorder %s724_s5, 15  ;;  %v504_v19 = vshrl.u32 %v503_v18, 7 }
  0x3f   : > { %430 = vmatpush1.bf16.msra.mxu0 %v827_v7  ;;  %471 = vmatpush1.bf16.msra.mxu1 %v828_v8  ;;  %v527_v26 = vld [vmem:[%s1085_s10] sm:$0xf] }
  0x40   : > { %431 = vmatprep.subr.bf16.mxu0 %v829_v9  ;;  %472 = vmatprep.subr.bf16.mxu1 %v831_v10  ;;  %s1157_s5 = smov (!%p302_p7, %s724_s5), 15  ;;  %v505_v20 = vsub.s32 0, %v504_v19  ;;  %v513_v21 = vsub.s32 2, %v504_v19  ;;  %v509_v23 = vsub.s32 1, %v504_v19  ;;  %v517_v24 = vsub.s32 3, %v504_v19 }
  0x41   : > { %s304_s12 = scalar_lea.vmem %s1142_s2, %s1157_s5  ;;  %s726_s18 = sshll.u32 %s1157_s5, 2 }
  0x42   : > { %v501_v22 = vld [vmem:[%s304_s12] sm:$0xf]  ;;  %v532_v31 = vrot.slane %v527_v26, %v505_v20  ;;  %v540_v33 = vrot.slane %v527_v26, %v513_v21  ;;  %v536_v36 = vrot.slane %v527_v26, %v509_v23  ;;  %v544_v37 = vrot.slane %v527_v26, %v517_v24  ;;  %s315_s15 = scalar_lea.vmem %s1144_s4, %s726_s18 }
  0x43   : > { %432 = vmatpush1.bf16.msra.mxu0 %v833_v11  ;;  %473 = vmatpush1.bf16.msra.mxu1 %v834_v12  ;;  %v506_v25 = vrot.slane %v501_v22, %v505_v20  ;;  %v514_v27 = vrot.slane %v501_v22, %v513_v21  ;;  %v510_v28 = vrot.slane %v501_v22, %v509_v23 }
  0x44   : > { %433 = vmatprep.subr.bf16.mxu0 %v835_v13  ;;  %474 = vmatprep.subr.bf16.mxu1 %v837_v14  ;;  %v518_v29 = vrot.slane %v501_v22, %v517_v24 }
  0x47   : > { %434 = vmatpush1.bf16.msra.mxu0 %v839_v15  ;;  %475 = vmatpush1.bf16.msra.mxu1 %v840_v16 }
  0x4a   : > { %743 = vmatmul.mubr.msk.bf16.vlgmr.msra.gmra.mxu0 %vm415_vm0, %v318_v17  ;;  %744 = vmatmul.mubr.msk.bf16.vlgmr.msra.gmra.mxu1 %vm415_vm0, %v318_v17 }
 0x10a   : > { %v453_v30 = vpop.f32.mrf.mxu0  ;;  %v494_v32 = vpop.f32.mrf.mxu1 }
 0x10b   : > { %v523_v34 = vmul.f32 %v506_v25, %v453_v30  ;;  %v525_v35 = vmul.f32 %v514_v27, %v494_v32 }
 0x10c   : > { %v455_v38 = vpop.f32.mrf.mxu0  ;;  %v496_v39 = vpop.f32.mrf.mxu1 }
 0x10d   : > { %v524_v40 = vmul.f32 %v510_v28, %v455_v38  ;;  %v526_v41 = vmul.f32 %v518_v29, %v496_v39  ;;  %v549_v44 = vadd.f32 %v532_v31, %v523_v34  ;;  %v551_v45 = vadd.f32 %v540_v33, %v525_v35 }
 0x10e   : > { %v457_v42 = vpop.f32.mrf.mxu0  ;;  %v498_v43 = vpop.f32.mrf.mxu1 }
 0x10f   : > { %v550_v46 = vadd.f32 %v536_v36, %v524_v40  ;;  %v552_v47 = vadd.f32 %v544_v37, %v526_v41 }
 0x110   : > { %v458_v48 = vpop.f32.mrf.mxu0  ;;  %v499_v49 = vpop.f32.mrf.mxu1 }
 0x111   : > { %v751_v50 = vpack.c.bf16 %v550_v46, %v549_v44  ;;  %v752_v51 = vpack.c.bf16 %v552_v47, %v551_v45 }
 0x113   : > { %569 = vst [vmem:[%s315_s15] sm:$0xff] %v751_v50  ;;  %570 = vst [vmem:[%s315_s15 + $0x8] sm:$0xff] %v752_v51 }
 0x114 PF: > { %s20_s20 = sadd.s32 1, %s951_s20   ;;  %s1149_s15 = smov %s935_s16 }
 0x115   : > { %p17_p9 = scmp.ge.s32.totalorder %s20_s20, 6   ;;  %s1150_s16 = smov %s939_s17 }
 0x116   : > { %s1151_s17 = smov %s1033_s27  ;;  %s1152_s18 = smov %s947_s19 }
 0x117   : > { %s1153_s19 = smov %s1155_s22  ;;  %19 = sbr.rel (!%p17_p9) target bundleno = 6 (0x6), region = 95 }
 0x11c   :  { %601 = vsyncpa [#allocation3], 1 }
 0x11d   :  { %603 = vsyncpa [#allocation3 + $0x1], 1 }
 0x11e   :  { %604 = vsyncpa [#allocation5], 1 }
 0x11f   :  { %606 = vsyncpa [#allocation5 + $0x1], 1 }

// kernel: generator_forward.12
= control target key start
LH: loop header
LB: loop body
LE: loop exit
PB: predicated region body
PF: predicated region fallthrough
CT: control target
= control target key end

     0   :  { %s2412_s1 = inlined_call_operand.vmem [shape: bf16[512,512], index: 1, kind: input, shape index: {}]   ;;  %s2413_s0 = inlined_call_operand.vmem [shape: bf16[56,512], index: 0, kind: input, shape index: {}]   ;;  %s2414_s2 = inlined_call_operand.vmem [shape: f32[1,512], index: 2, kind: input, shape index: {}]   ;;  %s2415_s3 = inlined_call_operand.vmem [shape: f32[1,512], index: 3, kind: input, shape index: {}]   ;;  %s2416_s4 = inlined_call_operand.vmem [shape: bf16[56,512], index: 4, kind: output, shape index: {}]  }
   0x1   :  { %v1563_v0 = vld [vmem:[%s2412_s1 + $0xe4] ss:$16 sps:$4 sm:$0xff]   ;;  %v1567_v2 = vld [vmem:[%s2412_s1 + $0xe0] ss:$16 sps:$4 sm:$0xff]   ;;  %v1960_v51 = vld [vmem:[%s2413_s0 + $0xc] ss:$16 sps:$4 sm:$0xff]  }
   0x2   :  { %v1565_v1 = vld [vmem:[%s2412_s1 + $0x2e4] ss:$16 sps:$4 sm:$0xff]   ;;  %873 = vmatprep.subr.bf16.mxu0 %v1563_v0  ;;  %v1568_v3 = vld [vmem:[%s2412_s1 + $0x2e0] ss:$16 sps:$4 sm:$0xff]   ;;  %976 = vmatprep.mubr.bf16.mxu1 %v1960_v51 }
   0x3   :  { %944 = vmatprep.subr.bf16.mxu1 %v1565_v1  ;;  %v1569_v4 = vld [vmem:[%s2412_s1 + $0xc4] ss:$16 sps:$4 sm:$0xff]   ;;  %874 = vmatpush1.bf16.msra.mxu0 %v1567_v2  ;;  %v1573_v6 = vld [vmem:[%s2412_s1 + $0xc0] ss:$16 sps:$4 sm:$0xff]   ;;  %v1667_v2 = vld [vmem:[%s2412_s1 + $0xec] ss:$16 sps:$4 sm:$0xff]  }
   0x4   :  { %945 = vmatpush1.bf16.msra.mxu1 %v1568_v3  ;;  %v1571_v5 = vld [vmem:[%s2412_s1 + $0x2c4] ss:$16 sps:$4 sm:$0xff]   ;;  %875 = vmatprep.subr.bf16.mxu0 %v1569_v4  ;;  %v1574_v7 = vld [vmem:[%s2412_s1 + $0x2c0] ss:$16 sps:$4 sm:$0xff]   ;;  %v1670_v3 = vld [vmem:[%s2412_s1 + $0x2ec] ss:$16 sps:$4 sm:$0xff]  }
   0x5   :  { %946 = vmatprep.subr.bf16.mxu1 %v1571_v5  ;;  %v1575_v8 = vld [vmem:[%s2412_s1 + $0xa4] ss:$16 sps:$4 sm:$0xff]   ;;  %v1579_v10 = vld [vmem:[%s2412_s1 + $0xa0] ss:$16 sps:$4 sm:$0xff]   ;;  %v2020_v5 = vld [vmem:[%s2413_s0 + $0x8] ss:$16 sps:$4 sm:$0xff]  }
   0x6   :  { %v1577_v9 = vld [vmem:[%s2412_s1 + $0x2a4] ss:$16 sps:$4 sm:$0xff]   ;;  %v1580_v11 = vld [vmem:[%s2412_s1 + $0x2a0] ss:$16 sps:$4 sm:$0xff]  }
   0x7   :  { %876 = vmatpush1.bf16.msra.mxu0 %v1573_v6  ;;  %v1581_v12 = vld [vmem:[%s2412_s1 + $0x84] ss:$16 sps:$4 sm:$0xff]   ;;  %v1585_v14 = vld [vmem:[%s2412_s1 + $0x80] ss:$16 sps:$4 sm:$0xff]   ;;  %v1665_v6 = vld [vmem:[%s2412_s1 + $0xe8] ss:$16 sps:$4 sm:$0xff]  }
   0x8   :  { %947 = vmatpush1.bf16.msra.mxu1 %v1574_v7  ;;  %877 = vmatprep.subr.bf16.mxu0 %v1575_v8  ;;  %v1583_v13 = vld [vmem:[%s2412_s1 + $0x284] ss:$16 sps:$4 sm:$0xff]   ;;  %v1586_v15 = vld [vmem:[%s2412_s1 + $0x280] ss:$16 sps:$4 sm:$0xff]   ;;  %v1668_v7 = vld [vmem:[%s2412_s1 + $0x2e8] ss:$16 sps:$4 sm:$0xff]  }
   0x9   :  { %948 = vmatprep.subr.bf16.mxu1 %v1577_v9  ;;  %v1587_v16 = vld [vmem:[%s2412_s1 + $0x64] ss:$16 sps:$4 sm:$0xff]   ;;  %v1591_v18 = vld [vmem:[%s2412_s1 + $0x60] ss:$16 sps:$4 sm:$0xff]   ;;  %v1673_v8 = vld [vmem:[%s2412_s1 + $0xcc] ss:$16 sps:$4 sm:$0xff]  }
   0xa   :  { %v1589_v17 = vld [vmem:[%s2412_s1 + $0x264] ss:$16 sps:$4 sm:$0xff]   ;;  %v1592_v19 = vld [vmem:[%s2412_s1 + $0x260] ss:$16 sps:$4 sm:$0xff]   ;;  %v1676_v9 = vld [vmem:[%s2412_s1 + $0x2cc] ss:$16 sps:$4 sm:$0xff]  }
   0xb   :  { %878 = vmatpush1.bf16.msra.mxu0 %v1579_v10  ;;  %v1593_v20 = vld [vmem:[%s2412_s1 + $0x44] ss:$16 sps:$4 sm:$0xff]   ;;  %v1597_v22 = vld [vmem:[%s2412_s1 + $0x40] ss:$16 sps:$4 sm:$0xff]   ;;  %v1671_v10 = vld [vmem:[%s2412_s1 + $0xc8] ss:$16 sps:$4 sm:$0xff]  }
   0xc   :  { %949 = vmatpush1.bf16.msra.mxu1 %v1580_v11  ;;  %879 = vmatprep.subr.bf16.mxu0 %v1581_v12  ;;  %v1595_v21 = vld [vmem:[%s2412_s1 + $0x244] ss:$16 sps:$4 sm:$0xff]   ;;  %v1598_v23 = vld [vmem:[%s2412_s1 + $0x240] ss:$16 sps:$4 sm:$0xff]   ;;  %v1674_v11 = vld [vmem:[%s2412_s1 + $0x2c8] ss:$16 sps:$4 sm:$0xff]  }
   0xd   :  { %950 = vmatprep.subr.bf16.mxu1 %v1583_v13  ;;  %v1599_v24 = vld [vmem:[%s2412_s1 + $0x24] ss:$16 sps:$4 sm:$0xff]   ;;  %v1603_v26 = vld [vmem:[%s2412_s1 + $0x20] ss:$16 sps:$4 sm:$0xff]   ;;  %v1679_v12 = vld [vmem:[%s2412_s1 + $0xac] ss:$16 sps:$4 sm:$0xff]  }
   0xe   :  { %v1601_v25 = vld [vmem:[%s2412_s1 + $0x224] ss:$16 sps:$4 sm:$0xff]   ;;  %v1604_v27 = vld [vmem:[%s2412_s1 + $0x220] ss:$16 sps:$4 sm:$0xff]   ;;  %v1682_v13 = vld [vmem:[%s2412_s1 + $0x2ac] ss:$16 sps:$4 sm:$0xff]  }
   0xf   :  { %880 = vmatpush1.bf16.msra.mxu0 %v1585_v14  ;;  %v1605_v28 = vld [vmem:[%s2412_s1 + $0x4] ss:$16 sps:$4 sm:$0xff]   ;;  %v1609_v30 = vld [vmem:[%s2412_s1] ss:$16 sps:$4 sm:$0xff]   ;;  %v1677_v14 = vld [vmem:[%s2412_s1 + $0xa8] ss:$16 sps:$4 sm:$0xff]  }
  0x10   :  { %951 = vmatpush1.bf16.msra.mxu1 %v1586_v15  ;;  %881 = vmatprep.subr.bf16.mxu0 %v1587_v16  ;;  %v1607_v29 = vld [vmem:[%s2412_s1 + $0x204] ss:$16 sps:$4 sm:$0xff]   ;;  %v1610_v31 = vld [vmem:[%s2412_s1 + $0x200] ss:$16 sps:$4 sm:$0xff]   ;;  %v1680_v15 = vld [vmem:[%s2412_s1 + $0x2a8] ss:$16 sps:$4 sm:$0xff]  }
  0x11   :  { %952 = vmatprep.subr.bf16.mxu1 %v1589_v17  ;;  %v1611_v32 = vld [vmem:[%s2412_s1 + $0x1e4] ss:$16 sps:$4 sm:$0xff]   ;;  %v1615_v34 = vld [vmem:[%s2412_s1 + $0x1e0] ss:$16 sps:$4 sm:$0xff]   ;;  %v2062_v17 = vld [vmem:[%s2413_s0 + $0x2c] ss:$16 sps:$4 sm:$0xff]  }
  0x12   :  { %v1613_v33 = vld [vmem:[%s2412_s1 + $0x3e4] ss:$16 sps:$4 sm:$0xff]   ;;  %v1616_v35 = vld [vmem:[%s2412_s1 + $0x3e0] ss:$16 sps:$4 sm:$0xff]  }
  0x13   :  { %882 = vmatpush1.bf16.msra.mxu0 %v1591_v18  ;;  %v1617_v36 = vld [vmem:[%s2412_s1 + $0x1c4] ss:$16 sps:$4 sm:$0xff]   ;;  %v1621_v38 = vld [vmem:[%s2412_s1 + $0x1c0] ss:$16 sps:$4 sm:$0xff]  }
  0x14   :  { %953 = vmatpush1.bf16.msra.mxu1 %v1592_v19  ;;  %883 = vmatprep.subr.bf16.mxu0 %v1593_v20  ;;  %v1619_v37 = vld [vmem:[%s2412_s1 + $0x3c4] ss:$16 sps:$4 sm:$0xff]   ;;  %v1622_v39 = vld [vmem:[%s2412_s1 + $0x3c0] ss:$16 sps:$4 sm:$0xff]   ;;  %v2072_v19 = vld [vmem:[%s2413_s0 + $0x28] ss:$16 sps:$4 sm:$0xff]  }
  0x15   :  { %954 = vmatprep.subr.bf16.mxu1 %v1595_v21  ;;  %v1623_v40 = vld [vmem:[%s2412_s1 + $0x1a4] ss:$16 sps:$4 sm:$0xff]   ;;  %v1627_v42 = vld [vmem:[%s2412_s1 + $0x1a0] ss:$16 sps:$4 sm:$0xff]   ;;  %v1685_v20 = vld [vmem:[%s2412_s1 + $0x8c] ss:$16 sps:$4 sm:$0xff]  }
  0x16   :  { %v1625_v41 = vld [vmem:[%s2412_s1 + $0x3a4] ss:$16 sps:$4 sm:$0xff]   ;;  %v1628_v43 = vld [vmem:[%s2412_s1 + $0x3a0] ss:$16 sps:$4 sm:$0xff]   ;;  %v1688_v21 = vld [vmem:[%s2412_s1 + $0x28c] ss:$16 sps:$4 sm:$0xff]  }
  0x17   :  { %884 = vmatpush1.bf16.msra.mxu0 %v1597_v22  ;;  %v1629_v44 = vld [vmem:[%s2412_s1 + $0x184] ss:$16 sps:$4 sm:$0xff]   ;;  %v1633_v46 = vld [vmem:[%s2412_s1 + $0x180] ss:$16 sps:$4 sm:$0xff]   ;;  %v1683_v22 = vld [vmem:[%s2412_s1 + $0x88] ss:$16 sps:$4 sm:$0xff]  }
  0x18   :  { %955 = vmatpush1.bf16.msra.mxu1 %v1598_v23  ;;  %885 = vmatprep.subr.bf16.mxu0 %v1599_v24  ;;  %v1631_v45 = vld [vmem:[%s2412_s1 + $0x384] ss:$16 sps:$4 sm:$0xff]   ;;  %v1634_v47 = vld [vmem:[%s2412_s1 + $0x380] ss:$16 sps:$4 sm:$0xff]   ;;  %v1686_v23 = vld [vmem:[%s2412_s1 + $0x288] ss:$16 sps:$4 sm:$0xff]  }
  0x19   :  { %956 = vmatprep.subr.bf16.mxu1 %v1601_v25  ;;  %v1635_v48 = vld [vmem:[%s2412_s1 + $0x164] ss:$16 sps:$4 sm:$0xff]   ;;  %v1639_v52 = vld [vmem:[%s2412_s1 + $0x160] ss:$16 sps:$4 sm:$0xff]   ;;  %v1691_v24 = vld [vmem:[%s2412_s1 + $0x6c] ss:$16 sps:$4 sm:$0xff]  }
  0x1a   :  { %v1952_v49 = vld [vmem:[%s2413_s0 + $0x4] ss:$16 sps:$4 sm:$0xff]   ;;  %v1640_v53 = vld [vmem:[%s2412_s1 + $0x360] ss:$16 sps:$4 sm:$0xff]   ;;  %v1694_v25 = vld [vmem:[%s2412_s1 + $0x26c] ss:$16 sps:$4 sm:$0xff]  }
  0x1b   :  { %886 = vmatpush1.bf16.msra.mxu0 %v1603_v26  ;;  %v1637_v50 = vld [vmem:[%s2412_s1 + $0x364] ss:$16 sps:$4 sm:$0xff]   ;;  %905 = vmatprep.mubr.bf16.mxu0 %v1952_v49  ;;  %v1645_v56 = vld [vmem:[%s2412_s1 + $0x140] ss:$16 sps:$4 sm:$0xff]   ;;  %v1689_v26 = vld [vmem:[%s2412_s1 + $0x68] ss:$16 sps:$4 sm:$0xff]  }
  0x1c   :  { %957 = vmatpush1.bf16.msra.mxu1 %v1604_v27  ;;  %887 = vmatprep.subr.bf16.mxu0 %v1605_v28  ;;  %v1641_v54 = vld [vmem:[%s2412_s1 + $0x144] ss:$16 sps:$4 sm:$0xff]   ;;  %v1646_v57 = vld [vmem:[%s2412_s1 + $0x340] ss:$16 sps:$4 sm:$0xff]   ;;  %v1692_v27 = vld [vmem:[%s2412_s1 + $0x268] ss:$16 sps:$4 sm:$0xff]  }
  0x1d   :  { %958 = vmatprep.subr.bf16.mxu1 %v1607_v29  ;;  %v1643_v55 = vld [vmem:[%s2412_s1 + $0x344] ss:$16 sps:$4 sm:$0xff]   ;;  %v1651_v60 = vld [vmem:[%s2412_s1 + $0x120] ss:$16 sps:$4 sm:$0xff]   ;;  %v2110_v29 = vld [vmem:[%s2413_s0 + $0x4c] ss:$16 sps:$4 sm:$0xff]  }
  0x1e   :  { %v1647_v58 = vld [vmem:[%s2412_s1 + $0x124] ss:$16 sps:$4 sm:$0xff]   ;;  %v1652_v61 = vld [vmem:[%s2412_s1 + $0x320] ss:$16 sps:$4 sm:$0xff]  }
  0x1f   :  { %888 = vmatpush1.bf16.msra.mxu0 %v1609_v30  ;;  %v1649_v59 = vld [vmem:[%s2412_s1 + $0x324] ss:$16 sps:$4 sm:$0xff]   ;;  %v1657_v0 = vld [vmem:[%s2412_s1 + $0x100] ss:$16 sps:$4 sm:$0xff]  }
  0x20   :  { %959 = vmatpush1.bf16.msra.mxu1 %v1610_v31  ;;  %889 = vmatprep.subr.bf16.mxu0 %v1611_v32  ;;  %v1653_v62 = vld [vmem:[%s2412_s1 + $0x104] ss:$16 sps:$4 sm:$0xff]   ;;  %v1658_v1 = vld [vmem:[%s2412_s1 + $0x300] ss:$16 sps:$4 sm:$0xff]   ;;  %v2120_v31 = vld [vmem:[%s2413_s0 + $0x48] ss:$16 sps:$4 sm:$0xff]  }
  0x21   :  { %960 = vmatprep.subr.bf16.mxu1 %v1613_v33  ;;  %v1655_v63 = vld [vmem:[%s2412_s1 + $0x304] ss:$16 sps:$4 sm:$0xff]   ;;  %v2015_v4 = vld [vmem:[%s2413_s0] ss:$16 sps:$4 sm:$0xff]   ;;  %v1697_v32 = vld [vmem:[%s2412_s1 + $0x4c] ss:$16 sps:$4 sm:$0xff]  }
  0x22   :  { %v2057_v16 = vld [vmem:[%s2413_s0 + $0x24] ss:$16 sps:$4 sm:$0xff]   ;;  %v2067_v18 = vld [vmem:[%s2413_s0 + $0x20] ss:$16 sps:$4 sm:$0xff]   ;;  %v1700_v33 = vld [vmem:[%s2412_s1 + $0x24c] ss:$16 sps:$4 sm:$0xff]  }
  0x23   :  { %890 = vmatpush2.bf16.msra.mxu0 %v1615_v34  ;;  %v2105_v28 = vld [vmem:[%s2413_s0 + $0x44] ss:$16 sps:$4 sm:$0xff]   ;;  %v2115_v30 = vld [vmem:[%s2413_s0 + $0x40] ss:$16 sps:$4 sm:$0xff]   ;;  %v1695_v34 = vld [vmem:[%s2412_s1 + $0x48] ss:$16 sps:$4 sm:$0xff]  }
  0x24   :  { %961 = vmatpush2.bf16.msra.mxu1 %v1616_v35  ;;  %891 = vmatprep.subr.bf16.mxu0 %v1617_v36  ;;  %v1698_v35 = vld [vmem:[%s2412_s1 + $0x248] ss:$16 sps:$4 sm:$0xff]   ;;  %v1703_v36 = vld [vmem:[%s2412_s1 + $0x2c] ss:$16 sps:$4 sm:$0xff]  }
  0x25   :  { %962 = vmatprep.subr.bf16.mxu1 %v1619_v37  ;;  %v1706_v37 = vld [vmem:[%s2412_s1 + $0x22c] ss:$16 sps:$4 sm:$0xff]  }
  0x27   :  { %892 = vmatpush2.bf16.msra.mxu0 %v1621_v38  ;;  %v29_v38 = vld [vmem:[%s2413_s0 + $0x60] sm:$0xff] }
  0x28   :  { %963 = vmatpush2.bf16.msra.mxu1 %v1622_v39  ;;  %893 = vmatprep.subr.bf16.mxu0 %v1623_v40  ;;  %v30_v39 = vld [vmem:[%s2413_s0 + $0x68] sm:$0xff]  ;;  %v2150_v40 = vcombine.high %v29_v38, %v29_v38 }
  0x29   :  { %964 = vmatprep.subr.bf16.mxu1 %v1625_v41  ;;  %v2152_v41 = vcombine.high %v30_v39, %v30_v39 }
  0x2b   :  { %894 = vmatpush2.bf16.msra.mxu0 %v1627_v42  ;;  %v2154_v42 = vcombine.low %v29_v38, %v29_v38 }
  0x2c   :  { %965 = vmatpush2.bf16.msra.mxu1 %v1628_v43  ;;  %895 = vmatprep.subr.bf16.mxu0 %v1629_v44  ;;  %v2156_v43 = vcombine.low %v30_v39, %v30_v39  ;;  %v1701_v44 = vld [vmem:[%s2412_s1 + $0x28] ss:$16 sps:$4 sm:$0xff]  }
  0x2d   :  { %966 = vmatprep.subr.bf16.mxu1 %v1631_v45  ;;  %v1704_v45 = vld [vmem:[%s2412_s1 + $0x228] ss:$16 sps:$4 sm:$0xff]  }
  0x2f   :  { %896 = vmatpush2.bf16.msra.mxu0 %v1633_v46  ;;  %v1709_v46 = vld [vmem:[%s2412_s1 + $0xc] ss:$16 sps:$4 sm:$0xff]  }
  0x30   :  { %967 = vmatpush2.bf16.msra.mxu1 %v1634_v47  ;;  %897 = vmatprep.subr.bf16.mxu0 %v1635_v48  ;;  %v1712_v47 = vld [vmem:[%s2412_s1 + $0x20c] ss:$16 sps:$4 sm:$0xff]   ;;  %v1707_v48 = vld [vmem:[%s2412_s1 + $0x8] ss:$16 sps:$4 sm:$0xff]  }
  0x31   :  { %968 = vmatprep.subr.bf16.mxu1 %v1637_v50  ;;  %v1710_v50 = vld [vmem:[%s2412_s1 + $0x208] ss:$16 sps:$4 sm:$0xff]  }
  0x33   :  { %898 = vmatpush2.bf16.msra.mxu0 %v1639_v52  ;;  %v1715_v52 = vld [vmem:[%s2412_s1 + $0x1ec] ss:$16 sps:$4 sm:$0xff]  }
  0x34   :  { %969 = vmatpush2.bf16.msra.mxu1 %v1640_v53  ;;  %899 = vmatprep.subr.bf16.mxu0 %v1641_v54  ;;  %v1718_v53 = vld [vmem:[%s2412_s1 + $0x3ec] ss:$16 sps:$4 sm:$0xff]   ;;  %v1713_v54 = vld [vmem:[%s2412_s1 + $0x1e8] ss:$16 sps:$4 sm:$0xff]  }
  0x35   :  { %970 = vmatprep.subr.bf16.mxu1 %v1643_v55  ;;  %v1716_v55 = vld [vmem:[%s2412_s1 + $0x3e8] ss:$16 sps:$4 sm:$0xff]  }
  0x37   :  { %900 = vmatpush2.bf16.msra.mxu0 %v1645_v56  ;;  %v1727_v56 = vld [vmem:[%s2412_s1 + $0x1cc] ss:$16 sps:$4 sm:$0xff]  }
  0x38   :  { %971 = vmatpush2.bf16.msra.mxu1 %v1646_v57  ;;  %901 = vmatprep.subr.bf16.mxu0 %v1647_v58  ;;  %v1728_v57 = vld [vmem:[%s2412_s1 + $0x3c8] ss:$16 sps:$4 sm:$0xff]   ;;  %v1733_v58 = vld [vmem:[%s2412_s1 + $0x1ac] ss:$16 sps:$4 sm:$0xff]  }
  0x39   :  { %972 = vmatprep.subr.bf16.mxu1 %v1649_v59  ;;  %v1736_v59 = vld [vmem:[%s2412_s1 + $0x3ac] ss:$16 sps:$4 sm:$0xff]  }
  0x3b   :  { %902 = vmatpush2.bf16.msra.mxu0 %v1651_v60  ;;  %v1731_v60 = vld [vmem:[%s2412_s1 + $0x1a8] ss:$16 sps:$4 sm:$0xff]  }
  0x3c   :  { %973 = vmatpush2.bf16.msra.mxu1 %v1652_v61  ;;  %903 = vmatprep.subr.bf16.mxu0 %v1653_v62  ;;  %v1734_v61 = vld [vmem:[%s2412_s1 + $0x3a8] ss:$16 sps:$4 sm:$0xff]   ;;  %v1745_v62 = vld [vmem:[%s2412_s1 + $0x18c] ss:$16 sps:$4 sm:$0xff]  }
  0x3d   :  { %974 = vmatprep.subr.bf16.mxu1 %v1655_v63  ;;  %v1748_v63 = vld [vmem:[%s2412_s1 + $0x38c] ss:$16 sps:$4 sm:$0xff]  }
  0x3f   :  { %904 = vmatpush2.bf16.msra.mxu0 %v1657_v0  ;;  %v1743_v0 = vld [vmem:[%s2412_s1 + $0x188] ss:$16 sps:$4 sm:$0xff]  }
  0x40   :  { %975 = vmatpush2.bf16.msra.mxu1 %v1658_v1  ;;  %1015 = vmatprep.subr.bf16.mxu0 %v1667_v2  ;;  %v1746_v1 = vld [vmem:[%s2412_s1 + $0x388] ss:$16 sps:$4 sm:$0xff]   ;;  %v1751_v2 = vld [vmem:[%s2412_s1 + $0x16c] ss:$16 sps:$4 sm:$0xff]  }
  0x41   :  { %1086 = vmatprep.subr.bf16.mxu1 %v1670_v3  ;;  %v1754_v3 = vld [vmem:[%s2412_s1 + $0x36c] ss:$16 sps:$4 sm:$0xff]  }
  0x42   :  { %906 = vmatmul.mubr.bf16.vlgmr.msra.gmra.mxu0 %v2015_v4 }
  0x43   :  { %977 = vmatmul.mubr.bf16.vlgmr.msra.gmra.mxu1 %v2020_v5  ;;  %1016 = vmatpush1.bf16.msra.mxu0 %v1665_v6  ;;  %v1749_v6 = vld [vmem:[%s2412_s1 + $0x168] ss:$16 sps:$4 sm:$0xff]  }
  0x44   :  { %1087 = vmatpush1.bf16.msra.mxu1 %v1668_v7  ;;  %1017 = vmatprep.subr.bf16.mxu0 %v1673_v8  ;;  %v1752_v7 = vld [vmem:[%s2412_s1 + $0x368] ss:$16 sps:$4 sm:$0xff]   ;;  %v1761_v8 = vld [vmem:[%s2412_s1 + $0x14c] ss:$16 sps:$4 sm:$0xff]  }
  0x45   :  { %1088 = vmatprep.subr.bf16.mxu1 %v1676_v9  ;;  %915 = vmatprep.mubr.bf16.mxu0 %v2057_v16  ;;  %v1764_v9 = vld [vmem:[%s2412_s1 + $0x34c] ss:$16 sps:$4 sm:$0xff]  }
  0x46   :  { %986 = vmatprep.mubr.bf16.mxu1 %v2062_v17 }
  0x47   :  { %1018 = vmatpush1.bf16.msra.mxu0 %v1671_v10  ;;  %v1759_v10 = vld [vmem:[%s2412_s1 + $0x148] ss:$16 sps:$4 sm:$0xff]  }
  0x48   :  { %1089 = vmatpush1.bf16.msra.mxu1 %v1674_v11  ;;  %1019 = vmatprep.subr.bf16.mxu0 %v1679_v12  ;;  %v1762_v11 = vld [vmem:[%s2412_s1 + $0x348] ss:$16 sps:$4 sm:$0xff]   ;;  %v1767_v12 = vld [vmem:[%s2412_s1 + $0x12c] ss:$16 sps:$4 sm:$0xff]  }
  0x49   :  { %1090 = vmatprep.subr.bf16.mxu1 %v1682_v13  ;;  %v1770_v13 = vld [vmem:[%s2412_s1 + $0x32c] ss:$16 sps:$4 sm:$0xff]  }
  0x4a   :  { %916 = vmatmul.mubr.bf16.gmra.mxu0 %v2067_v18 }
  0x4b   :  { %987 = vmatmul.mubr.bf16.gmra.mxu1 %v2072_v19  ;;  %1020 = vmatpush1.bf16.msra.mxu0 %v1677_v14  ;;  %v1765_v14 = vld [vmem:[%s2412_s1 + $0x128] ss:$16 sps:$4 sm:$0xff]  }
  0x4c   :  { %1091 = vmatpush1.bf16.msra.mxu1 %v1680_v15  ;;  %1021 = vmatprep.subr.bf16.mxu0 %v1685_v20  ;;  %v1768_v15 = vld [vmem:[%s2412_s1 + $0x328] ss:$16 sps:$4 sm:$0xff]   ;;  %v1773_v20 = vld [vmem:[%s2412_s1 + $0x10c] ss:$16 sps:$4 sm:$0xff]  }
  0x4d   :  { %1092 = vmatprep.subr.bf16.mxu1 %v1688_v21  ;;  %925 = vmatprep.mubr.bf16.mxu0 %v2105_v28  ;;  %v1776_v21 = vld [vmem:[%s2412_s1 + $0x30c] ss:$16 sps:$4 sm:$0xff]  }
  0x4e   :  { %996 = vmatprep.mubr.bf16.mxu1 %v2110_v29 }
  0x4f   :  { %1022 = vmatpush1.bf16.msra.mxu0 %v1683_v22  ;;  %v1771_v22 = vld [vmem:[%s2412_s1 + $0x108] ss:$16 sps:$4 sm:$0xff]  }
  0x50   :  { %1093 = vmatpush1.bf16.msra.mxu1 %v1686_v23  ;;  %1023 = vmatprep.subr.bf16.mxu0 %v1691_v24  ;;  %v1774_v23 = vld [vmem:[%s2412_s1 + $0x308] ss:$16 sps:$4 sm:$0xff]   ;;  %v1207_v24 = vld [vmem:[%s2415_s3] sm:$0xf] }
  0x51   :  { %1094 = vmatprep.subr.bf16.mxu1 %v1694_v25 }
  0x52   :  { %926 = vmatmul.mubr.bf16.gmra.mxu0 %v2115_v30 }
  0x53   :  { %997 = vmatmul.mubr.bf16.gmra.mxu1 %v2120_v31  ;;  %1024 = vmatpush1.bf16.msra.mxu0 %v1689_v26 }
  0x54   :  { %1095 = vmatpush1.bf16.msra.mxu1 %v1692_v27  ;;  %1025 = vmatprep.subr.bf16.mxu0 %v1697_v32 }
  0x55   :  { %1096 = vmatprep.subr.bf16.mxu1 %v1700_v33  ;;  %935 = vmatprep.mubr.bf16.mxu0 %v2150_v40 }
  0x56   :  { %1006 = vmatprep.mubr.bf16.mxu1 %v2152_v41 }
  0x57   :  { %1026 = vmatpush1.bf16.msra.mxu0 %v1695_v34 }
  0x58   :  { %1097 = vmatpush1.bf16.msra.mxu1 %v1698_v35  ;;  %1027 = vmatprep.subr.bf16.mxu0 %v1703_v36 }
  0x59   :  { %1098 = vmatprep.subr.bf16.mxu1 %v1706_v37 }
  0x5a   :  { %936 = vmatmul.mubr.bf16.gmra.mxu0 %v2154_v42 }
  0x5b   :  { %1007 = vmatmul.mubr.bf16.gmra.mxu1 %v2156_v43  ;;  %1028 = vmatpush1.bf16.msra.mxu0 %v1701_v44 }
  0x5c   :  { %1099 = vmatpush1.bf16.msra.mxu1 %v1704_v45  ;;  %1029 = vmatprep.subr.bf16.mxu0 %v1709_v46 }
  0x5d   :  { %1100 = vmatprep.subr.bf16.mxu1 %v1712_v47  ;;  %1047 = vmatprep.mubr.bf16.mxu0 %v1952_v49  ;;  %v1730_v49 = vld [vmem:[%s2412_s1 + $0x3cc] ss:$16 sps:$4 sm:$0xff]  }
  0x5e   :  { %1118 = vmatprep.mubr.bf16.mxu1 %v1960_v51  ;;  %v1725_v51 = vld [vmem:[%s2412_s1 + $0x1c8] ss:$16 sps:$4 sm:$0xff]  }
  0x5f   :  { %1030 = vmatpush1.bf16.msra.mxu0 %v1707_v48 }
  0x60   :  { %1101 = vmatpush1.bf16.msra.mxu1 %v1710_v50  ;;  %1031 = vmatprep.subr.bf16.mxu0 %v1715_v52 }
  0x61   :  { %1102 = vmatprep.subr.bf16.mxu1 %v1718_v53 }
  0x63   :  { %1032 = vmatpush2.bf16.msra.mxu0 %v1713_v54 }
  0x64   :  { %1103 = vmatpush2.bf16.msra.mxu1 %v1716_v55  ;;  %1033 = vmatprep.subr.bf16.mxu0 %v1727_v56 }
  0x65   :  { %1104 = vmatprep.subr.bf16.mxu1 %v1730_v49 }
  0x67   :  { %1034 = vmatpush2.bf16.msra.mxu0 %v1725_v51 }
  0x68   :  { %1105 = vmatpush2.bf16.msra.mxu1 %v1728_v57  ;;  %1035 = vmatprep.subr.bf16.mxu0 %v1733_v58 }
  0x69   :  { %1106 = vmatprep.subr.bf16.mxu1 %v1736_v59 }
  0x6b   :  { %1036 = vmatpush2.bf16.msra.mxu0 %v1731_v60 }
  0x6c   :  { %1107 = vmatpush2.bf16.msra.mxu1 %v1734_v61  ;;  %1037 = vmatprep.subr.bf16.mxu0 %v1745_v62 }
  0x6d   :  { %1108 = vmatprep.subr.bf16.mxu1 %v1748_v63 }
  0x6f   :  { %1038 = vmatpush2.bf16.msra.mxu0 %v1743_v0 }
  0x70   :  { %1109 = vmatpush2.bf16.msra.mxu1 %v1746_v1  ;;  %1039 = vmatprep.subr.bf16.mxu0 %v1751_v2 }
  0x71   :  { %1110 = vmatprep.subr.bf16.mxu1 %v1754_v3 }
  0x73   :  { %1040 = vmatpush2.bf16.msra.mxu0 %v1749_v6 }
  0x74   :  { %1111 = vmatpush2.bf16.msra.mxu1 %v1752_v7  ;;  %1041 = vmatprep.subr.bf16.mxu0 %v1761_v8 }
  0x75   :  { %1112 = vmatprep.subr.bf16.mxu1 %v1764_v9 }
  0x77   :  { %1042 = vmatpush2.bf16.msra.mxu0 %v1759_v10 }
  0x78   :  { %1113 = vmatpush2.bf16.msra.mxu1 %v1762_v11  ;;  %1043 = vmatprep.subr.bf16.mxu0 %v1767_v12 }
  0x79   :  { %1114 = vmatprep.subr.bf16.mxu1 %v1770_v13 }
  0x7b   :  { %1044 = vmatpush2.bf16.msra.mxu0 %v1765_v14 }
  0x7c   :  { %1115 = vmatpush2.bf16.msra.mxu1 %v1768_v15  ;;  %1045 = vmatprep.subr.bf16.mxu0 %v1773_v20 }
  0x7d   :  { %1116 = vmatprep.subr.bf16.mxu1 %v1776_v21 }
  0x7f   :  { %1046 = vmatpush2.bf16.msra.mxu0 %v1771_v22 }
  0x80   :  { %1117 = vmatpush2.bf16.msra.mxu1 %v1774_v23 }
  0x82   :  { %1048 = vmatmul.mubr.bf16.vlgmr.msra.gmra.mxu0 %v2015_v4  ;;  %v1159_v4 = vlaneseq }
  0x83   :  { %1119 = vmatmul.mubr.bf16.vlgmr.msra.gmra.mxu1 %v2020_v5  ;;  %1057 = vmatprep.mubr.bf16.mxu0 %v2057_v16 }
  0x84   :  { %1128 = vmatprep.mubr.bf16.mxu1 %v2062_v17  ;;  %v1160_v5 = vshrl.u32 %v1159_v4, 7  ;;  %v1157_v17 = vld [vmem:[%s2414_s2] sm:$0xf] }
  0x86   :  { %v1169_v16 = vsub.s32 2, %v1160_v5 }
  0x88   :  { %v2300_v25 = vrot.slane %v1207_v24, %v1169_v16 }
  0x8a   :  { %1058 = vmatmul.mubr.bf16.gmra.mxu0 %v2067_v18  ;;  %v2295_v18 = vrot.slane %v1157_v17, %v1169_v16 }
  0x8b   :  { %1129 = vmatmul.mubr.bf16.gmra.mxu1 %v2072_v19  ;;  %1067 = vmatprep.mubr.bf16.mxu0 %v2105_v28  ;;  %v1173_v19 = vsub.s32 3, %v1160_v5  ;;  %v1161_v28 = vsub.s32 0, %v1160_v5 }
  0x8c   :  { %1138 = vmatprep.mubr.bf16.mxu1 %v2110_v29  ;;  %v1165_v29 = vsub.s32 1, %v1160_v5 }
  0x8d   :  { %v2302_v26 = vrot.slane %v1157_v17, %v1173_v19  ;;  %v2304_v27 = vrot.slane %v1207_v24, %v1173_v19  ;;  %v2308_v34 = vrot.slane %v1207_v24, %v1161_v28 }
  0x8e   :  { %v2310_v35 = vrot.slane %v1157_v17, %v1165_v29 }
  0x92   :  { %1068 = vmatmul.mubr.bf16.gmra.mxu0 %v2115_v30  ;;  %v2306_v30 = vrot.slane %v1157_v17, %v1161_v28 }
  0x93   :  { %1139 = vmatmul.mubr.bf16.gmra.mxu1 %v2120_v31  ;;  %1077 = vmatprep.mubr.bf16.mxu0 %v2150_v40  ;;  %v2313_v40 = vrot.slane %v1207_v24, %v1165_v29 }
  0x94   :  { %1148 = vmatprep.mubr.bf16.mxu1 %v2152_v41 }
  0x9a   :  { %1078 = vmatmul.mubr.bf16.gmra.mxu0 %v2154_v42 }
  0x9b   :  { %1149 = vmatmul.mubr.bf16.gmra.mxu1 %v2156_v43 }
 0x102   :  { %v907_v31 = vpop.f32.mrf.mxu0 }
 0x103   :  { %v978_v32 = vpop.f32.mrf.mxu1 }
 0x104   :  { %v979_v33 = vadd.f32 %v978_v32, %v907_v31  ;;  %v909_v36 = vpop.f32.mrf.mxu0 }
 0x105   :  { %v980_v37 = vpop.f32.mrf.mxu1 }
 0x106   :  { %v1179_v38 = vmul.f32 %v2306_v30, %v979_v33  ;;  %v981_v39 = vadd.f32 %v980_v37, %v909_v36  ;;  %v911_v41 = vpop.f32.mrf.mxu0 }
 0x107   :  { %v982_v42 = vpop.f32.mrf.mxu1 }
 0x108   :  { %v1229_v43 = vadd.f32 %v2308_v34, %v1179_v38  ;;  %v1180_v44 = vmul.f32 %v2310_v35, %v981_v39  ;;  %v983_v45 = vadd.f32 %v982_v42, %v911_v41  ;;  %v913_v46 = vpop.f32.mrf.mxu0 }
 0x109   :  { %v984_v47 = vpop.f32.mrf.mxu1 }
 0x10a   :  { %v1257_v48 = vmax.f32 %v1229_v43, 0.0  ;;  %v1230_v50 = vadd.f32 %v2313_v40, %v1180_v44  ;;  %v1183_v52 = vmul.f32 %v2306_v30, %v983_v45  ;;  %v985_v53 = vadd.f32 %v984_v47, %v913_v46  ;;  %v917_v54 = vpop.f32.mrf.mxu0 }
 0x10b   :  { %v988_v55 = vpop.f32.mrf.mxu1 }
 0x10c   :  { %v1258_v56 = vmax.f32 %v1230_v50, 0.0  ;;  %v1233_v49 = vadd.f32 %v2308_v34, %v1183_v52  ;;  %v1184_v51 = vmul.f32 %v2310_v35, %v985_v53  ;;  %v989_v57 = vadd.f32 %v988_v55, %v917_v54  ;;  %v919_v58 = vpop.f32.mrf.mxu0 }
 0x10d   :  { %v990_v59 = vpop.f32.mrf.mxu1 }
 0x10e   :  { %v1549_v60 = vpack.c.bf16 %v1258_v56, %v1257_v48  ;;  %v1234_v61 = vadd.f32 %v2313_v40, %v1184_v51  ;;  %v1187_v62 = vmul.f32 %v2306_v30, %v989_v57  ;;  %v991_v63 = vadd.f32 %v990_v59, %v919_v58  ;;  %v921_v0 = vpop.f32.mrf.mxu0 }
 0x10f   :  { %v992_v1 = vpop.f32.mrf.mxu1  ;;  %v1261_v2 = vmax.f32 %v1233_v49, 0.0 }
 0x110   :  { %1373 = vst [vmem:[%s2416_s4] sm:$0xff] %v1549_v60  ;;  %v1262_v3 = vmax.f32 %v1234_v61, 0.0  ;;  %v1237_v6 = vadd.f32 %v2308_v34, %v1187_v62  ;;  %v993_v7 = vadd.f32 %v992_v1, %v921_v0  ;;  %v1188_v8 = vmul.f32 %v2310_v35, %v991_v63  ;;  %v923_v9 = vpop.f32.mrf.mxu0 }
 0x111   :  { %v994_v10 = vpop.f32.mrf.mxu1 }
 0x112   :  { %v1551_v11 = vpack.c.bf16 %v1262_v3, %v1261_v2  ;;  %v1191_v12 = vmul.f32 %v2306_v30, %v993_v7  ;;  %v995_v13 = vadd.f32 %v994_v10, %v923_v9  ;;  %v1265_v14 = vmax.f32 %v1237_v6, 0.0  ;;  %v927_v20 = vpop.f32.mrf.mxu0 }
 0x113   :  { %v1238_v15 = vadd.f32 %v2313_v40, %v1188_v8  ;;  %v998_v21 = vpop.f32.mrf.mxu1 }
 0x114   :  { %1375 = vst [vmem:[%s2416_s4 + $0x10] sm:$0xff] %v1551_v11  ;;  %v1241_v22 = vadd.f32 %v2308_v34, %v1191_v12  ;;  %v1192_v23 = vmul.f32 %v2310_v35, %v995_v13  ;;  %v999_v4 = vadd.f32 %v998_v21, %v927_v20  ;;  %v929_v16 = vpop.f32.mrf.mxu0 }
 0x115   :  { %v1266_v5 = vmax.f32 %v1238_v15, 0.0  ;;  %v1000_v17 = vpop.f32.mrf.mxu1 }
 0x116   :  { %v1269_v19 = vmax.f32 %v1241_v22, 0.0  ;;  %v1242_v24 = vadd.f32 %v2313_v40, %v1192_v23  ;;  %v1195_v28 = vmul.f32 %v2306_v30, %v999_v4  ;;  %v1001_v29 = vadd.f32 %v1000_v17, %v929_v16  ;;  %v931_v32 = vpop.f32.mrf.mxu0 }
 0x117   :  { %v1553_v31 = vpack.c.bf16 %v1266_v5, %v1265_v14  ;;  %v1002_v33 = vpop.f32.mrf.mxu1 }
 0x118   :  { %v1270_v36 = vmax.f32 %v1242_v24, 0.0  ;;  %v1245_v37 = vadd.f32 %v2308_v34, %v1195_v28  ;;  %v1196_v38 = vmul.f32 %v2310_v35, %v1001_v29  ;;  %v1003_v39 = vadd.f32 %v1002_v33, %v931_v32  ;;  %v933_v41 = vpop.f32.mrf.mxu0 }
 0x119   :  { %1377 = vst [vmem:[%s2416_s4 + $0x20] sm:$0xff] %v1553_v31  ;;  %v1004_v42 = vpop.f32.mrf.mxu1 }
 0x11a   :  { %v1555_v43 = vpack.c.bf16 %v1270_v36, %v1269_v19  ;;  %v1273_v44 = vmax.f32 %v1245_v37, 0.0  ;;  %v1246_v45 = vadd.f32 %v2313_v40, %v1196_v38  ;;  %v1199_v46 = vmul.f32 %v2306_v30, %v1003_v39  ;;  %v937_v48 = vpop.f32.mrf.mxu0 }
 0x11b   :  { %v1005_v47 = vadd.f32 %v1004_v42, %v933_v41  ;;  %v1008_v50 = vpop.f32.mrf.mxu1 }
 0x11c   :  { %1379 = vst [vmem:[%s2416_s4 + $0x30] sm:$0xff] %v1555_v43  ;;  %v1274_v52 = vmax.f32 %v1246_v45, 0.0  ;;  %v1249_v53 = vadd.f32 %v2308_v34, %v1199_v46  ;;  %v1009_v54 = vadd.f32 %v1008_v50, %v937_v48  ;;  %v939_v56 = vpop.f32.mrf.mxu0 }
 0x11d   :  { %v1200_v55 = vmul.f32 %v2310_v35, %v1005_v47  ;;  %v1010_v49 = vpop.f32.mrf.mxu1 }
 0x11e   :  { %v1557_v51 = vpack.c.bf16 %v1274_v52, %v1273_v44  ;;  %v1203_v57 = vmul.f32 %v2306_v30, %v1009_v54  ;;  %v1011_v58 = vadd.f32 %v1010_v49, %v939_v56  ;;  %v1277_v59 = vmax.f32 %v1249_v53, 0.0  ;;  %v941_v61 = vpop.f32.mrf.mxu0 }
 0x11f   :  { %v1250_v60 = vadd.f32 %v2313_v40, %v1200_v55  ;;  %v1012_v62 = vpop.f32.mrf.mxu1 }
 0x120   :  { %1381 = vst [vmem:[%s2416_s4 + $0x40] sm:$0xff] %v1557_v51  ;;  %v1253_v63 = vadd.f32 %v2308_v34, %v1203_v57  ;;  %v1204_v0 = vmul.f32 %v2310_v35, %v1011_v58  ;;  %v942_v2 = vpop.f32.mrf.mxu0 }
 0x121   :  { %v1278_v1 = vmax.f32 %v1250_v60, 0.0  ;;  %v1013_v3 = vpop.f32.mrf.mxu1 }
 0x122   :  { %v1281_v6 = vmax.f32 %v1253_v63, 0.0  ;;  %v1254_v30 = vadd.f32 %v2313_v40, %v1204_v0 }
 0x123   :  { %v1559_v7 = vpack.c.bf16 %v1278_v1, %v1277_v59 }
 0x124   :  { %v1282_v8 = vmax.f32 %v1254_v30, 0.0 }
 0x125   :  { %1383 = vst [vmem:[%s2416_s4 + $0x50] sm:$0xff] %v1559_v7 }
 0x126   :  { %v1561_v9 = vpack.c.bf16 %v1282_v8, %v1281_v6 }
 0x128   :  { %1385 = vst [vmem:[%s2416_s4 + $0x60] sm:$0xff] %v1561_v9 }
 0x142   :  { %v1049_v34 = vpop.f32.mrf.mxu0 }
 0x143   :  { %v1120_v10 = vpop.f32.mrf.mxu1 }
 0x144   :  { %v1121_v35 = vadd.f32 %v1120_v10, %v1049_v34  ;;  %v1051_v11 = vpop.f32.mrf.mxu0 }
 0x145   :  { %v1122_v12 = vpop.f32.mrf.mxu1 }
 0x146   :  { %v1181_v13 = vmul.f32 %v2295_v18, %v1121_v35  ;;  %v1123_v14 = vadd.f32 %v1122_v12, %v1051_v11  ;;  %v1053_v40 = vpop.f32.mrf.mxu0 }
 0x147   :  { %v1124_v15 = vpop.f32.mrf.mxu1 }
 0x148   :  { %v1231_v20 = vadd.f32 %v2300_v25, %v1181_v13  ;;  %v1182_v21 = vmul.f32 %v2302_v26, %v1123_v14  ;;  %v1125_v22 = vadd.f32 %v1124_v15, %v1053_v40  ;;  %v1055_v23 = vpop.f32.mrf.mxu0 }
 0x149   :  { %v1126_v4 = vpop.f32.mrf.mxu1 }
 0x14a   :  { %v1232_v5 = vadd.f32 %v2304_v27, %v1182_v21  ;;  %v1185_v16 = vmul.f32 %v2295_v18, %v1125_v22  ;;  %v1127_v17 = vadd.f32 %v1126_v4, %v1055_v23  ;;  %v1259_v19 = vmax.f32 %v1231_v20, 0.0  ;;  %v1059_v24 = vpop.f32.mrf.mxu0 }
 0x14b   :  { %v1130_v28 = vpop.f32.mrf.mxu1 }
 0x14c   :  { %v1260_v29 = vmax.f32 %v1232_v5, 0.0  ;;  %v1235_v31 = vadd.f32 %v2300_v25, %v1185_v16  ;;  %v1186_v32 = vmul.f32 %v2302_v26, %v1127_v17  ;;  %v1131_v33 = vadd.f32 %v1130_v28, %v1059_v24  ;;  %v1061_v36 = vpop.f32.mrf.mxu0 }
 0x14d   :  { %v1132_v37 = vpop.f32.mrf.mxu1 }
 0x14e   :  { %v1550_v38 = vpack.c.bf16 %v1260_v29, %v1259_v19  ;;  %v1236_v39 = vadd.f32 %v2304_v27, %v1186_v32  ;;  %v1189_v41 = vmul.f32 %v2295_v18, %v1131_v33  ;;  %v1133_v42 = vadd.f32 %v1132_v37, %v1061_v36  ;;  %v1063_v43 = vpop.f32.mrf.mxu0 }
 0x14f   :  { %v1134_v44 = vpop.f32.mrf.mxu1  ;;  %v1263_v45 = vmax.f32 %v1235_v31, 0.0 }
 0x150   :  { %1374 = vst [vmem:[%s2416_s4 + $0x8] sm:$0xff] %v1550_v38  ;;  %v1264_v46 = vmax.f32 %v1236_v39, 0.0  ;;  %v1239_v47 = vadd.f32 %v2300_v25, %v1189_v41  ;;  %v1135_v48 = vadd.f32 %v1134_v44, %v1063_v43  ;;  %v1190_v50 = vmul.f32 %v2302_v26, %v1133_v42  ;;  %v1065_v52 = vpop.f32.mrf.mxu0 }
 0x151   :  { %v1136_v53 = vpop.f32.mrf.mxu1 }
 0x152   :  { %v1552_v54 = vpack.c.bf16 %v1264_v46, %v1263_v45  ;;  %v1193_v55 = vmul.f32 %v2295_v18, %v1135_v48  ;;  %v1137_v56 = vadd.f32 %v1136_v53, %v1065_v52  ;;  %v1240_v49 = vadd.f32 %v2304_v27, %v1190_v50  ;;  %v1069_v51 = vpop.f32.mrf.mxu0 }
 0x153   :  { %v1140_v57 = vpop.f32.mrf.mxu1  ;;  %v1267_v61 = vmax.f32 %v1239_v47, 0.0 }
 0x154   :  { %1376 = vst [vmem:[%s2416_s4 + $0x18] sm:$0xff] %v1552_v54  ;;  %v1243_v58 = vadd.f32 %v2300_v25, %v1193_v55  ;;  %v1194_v59 = vmul.f32 %v2302_v26, %v1137_v56  ;;  %v1141_v60 = vadd.f32 %v1140_v57, %v1069_v51  ;;  %v1268_v62 = vmax.f32 %v1240_v49, 0.0  ;;  %v1071_v63 = vpop.f32.mrf.mxu0 }
 0x155   :  { %v1142_v0 = vpop.f32.mrf.mxu1 }
 0x156   :  { %v1244_v1 = vadd.f32 %v2304_v27, %v1194_v59  ;;  %v1197_v2 = vmul.f32 %v2295_v18, %v1141_v60  ;;  %v1143_v3 = vadd.f32 %v1142_v0, %v1071_v63  ;;  %v1554_v6 = vpack.c.bf16 %v1268_v62, %v1267_v61  ;;  %v1073_v7 = vpop.f32.mrf.mxu0 }
 0x157   :  { %v1271_v30 = vmax.f32 %v1243_v58, 0.0  ;;  %v1144_v8 = vpop.f32.mrf.mxu1 }
 0x158   :  { %v1272_v9 = vmax.f32 %v1244_v1, 0.0  ;;  %v1247_v34 = vadd.f32 %v2300_v25, %v1197_v2  ;;  %v1198_v10 = vmul.f32 %v2302_v26, %v1143_v3  ;;  %v1145_v35 = vadd.f32 %v1144_v8, %v1073_v7  ;;  %1378 = vst [vmem:[%s2416_s4 + $0x28] sm:$0xff] %v1554_v6  ;;  %v1075_v11 = vpop.f32.mrf.mxu0 }
 0x159   :  { %v1146_v12 = vpop.f32.mrf.mxu1 }
 0x15a   :  { %v1556_v13 = vpack.c.bf16 %v1272_v9, %v1271_v30  ;;  %v1248_v14 = vadd.f32 %v2304_v27, %v1198_v10  ;;  %v1201_v40 = vmul.f32 %v2295_v18, %v1145_v35  ;;  %v1147_v15 = vadd.f32 %v1146_v12, %v1075_v11  ;;  %v1079_v20 = vpop.f32.mrf.mxu0 }
 0x15b   :  { %v1150_v21 = vpop.f32.mrf.mxu1  ;;  %v1275_v22 = vmax.f32 %v1247_v34, 0.0 }
 0x15c   :  { %1380 = vst [vmem:[%s2416_s4 + $0x38] sm:$0xff] %v1556_v13  ;;  %v1276_v23 = vmax.f32 %v1248_v14, 0.0  ;;  %v1251_v4 = vadd.f32 %v2300_v25, %v1201_v40  ;;  %v1151_v5 = vadd.f32 %v1150_v21, %v1079_v20  ;;  %v1202_v16 = vmul.f32 %v2302_v26, %v1147_v15  ;;  %v1081_v17 = vpop.f32.mrf.mxu0 }
 0x15d   :  { %v1152_v19 = vpop.f32.mrf.mxu1 }
 0x15e   :  { %v1558_v24 = vpack.c.bf16 %v1276_v23, %v1275_v22  ;;  %v1205_v28 = vmul.f32 %v2295_v18, %v1151_v5  ;;  %v1153_v29 = vadd.f32 %v1152_v19, %v1081_v17  ;;  %v1252_v31 = vadd.f32 %v2304_v27, %v1202_v16  ;;  %v1083_v32 = vpop.f32.mrf.mxu0 }
 0x15f   :  { %v1154_v33 = vpop.f32.mrf.mxu1  ;;  %v1279_v38 = vmax.f32 %v1251_v4, 0.0 }
 0x160   :  { %1382 = vst [vmem:[%s2416_s4 + $0x48] sm:$0xff] %v1558_v24  ;;  %v1255_v36 = vadd.f32 %v2300_v25, %v1205_v28  ;;  %v1206_v37 = vmul.f32 %v2302_v26, %v1153_v29  ;;  %v1280_v39 = vmax.f32 %v1252_v31, 0.0  ;;  %v1084_v41 = vpop.f32.mrf.mxu0 }
 0x161   :  { %v1155_v42 = vpop.f32.mrf.mxu1 }
 0x162   :  { %v1256_v43 = vadd.f32 %v2304_v27, %v1206_v37  ;;  %v1560_v18 = vpack.c.bf16 %v1280_v39, %v1279_v38  ;;  %v1283_v44 = vmax.f32 %v1255_v36, 0.0 }
 0x164   :  { %v1284_v45 = vmax.f32 %v1256_v43, 0.0  ;;  %1384 = vst [vmem:[%s2416_s4 + $0x58] sm:$0xff] %v1560_v18 }
 0x166   :  { %v1562_v46 = vpack.c.bf16 %v1284_v45, %v1283_v44 }
 0x168   :  { %1386 = vst [vmem:[%s2416_s4 + $0x68] sm:$0xff] %v1562_v46 }

// kernel: generator_forward.13
= control target key start
LH: loop header
LB: loop body
LE: loop exit
PB: predicated region body
PF: predicated region fallthrough
CT: control target
= control target key end

     0   :  { %s2056_s1 = inlined_call_operand.vmem [shape: bf16[512,256], index: 1, kind: input, shape index: {}]   ;;  %s2057_s0 = inlined_call_operand.vmem [shape: bf16[168,512], index: 0, kind: input, shape index: {}]   ;;  %s2058_s2 = inlined_call_operand.vmem [shape: f32[1,256], index: 2, kind: input, shape index: {}]   ;;  %s2059_s3 = inlined_call_operand.vmem [shape: f32[1,256], index: 3, kind: input, shape index: {}]   ;;  %s2060_s4 = inlined_call_operand.vmem [shape: bf16[168,256], index: 4, kind: output, shape index: {}]  }
   0x1   :  { %v1392_v0 = vld [vmem:[%s2056_s1 + $0x74] ss:$8 sps:$4 sm:$0xff]   ;;  %v1396_v2 = vld [vmem:[%s2056_s1 + $0x70] ss:$8 sps:$4 sm:$0xff]   ;;  %v1398_v4 = vld [vmem:[%s2056_s1 + $0x64] ss:$8 sps:$4 sm:$0xff]  }
   0x2   :  { %v1394_v1 = vld [vmem:[%s2056_s1 + $0x174] ss:$8 sps:$4 sm:$0xff]   ;;  %657 = vmatprep.subr.bf16.mxu0 %v1392_v0  ;;  %v1397_v3 = vld [vmem:[%s2056_s1 + $0x170] ss:$8 sps:$4 sm:$0xff]   ;;  %v1400_v5 = vld [vmem:[%s2056_s1 + $0x164] ss:$8 sps:$4 sm:$0xff]  }
   0x3   :  { %798 = vmatprep.subr.bf16.mxu1 %v1394_v1  ;;  %658 = vmatpush1.bf16.msra.mxu0 %v1396_v2  ;;  %v1402_v6 = vld [vmem:[%s2056_s1 + $0x60] ss:$8 sps:$4 sm:$0xff]   ;;  %v1404_v8 = vld [vmem:[%s2056_s1 + $0x54] ss:$8 sps:$4 sm:$0xff]   ;;  %v1408_v10 = vld [vmem:[%s2056_s1 + $0x50] ss:$8 sps:$4 sm:$0xff]  }
   0x4   :  { %799 = vmatpush1.bf16.msra.mxu1 %v1397_v3  ;;  %659 = vmatprep.subr.bf16.mxu0 %v1398_v4  ;;  %v1403_v7 = vld [vmem:[%s2056_s1 + $0x160] ss:$8 sps:$4 sm:$0xff]   ;;  %v1406_v9 = vld [vmem:[%s2056_s1 + $0x154] ss:$8 sps:$4 sm:$0xff]   ;;  %v1409_v11 = vld [vmem:[%s2056_s1 + $0x150] ss:$8 sps:$4 sm:$0xff]  }
   0x5   :  { %800 = vmatprep.subr.bf16.mxu1 %v1400_v5  ;;  %v1410_v12 = vld [vmem:[%s2056_s1 + $0x44] ss:$8 sps:$4 sm:$0xff]   ;;  %v1414_v14 = vld [vmem:[%s2056_s1 + $0x40] ss:$8 sps:$4 sm:$0xff]   ;;  %v1416_v16 = vld [vmem:[%s2056_s1 + $0x34] ss:$8 sps:$4 sm:$0xff]  }
   0x6   :  { %v1412_v13 = vld [vmem:[%s2056_s1 + $0x144] ss:$8 sps:$4 sm:$0xff]   ;;  %v1415_v15 = vld [vmem:[%s2056_s1 + $0x140] ss:$8 sps:$4 sm:$0xff]   ;;  %v1418_v17 = vld [vmem:[%s2056_s1 + $0x134] ss:$8 sps:$4 sm:$0xff]  }
   0x7   :  { %660 = vmatpush1.bf16.msra.mxu0 %v1402_v6  ;;  %v1420_v18 = vld [vmem:[%s2056_s1 + $0x30] ss:$8 sps:$4 sm:$0xff]   ;;  %v1422_v20 = vld [vmem:[%s2056_s1 + $0x24] ss:$8 sps:$4 sm:$0xff]   ;;  %v1426_v22 = vld [vmem:[%s2056_s1 + $0x20] ss:$8 sps:$4 sm:$0xff]  }
   0x8   :  { %801 = vmatpush1.bf16.msra.mxu1 %v1403_v7  ;;  %661 = vmatprep.subr.bf16.mxu0 %v1404_v8  ;;  %v1421_v19 = vld [vmem:[%s2056_s1 + $0x130] ss:$8 sps:$4 sm:$0xff]   ;;  %v1424_v21 = vld [vmem:[%s2056_s1 + $0x124] ss:$8 sps:$4 sm:$0xff]   ;;  %v1427_v23 = vld [vmem:[%s2056_s1 + $0x120] ss:$8 sps:$4 sm:$0xff]  }
   0x9   :  { %802 = vmatprep.subr.bf16.mxu1 %v1406_v9  ;;  %v1428_v24 = vld [vmem:[%s2056_s1 + $0x14] ss:$8 sps:$4 sm:$0xff]   ;;  %v1432_v26 = vld [vmem:[%s2056_s1 + $0x10] ss:$8 sps:$4 sm:$0xff]   ;;  %v1434_v28 = vld [vmem:[%s2056_s1 + $0x4] ss:$8 sps:$4 sm:$0xff]  }
   0xa   :  { %v1430_v25 = vld [vmem:[%s2056_s1 + $0x114] ss:$8 sps:$4 sm:$0xff]   ;;  %v1433_v27 = vld [vmem:[%s2056_s1 + $0x110] ss:$8 sps:$4 sm:$0xff]   ;;  %v1436_v29 = vld [vmem:[%s2056_s1 + $0x104] ss:$8 sps:$4 sm:$0xff]  }
   0xb   :  { %662 = vmatpush1.bf16.msra.mxu0 %v1408_v10  ;;  %v1438_v30 = vld [vmem:[%s2056_s1] ss:$8 sps:$4 sm:$0xff]   ;;  %v1440_v32 = vld [vmem:[%s2056_s1 + $0xf4] ss:$8 sps:$4 sm:$0xff]   ;;  %v1444_v34 = vld [vmem:[%s2056_s1 + $0xf0] ss:$8 sps:$4 sm:$0xff]  }
   0xc   :  { %803 = vmatpush1.bf16.msra.mxu1 %v1409_v11  ;;  %663 = vmatprep.subr.bf16.mxu0 %v1410_v12  ;;  %v1439_v31 = vld [vmem:[%s2056_s1 + $0x100] ss:$8 sps:$4 sm:$0xff]   ;;  %v1442_v33 = vld [vmem:[%s2056_s1 + $0x1f4] ss:$8 sps:$4 sm:$0xff]   ;;  %v1445_v35 = vld [vmem:[%s2056_s1 + $0x1f0] ss:$8 sps:$4 sm:$0xff]  }
   0xd   :  { %804 = vmatprep.subr.bf16.mxu1 %v1412_v13  ;;  %v1446_v36 = vld [vmem:[%s2056_s1 + $0xe4] ss:$8 sps:$4 sm:$0xff]   ;;  %v1450_v38 = vld [vmem:[%s2056_s1 + $0xe0] ss:$8 sps:$4 sm:$0xff]   ;;  %v1452_v40 = vld [vmem:[%s2056_s1 + $0xd4] ss:$8 sps:$4 sm:$0xff]  }
   0xe   :  { %v1448_v37 = vld [vmem:[%s2056_s1 + $0x1e4] ss:$8 sps:$4 sm:$0xff]   ;;  %v1451_v39 = vld [vmem:[%s2056_s1 + $0x1e0] ss:$8 sps:$4 sm:$0xff]   ;;  %v1454_v41 = vld [vmem:[%s2056_s1 + $0x1d4] ss:$8 sps:$4 sm:$0xff]  }
   0xf   :  { %664 = vmatpush1.bf16.msra.mxu0 %v1414_v14  ;;  %v1456_v42 = vld [vmem:[%s2056_s1 + $0xd0] ss:$8 sps:$4 sm:$0xff]   ;;  %v1458_v44 = vld [vmem:[%s2056_s1 + $0xc4] ss:$8 sps:$4 sm:$0xff]   ;;  %v1462_v46 = vld [vmem:[%s2056_s1 + $0xc0] ss:$8 sps:$4 sm:$0xff]  }
  0x10   :  { %805 = vmatpush1.bf16.msra.mxu1 %v1415_v15  ;;  %665 = vmatprep.subr.bf16.mxu0 %v1416_v16  ;;  %v1457_v43 = vld [vmem:[%s2056_s1 + $0x1d0] ss:$8 sps:$4 sm:$0xff]   ;;  %v1460_v45 = vld [vmem:[%s2056_s1 + $0x1c4] ss:$8 sps:$4 sm:$0xff]   ;;  %v1463_v47 = vld [vmem:[%s2056_s1 + $0x1c0] ss:$8 sps:$4 sm:$0xff]  }
  0x11   :  { %806 = vmatprep.subr.bf16.mxu1 %v1418_v17  ;;  %v1464_v48 = vld [vmem:[%s2056_s1 + $0xb4] ss:$8 sps:$4 sm:$0xff]   ;;  %v1468_v52 = vld [vmem:[%s2056_s1 + $0xb0] ss:$8 sps:$4 sm:$0xff]   ;;  %v1470_v54 = vld [vmem:[%s2056_s1 + $0xa4] ss:$8 sps:$4 sm:$0xff]  }
  0x12   :  { %v1490_v49 = vld [vmem:[%s2057_s0 + $0x4] ss:$16 sps:$4 sm:$0xff]   ;;  %v1493_v51 = vld [vmem:[%s2057_s0 + $0xc] ss:$16 sps:$4 sm:$0xff]   ;;  %v1469_v53 = vld [vmem:[%s2056_s1 + $0x1b0] ss:$8 sps:$4 sm:$0xff]  }
  0x13   :  { %666 = vmatpush1.bf16.msra.mxu0 %v1420_v18  ;;  %v1466_v50 = vld [vmem:[%s2056_s1 + $0x1b4] ss:$8 sps:$4 sm:$0xff]   ;;  %689 = vmatprep.mubr.bf16.mxu0 %v1490_v49  ;;  %v1472_v55 = vld [vmem:[%s2056_s1 + $0x1a4] ss:$8 sps:$4 sm:$0xff]   ;;  %v1474_v56 = vld [vmem:[%s2056_s1 + $0xa0] ss:$8 sps:$4 sm:$0xff]  }
  0x14   :  { %807 = vmatpush1.bf16.msra.mxu1 %v1421_v19  ;;  %667 = vmatprep.subr.bf16.mxu0 %v1422_v20  ;;  %v1475_v57 = vld [vmem:[%s2056_s1 + $0x1a0] ss:$8 sps:$4 sm:$0xff]   ;;  %v1476_v58 = vld [vmem:[%s2056_s1 + $0x94] ss:$8 sps:$4 sm:$0xff]   ;;  %v1480_v60 = vld [vmem:[%s2056_s1 + $0x90] ss:$8 sps:$4 sm:$0xff]  }
  0x15   :  { %808 = vmatprep.subr.bf16.mxu1 %v1424_v21  ;;  %830 = vmatprep.mubr.bf16.mxu1 %v1493_v51  ;;  %v1478_v59 = vld [vmem:[%s2056_s1 + $0x194] ss:$8 sps:$4 sm:$0xff]   ;;  %v1481_v61 = vld [vmem:[%s2056_s1 + $0x190] ss:$8 sps:$4 sm:$0xff]   ;;  %v1482_v62 = vld [vmem:[%s2056_s1 + $0x84] ss:$8 sps:$4 sm:$0xff]  }
  0x16   :  { %v1484_v63 = vld [vmem:[%s2056_s1 + $0x184] ss:$8 sps:$4 sm:$0xff]   ;;  %v1486_v0 = vld [vmem:[%s2056_s1 + $0x80] ss:$8 sps:$4 sm:$0xff]  }
  0x17   :  { %668 = vmatpush1.bf16.msra.mxu0 %v1426_v22  ;;  %v1487_v1 = vld [vmem:[%s2056_s1 + $0x180] ss:$8 sps:$4 sm:$0xff]   ;;  %v1494_v4 = vld [vmem:[%s2057_s0 + $0x24] ss:$16 sps:$4 sm:$0xff]   ;;  %v1496_v5 = vld [vmem:[%s2057_s0 + $0x2c] ss:$16 sps:$4 sm:$0xff]  }
  0x18   :  { %809 = vmatpush1.bf16.msra.mxu1 %v1427_v23  ;;  %669 = vmatprep.subr.bf16.mxu0 %v1428_v24  ;;  %v1488_v2 = vld [vmem:[%s2057_s0] ss:$16 sps:$4 sm:$0xff]   ;;  %v1491_v3 = vld [vmem:[%s2057_s0 + $0x8] ss:$16 sps:$4 sm:$0xff]   ;;  %v1500_v8 = vld [vmem:[%s2057_s0 + $0x44] ss:$16 sps:$4 sm:$0xff]  }
  0x19   :  { %810 = vmatprep.subr.bf16.mxu1 %v1430_v25  ;;  %v1498_v6 = vld [vmem:[%s2057_s0 + $0x20] ss:$16 sps:$4 sm:$0xff]   ;;  %v1499_v7 = vld [vmem:[%s2057_s0 + $0x28] ss:$16 sps:$4 sm:$0xff]   ;;  %v1502_v9 = vld [vmem:[%s2057_s0 + $0x4c] ss:$16 sps:$4 sm:$0xff]  }
  0x1a   :  { %v1504_v10 = vld [vmem:[%s2057_s0 + $0x40] ss:$16 sps:$4 sm:$0xff]   ;;  %v1505_v11 = vld [vmem:[%s2057_s0 + $0x48] ss:$16 sps:$4 sm:$0xff]   ;;  %v1506_v12 = vld [vmem:[%s2057_s0 + $0x64] ss:$16 sps:$4 sm:$0xff]  }
  0x1b   :  { %670 = vmatpush1.bf16.msra.mxu0 %v1432_v26  ;;  %v1508_v13 = vld [vmem:[%s2057_s0 + $0x6c] ss:$16 sps:$4 sm:$0xff]   ;;  %v1510_v14 = vld [vmem:[%s2057_s0 + $0x60] ss:$16 sps:$4 sm:$0xff]   ;;  %v1511_v15 = vld [vmem:[%s2057_s0 + $0x68] ss:$16 sps:$4 sm:$0xff]  }
  0x1c   :  { %811 = vmatpush1.bf16.msra.mxu1 %v1433_v27  ;;  %671 = vmatprep.subr.bf16.mxu0 %v1434_v28  ;;  %v1512_v16 = vld [vmem:[%s2057_s0 + $0x84] ss:$16 sps:$4 sm:$0xff]   ;;  %v1514_v17 = vld [vmem:[%s2057_s0 + $0x8c] ss:$16 sps:$4 sm:$0xff]   ;;  %v1516_v18 = vld [vmem:[%s2057_s0 + $0x80] ss:$16 sps:$4 sm:$0xff]  }
  0x1d   :  { %812 = vmatprep.subr.bf16.mxu1 %v1436_v29  ;;  %v1517_v19 = vld [vmem:[%s2057_s0 + $0x88] ss:$16 sps:$4 sm:$0xff]   ;;  %v1518_v20 = vld [vmem:[%s2057_s0 + $0xa4] ss:$16 sps:$4 sm:$0xff]   ;;  %v1520_v21 = vld [vmem:[%s2057_s0 + $0xac] ss:$16 sps:$4 sm:$0xff]  }
  0x1e   :  { %v1522_v22 = vld [vmem:[%s2057_s0 + $0xa0] ss:$16 sps:$4 sm:$0xff]   ;;  %v1523_v23 = vld [vmem:[%s2057_s0 + $0xa8] ss:$16 sps:$4 sm:$0xff]   ;;  %v1524_v24 = vld [vmem:[%s2057_s0 + $0xc4] ss:$16 sps:$4 sm:$0xff]  }
  0x1f   :  { %672 = vmatpush1.bf16.msra.mxu0 %v1438_v30  ;;  %v1526_v25 = vld [vmem:[%s2057_s0 + $0xcc] ss:$16 sps:$4 sm:$0xff]   ;;  %v1528_v26 = vld [vmem:[%s2057_s0 + $0xc0] ss:$16 sps:$4 sm:$0xff]   ;;  %v1529_v27 = vld [vmem:[%s2057_s0 + $0xc8] ss:$16 sps:$4 sm:$0xff]  }
  0x20   :  { %813 = vmatpush1.bf16.msra.mxu1 %v1439_v31  ;;  %673 = vmatprep.subr.bf16.mxu0 %v1440_v32  ;;  %v1530_v28 = vld [vmem:[%s2057_s0 + $0xe4] ss:$16 sps:$4 sm:$0xff]   ;;  %v1532_v29 = vld [vmem:[%s2057_s0 + $0xec] ss:$16 sps:$4 sm:$0xff]   ;;  %v1534_v30 = vld [vmem:[%s2057_s0 + $0xe0] ss:$16 sps:$4 sm:$0xff]  }
  0x21   :  { %814 = vmatprep.subr.bf16.mxu1 %v1442_v33  ;;  %v1535_v31 = vld [vmem:[%s2057_s0 + $0xe8] ss:$16 sps:$4 sm:$0xff]   ;;  %v1536_v32 = vld [vmem:[%s2057_s0 + $0x104] ss:$16 sps:$4 sm:$0xff]   ;;  %v1538_v33 = vld [vmem:[%s2057_s0 + $0x10c] ss:$16 sps:$4 sm:$0xff]  }
  0x22   :  { %v939_v49 = vld [vmem:[%s2058_s2] sm:$0x3] }
  0x23   :  { %674 = vmatpush2.bf16.msra.mxu0 %v1444_v34  ;;  %v1540_v34 = vld [vmem:[%s2057_s0 + $0x100] ss:$16 sps:$4 sm:$0xff]  }
  0x24   :  { %815 = vmatpush2.bf16.msra.mxu1 %v1445_v35  ;;  %675 = vmatprep.subr.bf16.mxu0 %v1446_v36  ;;  %v1541_v35 = vld [vmem:[%s2057_s0 + $0x108] ss:$16 sps:$4 sm:$0xff]   ;;  %v1542_v36 = vld [vmem:[%s2057_s0 + $0x124] ss:$16 sps:$4 sm:$0xff]   ;;  %v993_v51 = vld [vmem:[%s2059_s3] sm:$0x3] }
  0x25   :  { %816 = vmatprep.subr.bf16.mxu1 %v1448_v37  ;;  %v1544_v37 = vld [vmem:[%s2057_s0 + $0x12c] ss:$16 sps:$4 sm:$0xff]  }
  0x27   :  { %676 = vmatpush2.bf16.msra.mxu0 %v1450_v38  ;;  %v57_v38 = vld [vmem:[%s2057_s0 + $0x140] sm:$0xff] }
  0x28   :  { %817 = vmatpush2.bf16.msra.mxu1 %v1451_v39  ;;  %677 = vmatprep.subr.bf16.mxu0 %v1452_v40  ;;  %v58_v39 = vld [vmem:[%s2057_s0 + $0x148] sm:$0xff]  ;;  %v1546_v40 = vld [vmem:[%s2057_s0 + $0x120] ss:$16 sps:$4 sm:$0xff]  }
  0x29   :  { %818 = vmatprep.subr.bf16.mxu1 %v1454_v41  ;;  %v1547_v41 = vld [vmem:[%s2057_s0 + $0x128] ss:$16 sps:$4 sm:$0xff]  }
  0x2b   :  { %678 = vmatpush2.bf16.msra.mxu0 %v1456_v42  ;;  %v1283_v42 = vcombine.high %v57_v38, %v57_v38 }
  0x2c   :  { %819 = vmatpush2.bf16.msra.mxu1 %v1457_v43  ;;  %679 = vmatprep.subr.bf16.mxu0 %v1458_v44  ;;  %v1285_v43 = vcombine.high %v58_v39, %v58_v39  ;;  %v1282_v44 = vcombine.low %v57_v38, %v57_v38 }
  0x2d   :  { %820 = vmatprep.subr.bf16.mxu1 %v1460_v45  ;;  %v1284_v45 = vcombine.low %v58_v39, %v58_v39 }
  0x2f   :  { %680 = vmatpush2.bf16.msra.mxu0 %v1462_v46  ;;  %v941_v46 = vlaneseq }
  0x30   :  { %821 = vmatpush2.bf16.msra.mxu1 %v1463_v47  ;;  %681 = vmatprep.subr.bf16.mxu0 %v1464_v48 }
  0x31   :  { %822 = vmatprep.subr.bf16.mxu1 %v1466_v50  ;;  %v942_v47 = vshrl.u32 %v941_v46, 7 }
  0x33   :  { %682 = vmatpush2.bf16.msra.mxu0 %v1468_v52  ;;  %v943_v48 = vsub.s32 0, %v942_v47  ;;  %v947_v50 = vsub.s32 1, %v942_v47 }
  0x34   :  { %823 = vmatpush2.bf16.msra.mxu1 %v1469_v53  ;;  %683 = vmatprep.subr.bf16.mxu0 %v1470_v54 }
  0x35   :  { %824 = vmatprep.subr.bf16.mxu1 %v1472_v55  ;;  %v1901_v52 = vrot.slane %v939_v49, %v943_v48 }
  0x37   :  { %684 = vmatpush2.bf16.msra.mxu0 %v1474_v56  ;;  %v1903_v56 = vrot.slane %v993_v51, %v943_v48 }
  0x38   :  { %825 = vmatpush2.bf16.msra.mxu1 %v1475_v57  ;;  %685 = vmatprep.subr.bf16.mxu0 %v1476_v58  ;;  %v1905_v57 = vrot.slane %v939_v49, %v947_v50 }
  0x39   :  { %826 = vmatprep.subr.bf16.mxu1 %v1478_v59 }
  0x3b   :  { %686 = vmatpush2.bf16.msra.mxu0 %v1480_v60 }
  0x3c   :  { %827 = vmatpush2.bf16.msra.mxu1 %v1481_v61  ;;  %687 = vmatprep.subr.bf16.mxu0 %v1482_v62  ;;  %v1908_v62 = vrot.slane %v993_v51, %v947_v50 }
  0x3d   :  { %828 = vmatprep.subr.bf16.mxu1 %v1484_v63 }
  0x3f   :  { %688 = vmatpush2.bf16.msra.mxu0 %v1486_v0 }
  0x40   :  { %829 = vmatpush2.bf16.msra.mxu1 %v1487_v1 }
  0x42   :  { %690 = vmatmul.mubr.bf16.vlgmr.msra.gmra.mxu0 %v1488_v2 }
  0x43   :  { %831 = vmatmul.mubr.bf16.vlgmr.msra.gmra.mxu1 %v1491_v3  ;;  %699 = vmatprep.mubr.bf16.mxu0 %v1494_v4 }
  0x44   :  { %840 = vmatprep.mubr.bf16.mxu1 %v1496_v5 }
  0x4a   :  { %700 = vmatmul.mubr.bf16.gmra.mxu0 %v1498_v6 }
  0x4b   :  { %841 = vmatmul.mubr.bf16.gmra.mxu1 %v1499_v7  ;;  %709 = vmatprep.mubr.bf16.mxu0 %v1500_v8 }
  0x4c   :  { %850 = vmatprep.mubr.bf16.mxu1 %v1502_v9 }
  0x52   :  { %710 = vmatmul.mubr.bf16.gmra.mxu0 %v1504_v10 }
  0x53   :  { %851 = vmatmul.mubr.bf16.gmra.mxu1 %v1505_v11  ;;  %719 = vmatprep.mubr.bf16.mxu0 %v1506_v12 }
  0x54   :  { %860 = vmatprep.mubr.bf16.mxu1 %v1508_v13 }
  0x5a   :  { %720 = vmatmul.mubr.bf16.gmra.mxu0 %v1510_v14 }
  0x5b   :  { %861 = vmatmul.mubr.bf16.gmra.mxu1 %v1511_v15  ;;  %729 = vmatprep.mubr.bf16.mxu0 %v1512_v16 }
  0x5c   :  { %870 = vmatprep.mubr.bf16.mxu1 %v1514_v17 }
  0x62   :  { %730 = vmatmul.mubr.bf16.gmra.mxu0 %v1516_v18 }
  0x63   :  { %871 = vmatmul.mubr.bf16.gmra.mxu1 %v1517_v19  ;;  %739 = vmatprep.mubr.bf16.mxu0 %v1518_v20 }
  0x64   :  { %880 = vmatprep.mubr.bf16.mxu1 %v1520_v21 }
  0x6a   :  { %740 = vmatmul.mubr.bf16.gmra.mxu0 %v1522_v22 }
  0x6b   :  { %881 = vmatmul.mubr.bf16.gmra.mxu1 %v1523_v23  ;;  %749 = vmatprep.mubr.bf16.mxu0 %v1524_v24 }
  0x6c   :  { %890 = vmatprep.mubr.bf16.mxu1 %v1526_v25 }
  0x72   :  { %750 = vmatmul.mubr.bf16.gmra.mxu0 %v1528_v26 }
  0x73   :  { %891 = vmatmul.mubr.bf16.gmra.mxu1 %v1529_v27  ;;  %759 = vmatprep.mubr.bf16.mxu0 %v1530_v28 }
  0x74   :  { %900 = vmatprep.mubr.bf16.mxu1 %v1532_v29 }
  0x7a   :  { %760 = vmatmul.mubr.bf16.gmra.mxu0 %v1534_v30 }
  0x7b   :  { %901 = vmatmul.mubr.bf16.gmra.mxu1 %v1535_v31  ;;  %769 = vmatprep.mubr.bf16.mxu0 %v1536_v32 }
  0x7c   :  { %910 = vmatprep.mubr.bf16.mxu1 %v1538_v33 }
  0x82   :  { %770 = vmatmul.mubr.bf16.gmra.mxu0 %v1540_v34 }
  0x83   :  { %911 = vmatmul.mubr.bf16.gmra.mxu1 %v1541_v35  ;;  %779 = vmatprep.mubr.bf16.mxu0 %v1542_v36 }
  0x84   :  { %920 = vmatprep.mubr.bf16.mxu1 %v1544_v37 }
  0x8a   :  { %780 = vmatmul.mubr.bf16.gmra.mxu0 %v1546_v40 }
  0x8b   :  { %921 = vmatmul.mubr.bf16.gmra.mxu1 %v1547_v41  ;;  %789 = vmatprep.mubr.bf16.mxu0 %v1283_v42 }
  0x8c   :  { %930 = vmatprep.mubr.bf16.mxu1 %v1285_v43 }
  0x92   :  { %790 = vmatmul.mubr.bf16.gmra.mxu0 %v1282_v44 }
  0x93   :  { %931 = vmatmul.mubr.bf16.gmra.mxu1 %v1284_v45 }
 0x102   :  { %v691_v53 = vpop.f32.mrf.mxu0 }
 0x103   :  { %v832_v54 = vpop.f32.mrf.mxu1 }
 0x104   :  { %v833_v55 = vadd.f32 %v832_v54, %v691_v53  ;;  %v693_v58 = vpop.f32.mrf.mxu0 }
 0x105   :  { %v834_v59 = vpop.f32.mrf.mxu1 }
 0x106   :  { %v951_v60 = vmul.f32 %v1901_v52, %v833_v55  ;;  %v835_v61 = vadd.f32 %v834_v59, %v693_v58  ;;  %v695_v63 = vpop.f32.mrf.mxu0 }
 0x107   :  { %v836_v0 = vpop.f32.mrf.mxu1 }
 0x108   :  { %v1005_v1 = vadd.f32 %v1903_v56, %v951_v60  ;;  %v952_v2 = vmul.f32 %v1905_v57, %v835_v61  ;;  %v837_v3 = vadd.f32 %v836_v0, %v695_v63  ;;  %v697_v4 = vpop.f32.mrf.mxu0 }
 0x109   :  { %v838_v5 = vpop.f32.mrf.mxu1 }
 0x10a   :  { %v1006_v6 = vadd.f32 %v1908_v62, %v952_v2  ;;  %v953_v7 = vmul.f32 %v1901_v52, %v837_v3  ;;  %v839_v8 = vadd.f32 %v838_v5, %v697_v4  ;;  %v1047_v9 = vmax.f32 %v1005_v1, 0.0  ;;  %v701_v10 = vpop.f32.mrf.mxu0 }
 0x10b   :  { %v842_v11 = vpop.f32.mrf.mxu1 }
 0x10c   :  { %v1048_v12 = vmax.f32 %v1006_v6, 0.0  ;;  %v1007_v13 = vadd.f32 %v1903_v56, %v953_v7  ;;  %v954_v14 = vmul.f32 %v1905_v57, %v839_v8  ;;  %v843_v15 = vadd.f32 %v842_v11, %v701_v10  ;;  %v703_v16 = vpop.f32.mrf.mxu0 }
 0x10d   :  { %v844_v17 = vpop.f32.mrf.mxu1 }
 0x10e   :  { %v1371_v18 = vpack.c.bf16 %v1048_v12, %v1047_v9  ;;  %v1008_v19 = vadd.f32 %v1908_v62, %v954_v14  ;;  %v955_v20 = vmul.f32 %v1901_v52, %v843_v15  ;;  %v845_v21 = vadd.f32 %v844_v17, %v703_v16  ;;  %v705_v22 = vpop.f32.mrf.mxu0 }
 0x10f   :  { %v846_v23 = vpop.f32.mrf.mxu1  ;;  %v1049_v24 = vmax.f32 %v1007_v13, 0.0 }
 0x110   :  { %1217 = vst [vmem:[%s2060_s4] sm:$0xff] %v1371_v18  ;;  %v1050_v25 = vmax.f32 %v1008_v19, 0.0  ;;  %v847_v26 = vadd.f32 %v846_v23, %v705_v22  ;;  %v1009_v27 = vadd.f32 %v1903_v56, %v955_v20  ;;  %v956_v28 = vmul.f32 %v1905_v57, %v845_v21  ;;  %v707_v29 = vpop.f32.mrf.mxu0 }
 0x111   :  { %v848_v30 = vpop.f32.mrf.mxu1 }
 0x112   :  { %v1372_v31 = vpack.c.bf16 %v1050_v25, %v1049_v24  ;;  %v957_v32 = vmul.f32 %v1901_v52, %v847_v26  ;;  %v849_v33 = vadd.f32 %v848_v30, %v707_v29  ;;  %v1010_v34 = vadd.f32 %v1908_v62, %v956_v28  ;;  %v711_v35 = vpop.f32.mrf.mxu0 }
 0x113   :  { %v852_v36 = vpop.f32.mrf.mxu1  ;;  %v1051_v40 = vmax.f32 %v1009_v27, 0.0 }
 0x114   :  { %1218 = vst [vmem:[%s2060_s4 + $0x8] sm:$0xff] %v1372_v31  ;;  %v1011_v37 = vadd.f32 %v1903_v56, %v957_v32  ;;  %v958_v38 = vmul.f32 %v1905_v57, %v849_v33  ;;  %v853_v39 = vadd.f32 %v852_v36, %v711_v35  ;;  %v1052_v41 = vmax.f32 %v1010_v34, 0.0  ;;  %v713_v42 = vpop.f32.mrf.mxu0 }
 0x115   :  { %v854_v43 = vpop.f32.mrf.mxu1 }
 0x116   :  { %v1012_v44 = vadd.f32 %v1908_v62, %v958_v38  ;;  %v959_v45 = vmul.f32 %v1901_v52, %v853_v39  ;;  %v855_v46 = vadd.f32 %v854_v43, %v713_v42  ;;  %v1373_v47 = vpack.c.bf16 %v1052_v41, %v1051_v40  ;;  %v715_v49 = vpop.f32.mrf.mxu0 }
 0x117   :  { %v1053_v48 = vmax.f32 %v1011_v37, 0.0  ;;  %v856_v50 = vpop.f32.mrf.mxu1 }
 0x118   :  { %v1054_v51 = vmax.f32 %v1012_v44, 0.0  ;;  %v1013_v53 = vadd.f32 %v1903_v56, %v959_v45  ;;  %v960_v54 = vmul.f32 %v1905_v57, %v855_v46  ;;  %v857_v55 = vadd.f32 %v856_v50, %v715_v49  ;;  %1219 = vst [vmem:[%s2060_s4 + $0x10] sm:$0xff] %v1373_v47  ;;  %v717_v58 = vpop.f32.mrf.mxu0 }
 0x119   :  { %v858_v59 = vpop.f32.mrf.mxu1 }
 0x11a   :  { %v1374_v60 = vpack.c.bf16 %v1054_v51, %v1053_v48  ;;  %v1014_v61 = vadd.f32 %v1908_v62, %v960_v54  ;;  %v961_v63 = vmul.f32 %v1901_v52, %v857_v55  ;;  %v859_v0 = vadd.f32 %v858_v59, %v717_v58  ;;  %v721_v1 = vpop.f32.mrf.mxu0 }
 0x11b   :  { %v862_v2 = vpop.f32.mrf.mxu1  ;;  %v1055_v3 = vmax.f32 %v1013_v53, 0.0 }
 0x11c   :  { %1220 = vst [vmem:[%s2060_s4 + $0x18] sm:$0xff] %v1374_v60  ;;  %v1056_v4 = vmax.f32 %v1014_v61, 0.0  ;;  %v863_v5 = vadd.f32 %v862_v2, %v721_v1  ;;  %v1015_v6 = vadd.f32 %v1903_v56, %v961_v63  ;;  %v962_v7 = vmul.f32 %v1905_v57, %v859_v0  ;;  %v723_v8 = vpop.f32.mrf.mxu0 }
 0x11d   :  { %v864_v9 = vpop.f32.mrf.mxu1 }
 0x11e   :  { %v1375_v10 = vpack.c.bf16 %v1056_v4, %v1055_v3  ;;  %v963_v11 = vmul.f32 %v1901_v52, %v863_v5  ;;  %v865_v12 = vadd.f32 %v864_v9, %v723_v8  ;;  %v1016_v13 = vadd.f32 %v1908_v62, %v962_v7  ;;  %v725_v14 = vpop.f32.mrf.mxu0 }
 0x11f   :  { %v866_v15 = vpop.f32.mrf.mxu1  ;;  %v1057_v19 = vmax.f32 %v1015_v6, 0.0 }
 0x120   :  { %1221 = vst [vmem:[%s2060_s4 + $0x20] sm:$0xff] %v1375_v10  ;;  %v1017_v16 = vadd.f32 %v1903_v56, %v963_v11  ;;  %v964_v17 = vmul.f32 %v1905_v57, %v865_v12  ;;  %v867_v18 = vadd.f32 %v866_v15, %v725_v14  ;;  %v1058_v20 = vmax.f32 %v1016_v13, 0.0  ;;  %v727_v21 = vpop.f32.mrf.mxu0 }
 0x121   :  { %v868_v22 = vpop.f32.mrf.mxu1 }
 0x122   :  { %v1018_v23 = vadd.f32 %v1908_v62, %v964_v17  ;;  %v965_v24 = vmul.f32 %v1901_v52, %v867_v18  ;;  %v869_v25 = vadd.f32 %v868_v22, %v727_v21  ;;  %v1376_v26 = vpack.c.bf16 %v1058_v20, %v1057_v19  ;;  %v731_v28 = vpop.f32.mrf.mxu0 }
 0x123   :  { %v1059_v27 = vmax.f32 %v1017_v16, 0.0  ;;  %v872_v29 = vpop.f32.mrf.mxu1 }
 0x124   :  { %v1060_v30 = vmax.f32 %v1018_v23, 0.0  ;;  %v1019_v31 = vadd.f32 %v1903_v56, %v965_v24  ;;  %v966_v32 = vmul.f32 %v1905_v57, %v869_v25  ;;  %v873_v33 = vadd.f32 %v872_v29, %v731_v28  ;;  %1222 = vst [vmem:[%s2060_s4 + $0x28] sm:$0xff] %v1376_v26  ;;  %v733_v34 = vpop.f32.mrf.mxu0 }
 0x125   :  { %v874_v35 = vpop.f32.mrf.mxu1 }
 0x126   :  { %v1377_v36 = vpack.c.bf16 %v1060_v30, %v1059_v27  ;;  %v1020_v37 = vadd.f32 %v1908_v62, %v966_v32  ;;  %v967_v38 = vmul.f32 %v1901_v52, %v873_v33  ;;  %v875_v39 = vadd.f32 %v874_v35, %v733_v34  ;;  %v735_v40 = vpop.f32.mrf.mxu0 }
 0x127   :  { %v876_v41 = vpop.f32.mrf.mxu1  ;;  %v1061_v42 = vmax.f32 %v1019_v31, 0.0 }
 0x128   :  { %1223 = vst [vmem:[%s2060_s4 + $0x30] sm:$0xff] %v1377_v36  ;;  %v1062_v43 = vmax.f32 %v1020_v37, 0.0  ;;  %v877_v44 = vadd.f32 %v876_v41, %v735_v40  ;;  %v1021_v45 = vadd.f32 %v1903_v56, %v967_v38  ;;  %v968_v46 = vmul.f32 %v1905_v57, %v875_v39  ;;  %v737_v47 = vpop.f32.mrf.mxu0 }
 0x129   :  { %v878_v48 = vpop.f32.mrf.mxu1 }
 0x12a   :  { %v1378_v49 = vpack.c.bf16 %v1062_v43, %v1061_v42  ;;  %v969_v50 = vmul.f32 %v1901_v52, %v877_v44  ;;  %v879_v51 = vadd.f32 %v878_v48, %v737_v47  ;;  %v1022_v53 = vadd.f32 %v1908_v62, %v968_v46  ;;  %v741_v54 = vpop.f32.mrf.mxu0 }
 0x12b   :  { %v882_v55 = vpop.f32.mrf.mxu1  ;;  %v1063_v61 = vmax.f32 %v1021_v45, 0.0 }
 0x12c   :  { %1224 = vst [vmem:[%s2060_s4 + $0x38] sm:$0xff] %v1378_v49  ;;  %v1023_v58 = vadd.f32 %v1903_v56, %v969_v50  ;;  %v970_v59 = vmul.f32 %v1905_v57, %v879_v51  ;;  %v883_v60 = vadd.f32 %v882_v55, %v741_v54  ;;  %v1064_v63 = vmax.f32 %v1022_v53, 0.0  ;;  %v743_v0 = vpop.f32.mrf.mxu0 }
 0x12d   :  { %v884_v1 = vpop.f32.mrf.mxu1 }
 0x12e   :  { %v1024_v2 = vadd.f32 %v1908_v62, %v970_v59  ;;  %v971_v3 = vmul.f32 %v1901_v52, %v883_v60  ;;  %v885_v4 = vadd.f32 %v884_v1, %v743_v0  ;;  %v1379_v5 = vpack.c.bf16 %v1064_v63, %v1063_v61  ;;  %v745_v7 = vpop.f32.mrf.mxu0 }
 0x12f   :  { %v1065_v6 = vmax.f32 %v1023_v58, 0.0  ;;  %v886_v8 = vpop.f32.mrf.mxu1 }
 0x130   :  { %v1066_v9 = vmax.f32 %v1024_v2, 0.0  ;;  %v1025_v10 = vadd.f32 %v1903_v56, %v971_v3  ;;  %v972_v11 = vmul.f32 %v1905_v57, %v885_v4  ;;  %v887_v12 = vadd.f32 %v886_v8, %v745_v7  ;;  %1225 = vst [vmem:[%s2060_s4 + $0x40] sm:$0xff] %v1379_v5  ;;  %v747_v13 = vpop.f32.mrf.mxu0 }
 0x131   :  { %v888_v14 = vpop.f32.mrf.mxu1 }
 0x132   :  { %v1380_v15 = vpack.c.bf16 %v1066_v9, %v1065_v6  ;;  %v1026_v16 = vadd.f32 %v1908_v62, %v972_v11  ;;  %v973_v17 = vmul.f32 %v1901_v52, %v887_v12  ;;  %v889_v18 = vadd.f32 %v888_v14, %v747_v13  ;;  %v751_v19 = vpop.f32.mrf.mxu0 }
 0x133   :  { %v892_v20 = vpop.f32.mrf.mxu1  ;;  %v1067_v21 = vmax.f32 %v1025_v10, 0.0 }
 0x134   :  { %1226 = vst [vmem:[%s2060_s4 + $0x48] sm:$0xff] %v1380_v15  ;;  %v1068_v22 = vmax.f32 %v1026_v16, 0.0  ;;  %v893_v23 = vadd.f32 %v892_v20, %v751_v19  ;;  %v1027_v24 = vadd.f32 %v1903_v56, %v973_v17  ;;  %v974_v25 = vmul.f32 %v1905_v57, %v889_v18  ;;  %v753_v26 = vpop.f32.mrf.mxu0 }
 0x135   :  { %v894_v27 = vpop.f32.mrf.mxu1 }
 0x136   :  { %v1381_v28 = vpack.c.bf16 %v1068_v22, %v1067_v21  ;;  %v975_v29 = vmul.f32 %v1901_v52, %v893_v23  ;;  %v895_v30 = vadd.f32 %v894_v27, %v753_v26  ;;  %v1028_v31 = vadd.f32 %v1908_v62, %v974_v25  ;;  %v755_v32 = vpop.f32.mrf.mxu0 }
 0x137   :  { %v896_v33 = vpop.f32.mrf.mxu1  ;;  %v1069_v37 = vmax.f32 %v1027_v24, 0.0 }
 0x138   :  { %1227 = vst [vmem:[%s2060_s4 + $0x50] sm:$0xff] %v1381_v28  ;;  %v1029_v34 = vadd.f32 %v1903_v56, %v975_v29  ;;  %v976_v35 = vmul.f32 %v1905_v57, %v895_v30  ;;  %v897_v36 = vadd.f32 %v896_v33, %v755_v32  ;;  %v1070_v38 = vmax.f32 %v1028_v31, 0.0  ;;  %v757_v39 = vpop.f32.mrf.mxu0 }
 0x139   :  { %v898_v40 = vpop.f32.mrf.mxu1 }
 0x13a   :  { %v1030_v41 = vadd.f32 %v1908_v62, %v976_v35  ;;  %v977_v42 = vmul.f32 %v1901_v52, %v897_v36  ;;  %v899_v43 = vadd.f32 %v898_v40, %v757_v39  ;;  %v1382_v44 = vpack.c.bf16 %v1070_v38, %v1069_v37  ;;  %v761_v46 = vpop.f32.mrf.mxu0 }
 0x13b   :  { %v1071_v45 = vmax.f32 %v1029_v34, 0.0  ;;  %v902_v47 = vpop.f32.mrf.mxu1 }
 0x13c   :  { %v1072_v48 = vmax.f32 %v1030_v41, 0.0  ;;  %v1031_v49 = vadd.f32 %v1903_v56, %v977_v42  ;;  %v978_v50 = vmul.f32 %v1905_v57, %v899_v43  ;;  %v903_v51 = vadd.f32 %v902_v47, %v761_v46  ;;  %1228 = vst [vmem:[%s2060_s4 + $0x58] sm:$0xff] %v1382_v44  ;;  %v763_v53 = vpop.f32.mrf.mxu0 }
 0x13d   :  { %v904_v54 = vpop.f32.mrf.mxu1 }
 0x13e   :  { %v1383_v55 = vpack.c.bf16 %v1072_v48, %v1071_v45  ;;  %v1032_v58 = vadd.f32 %v1908_v62, %v978_v50  ;;  %v979_v59 = vmul.f32 %v1901_v52, %v903_v51  ;;  %v905_v60 = vadd.f32 %v904_v54, %v763_v53  ;;  %v765_v61 = vpop.f32.mrf.mxu0 }
 0x13f   :  { %v906_v63 = vpop.f32.mrf.mxu1  ;;  %v1073_v0 = vmax.f32 %v1031_v49, 0.0 }
 0x140   :  { %1229 = vst [vmem:[%s2060_s4 + $0x60] sm:$0xff] %v1383_v55  ;;  %v1074_v1 = vmax.f32 %v1032_v58, 0.0  ;;  %v907_v2 = vadd.f32 %v906_v63, %v765_v61  ;;  %v1033_v3 = vadd.f32 %v1903_v56, %v979_v59  ;;  %v980_v4 = vmul.f32 %v1905_v57, %v905_v60  ;;  %v767_v5 = vpop.f32.mrf.mxu0 }
 0x141   :  { %v908_v6 = vpop.f32.mrf.mxu1 }
 0x142   :  { %v1384_v7 = vpack.c.bf16 %v1074_v1, %v1073_v0  ;;  %v981_v8 = vmul.f32 %v1901_v52, %v907_v2  ;;  %v909_v9 = vadd.f32 %v908_v6, %v767_v5  ;;  %v1034_v10 = vadd.f32 %v1908_v62, %v980_v4  ;;  %v771_v11 = vpop.f32.mrf.mxu0 }
 0x143   :  { %v912_v12 = vpop.f32.mrf.mxu1  ;;  %v1075_v16 = vmax.f32 %v1033_v3, 0.0 }
 0x144   :  { %1230 = vst [vmem:[%s2060_s4 + $0x68] sm:$0xff] %v1384_v7  ;;  %v1035_v13 = vadd.f32 %v1903_v56, %v981_v8  ;;  %v982_v14 = vmul.f32 %v1905_v57, %v909_v9  ;;  %v913_v15 = vadd.f32 %v912_v12, %v771_v11  ;;  %v1076_v17 = vmax.f32 %v1034_v10, 0.0  ;;  %v773_v18 = vpop.f32.mrf.mxu0 }
 0x145   :  { %v914_v19 = vpop.f32.mrf.mxu1 }
 0x146   :  { %v1036_v20 = vadd.f32 %v1908_v62, %v982_v14  ;;  %v983_v21 = vmul.f32 %v1901_v52, %v913_v15  ;;  %v915_v22 = vadd.f32 %v914_v19, %v773_v18  ;;  %v1385_v23 = vpack.c.bf16 %v1076_v17, %v1075_v16  ;;  %v775_v25 = vpop.f32.mrf.mxu0 }
 0x147   :  { %v1077_v24 = vmax.f32 %v1035_v13, 0.0  ;;  %v916_v26 = vpop.f32.mrf.mxu1 }
 0x148   :  { %v1078_v27 = vmax.f32 %v1036_v20, 0.0  ;;  %v1037_v28 = vadd.f32 %v1903_v56, %v983_v21  ;;  %v984_v29 = vmul.f32 %v1905_v57, %v915_v22  ;;  %v917_v30 = vadd.f32 %v916_v26, %v775_v25  ;;  %1231 = vst [vmem:[%s2060_s4 + $0x70] sm:$0xff] %v1385_v23  ;;  %v777_v31 = vpop.f32.mrf.mxu0 }
 0x149   :  { %v918_v32 = vpop.f32.mrf.mxu1 }
 0x14a   :  { %v1386_v33 = vpack.c.bf16 %v1078_v27, %v1077_v24  ;;  %v1038_v34 = vadd.f32 %v1908_v62, %v984_v29  ;;  %v985_v35 = vmul.f32 %v1901_v52, %v917_v30  ;;  %v919_v36 = vadd.f32 %v918_v32, %v777_v31  ;;  %v781_v37 = vpop.f32.mrf.mxu0 }
 0x14b   :  { %v922_v38 = vpop.f32.mrf.mxu1  ;;  %v1079_v39 = vmax.f32 %v1037_v28, 0.0 }
 0x14c   :  { %1232 = vst [vmem:[%s2060_s4 + $0x78] sm:$0xff] %v1386_v33  ;;  %v1080_v40 = vmax.f32 %v1038_v34, 0.0  ;;  %v923_v41 = vadd.f32 %v922_v38, %v781_v37  ;;  %v1039_v42 = vadd.f32 %v1903_v56, %v985_v35  ;;  %v986_v43 = vmul.f32 %v1905_v57, %v919_v36  ;;  %v783_v44 = vpop.f32.mrf.mxu0 }
 0x14d   :  { %v924_v45 = vpop.f32.mrf.mxu1 }
 0x14e   :  { %v1387_v46 = vpack.c.bf16 %v1080_v40, %v1079_v39  ;;  %v987_v47 = vmul.f32 %v1901_v52, %v923_v41  ;;  %v925_v48 = vadd.f32 %v924_v45, %v783_v44  ;;  %v1040_v49 = vadd.f32 %v1908_v62, %v986_v43  ;;  %v785_v50 = vpop.f32.mrf.mxu0 }
 0x14f   :  { %v926_v51 = vpop.f32.mrf.mxu1  ;;  %v1081_v58 = vmax.f32 %v1039_v42, 0.0 }
 0x150   :  { %1233 = vst [vmem:[%s2060_s4 + $0x80] sm:$0xff] %v1387_v46  ;;  %v1041_v53 = vadd.f32 %v1903_v56, %v987_v47  ;;  %v988_v54 = vmul.f32 %v1905_v57, %v925_v48  ;;  %v927_v55 = vadd.f32 %v926_v51, %v785_v50  ;;  %v1082_v59 = vmax.f32 %v1040_v49, 0.0  ;;  %v787_v60 = vpop.f32.mrf.mxu0 }
 0x151   :  { %v928_v61 = vpop.f32.mrf.mxu1 }
 0x152   :  { %v1042_v63 = vadd.f32 %v1908_v62, %v988_v54  ;;  %v989_v0 = vmul.f32 %v1901_v52, %v927_v55  ;;  %v929_v1 = vadd.f32 %v928_v61, %v787_v60  ;;  %v1388_v2 = vpack.c.bf16 %v1082_v59, %v1081_v58  ;;  %v791_v4 = vpop.f32.mrf.mxu0 }
 0x153   :  { %v1083_v3 = vmax.f32 %v1041_v53, 0.0  ;;  %v932_v5 = vpop.f32.mrf.mxu1 }
 0x154   :  { %v1084_v6 = vmax.f32 %v1042_v63, 0.0  ;;  %v1043_v7 = vadd.f32 %v1903_v56, %v989_v0  ;;  %v990_v8 = vmul.f32 %v1905_v57, %v929_v1  ;;  %v933_v9 = vadd.f32 %v932_v5, %v791_v4  ;;  %1234 = vst [vmem:[%s2060_s4 + $0x88] sm:$0xff] %v1388_v2  ;;  %v793_v10 = vpop.f32.mrf.mxu0 }
 0x155   :  { %v934_v11 = vpop.f32.mrf.mxu1 }
 0x156   :  { %v1389_v12 = vpack.c.bf16 %v1084_v6, %v1083_v3  ;;  %v1044_v13 = vadd.f32 %v1908_v62, %v990_v8  ;;  %v991_v14 = vmul.f32 %v1901_v52, %v933_v9  ;;  %v935_v15 = vadd.f32 %v934_v11, %v793_v10  ;;  %v795_v16 = vpop.f32.mrf.mxu0 }
 0x157   :  { %v936_v17 = vpop.f32.mrf.mxu1  ;;  %v1085_v18 = vmax.f32 %v1043_v7, 0.0 }
 0x158   :  { %1235 = vst [vmem:[%s2060_s4 + $0x90] sm:$0xff] %v1389_v12  ;;  %v1086_v19 = vmax.f32 %v1044_v13, 0.0  ;;  %v1045_v20 = vadd.f32 %v1903_v56, %v991_v14  ;;  %v992_v21 = vmul.f32 %v1905_v57, %v935_v15  ;;  %v796_v22 = vpop.f32.mrf.mxu0 }
 0x159   :  { %v937_v23 = vpop.f32.mrf.mxu1 }
 0x15a   :  { %v1390_v24 = vpack.c.bf16 %v1086_v19, %v1085_v18  ;;  %v1046_v25 = vadd.f32 %v1908_v62, %v992_v21  ;;  %v1087_v52 = vmax.f32 %v1045_v20, 0.0 }
 0x15c   :  { %1236 = vst [vmem:[%s2060_s4 + $0x98] sm:$0xff] %v1390_v24  ;;  %v1088_v26 = vmax.f32 %v1046_v25, 0.0 }
 0x15e   :  { %v1391_v27 = vpack.c.bf16 %v1088_v26, %v1087_v52 }
 0x160   :  { %1237 = vst [vmem:[%s2060_s4 + $0xa0] sm:$0xff] %v1391_v27 }

// kernel: generator_forward.14
= control target key start
LH: loop header
LB: loop body
LE: loop exit
PB: predicated region body
PF: predicated region fallthrough
CT: control target
= control target key end

     0   :  { %s1625_s15 = smov 0   ;;  %s1627_s16 = smov 0   ;;  %s1836_s0 = inlined_call_operand.vmem [shape: bf16[768,256], index: 0, kind: input, shape index: {}]   ;;  %s1837_s1 = inlined_call_operand.vmem [shape: bf16[256,128], index: 1, kind: input, shape index: {}]   ;;  %s1838_s2 = inlined_call_operand.vmem [shape: f32[1,128], index: 2, kind: input, shape index: {}]   ;;  %s1839_s3 = inlined_call_operand.vmem [shape: f32[1,128], index: 3, kind: input, shape index: {}]   ;;  %s1840_s4 = inlined_call_operand.vmem [shape: bf16[768,128], index: 4, kind: output, shape index: {}]  }
   0x1   :  { %s1629_s17 = smov 0  }
   0x2 LB: > { %s26_s18 = sadd.s32 1, %s1594_s16  ;;  %p1142_p0 = scmp.ge.s32.totalorder %s1598_s17, 1  ;;  %s1598_s17 = sphi %s1629_s17, %s14_s17   ;;  %s1594_s16 = sphi %s1627_s16, %s1842_s16   ;;  %s1590_s15 = sphi %s1625_s15, %s1841_s15  }
   0x3   : > { %p28_p1 = scmp.ge.s32.totalorder %s26_s18, 3  ;;  %p203_p2 = scmp.lt.s32.totalorder %s1598_s17, 4 }
   0x5   : > { %s1844_s18 = smov (%p28_p1, %s26_s18), 0  ;;  %p204_p3 = pnand %p1142_p0, %p203_p2 }
   0x6   : > { %s1143_s21 = sshll.u32 (!%p204_p3), %s1590_s15, 5 }
   0x7   : > { %207 = sbr.rel (%p204_p3) target bundleno = 311 (0x137), region = 36  ;;  %p244_p4 = scmp.lt.s32.totalorder (!%p204_p3), %s1143_s21, 95 }
   0xc   : > { %v1512_v0 = vld [vmem:[%s1837_s1 + $0x78] sm:$0xff]   ;;  %v1514_v2 = vld [vmem:[%s1837_s1 + $0x70] sm:$0xff]   ;;  %v1516_v4 = vld [vmem:[%s1837_s1 + $0x68] sm:$0xff]   ;;  %s1846_s21 = smov (!%p244_p4, %s1143_s21), 95 }
   0xd   : > { %v1513_v1 = vld [vmem:[%s1837_s1 + $0x38] sm:$0xff]   ;;  %1360 = vmatprep.subr.bf16.mxu0 %v1512_v0  ;;  %1472 = vmatprep.subr.bf16.mxu1 %v1512_v0  ;;  %v1515_v3 = vld [vmem:[%s1837_s1 + $0x30] sm:$0xff]   ;;  %v1517_v5 = vld [vmem:[%s1837_s1 + $0x28] sm:$0xff]   ;;  %s1232_s10 = sshll.u32 %s1846_s21, 3  ;;  %s1147_s12 = sshll.u32 %s1846_s21, 2 }
   0xe   : > { %1361 = vmatpush3.bf16.msra.mxu0 %v1513_v1  ;;  %1480 = vmatpush3.bf16.msra.mxu1 %v1513_v1  ;;  %v1518_v6 = vld [vmem:[%s1837_s1 + $0x60] sm:$0xff]   ;;  %v1520_v8 = vld [vmem:[%s1837_s1 + $0x58] sm:$0xff]   ;;  %s1676_s15 = scalar_lea.vmem %s1836_s0, %s1232_s10  ;;  %v1522_v10 = vld [vmem:[%s1837_s1 + $0x50] sm:$0xff]  }
   0xf   : > { %1362 = vmatprep.subr.bf16.mxu0 %v1514_v2  ;;  %1473 = vmatprep.subr.bf16.mxu1 %v1514_v2  ;;  %v1519_v7 = vld [vmem:[%s1837_s1 + $0x20] sm:$0xff]   ;;  %v1521_v9 = vld [vmem:[%s1837_s1 + $0x18] sm:$0xff]   ;;  %v1523_v13 = vld [vmem:[%s1837_s1 + $0x10] sm:$0xff]  }
  0x10   : > { %v1530_v11 = vld [vmem:[%s1676_s15 + $0x4] ss:$8 sps:$4 sm:$0xff]   ;;  %v1528_v18 = vld [vmem:[%s1676_s15] ss:$8 sps:$4 sm:$0xff]   ;;  %v1534_v20 = vld [vmem:[%s1676_s15 + $0x14] ss:$8 sps:$4 sm:$0xff]  }
  0x11   : > { %v1533_v12 = vld [vmem:[%s1676_s15 + $0x84] ss:$8 sps:$4 sm:$0xff]   ;;  %622 = vmatprep.mubr.bf16.mxu0 %v1530_v11  ;;  %v1531_v19 = vld [vmem:[%s1676_s15 + $0x80] ss:$8 sps:$4 sm:$0xff]   ;;  %v1536_v21 = vld [vmem:[%s1676_s15 + $0x94] ss:$8 sps:$4 sm:$0xff]  }
  0x12   : > { %1363 = vmatpush3.bf16.msra.mxu0 %v1515_v3  ;;  %1481 = vmatpush3.bf16.msra.mxu1 %v1515_v3  ;;  %v1524_v14 = vld [vmem:[%s1837_s1 + $0x48] sm:$0xff]   ;;  %v1526_v16 = vld [vmem:[%s1837_s1 + $0x40] sm:$0xff]   ;;  %v1538_v22 = vld [vmem:[%s1676_s15 + $0x10] ss:$8 sps:$4 sm:$0xff]  }
  0x13   : > { %1364 = vmatprep.subr.bf16.mxu0 %v1516_v4  ;;  %1474 = vmatprep.subr.bf16.mxu1 %v1516_v4  ;;  %v1525_v15 = vld [vmem:[%s1837_s1 + $0x8] sm:$0xff]   ;;  %v1527_v17 = vld [vmem:[%s1837_s1] sm:$0xff]   ;;  %v1539_v23 = vld [vmem:[%s1676_s15 + $0x90] ss:$8 sps:$4 sm:$0xff]  }
  0x14   : > { %686 = vmatprep.mubr.bf16.mxu1 %v1533_v12  ;;  %v1540_v24 = vld [vmem:[%s1676_s15 + $0x24] ss:$8 sps:$4 sm:$0xff]   ;;  %v1544_v26 = vld [vmem:[%s1676_s15 + $0x20] ss:$8 sps:$4 sm:$0xff]   ;;  %v1546_v28 = vld [vmem:[%s1676_s15 + $0x34] ss:$8 sps:$4 sm:$0xff]  }
  0x15   : > { %v1542_v25 = vld [vmem:[%s1676_s15 + $0xa4] ss:$8 sps:$4 sm:$0xff]   ;;  %v1545_v27 = vld [vmem:[%s1676_s15 + $0xa0] ss:$8 sps:$4 sm:$0xff]   ;;  %v1548_v29 = vld [vmem:[%s1676_s15 + $0xb4] ss:$8 sps:$4 sm:$0xff]  }
  0x16   : > { %1365 = vmatpush3.bf16.msra.mxu0 %v1517_v5  ;;  %1482 = vmatpush3.bf16.msra.mxu1 %v1517_v5  ;;  %v1550_v30 = vld [vmem:[%s1676_s15 + $0x30] ss:$8 sps:$4 sm:$0xff]   ;;  %v1552_v32 = vld [vmem:[%s1676_s15 + $0x44] ss:$8 sps:$4 sm:$0xff]   ;;  %v1556_v34 = vld [vmem:[%s1676_s15 + $0x40] ss:$8 sps:$4 sm:$0xff]  }
  0x17   : > { %1366 = vmatprep.subr.bf16.mxu0 %v1518_v6  ;;  %1475 = vmatprep.subr.bf16.mxu1 %v1518_v6  ;;  %v1551_v31 = vld [vmem:[%s1676_s15 + $0xb0] ss:$8 sps:$4 sm:$0xff]   ;;  %v1554_v33 = vld [vmem:[%s1676_s15 + $0xc4] ss:$8 sps:$4 sm:$0xff]   ;;  %v1557_v35 = vld [vmem:[%s1676_s15 + $0xc0] ss:$8 sps:$4 sm:$0xff]  }
  0x18   : > { %v1558_v36 = vld [vmem:[%s1676_s15 + $0x54] ss:$8 sps:$4 sm:$0xff]   ;;  %v1562_v38 = vld [vmem:[%s1676_s15 + $0x50] ss:$8 sps:$4 sm:$0xff]   ;;  %v1564_v40 = vld [vmem:[%s1676_s15 + $0x64] ss:$8 sps:$4 sm:$0xff]  }
  0x19   : > { %v1560_v37 = vld [vmem:[%s1676_s15 + $0xd4] ss:$8 sps:$4 sm:$0xff]   ;;  %v1563_v39 = vld [vmem:[%s1676_s15 + $0xd0] ss:$8 sps:$4 sm:$0xff]   ;;  %v1566_v41 = vld [vmem:[%s1676_s15 + $0xe4] ss:$8 sps:$4 sm:$0xff]  }
  0x1a   : > { %1367 = vmatpush3.bf16.msra.mxu0 %v1519_v7  ;;  %1483 = vmatpush3.bf16.msra.mxu1 %v1519_v7  ;;  %v1568_v42 = vld [vmem:[%s1676_s15 + $0x60] ss:$8 sps:$4 sm:$0xff]   ;;  %v1570_v44 = vld [vmem:[%s1676_s15 + $0x74] ss:$8 sps:$4 sm:$0xff]   ;;  %v1574_v46 = vld [vmem:[%s1676_s15 + $0x70] ss:$8 sps:$4 sm:$0xff]  }
  0x1b   : > { %1368 = vmatprep.subr.bf16.mxu0 %v1520_v8  ;;  %1476 = vmatprep.subr.bf16.mxu1 %v1520_v8  ;;  %v1569_v43 = vld [vmem:[%s1676_s15 + $0xe0] ss:$8 sps:$4 sm:$0xff]   ;;  %v1572_v45 = vld [vmem:[%s1676_s15 + $0xf4] ss:$8 sps:$4 sm:$0xff]   ;;  %v1575_v47 = vld [vmem:[%s1676_s15 + $0xf0] ss:$8 sps:$4 sm:$0xff]   ;;  %s1753_s15 = scalar_lea.vmem %s1840_s4, %s1147_s12 }
  0x1c   : > { %v1734_v51 = vld [vmem:[%s1838_s2] ss:$0 sm:$0xff] }
  0x1d   : > { %v1741_v59 = vld [vmem:[%s1839_s3] ss:$0 sm:$0xff] }
  0x1e   : > { %1369 = vmatpush3.bf16.msra.mxu0 %v1521_v9  ;;  %1484 = vmatpush3.bf16.msra.mxu1 %v1521_v9 }
  0x1f   : > { %1370 = vmatprep.subr.bf16.mxu0 %v1522_v10  ;;  %1477 = vmatprep.subr.bf16.mxu1 %v1522_v10 }
  0x22   : > { %1371 = vmatpush3.bf16.msra.mxu0 %v1523_v13  ;;  %1485 = vmatpush3.bf16.msra.mxu1 %v1523_v13 }
  0x23   : > { %1372 = vmatprep.subr.bf16.mxu0 %v1524_v14  ;;  %1478 = vmatprep.subr.bf16.mxu1 %v1524_v14 }
  0x26   : > { %1373 = vmatpush3.bf16.msra.mxu0 %v1525_v15  ;;  %1486 = vmatpush3.bf16.msra.mxu1 %v1525_v15 }
  0x27   : > { %1374 = vmatprep.subr.bf16.mxu0 %v1526_v16  ;;  %1479 = vmatprep.subr.bf16.mxu1 %v1526_v16 }
  0x2a   : > { %1375 = vmatpush3.bf16.msra.mxu0 %v1527_v17  ;;  %1487 = vmatpush3.bf16.msra.mxu1 %v1527_v17 }
  0x2d   : > { %623 = vmatmul.mubr.bf16.vlgmr.msra.gmra.mxu0 %v1528_v18  ;;  %687 = vmatmul.mubr.bf16.vlgmr.msra.gmra.mxu1 %v1531_v19 }
  0x2e   : > { %630 = vmatprep.mubr.bf16.mxu0 %v1534_v20  ;;  %694 = vmatprep.mubr.bf16.mxu1 %v1536_v21 }
  0x35   : > { %631 = vmatmul.mubr.bf16.gmra.mxu0 %v1538_v22  ;;  %695 = vmatmul.mubr.bf16.gmra.mxu1 %v1539_v23 }
  0x36   : > { %638 = vmatprep.mubr.bf16.mxu0 %v1540_v24  ;;  %702 = vmatprep.mubr.bf16.mxu1 %v1542_v25 }
  0x3d   : > { %639 = vmatmul.mubr.bf16.gmra.mxu0 %v1544_v26  ;;  %703 = vmatmul.mubr.bf16.gmra.mxu1 %v1545_v27 }
  0x3e   : > { %646 = vmatprep.mubr.bf16.mxu0 %v1546_v28  ;;  %710 = vmatprep.mubr.bf16.mxu1 %v1548_v29 }
  0x45   : > { %647 = vmatmul.mubr.bf16.gmra.mxu0 %v1550_v30  ;;  %711 = vmatmul.mubr.bf16.gmra.mxu1 %v1551_v31 }
  0x46   : > { %654 = vmatprep.mubr.bf16.mxu0 %v1552_v32  ;;  %718 = vmatprep.mubr.bf16.mxu1 %v1554_v33 }
  0x4d   : > { %655 = vmatmul.mubr.bf16.gmra.mxu0 %v1556_v34  ;;  %719 = vmatmul.mubr.bf16.gmra.mxu1 %v1557_v35 }
  0x4e   : > { %662 = vmatprep.mubr.bf16.mxu0 %v1558_v36  ;;  %726 = vmatprep.mubr.bf16.mxu1 %v1560_v37 }
  0x55   : > { %663 = vmatmul.mubr.bf16.gmra.mxu0 %v1562_v38  ;;  %727 = vmatmul.mubr.bf16.gmra.mxu1 %v1563_v39 }
  0x56   : > { %670 = vmatprep.mubr.bf16.mxu0 %v1564_v40  ;;  %734 = vmatprep.mubr.bf16.mxu1 %v1566_v41 }
  0x5d   : > { %671 = vmatmul.mubr.bf16.gmra.mxu0 %v1568_v42  ;;  %735 = vmatmul.mubr.bf16.gmra.mxu1 %v1569_v43 }
  0x5e   : > { %678 = vmatprep.mubr.bf16.mxu0 %v1570_v44  ;;  %742 = vmatprep.mubr.bf16.mxu1 %v1572_v45 }
  0x65   : > { %679 = vmatmul.mubr.bf16.gmra.mxu0 %v1574_v46  ;;  %743 = vmatmul.mubr.bf16.gmra.mxu1 %v1575_v47 }
  0xed   : > { %v1376_v48 = vpop.f32.mrf.mxu0  ;;  %v1424_v49 = vpop.f32.mrf.mxu1 }
  0xef   : > { %v1377_v50 = vpop.f32.mrf.mxu0  ;;  %v1425_v52 = vpop.f32.mrf.mxu1 }
  0xf0   : > { %v1378_v53 = vadd.f32 %v1377_v50, %v1376_v48  ;;  %v1426_v54 = vadd.f32 %v1425_v52, %v1424_v49 }
  0xf1   : > { %v1379_v55 = vpop.f32.mrf.mxu0  ;;  %v1427_v56 = vpop.f32.mrf.mxu1 }
  0xf2   : > { %v758_v57 = vmul.f32 %v1378_v53, %v1734_v51  ;;  %v774_v58 = vmul.f32 %v1426_v54, %v1734_v51 }
  0xf3   : > { %v1380_v60 = vpop.f32.mrf.mxu0  ;;  %v1428_v61 = vpop.f32.mrf.mxu1 }
  0xf4   : > { %v1381_v62 = vadd.f32 %v1380_v60, %v1379_v55  ;;  %v1429_v63 = vadd.f32 %v1428_v61, %v1427_v56  ;;  %v797_v2 = vadd.f32 %v1741_v59, %v758_v57  ;;  %v813_v3 = vadd.f32 %v1741_v59, %v774_v58 }
  0xf5   : > { %v1382_v0 = vpop.f32.mrf.mxu0  ;;  %v1430_v1 = vpop.f32.mrf.mxu1 }
  0xf6   : > { %v759_v4 = vmul.f32 %v1381_v62, %v1734_v51  ;;  %v775_v5 = vmul.f32 %v1429_v63, %v1734_v51  ;;  %v829_v14 = vmax.f32 %v797_v2, 0.0  ;;  %v845_v15 = vmax.f32 %v813_v3, 0.0 }
  0xf7   : > { %v1383_v6 = vpop.f32.mrf.mxu0  ;;  %v1431_v7 = vpop.f32.mrf.mxu1 }
  0xf8   : > { %v798_v8 = vadd.f32 %v1741_v59, %v759_v4  ;;  %v814_v9 = vadd.f32 %v1741_v59, %v775_v5  ;;  %v1384_v10 = vadd.f32 %v1383_v6, %v1382_v0  ;;  %v1432_v11 = vadd.f32 %v1431_v7, %v1430_v1 }
  0xf9   : > { %v1385_v12 = vpop.f32.mrf.mxu0  ;;  %v1433_v13 = vpop.f32.mrf.mxu1 }
  0xfa   : > { %v830_v16 = vmax.f32 %v798_v8, 0.0  ;;  %v846_v17 = vmax.f32 %v814_v9, 0.0  ;;  %v760_v18 = vmul.f32 %v1384_v10, %v1734_v51  ;;  %v776_v19 = vmul.f32 %v1432_v11, %v1734_v51 }
  0xfb   : > { %v1386_v20 = vpop.f32.mrf.mxu0  ;;  %v1434_v21 = vpop.f32.mrf.mxu1 }
  0xfc   : > { %v1268_v22 = vpack.c.bf16 %v830_v16, %v829_v14  ;;  %v1308_v23 = vpack.c.bf16 %v846_v17, %v845_v15  ;;  %v1387_v24 = vadd.f32 %v1386_v20, %v1385_v12  ;;  %v1435_v25 = vadd.f32 %v1434_v21, %v1433_v13 }
  0xfd   : > { %v1388_v26 = vpop.f32.mrf.mxu0  ;;  %v1436_v27 = vpop.f32.mrf.mxu1  ;;  %v799_v28 = vadd.f32 %v1741_v59, %v760_v18  ;;  %v815_v29 = vadd.f32 %v1741_v59, %v776_v19 }
  0xfe   : > { %1269 = vst [vmem:[%s1753_s15] sm:$0xff] %v1268_v22   ;;  %1352 = vst [vmem:[%s1753_s15 + $0x40] sm:$0xff] %v1308_v23   ;;  %v761_v30 = vmul.f32 %v1387_v24, %v1734_v51  ;;  %v777_v31 = vmul.f32 %v1435_v25, %v1734_v51 }
  0xff   : > { %v1389_v32 = vpop.f32.mrf.mxu0  ;;  %v1437_v33 = vpop.f32.mrf.mxu1  ;;  %v831_v42 = vmax.f32 %v799_v28, 0.0  ;;  %v847_v43 = vmax.f32 %v815_v29, 0.0 }
 0x100   : > { %v1390_v34 = vadd.f32 %v1389_v32, %v1388_v26  ;;  %v1438_v35 = vadd.f32 %v1437_v33, %v1436_v27  ;;  %v800_v36 = vadd.f32 %v1741_v59, %v761_v30  ;;  %v816_v37 = vadd.f32 %v1741_v59, %v777_v31 }
 0x101   : > { %v1391_v38 = vpop.f32.mrf.mxu0  ;;  %v1439_v39 = vpop.f32.mrf.mxu1 }
 0x102   : > { %v762_v40 = vmul.f32 %v1390_v34, %v1734_v51  ;;  %v778_v41 = vmul.f32 %v1438_v35, %v1734_v51  ;;  %v832_v44 = vmax.f32 %v800_v36, 0.0  ;;  %v848_v45 = vmax.f32 %v816_v37, 0.0 }
 0x103   : > { %v1392_v46 = vpop.f32.mrf.mxu0  ;;  %v1440_v47 = vpop.f32.mrf.mxu1 }
 0x104   : > { %v1393_v48 = vadd.f32 %v1392_v46, %v1391_v38  ;;  %v1441_v49 = vadd.f32 %v1440_v47, %v1439_v39  ;;  %v1273_v50 = vpack.c.bf16 %v832_v44, %v831_v42  ;;  %v1313_v52 = vpack.c.bf16 %v848_v45, %v847_v43 }
 0x105   : > { %v1394_v53 = vpop.f32.mrf.mxu0  ;;  %v1442_v54 = vpop.f32.mrf.mxu1  ;;  %v801_v55 = vadd.f32 %v1741_v59, %v762_v40  ;;  %v817_v56 = vadd.f32 %v1741_v59, %v778_v41 }
 0x106   : > { %v763_v57 = vmul.f32 %v1393_v48, %v1734_v51  ;;  %v779_v58 = vmul.f32 %v1441_v49, %v1734_v51  ;;  %1345 = vst [vmem:[%s1753_s15 + $0x8] sm:$0xff] %v1273_v50   ;;  %1353 = vst [vmem:[%s1753_s15 + $0x48] sm:$0xff] %v1313_v52  }
 0x107   : > { %v1395_v60 = vpop.f32.mrf.mxu0  ;;  %v1443_v61 = vpop.f32.mrf.mxu1  ;;  %v833_v4 = vmax.f32 %v801_v55, 0.0  ;;  %v849_v5 = vmax.f32 %v817_v56, 0.0 }
 0x108   : > { %v802_v62 = vadd.f32 %v1741_v59, %v763_v57  ;;  %v818_v63 = vadd.f32 %v1741_v59, %v779_v58  ;;  %v1396_v0 = vadd.f32 %v1395_v60, %v1394_v53  ;;  %v1444_v1 = vadd.f32 %v1443_v61, %v1442_v54 }
 0x109   : > { %v1397_v2 = vpop.f32.mrf.mxu0  ;;  %v1445_v3 = vpop.f32.mrf.mxu1 }
 0x10a   : > { %v834_v6 = vmax.f32 %v802_v62, 0.0  ;;  %v850_v7 = vmax.f32 %v818_v63, 0.0  ;;  %v764_v8 = vmul.f32 %v1396_v0, %v1734_v51  ;;  %v780_v9 = vmul.f32 %v1444_v1, %v1734_v51 }
 0x10b   : > { %v1398_v10 = vpop.f32.mrf.mxu0  ;;  %v1446_v11 = vpop.f32.mrf.mxu1 }
 0x10c   : > { %v1278_v12 = vpack.c.bf16 %v834_v6, %v833_v4  ;;  %v1318_v13 = vpack.c.bf16 %v850_v7, %v849_v5  ;;  %v1399_v14 = vadd.f32 %v1398_v10, %v1397_v2  ;;  %v1447_v15 = vadd.f32 %v1446_v11, %v1445_v3 }
 0x10d   : > { %v1400_v16 = vpop.f32.mrf.mxu0  ;;  %v1448_v17 = vpop.f32.mrf.mxu1  ;;  %v803_v18 = vadd.f32 %v1741_v59, %v764_v8  ;;  %v819_v19 = vadd.f32 %v1741_v59, %v780_v9 }
 0x10e   : > { %1346 = vst [vmem:[%s1753_s15 + $0x10] sm:$0xff] %v1278_v12   ;;  %1354 = vst [vmem:[%s1753_s15 + $0x50] sm:$0xff] %v1318_v13   ;;  %v765_v20 = vmul.f32 %v1399_v14, %v1734_v51  ;;  %v781_v21 = vmul.f32 %v1447_v15, %v1734_v51 }
 0x10f   : > { %v1401_v22 = vpop.f32.mrf.mxu0  ;;  %v1449_v23 = vpop.f32.mrf.mxu1  ;;  %v835_v32 = vmax.f32 %v803_v18, 0.0  ;;  %v851_v33 = vmax.f32 %v819_v19, 0.0 }
 0x110   : > { %v1402_v24 = vadd.f32 %v1401_v22, %v1400_v16  ;;  %v1450_v25 = vadd.f32 %v1449_v23, %v1448_v17  ;;  %v804_v26 = vadd.f32 %v1741_v59, %v765_v20  ;;  %v820_v27 = vadd.f32 %v1741_v59, %v781_v21 }
 0x111   : > { %v1403_v28 = vpop.f32.mrf.mxu0  ;;  %v1451_v29 = vpop.f32.mrf.mxu1 }
 0x112   : > { %v766_v30 = vmul.f32 %v1402_v24, %v1734_v51  ;;  %v782_v31 = vmul.f32 %v1450_v25, %v1734_v51  ;;  %v836_v34 = vmax.f32 %v804_v26, 0.0  ;;  %v852_v35 = vmax.f32 %v820_v27, 0.0 }
 0x113   : > { %v1404_v36 = vpop.f32.mrf.mxu0  ;;  %v1452_v37 = vpop.f32.mrf.mxu1 }
 0x114   : > { %v1405_v38 = vadd.f32 %v1404_v36, %v1403_v28  ;;  %v1453_v39 = vadd.f32 %v1452_v37, %v1451_v29  ;;  %v1283_v40 = vpack.c.bf16 %v836_v34, %v835_v32  ;;  %v1323_v41 = vpack.c.bf16 %v852_v35, %v851_v33 }
 0x115   : > { %v1406_v42 = vpop.f32.mrf.mxu0  ;;  %v1454_v43 = vpop.f32.mrf.mxu1  ;;  %v805_v44 = vadd.f32 %v1741_v59, %v766_v30  ;;  %v821_v45 = vadd.f32 %v1741_v59, %v782_v31 }
 0x116   : > { %v767_v46 = vmul.f32 %v1405_v38, %v1734_v51  ;;  %v783_v47 = vmul.f32 %v1453_v39, %v1734_v51  ;;  %1347 = vst [vmem:[%s1753_s15 + $0x18] sm:$0xff] %v1283_v40   ;;  %1355 = vst [vmem:[%s1753_s15 + $0x58] sm:$0xff] %v1323_v41  }
 0x117   : > { %v1407_v48 = vpop.f32.mrf.mxu0  ;;  %v1455_v49 = vpop.f32.mrf.mxu1  ;;  %v837_v57 = vmax.f32 %v805_v44, 0.0  ;;  %v853_v58 = vmax.f32 %v821_v45, 0.0 }
 0x118   : > { %v806_v50 = vadd.f32 %v1741_v59, %v767_v46  ;;  %v822_v52 = vadd.f32 %v1741_v59, %v783_v47  ;;  %v1408_v53 = vadd.f32 %v1407_v48, %v1406_v42  ;;  %v1456_v54 = vadd.f32 %v1455_v49, %v1454_v43 }
 0x119   : > { %v1409_v55 = vpop.f32.mrf.mxu0  ;;  %v1457_v56 = vpop.f32.mrf.mxu1 }
 0x11a   : > { %v838_v60 = vmax.f32 %v806_v50, 0.0  ;;  %v854_v61 = vmax.f32 %v822_v52, 0.0  ;;  %v768_v62 = vmul.f32 %v1408_v53, %v1734_v51  ;;  %v784_v63 = vmul.f32 %v1456_v54, %v1734_v51 }
 0x11b   : > { %v1410_v0 = vpop.f32.mrf.mxu0  ;;  %v1458_v1 = vpop.f32.mrf.mxu1 }
 0x11c   : > { %v1288_v2 = vpack.c.bf16 %v838_v60, %v837_v57  ;;  %v1328_v3 = vpack.c.bf16 %v854_v61, %v853_v58  ;;  %v1411_v4 = vadd.f32 %v1410_v0, %v1409_v55  ;;  %v1459_v5 = vadd.f32 %v1458_v1, %v1457_v56 }
 0x11d   : > { %v1412_v6 = vpop.f32.mrf.mxu0  ;;  %v1460_v7 = vpop.f32.mrf.mxu1  ;;  %v807_v8 = vadd.f32 %v1741_v59, %v768_v62  ;;  %v823_v9 = vadd.f32 %v1741_v59, %v784_v63 }
 0x11e   : > { %1348 = vst [vmem:[%s1753_s15 + $0x20] sm:$0xff] %v1288_v2   ;;  %1356 = vst [vmem:[%s1753_s15 + $0x60] sm:$0xff] %v1328_v3   ;;  %v769_v10 = vmul.f32 %v1411_v4, %v1734_v51  ;;  %v785_v11 = vmul.f32 %v1459_v5, %v1734_v51 }
 0x11f   : > { %v1413_v12 = vpop.f32.mrf.mxu0  ;;  %v1461_v13 = vpop.f32.mrf.mxu1  ;;  %v839_v22 = vmax.f32 %v807_v8, 0.0  ;;  %v855_v23 = vmax.f32 %v823_v9, 0.0 }
 0x120   : > { %v1414_v14 = vadd.f32 %v1413_v12, %v1412_v6  ;;  %v1462_v15 = vadd.f32 %v1461_v13, %v1460_v7  ;;  %v808_v16 = vadd.f32 %v1741_v59, %v769_v10  ;;  %v824_v17 = vadd.f32 %v1741_v59, %v785_v11 }
 0x121   : > { %v1415_v18 = vpop.f32.mrf.mxu0  ;;  %v1463_v19 = vpop.f32.mrf.mxu1 }
 0x122   : > { %v770_v20 = vmul.f32 %v1414_v14, %v1734_v51  ;;  %v786_v21 = vmul.f32 %v1462_v15, %v1734_v51  ;;  %v840_v24 = vmax.f32 %v808_v16, 0.0  ;;  %v856_v25 = vmax.f32 %v824_v17, 0.0 }
 0x123   : > { %v1416_v26 = vpop.f32.mrf.mxu0  ;;  %v1464_v27 = vpop.f32.mrf.mxu1 }
 0x124   : > { %v1417_v28 = vadd.f32 %v1416_v26, %v1415_v18  ;;  %v1465_v29 = vadd.f32 %v1464_v27, %v1463_v19  ;;  %v1293_v30 = vpack.c.bf16 %v840_v24, %v839_v22  ;;  %v1333_v31 = vpack.c.bf16 %v856_v25, %v855_v23 }
 0x125   : > { %v1418_v32 = vpop.f32.mrf.mxu0  ;;  %v1466_v33 = vpop.f32.mrf.mxu1  ;;  %v809_v34 = vadd.f32 %v1741_v59, %v770_v20  ;;  %v825_v35 = vadd.f32 %v1741_v59, %v786_v21 }
 0x126   : > { %v771_v36 = vmul.f32 %v1417_v28, %v1734_v51  ;;  %v787_v37 = vmul.f32 %v1465_v29, %v1734_v51  ;;  %1349 = vst [vmem:[%s1753_s15 + $0x28] sm:$0xff] %v1293_v30   ;;  %1357 = vst [vmem:[%s1753_s15 + $0x68] sm:$0xff] %v1333_v31  }
 0x127   : > { %v1419_v38 = vpop.f32.mrf.mxu0  ;;  %v1467_v39 = vpop.f32.mrf.mxu1  ;;  %v841_v46 = vmax.f32 %v809_v34, 0.0  ;;  %v857_v47 = vmax.f32 %v825_v35, 0.0 }
 0x128   : > { %v810_v40 = vadd.f32 %v1741_v59, %v771_v36  ;;  %v826_v41 = vadd.f32 %v1741_v59, %v787_v37  ;;  %v1420_v42 = vadd.f32 %v1419_v38, %v1418_v32  ;;  %v1468_v43 = vadd.f32 %v1467_v39, %v1466_v33 }
 0x129   : > { %v1421_v44 = vpop.f32.mrf.mxu0  ;;  %v1469_v45 = vpop.f32.mrf.mxu1 }
 0x12a   : > { %v842_v48 = vmax.f32 %v810_v40, 0.0  ;;  %v858_v49 = vmax.f32 %v826_v41, 0.0  ;;  %v772_v50 = vmul.f32 %v1420_v42, %v1734_v51  ;;  %v788_v52 = vmul.f32 %v1468_v43, %v1734_v51 }
 0x12b   : > { %v1422_v53 = vpop.f32.mrf.mxu0  ;;  %v1470_v54 = vpop.f32.mrf.mxu1 }
 0x12c   : > { %v1298_v55 = vpack.c.bf16 %v842_v48, %v841_v46  ;;  %v1338_v56 = vpack.c.bf16 %v858_v49, %v857_v47  ;;  %v1423_v57 = vadd.f32 %v1422_v53, %v1421_v44  ;;  %v1471_v58 = vadd.f32 %v1470_v54, %v1469_v45 }
 0x12d   : > { %v811_v60 = vadd.f32 %v1741_v59, %v772_v50  ;;  %v827_v61 = vadd.f32 %v1741_v59, %v788_v52 }
 0x12e   : > { %1350 = vst [vmem:[%s1753_s15 + $0x30] sm:$0xff] %v1298_v55   ;;  %1358 = vst [vmem:[%s1753_s15 + $0x70] sm:$0xff] %v1338_v56   ;;  %v773_v62 = vmul.f32 %v1423_v57, %v1734_v51  ;;  %v789_v63 = vmul.f32 %v1471_v58, %v1734_v51 }
 0x12f   : > { %v843_v2 = vmax.f32 %v811_v60, 0.0  ;;  %v859_v3 = vmax.f32 %v827_v61, 0.0 }
 0x130   : > { %v812_v0 = vadd.f32 %v1741_v59, %v773_v62  ;;  %v828_v1 = vadd.f32 %v1741_v59, %v789_v63 }
 0x132   : > { %v844_v4 = vmax.f32 %v812_v0, 0.0  ;;  %v860_v5 = vmax.f32 %v828_v1, 0.0 }
 0x134   : > { %v1303_v6 = vpack.c.bf16 %v844_v4, %v843_v2  ;;  %v1343_v7 = vpack.c.bf16 %v860_v5, %v859_v3 }
 0x136   : > { %1351 = vst [vmem:[%s1753_s15 + $0x38] sm:$0xff] %v1303_v6   ;;  %1359 = vst [vmem:[%s1753_s15 + $0x78] sm:$0xff] %v1343_v7  }
 0x137 PF: > { %s14_s17 = sadd.s32 1, %s1598_s17   ;;  %s1841_s15 = smov %s1594_s16 }
 0x138   : > { %p11_p5 = scmp.ge.s32.totalorder %s14_s17, 5   ;;  %s1842_s16 = smov %s1844_s18 }
 0x13a   :  { %13 = sbr.rel (!%p11_p5) target bundleno = 2 (0x2), region = 75 }

// kernel: generator_forward.15
= control target key start
LH: loop header
LB: loop body
LE: loop exit
PB: predicated region body
PF: predicated region fallthrough
CT: control target
= control target key end

     0   :  { %s1294_s15 = smov 0   ;;  %s1296_s16 = smov 0   ;;  %s1516_s0 = inlined_call_operand.vmem [shape: bf16[2304,128], index: 0, kind: input, shape index: {}]   ;;  %s1517_s1 = inlined_call_operand.vmem [shape: bf16[128,64], index: 1, kind: input, shape index: {}]   ;;  %s1518_s2 = inlined_call_operand.vmem [shape: f32[1,64], index: 2, kind: input, shape index: {}]   ;;  %s1519_s3 = inlined_call_operand.vmem [shape: f32[1,64], index: 3, kind: input, shape index: {}]   ;;  %s1520_s4 = inlined_call_operand.vmem [shape: bf16[2304,64], index: 4, kind: output, shape index: {}]  }
   0x1   :  { %s1298_s17 = smov 0  }
   0x2 LB: > { %s26_s18 = sadd.s32 1, %s1263_s16  ;;  %p1012_p0 = scmp.ge.s32.totalorder %s1267_s17, 1  ;;  %s1267_s17 = sphi %s1298_s17, %s14_s17   ;;  %s1263_s16 = sphi %s1296_s16, %s1522_s16   ;;  %s1259_s15 = sphi %s1294_s15, %s1521_s15  }
   0x3   : > { %p28_p1 = scmp.ge.s32.totalorder %s26_s18, 9  ;;  %p202_p2 = scmp.lt.s32.totalorder %s1267_s17, 10 }
   0x5   : > { %s1524_s18 = smov (%p28_p1, %s26_s18), 0  ;;  %p203_p3 = pnand %p1012_p0, %p202_p2 }
   0x6   : > { %s1013_s21 = sshll.u32 (!%p203_p3), %s1259_s15, 5 }
   0x7   : > { %206 = sbr.rel (%p203_p3) target bundleno = 280 (0x118), region = 36  ;;  %p242_p4 = scmp.lt.s32.totalorder (!%p203_p3), %s1013_s21, 287 }
   0xc   : > { %v1221_v0 = vld [vmem:[%s1517_s1 + $0x38] sm:$0xff]   ;;  %v1222_v1 = vld [vmem:[%s1517_s1 + $0x30] sm:$0xff]   ;;  %s1526_s21 = smov (!%p242_p4, %s1013_s21), 287  ;;  %v1223_v2 = vld [vmem:[%s1517_s1 + $0x28] sm:$0xff]   ;;  %vm858_vm0 = vcmask 519168  }
   0xd   : > { %1133 = vmatprep.subr.bf16.mxu0 %v1221_v0  ;;  %1181 = vmatprep.subr.bf16.mxu1 %v1221_v0  ;;  %s1014_s26 = sshll.u32 %s1526_s21, 2  ;;  %v1224_v3 = vld [vmem:[%s1517_s1 + $0x20] sm:$0xff]   ;;  %v1225_v6 = vld [vmem:[%s1517_s1 + $0x18] sm:$0xff]   ;;  %v1226_v7 = vld [vmem:[%s1517_s1 + $0x10] sm:$0xff]  }
   0xe   : > { %1134 = vmatpush3.bf16.msra.mxu0 %v1221_v0  ;;  %1189 = vmatpush3.bf16.msra.mxu1 %v1221_v0  ;;  %s1329_s29 = scalar_lea.vmem %s1516_s0, %s1014_s26  ;;  %v1227_v8 = vld [vmem:[%s1517_s1 + $0x8] sm:$0xff]   ;;  %v1228_v9 = vld [vmem:[%s1517_s1] sm:$0xff]   ;;  %s1385_s24 = scalar_lea.vmem %s1520_s4, %s1014_s26 }
   0xf   : > { %1135 = vmatprep.subr.bf16.mxu0 %v1222_v1  ;;  %1182 = vmatprep.subr.bf16.mxu1 %v1222_v1  ;;  %v1229_v4 = vld [vmem:[%s1329_s29] sm:$0xff]   ;;  %v1231_v10 = vld [vmem:[%s1329_s29 + $0x8] sm:$0xff]   ;;  %v1233_v12 = vld [vmem:[%s1329_s29 + $0x10] sm:$0xff]  }
  0x10   : > { %v1230_v5 = vld [vmem:[%s1329_s29 + $0x40] sm:$0xff]   ;;  %1149 = vmatprep.mubr.bf16.mxu0 %v1229_v4  ;;  %v1232_v11 = vld [vmem:[%s1329_s29 + $0x48] sm:$0xff]   ;;  %v1234_v13 = vld [vmem:[%s1329_s29 + $0x50] sm:$0xff]  }
  0x11   : > { %1165 = vmatprep.mubr.bf16.mxu1 %v1230_v5  ;;  %v1235_v14 = vld [vmem:[%s1329_s29 + $0x18] sm:$0xff]   ;;  %v1237_v16 = vld [vmem:[%s1329_s29 + $0x20] sm:$0xff]   ;;  %v1239_v18 = vld [vmem:[%s1329_s29 + $0x28] sm:$0xff]  }
  0x12   : > { %1136 = vmatpush3.bf16.msra.mxu0 %v1222_v1  ;;  %1190 = vmatpush3.bf16.msra.mxu1 %v1222_v1  ;;  %v1236_v15 = vld [vmem:[%s1329_s29 + $0x58] sm:$0xff]   ;;  %v1238_v17 = vld [vmem:[%s1329_s29 + $0x60] sm:$0xff]   ;;  %v1240_v19 = vld [vmem:[%s1329_s29 + $0x68] sm:$0xff]  }
  0x13   : > { %1137 = vmatprep.subr.bf16.mxu0 %v1223_v2  ;;  %1183 = vmatprep.subr.bf16.mxu1 %v1223_v2  ;;  %v1241_v20 = vld [vmem:[%s1329_s29 + $0x30] sm:$0xff]   ;;  %v1243_v22 = vld [vmem:[%s1329_s29 + $0x38] sm:$0xff]   ;;  %v1365_v24 = vld [vmem:[%s1518_s2] ss:$0 sm:$0xff] }
  0x14   : > { %v1242_v21 = vld [vmem:[%s1329_s29 + $0x70] sm:$0xff]   ;;  %v1244_v23 = vld [vmem:[%s1329_s29 + $0x78] sm:$0xff]   ;;  %v1370_v26 = vld [vmem:[%s1519_s3] ss:$0 sm:$0xff] }
  0x16   : > { %1138 = vmatpush3.bf16.msra.mxu0 %v1223_v2  ;;  %1191 = vmatpush3.bf16.msra.mxu1 %v1223_v2 }
  0x17   : > { %1139 = vmatprep.subr.bf16.mxu0 %v1224_v3  ;;  %1184 = vmatprep.subr.bf16.mxu1 %v1224_v3 }
  0x1a   : > { %1140 = vmatpush3.bf16.msra.mxu0 %v1224_v3  ;;  %1192 = vmatpush3.bf16.msra.mxu1 %v1224_v3 }
  0x1b   : > { %1141 = vmatprep.subr.bf16.mxu0 %v1225_v6  ;;  %1185 = vmatprep.subr.bf16.mxu1 %v1225_v6 }
  0x1e   : > { %1142 = vmatpush3.bf16.msra.mxu0 %v1225_v6  ;;  %1193 = vmatpush3.bf16.msra.mxu1 %v1225_v6 }
  0x1f   : > { %1143 = vmatprep.subr.bf16.mxu0 %v1226_v7  ;;  %1186 = vmatprep.subr.bf16.mxu1 %v1226_v7 }
  0x22   : > { %1144 = vmatpush3.bf16.msra.mxu0 %v1226_v7  ;;  %1194 = vmatpush3.bf16.msra.mxu1 %v1226_v7 }
  0x23   : > { %1145 = vmatprep.subr.bf16.mxu0 %v1227_v8  ;;  %1187 = vmatprep.subr.bf16.mxu1 %v1227_v8 }
  0x26   : > { %1146 = vmatpush3.bf16.msra.mxu0 %v1227_v8  ;;  %1195 = vmatpush3.bf16.msra.mxu1 %v1227_v8 }
  0x27   : > { %1147 = vmatprep.subr.bf16.mxu0 %v1228_v9  ;;  %1188 = vmatprep.subr.bf16.mxu1 %v1228_v9 }
  0x2a   : > { %1148 = vmatpush3.bf16.msra.mxu0 %v1228_v9  ;;  %1196 = vmatpush3.bf16.msra.mxu1 %v1228_v9 }
  0x2d   : > { %1150 = vmatmul.mubr.bf16.vlgmr.msra.gmra.mxu0 %v1231_v10  ;;  %1166 = vmatmul.mubr.bf16.vlgmr.msra.gmra.mxu1 %v1232_v11 }
  0x2e   : > { %1153 = vmatprep.mubr.bf16.mxu0 %v1233_v12  ;;  %1169 = vmatprep.mubr.bf16.mxu1 %v1234_v13 }
  0x35   : > { %1154 = vmatmul.mubr.bf16.gmra.mxu0 %v1235_v14  ;;  %1170 = vmatmul.mubr.bf16.gmra.mxu1 %v1236_v15 }
  0x36   : > { %1157 = vmatprep.mubr.bf16.mxu0 %v1237_v16  ;;  %1173 = vmatprep.mubr.bf16.mxu1 %v1238_v17 }
  0x3d   : > { %1158 = vmatmul.mubr.bf16.gmra.mxu0 %v1239_v18  ;;  %1174 = vmatmul.mubr.bf16.gmra.mxu1 %v1240_v19 }
  0x3e   : > { %1161 = vmatprep.mubr.bf16.mxu0 %v1241_v20  ;;  %1177 = vmatprep.mubr.bf16.mxu1 %v1242_v21 }
  0x45   : > { %1162 = vmatmul.mubr.bf16.gmra.mxu0 %v1243_v22  ;;  %1178 = vmatmul.mubr.bf16.gmra.mxu1 %v1244_v23 }
  0xed   : > { %v1151_v25 = vpop.f32.mrf.mxu0  ;;  %v1167_v27 = vpop.f32.mrf.mxu1 }
  0xee   : > { %v629_v28 = vmul.f32 %v1151_v25, %v1365_v24  ;;  %v645_v29 = vmul.f32 %v1167_v27, %v1365_v24 }
  0xef   : > { %v493_v30 = vpop.f32.mrf.mxu0  ;;  %v557_v31 = vpop.f32.mrf.mxu1 }
  0xf0   : > { %v668_v32 = vadd.f32 %v1370_v26, %v629_v28  ;;  %v684_v33 = vadd.f32 %v1370_v26, %v645_v29  ;;  %v627_v34 = vmul.f32 %v1365_v24, %v493_v30  ;;  %v643_v35 = vmul.f32 %v1365_v24, %v557_v31 }
  0xf1   : > { %v1152_v36 = vpop.f32.mrf.mxu0  ;;  %v1168_v37 = vpop.f32.mrf.mxu1 }
  0xf2   : > { %v700_v38 = vmax.f32 %v668_v32, 0.0  ;;  %v716_v39 = vmax.f32 %v684_v33, 0.0  ;;  %v666_v40 = vadd.f32 %v1370_v26, %v627_v34  ;;  %v682_v41 = vadd.f32 %v1370_v26, %v643_v35 }
  0xf3   : > { %v630_v42 = vmul.f32 %v1152_v36, %v1365_v24  ;;  %v646_v43 = vmul.f32 %v1168_v37, %v1365_v24  ;;  %v496_v44 = vpop.f32.mrf.mxu0  ;;  %v560_v45 = vpop.f32.mrf.mxu1 }
  0xf4   : > { %v1079_v46 = vpack.c.bf16 %v700_v38, %v700_v38  ;;  %v1095_v47 = vpack.c.bf16 %v716_v39, %v716_v39  ;;  %v698_v48 = vmax.f32 %v666_v40, 0.0  ;;  %v714_v49 = vmax.f32 %v682_v41, 0.0 }
  0xf5   : > { %v669_v50 = vadd.f32 %v1370_v26, %v630_v42  ;;  %v685_v51 = vadd.f32 %v1370_v26, %v646_v43  ;;  %v628_v52 = vmul.f32 %v1365_v24, %v496_v44  ;;  %v644_v53 = vmul.f32 %v1365_v24, %v560_v45  ;;  %v1155_v54 = vpop.f32.mrf.mxu0  ;;  %v1171_v55 = vpop.f32.mrf.mxu1 }
  0xf6   : > { %861 = vst.msk [vmem:[%s1385_s24 + $0x8] sm:$0xf] %vm858_vm0, %v1079_v46  ;;  %877 = vst.msk [vmem:[%s1385_s24 + $0x48] sm:$0xf] %vm858_vm0, %v1095_v47  ;;  %v1077_v56 = vpack.c.bf16 %v698_v48, %v698_v48  ;;  %v1093_v57 = vpack.c.bf16 %v714_v49, %v714_v49  ;;  %v633_v58 = vmul.f32 %v1155_v54, %v1365_v24 }
  0xf7   : > { %v649_v59 = vmul.f32 %v1171_v55, %v1365_v24  ;;  %v701_v60 = vmax.f32 %v669_v50, 0.0  ;;  %v717_v61 = vmax.f32 %v685_v51, 0.0  ;;  %v667_v62 = vadd.f32 %v1370_v26, %v628_v52  ;;  %v509_v0 = vpop.f32.mrf.mxu0  ;;  %v573_v1 = vpop.f32.mrf.mxu1 }
  0xf8   : > { %v683_v63 = vadd.f32 %v1370_v26, %v644_v53  ;;  %859 = vst.msk [vmem:[%s1385_s24] sm:$0xf] %vm858_vm0, %v1077_v56  ;;  %875 = vst.msk [vmem:[%s1385_s24 + $0x40] sm:$0xf] %vm858_vm0, %v1093_v57  ;;  %v672_v2 = vadd.f32 %v1370_v26, %v633_v58  ;;  %v631_v4 = vmul.f32 %v1365_v24, %v509_v0 }
  0xf9   : > { %v688_v3 = vadd.f32 %v1370_v26, %v649_v59  ;;  %v647_v5 = vmul.f32 %v1365_v24, %v573_v1  ;;  %v1080_v6 = vpack.c.bf16 %v701_v60, %v701_v60  ;;  %v1096_v7 = vpack.c.bf16 %v717_v61, %v717_v61  ;;  %v1156_v10 = vpop.f32.mrf.mxu0  ;;  %v1172_v11 = vpop.f32.mrf.mxu1 }
  0xfa   : > { %v699_v8 = vmax.f32 %v667_v62, 0.0  ;;  %v715_v9 = vmax.f32 %v683_v63, 0.0  ;;  %v704_v12 = vmax.f32 %v672_v2, 0.0  ;;  %v670_v14 = vadd.f32 %v1370_v26, %v631_v4 }
  0xfb   : > { %v720_v13 = vmax.f32 %v688_v3, 0.0  ;;  %v686_v15 = vadd.f32 %v1370_v26, %v647_v5  ;;  %862 = vst.msk [vmem:[%s1385_s24 + $0xc] sm:$0xf] %vm858_vm0, %v1080_v6  ;;  %878 = vst.msk [vmem:[%s1385_s24 + $0x4c] sm:$0xf] %vm858_vm0, %v1096_v7  ;;  %v634_v18 = vmul.f32 %v1156_v10, %v1365_v24  ;;  %v650_v19 = vmul.f32 %v1172_v11, %v1365_v24  ;;  %v512_v20 = vpop.f32.mrf.mxu0  ;;  %v576_v21 = vpop.f32.mrf.mxu1 }
  0xfc   : > { %v1078_v16 = vpack.c.bf16 %v699_v8, %v699_v8  ;;  %v1094_v17 = vpack.c.bf16 %v715_v9, %v715_v9  ;;  %v1083_v22 = vpack.c.bf16 %v704_v12, %v704_v12  ;;  %v702_v25 = vmax.f32 %v670_v14, 0.0 }
  0xfd   : > { %v1099_v23 = vpack.c.bf16 %v720_v13, %v720_v13  ;;  %v718_v27 = vmax.f32 %v686_v15, 0.0  ;;  %v673_v28 = vadd.f32 %v1370_v26, %v634_v18  ;;  %v689_v29 = vadd.f32 %v1370_v26, %v650_v19  ;;  %v1159_v32 = vpop.f32.mrf.mxu0  ;;  %v1175_v33 = vpop.f32.mrf.mxu1 }
  0xfe   : > { %860 = vst.msk [vmem:[%s1385_s24 + $0x4] sm:$0xf] %vm858_vm0, %v1078_v16  ;;  %876 = vst.msk [vmem:[%s1385_s24 + $0x44] sm:$0xf] %vm858_vm0, %v1094_v17  ;;  %v632_v30 = vmul.f32 %v1365_v24, %v512_v20  ;;  %v648_v31 = vmul.f32 %v1365_v24, %v576_v21  ;;  %v1081_v34 = vpack.c.bf16 %v702_v25, %v702_v25 }
  0xff   : > { %865 = vst.msk [vmem:[%s1385_s24 + $0x18] sm:$0xf] %vm858_vm0, %v1083_v22  ;;  %881 = vst.msk [vmem:[%s1385_s24 + $0x58] sm:$0xf] %vm858_vm0, %v1099_v23  ;;  %v1097_v35 = vpack.c.bf16 %v718_v27, %v718_v27  ;;  %v637_v36 = vmul.f32 %v1159_v32, %v1365_v24  ;;  %v653_v37 = vmul.f32 %v1175_v33, %v1365_v24  ;;  %v705_v38 = vmax.f32 %v673_v28, 0.0  ;;  %v525_v42 = vpop.f32.mrf.mxu0  ;;  %v589_v43 = vpop.f32.mrf.mxu1 }
 0x100   : > { %v721_v39 = vmax.f32 %v689_v29, 0.0  ;;  %v671_v40 = vadd.f32 %v1370_v26, %v632_v30  ;;  %v687_v41 = vadd.f32 %v1370_v26, %v648_v31  ;;  %863 = vst.msk [vmem:[%s1385_s24 + $0x10] sm:$0xf] %vm858_vm0, %v1081_v34  ;;  %v635_v46 = vmul.f32 %v1365_v24, %v525_v42 }
 0x101   : > { %879 = vst.msk [vmem:[%s1385_s24 + $0x50] sm:$0xf] %vm858_vm0, %v1097_v35  ;;  %v676_v44 = vadd.f32 %v1370_v26, %v637_v36  ;;  %v692_v45 = vadd.f32 %v1370_v26, %v653_v37  ;;  %v651_v47 = vmul.f32 %v1365_v24, %v589_v43  ;;  %v1084_v48 = vpack.c.bf16 %v705_v38, %v705_v38  ;;  %v1160_v52 = vpop.f32.mrf.mxu0  ;;  %v1176_v53 = vpop.f32.mrf.mxu1 }
 0x102   : > { %v1100_v49 = vpack.c.bf16 %v721_v39, %v721_v39  ;;  %v703_v50 = vmax.f32 %v671_v40, 0.0  ;;  %v719_v51 = vmax.f32 %v687_v41, 0.0  ;;  %v674_v56 = vadd.f32 %v1370_v26, %v635_v46 }
 0x103   : > { %v708_v54 = vmax.f32 %v676_v44, 0.0  ;;  %v724_v55 = vmax.f32 %v692_v45, 0.0  ;;  %v690_v57 = vadd.f32 %v1370_v26, %v651_v47  ;;  %866 = vst.msk [vmem:[%s1385_s24 + $0x1c] sm:$0xf] %vm858_vm0, %v1084_v48  ;;  %v638_v60 = vmul.f32 %v1160_v52, %v1365_v24  ;;  %v528_v62 = vpop.f32.mrf.mxu0  ;;  %v592_v63 = vpop.f32.mrf.mxu1 }
 0x104   : > { %882 = vst.msk [vmem:[%s1385_s24 + $0x5c] sm:$0xf] %vm858_vm0, %v1100_v49  ;;  %v1082_v58 = vpack.c.bf16 %v703_v50, %v703_v50  ;;  %v1098_v59 = vpack.c.bf16 %v719_v51, %v719_v51  ;;  %v654_v61 = vmul.f32 %v1176_v53, %v1365_v24  ;;  %v706_v2 = vmax.f32 %v674_v56, 0.0 }
 0x105   : > { %v1087_v0 = vpack.c.bf16 %v708_v54, %v708_v54  ;;  %v1103_v1 = vpack.c.bf16 %v724_v55, %v724_v55  ;;  %v722_v3 = vmax.f32 %v690_v57, 0.0  ;;  %v677_v4 = vadd.f32 %v1370_v26, %v638_v60  ;;  %v1163_v8 = vpop.f32.mrf.mxu0  ;;  %v1179_v9 = vpop.f32.mrf.mxu1 }
 0x106   : > { %864 = vst.msk [vmem:[%s1385_s24 + $0x14] sm:$0xf] %vm858_vm0, %v1082_v58  ;;  %880 = vst.msk [vmem:[%s1385_s24 + $0x54] sm:$0xf] %vm858_vm0, %v1098_v59  ;;  %v693_v5 = vadd.f32 %v1370_v26, %v654_v61  ;;  %v636_v6 = vmul.f32 %v1365_v24, %v528_v62  ;;  %v652_v7 = vmul.f32 %v1365_v24, %v592_v63 }
 0x107   : > { %869 = vst.msk [vmem:[%s1385_s24 + $0x28] sm:$0xf] %vm858_vm0, %v1087_v0  ;;  %885 = vst.msk [vmem:[%s1385_s24 + $0x68] sm:$0xf] %vm858_vm0, %v1103_v1  ;;  %v1085_v10 = vpack.c.bf16 %v706_v2, %v706_v2  ;;  %v1101_v11 = vpack.c.bf16 %v722_v3, %v722_v3  ;;  %v641_v12 = vmul.f32 %v1163_v8, %v1365_v24  ;;  %v709_v14 = vmax.f32 %v677_v4, 0.0  ;;  %v541_v18 = vpop.f32.mrf.mxu0  ;;  %v605_v19 = vpop.f32.mrf.mxu1 }
 0x108   : > { %v657_v13 = vmul.f32 %v1179_v9, %v1365_v24  ;;  %v725_v15 = vmax.f32 %v693_v5, 0.0  ;;  %v675_v16 = vadd.f32 %v1370_v26, %v636_v6  ;;  %v691_v17 = vadd.f32 %v1370_v26, %v652_v7 }
 0x109   : > { %867 = vst.msk [vmem:[%s1385_s24 + $0x20] sm:$0xf] %vm858_vm0, %v1085_v10  ;;  %883 = vst.msk [vmem:[%s1385_s24 + $0x60] sm:$0xf] %vm858_vm0, %v1101_v11  ;;  %v680_v20 = vadd.f32 %v1370_v26, %v641_v12  ;;  %v639_v22 = vmul.f32 %v1365_v24, %v541_v18  ;;  %v655_v23 = vmul.f32 %v1365_v24, %v605_v19  ;;  %v1164_v30 = vpop.f32.mrf.mxu0  ;;  %v1180_v31 = vpop.f32.mrf.mxu1 }
 0x10a   : > { %v696_v21 = vadd.f32 %v1370_v26, %v657_v13  ;;  %v1088_v25 = vpack.c.bf16 %v709_v14, %v709_v14  ;;  %v1104_v27 = vpack.c.bf16 %v725_v15, %v725_v15  ;;  %v707_v28 = vmax.f32 %v675_v16, 0.0 }
 0x10b   : > { %v723_v29 = vmax.f32 %v691_v17, 0.0  ;;  %v712_v32 = vmax.f32 %v680_v20, 0.0  ;;  %v678_v34 = vadd.f32 %v1370_v26, %v639_v22  ;;  %v694_v35 = vadd.f32 %v1370_v26, %v655_v23  ;;  %v544_v40 = vpop.f32.mrf.mxu0  ;;  %v608_v41 = vpop.f32.mrf.mxu1 }
 0x10c   : > { %v728_v33 = vmax.f32 %v696_v21, 0.0  ;;  %870 = vst.msk [vmem:[%s1385_s24 + $0x2c] sm:$0xf] %vm858_vm0, %v1088_v25  ;;  %886 = vst.msk [vmem:[%s1385_s24 + $0x6c] sm:$0xf] %vm858_vm0, %v1104_v27  ;;  %v1086_v36 = vpack.c.bf16 %v707_v28, %v707_v28  ;;  %v642_v38 = vmul.f32 %v1164_v30, %v1365_v24  ;;  %v658_v39 = vmul.f32 %v1180_v31, %v1365_v24 }
 0x10d   : > { %v1102_v37 = vpack.c.bf16 %v723_v29, %v723_v29  ;;  %v1091_v42 = vpack.c.bf16 %v712_v32, %v712_v32  ;;  %v710_v44 = vmax.f32 %v678_v34, 0.0  ;;  %v726_v45 = vmax.f32 %v694_v35, 0.0 }
 0x10e   : > { %v1107_v43 = vpack.c.bf16 %v728_v33, %v728_v33  ;;  %868 = vst.msk [vmem:[%s1385_s24 + $0x24] sm:$0xf] %vm858_vm0, %v1086_v36  ;;  %v681_v46 = vadd.f32 %v1370_v26, %v642_v38  ;;  %v697_v47 = vadd.f32 %v1370_v26, %v658_v39  ;;  %v640_v48 = vmul.f32 %v1365_v24, %v544_v40 }
 0x10f   : > { %884 = vst.msk [vmem:[%s1385_s24 + $0x64] sm:$0xf] %vm858_vm0, %v1102_v37  ;;  %v656_v49 = vmul.f32 %v1365_v24, %v608_v41  ;;  %873 = vst.msk [vmem:[%s1385_s24 + $0x38] sm:$0xf] %vm858_vm0, %v1091_v42  ;;  %v1089_v50 = vpack.c.bf16 %v710_v44, %v710_v44  ;;  %v1105_v51 = vpack.c.bf16 %v726_v45, %v726_v45 }
 0x110   : > { %889 = vst.msk [vmem:[%s1385_s24 + $0x78] sm:$0xf] %vm858_vm0, %v1107_v43  ;;  %v713_v52 = vmax.f32 %v681_v46, 0.0  ;;  %v729_v53 = vmax.f32 %v697_v47, 0.0  ;;  %v679_v54 = vadd.f32 %v1370_v26, %v640_v48 }
 0x111   : > { %v695_v55 = vadd.f32 %v1370_v26, %v656_v49  ;;  %871 = vst.msk [vmem:[%s1385_s24 + $0x30] sm:$0xf] %vm858_vm0, %v1089_v50  ;;  %887 = vst.msk [vmem:[%s1385_s24 + $0x70] sm:$0xf] %vm858_vm0, %v1105_v51 }
 0x112   : > { %v1092_v24 = vpack.c.bf16 %v713_v52, %v713_v52  ;;  %v1108_v56 = vpack.c.bf16 %v729_v53, %v729_v53  ;;  %v711_v57 = vmax.f32 %v679_v54, 0.0 }
 0x113   : > { %v727_v58 = vmax.f32 %v695_v55, 0.0 }
 0x114   : > { %874 = vst.msk [vmem:[%s1385_s24 + $0x3c] sm:$0xf] %vm858_vm0, %v1092_v24  ;;  %890 = vst.msk [vmem:[%s1385_s24 + $0x7c] sm:$0xf] %vm858_vm0, %v1108_v56  ;;  %v1090_v59 = vpack.c.bf16 %v711_v57, %v711_v57 }
 0x115   : > { %v1106_v60 = vpack.c.bf16 %v727_v58, %v727_v58 }
 0x116   : > { %872 = vst.msk [vmem:[%s1385_s24 + $0x34] sm:$0xf] %vm858_vm0, %v1090_v59 }
 0x117   : > { %888 = vst.msk [vmem:[%s1385_s24 + $0x74] sm:$0xf] %vm858_vm0, %v1106_v60 }
 0x118 PF: > { %s14_s17 = sadd.s32 1, %s1267_s17   ;;  %s1521_s15 = smov %s1263_s16 }
 0x119   : > { %p11_p5 = scmp.ge.s32.totalorder %s14_s17, 11   ;;  %s1522_s16 = smov %s1524_s18 }
 0x11b   :  { %13 = sbr.rel (!%p11_p5) target bundleno = 2 (0x2), region = 75 }

// kernel: generator_forward.16
= control target key start
LH: loop header
LB: loop body
LE: loop exit
PB: predicated region body
PF: predicated region fallthrough
CT: control target
= control target key end

     0   :  { %s1283_s15 = smov 0   ;;  %s1285_s16 = smov 0   ;;  %s1509_s0 = inlined_call_operand.vmem [shape: bf16[8704,64], index: 0, kind: input, shape index: {}]   ;;  %s1510_s1 = inlined_call_operand.vmem [shape: bf16[64,64], index: 1, kind: input, shape index: {}]   ;;  %s1511_s2 = inlined_call_operand.vmem [shape: f32[1,64], index: 2, kind: input, shape index: {}]   ;;  %s1512_s3 = inlined_call_operand.vmem [shape: f32[1,64], index: 3, kind: input, shape index: {}]   ;;  %s1513_s4 = inlined_call_operand.vmem [shape: bf16[8704,64], index: 4, kind: output, shape index: {}]  }
   0x1   :  { %s1287_s17 = smov 0  }
   0x2 LB: > { %s26_s18 = sadd.s32 1, %s1252_s16  ;;  %p1013_p0 = scmp.ge.s32.totalorder %s1256_s17, 1  ;;  %s1256_s17 = sphi %s1287_s17, %s14_s17   ;;  %s1252_s16 = sphi %s1285_s16, %s1515_s16   ;;  %s1248_s15 = sphi %s1283_s15, %s1514_s15  }
   0x3   : > { %p28_p1 = scmp.ge.s32.totalorder %s26_s18, 34  ;;  %p202_p2 = scmp.lt.s32.totalorder %s1256_s17, 35 }
   0x5   : > { %s1517_s18 = smov (%p28_p1, %s26_s18), 0  ;;  %p203_p3 = pnand %p1013_p0, %p202_p2 }
   0x6   : > { %s1014_s21 = sshll.u32 (!%p203_p3), %s1248_s15, 5 }
   0x7   : > { %206 = sbr.rel (%p203_p3) target bundleno = 264 (0x108), region = 36  ;;  %p242_p4 = scmp.lt.s32.totalorder (!%p203_p3), %s1014_s21, 1087 }
   0xc   : > { %v1214_v0 = vld [vmem:[%s1510_s1 + $0x18] sm:$0xff]   ;;  %v1215_v1 = vld [vmem:[%s1510_s1 + $0x10] sm:$0xff]   ;;  %s1519_s21 = smov (!%p242_p4, %s1014_s21), 1087  ;;  %v1216_v2 = vld [vmem:[%s1510_s1 + $0x8] sm:$0xff]   ;;  %vm411_vm0 = vcmask 523264   ;;  %vm859_vm1 = vcmask 519168  }
   0xd   : > { %1142 = vmatprep.subr.bf16.mxu0 %v1214_v0  ;;  %1182 = vmatprep.subr.bf16.mxu1 %v1214_v0  ;;  %s1015_s26 = sshll.u32 %s1519_s21, 2  ;;  %v1217_v3 = vld [vmem:[%s1510_s1] sm:$0xff]  }
   0xe   : > { %1143 = vmatpush3.bf16.msra.mxu0 %v1214_v0  ;;  %1186 = vmatpush3.bf16.msra.mxu1 %v1214_v0  ;;  %s1321_s5 = scalar_lea.vmem %s1509_s0, %s1015_s26  ;;  %v1358_v20 = vld [vmem:[%s1511_s2] ss:$0 sm:$0xff]  ;;  %s1378_s12 = scalar_lea.vmem %s1513_s4, %s1015_s26 }
   0xf   : > { %1144 = vmatprep.subr.bf16.mxu0 %v1215_v1  ;;  %1183 = vmatprep.subr.bf16.mxu1 %v1215_v1  ;;  %v1218_v4 = vld [vmem:[%s1321_s5] sm:$0xff]   ;;  %v1220_v6 = vld [vmem:[%s1321_s5 + $0x8] sm:$0xff]   ;;  %v1222_v8 = vld [vmem:[%s1321_s5 + $0x10] sm:$0xff]  }
  0x10   : > { %v1219_v5 = vld [vmem:[%s1321_s5 + $0x40] sm:$0xff]   ;;  %1150 = vmatprep.mubr.msk.bf16.mxu0 %vm411_vm0, %v1218_v4  ;;  %v1221_v7 = vld [vmem:[%s1321_s5 + $0x48] sm:$0xff]   ;;  %v1223_v9 = vld [vmem:[%s1321_s5 + $0x50] sm:$0xff]  }
  0x11   : > { %1166 = vmatprep.mubr.msk.bf16.mxu1 %vm411_vm0, %v1219_v5  ;;  %v1224_v10 = vld [vmem:[%s1321_s5 + $0x18] sm:$0xff]   ;;  %v1226_v12 = vld [vmem:[%s1321_s5 + $0x20] sm:$0xff]   ;;  %v1228_v14 = vld [vmem:[%s1321_s5 + $0x28] sm:$0xff]  }
  0x12   : > { %1145 = vmatpush3.bf16.msra.mxu0 %v1215_v1  ;;  %1187 = vmatpush3.bf16.msra.mxu1 %v1215_v1  ;;  %v1225_v11 = vld [vmem:[%s1321_s5 + $0x58] sm:$0xff]   ;;  %v1227_v13 = vld [vmem:[%s1321_s5 + $0x60] sm:$0xff]   ;;  %v1229_v15 = vld [vmem:[%s1321_s5 + $0x68] sm:$0xff]  }
  0x13   : > { %1146 = vmatprep.subr.bf16.mxu0 %v1216_v2  ;;  %1184 = vmatprep.subr.bf16.mxu1 %v1216_v2  ;;  %v1230_v16 = vld [vmem:[%s1321_s5 + $0x30] sm:$0xff]   ;;  %v1232_v18 = vld [vmem:[%s1321_s5 + $0x38] sm:$0xff]   ;;  %v1363_v22 = vld [vmem:[%s1512_s3] ss:$0 sm:$0xff] }
  0x14   : > { %v1231_v17 = vld [vmem:[%s1321_s5 + $0x70] sm:$0xff]   ;;  %v1233_v19 = vld [vmem:[%s1321_s5 + $0x78] sm:$0xff]  }
  0x16   : > { %1147 = vmatpush3.bf16.msra.mxu0 %v1216_v2  ;;  %1188 = vmatpush3.bf16.msra.mxu1 %v1216_v2 }
  0x17   : > { %1148 = vmatprep.subr.bf16.mxu0 %v1217_v3  ;;  %1185 = vmatprep.subr.bf16.mxu1 %v1217_v3 }
  0x1a   : > { %1149 = vmatpush3.bf16.msra.mxu0 %v1217_v3  ;;  %1189 = vmatpush3.bf16.msra.mxu1 %v1217_v3 }
  0x1d   : > { %1151 = vmatmul.mubr.msk.bf16.vlgmr.msra.gmra.mxu0 %vm411_vm0, %v1220_v6  ;;  %1167 = vmatmul.mubr.msk.bf16.vlgmr.msra.gmra.mxu1 %vm411_vm0, %v1221_v7 }
  0x1e   : > { %1154 = vmatprep.mubr.msk.bf16.mxu0 %vm411_vm0, %v1222_v8  ;;  %1170 = vmatprep.mubr.msk.bf16.mxu1 %vm411_vm0, %v1223_v9 }
  0x25   : > { %1155 = vmatmul.mubr.msk.bf16.gmra.mxu0 %vm411_vm0, %v1224_v10  ;;  %1171 = vmatmul.mubr.msk.bf16.gmra.mxu1 %vm411_vm0, %v1225_v11 }
  0x26   : > { %1158 = vmatprep.mubr.msk.bf16.mxu0 %vm411_vm0, %v1226_v12  ;;  %1174 = vmatprep.mubr.msk.bf16.mxu1 %vm411_vm0, %v1227_v13 }
  0x2d   : > { %1159 = vmatmul.mubr.msk.bf16.gmra.mxu0 %vm411_vm0, %v1228_v14  ;;  %1175 = vmatmul.mubr.msk.bf16.gmra.mxu1 %vm411_vm0, %v1229_v15 }
  0x2e   : > { %1162 = vmatprep.mubr.msk.bf16.mxu0 %vm411_vm0, %v1230_v16  ;;  %1178 = vmatprep.mubr.msk.bf16.mxu1 %vm411_vm0, %v1231_v17 }
  0x35   : > { %1163 = vmatmul.mubr.msk.bf16.gmra.mxu0 %vm411_vm0, %v1232_v18  ;;  %1179 = vmatmul.mubr.msk.bf16.gmra.mxu1 %vm411_vm0, %v1233_v19 }
  0xdd   : > { %v1152_v21 = vpop.f32.mrf.mxu0  ;;  %v1168_v23 = vpop.f32.mrf.mxu1 }
  0xde   : > { %v630_v24 = vmul.f32 %v1152_v21, %v1358_v20  ;;  %v646_v25 = vmul.f32 %v1168_v23, %v1358_v20 }
  0xdf   : > { %v494_v26 = vpop.f32.mrf.mxu0  ;;  %v558_v27 = vpop.f32.mrf.mxu1 }
  0xe0   : > { %v669_v28 = vadd.f32 %v1363_v22, %v630_v24  ;;  %v685_v29 = vadd.f32 %v1363_v22, %v646_v25  ;;  %v628_v30 = vmul.f32 %v1358_v20, %v494_v26  ;;  %v644_v31 = vmul.f32 %v1358_v20, %v558_v27 }
  0xe1   : > { %v1153_v32 = vpop.f32.mrf.mxu0  ;;  %v1169_v33 = vpop.f32.mrf.mxu1 }
  0xe2   : > { %v701_v34 = vmax.f32 %v669_v28, 0.0  ;;  %v717_v35 = vmax.f32 %v685_v29, 0.0  ;;  %v667_v36 = vadd.f32 %v1363_v22, %v628_v30  ;;  %v683_v37 = vadd.f32 %v1363_v22, %v644_v31 }
  0xe3   : > { %v631_v38 = vmul.f32 %v1153_v32, %v1358_v20  ;;  %v647_v39 = vmul.f32 %v1169_v33, %v1358_v20  ;;  %v497_v40 = vpop.f32.mrf.mxu0  ;;  %v561_v41 = vpop.f32.mrf.mxu1 }
  0xe4   : > { %v1092_v42 = vpack.c.bf16 %v701_v34, %v701_v34  ;;  %v1108_v43 = vpack.c.bf16 %v717_v35, %v717_v35  ;;  %v699_v44 = vmax.f32 %v667_v36, 0.0  ;;  %v715_v45 = vmax.f32 %v683_v37, 0.0 }
  0xe5   : > { %v670_v46 = vadd.f32 %v1363_v22, %v631_v38  ;;  %v686_v47 = vadd.f32 %v1363_v22, %v647_v39  ;;  %v629_v48 = vmul.f32 %v1358_v20, %v497_v40  ;;  %v645_v49 = vmul.f32 %v1358_v20, %v561_v41  ;;  %v1156_v50 = vpop.f32.mrf.mxu0  ;;  %v1172_v51 = vpop.f32.mrf.mxu1 }
  0xe6   : > { %862 = vst.msk [vmem:[%s1378_s12 + $0x8] sm:$0xf] %vm859_vm1, %v1092_v42  ;;  %878 = vst.msk [vmem:[%s1378_s12 + $0x48] sm:$0xf] %vm859_vm1, %v1108_v43  ;;  %v1090_v52 = vpack.c.bf16 %v699_v44, %v699_v44  ;;  %v1106_v53 = vpack.c.bf16 %v715_v45, %v715_v45  ;;  %v634_v54 = vmul.f32 %v1156_v50, %v1358_v20 }
  0xe7   : > { %v650_v55 = vmul.f32 %v1172_v51, %v1358_v20  ;;  %v702_v56 = vmax.f32 %v670_v46, 0.0  ;;  %v718_v57 = vmax.f32 %v686_v47, 0.0  ;;  %v668_v58 = vadd.f32 %v1363_v22, %v629_v48  ;;  %v510_v60 = vpop.f32.mrf.mxu0  ;;  %v574_v61 = vpop.f32.mrf.mxu1 }
  0xe8   : > { %v684_v59 = vadd.f32 %v1363_v22, %v645_v49  ;;  %860 = vst.msk [vmem:[%s1378_s12] sm:$0xf] %vm859_vm1, %v1090_v52  ;;  %876 = vst.msk [vmem:[%s1378_s12 + $0x40] sm:$0xf] %vm859_vm1, %v1106_v53  ;;  %v673_v62 = vadd.f32 %v1363_v22, %v634_v54  ;;  %v632_v0 = vmul.f32 %v1358_v20, %v510_v60 }
  0xe9   : > { %v689_v63 = vadd.f32 %v1363_v22, %v650_v55  ;;  %v648_v1 = vmul.f32 %v1358_v20, %v574_v61  ;;  %v1093_v2 = vpack.c.bf16 %v702_v56, %v702_v56  ;;  %v1109_v3 = vpack.c.bf16 %v718_v57, %v718_v57  ;;  %v1157_v6 = vpop.f32.mrf.mxu0  ;;  %v1173_v7 = vpop.f32.mrf.mxu1 }
  0xea   : > { %v700_v4 = vmax.f32 %v668_v58, 0.0  ;;  %v716_v5 = vmax.f32 %v684_v59, 0.0  ;;  %v705_v8 = vmax.f32 %v673_v62, 0.0  ;;  %v671_v10 = vadd.f32 %v1363_v22, %v632_v0 }
  0xeb   : > { %v721_v9 = vmax.f32 %v689_v63, 0.0  ;;  %v687_v11 = vadd.f32 %v1363_v22, %v648_v1  ;;  %863 = vst.msk [vmem:[%s1378_s12 + $0xc] sm:$0xf] %vm859_vm1, %v1093_v2  ;;  %879 = vst.msk [vmem:[%s1378_s12 + $0x4c] sm:$0xf] %vm859_vm1, %v1109_v3  ;;  %v635_v14 = vmul.f32 %v1157_v6, %v1358_v20  ;;  %v651_v15 = vmul.f32 %v1173_v7, %v1358_v20  ;;  %v513_v16 = vpop.f32.mrf.mxu0  ;;  %v577_v17 = vpop.f32.mrf.mxu1 }
  0xec   : > { %v1091_v12 = vpack.c.bf16 %v700_v4, %v700_v4  ;;  %v1107_v13 = vpack.c.bf16 %v716_v5, %v716_v5  ;;  %v1096_v18 = vpack.c.bf16 %v705_v8, %v705_v8  ;;  %v703_v21 = vmax.f32 %v671_v10, 0.0 }
  0xed   : > { %v1112_v19 = vpack.c.bf16 %v721_v9, %v721_v9  ;;  %v719_v23 = vmax.f32 %v687_v11, 0.0  ;;  %v674_v24 = vadd.f32 %v1363_v22, %v635_v14  ;;  %v690_v25 = vadd.f32 %v1363_v22, %v651_v15  ;;  %v1160_v28 = vpop.f32.mrf.mxu0  ;;  %v1176_v29 = vpop.f32.mrf.mxu1 }
  0xee   : > { %861 = vst.msk [vmem:[%s1378_s12 + $0x4] sm:$0xf] %vm859_vm1, %v1091_v12  ;;  %877 = vst.msk [vmem:[%s1378_s12 + $0x44] sm:$0xf] %vm859_vm1, %v1107_v13  ;;  %v633_v26 = vmul.f32 %v1358_v20, %v513_v16  ;;  %v649_v27 = vmul.f32 %v1358_v20, %v577_v17  ;;  %v1094_v30 = vpack.c.bf16 %v703_v21, %v703_v21 }
  0xef   : > { %866 = vst.msk [vmem:[%s1378_s12 + $0x18] sm:$0xf] %vm859_vm1, %v1096_v18  ;;  %882 = vst.msk [vmem:[%s1378_s12 + $0x58] sm:$0xf] %vm859_vm1, %v1112_v19  ;;  %v1110_v31 = vpack.c.bf16 %v719_v23, %v719_v23  ;;  %v638_v32 = vmul.f32 %v1160_v28, %v1358_v20  ;;  %v654_v33 = vmul.f32 %v1176_v29, %v1358_v20  ;;  %v706_v34 = vmax.f32 %v674_v24, 0.0  ;;  %v526_v38 = vpop.f32.mrf.mxu0  ;;  %v590_v39 = vpop.f32.mrf.mxu1 }
  0xf0   : > { %v722_v35 = vmax.f32 %v690_v25, 0.0  ;;  %v672_v36 = vadd.f32 %v1363_v22, %v633_v26  ;;  %v688_v37 = vadd.f32 %v1363_v22, %v649_v27  ;;  %864 = vst.msk [vmem:[%s1378_s12 + $0x10] sm:$0xf] %vm859_vm1, %v1094_v30  ;;  %v636_v42 = vmul.f32 %v1358_v20, %v526_v38 }
  0xf1   : > { %880 = vst.msk [vmem:[%s1378_s12 + $0x50] sm:$0xf] %vm859_vm1, %v1110_v31  ;;  %v677_v40 = vadd.f32 %v1363_v22, %v638_v32  ;;  %v693_v41 = vadd.f32 %v1363_v22, %v654_v33  ;;  %v652_v43 = vmul.f32 %v1358_v20, %v590_v39  ;;  %v1097_v44 = vpack.c.bf16 %v706_v34, %v706_v34  ;;  %v1161_v48 = vpop.f32.mrf.mxu0  ;;  %v1177_v49 = vpop.f32.mrf.mxu1 }
  0xf2   : > { %v1113_v45 = vpack.c.bf16 %v722_v35, %v722_v35  ;;  %v704_v46 = vmax.f32 %v672_v36, 0.0  ;;  %v720_v47 = vmax.f32 %v688_v37, 0.0  ;;  %v675_v52 = vadd.f32 %v1363_v22, %v636_v42 }
  0xf3   : > { %v709_v50 = vmax.f32 %v677_v40, 0.0  ;;  %v725_v51 = vmax.f32 %v693_v41, 0.0  ;;  %v691_v53 = vadd.f32 %v1363_v22, %v652_v43  ;;  %867 = vst.msk [vmem:[%s1378_s12 + $0x1c] sm:$0xf] %vm859_vm1, %v1097_v44  ;;  %v639_v56 = vmul.f32 %v1161_v48, %v1358_v20  ;;  %v529_v58 = vpop.f32.mrf.mxu0  ;;  %v593_v59 = vpop.f32.mrf.mxu1 }
  0xf4   : > { %883 = vst.msk [vmem:[%s1378_s12 + $0x5c] sm:$0xf] %vm859_vm1, %v1113_v45  ;;  %v1095_v54 = vpack.c.bf16 %v704_v46, %v704_v46  ;;  %v1111_v55 = vpack.c.bf16 %v720_v47, %v720_v47  ;;  %v655_v57 = vmul.f32 %v1177_v49, %v1358_v20  ;;  %v707_v62 = vmax.f32 %v675_v52, 0.0 }
  0xf5   : > { %v1100_v60 = vpack.c.bf16 %v709_v50, %v709_v50  ;;  %v1116_v61 = vpack.c.bf16 %v725_v51, %v725_v51  ;;  %v723_v63 = vmax.f32 %v691_v53, 0.0  ;;  %v678_v0 = vadd.f32 %v1363_v22, %v639_v56  ;;  %v1164_v4 = vpop.f32.mrf.mxu0  ;;  %v1180_v5 = vpop.f32.mrf.mxu1 }
  0xf6   : > { %865 = vst.msk [vmem:[%s1378_s12 + $0x14] sm:$0xf] %vm859_vm1, %v1095_v54  ;;  %881 = vst.msk [vmem:[%s1378_s12 + $0x54] sm:$0xf] %vm859_vm1, %v1111_v55  ;;  %v694_v1 = vadd.f32 %v1363_v22, %v655_v57  ;;  %v637_v2 = vmul.f32 %v1358_v20, %v529_v58  ;;  %v653_v3 = vmul.f32 %v1358_v20, %v593_v59 }
  0xf7   : > { %870 = vst.msk [vmem:[%s1378_s12 + $0x28] sm:$0xf] %vm859_vm1, %v1100_v60  ;;  %886 = vst.msk [vmem:[%s1378_s12 + $0x68] sm:$0xf] %vm859_vm1, %v1116_v61  ;;  %v1098_v6 = vpack.c.bf16 %v707_v62, %v707_v62  ;;  %v1114_v7 = vpack.c.bf16 %v723_v63, %v723_v63  ;;  %v642_v8 = vmul.f32 %v1164_v4, %v1358_v20  ;;  %v710_v10 = vmax.f32 %v678_v0, 0.0  ;;  %v542_v14 = vpop.f32.mrf.mxu0  ;;  %v606_v15 = vpop.f32.mrf.mxu1 }
  0xf8   : > { %v658_v9 = vmul.f32 %v1180_v5, %v1358_v20  ;;  %v726_v11 = vmax.f32 %v694_v1, 0.0  ;;  %v676_v12 = vadd.f32 %v1363_v22, %v637_v2  ;;  %v692_v13 = vadd.f32 %v1363_v22, %v653_v3 }
  0xf9   : > { %868 = vst.msk [vmem:[%s1378_s12 + $0x20] sm:$0xf] %vm859_vm1, %v1098_v6  ;;  %884 = vst.msk [vmem:[%s1378_s12 + $0x60] sm:$0xf] %vm859_vm1, %v1114_v7  ;;  %v681_v16 = vadd.f32 %v1363_v22, %v642_v8  ;;  %v640_v18 = vmul.f32 %v1358_v20, %v542_v14  ;;  %v656_v19 = vmul.f32 %v1358_v20, %v606_v15  ;;  %v1165_v26 = vpop.f32.mrf.mxu0  ;;  %v1181_v27 = vpop.f32.mrf.mxu1 }
  0xfa   : > { %v697_v17 = vadd.f32 %v1363_v22, %v658_v9  ;;  %v1101_v21 = vpack.c.bf16 %v710_v10, %v710_v10  ;;  %v1117_v23 = vpack.c.bf16 %v726_v11, %v726_v11  ;;  %v708_v24 = vmax.f32 %v676_v12, 0.0 }
  0xfb   : > { %v724_v25 = vmax.f32 %v692_v13, 0.0  ;;  %v713_v28 = vmax.f32 %v681_v16, 0.0  ;;  %v679_v30 = vadd.f32 %v1363_v22, %v640_v18  ;;  %v695_v31 = vadd.f32 %v1363_v22, %v656_v19  ;;  %v545_v36 = vpop.f32.mrf.mxu0  ;;  %v609_v37 = vpop.f32.mrf.mxu1 }
  0xfc   : > { %v729_v29 = vmax.f32 %v697_v17, 0.0  ;;  %871 = vst.msk [vmem:[%s1378_s12 + $0x2c] sm:$0xf] %vm859_vm1, %v1101_v21  ;;  %887 = vst.msk [vmem:[%s1378_s12 + $0x6c] sm:$0xf] %vm859_vm1, %v1117_v23  ;;  %v1099_v32 = vpack.c.bf16 %v708_v24, %v708_v24  ;;  %v643_v34 = vmul.f32 %v1165_v26, %v1358_v20  ;;  %v659_v35 = vmul.f32 %v1181_v27, %v1358_v20 }
  0xfd   : > { %v1115_v33 = vpack.c.bf16 %v724_v25, %v724_v25  ;;  %v1104_v38 = vpack.c.bf16 %v713_v28, %v713_v28  ;;  %v711_v40 = vmax.f32 %v679_v30, 0.0  ;;  %v727_v41 = vmax.f32 %v695_v31, 0.0 }
  0xfe   : > { %v1120_v39 = vpack.c.bf16 %v729_v29, %v729_v29  ;;  %869 = vst.msk [vmem:[%s1378_s12 + $0x24] sm:$0xf] %vm859_vm1, %v1099_v32  ;;  %v682_v42 = vadd.f32 %v1363_v22, %v643_v34  ;;  %v698_v43 = vadd.f32 %v1363_v22, %v659_v35  ;;  %v641_v44 = vmul.f32 %v1358_v20, %v545_v36 }
  0xff   : > { %885 = vst.msk [vmem:[%s1378_s12 + $0x64] sm:$0xf] %vm859_vm1, %v1115_v33  ;;  %v657_v45 = vmul.f32 %v1358_v20, %v609_v37  ;;  %874 = vst.msk [vmem:[%s1378_s12 + $0x38] sm:$0xf] %vm859_vm1, %v1104_v38  ;;  %v1102_v46 = vpack.c.bf16 %v711_v40, %v711_v40  ;;  %v1118_v47 = vpack.c.bf16 %v727_v41, %v727_v41 }
 0x100   : > { %890 = vst.msk [vmem:[%s1378_s12 + $0x78] sm:$0xf] %vm859_vm1, %v1120_v39  ;;  %v714_v48 = vmax.f32 %v682_v42, 0.0  ;;  %v730_v49 = vmax.f32 %v698_v43, 0.0  ;;  %v680_v50 = vadd.f32 %v1363_v22, %v641_v44 }
 0x101   : > { %v696_v51 = vadd.f32 %v1363_v22, %v657_v45  ;;  %872 = vst.msk [vmem:[%s1378_s12 + $0x30] sm:$0xf] %vm859_vm1, %v1102_v46  ;;  %888 = vst.msk [vmem:[%s1378_s12 + $0x70] sm:$0xf] %vm859_vm1, %v1118_v47 }
 0x102   : > { %v1105_v20 = vpack.c.bf16 %v714_v48, %v714_v48  ;;  %v1121_v52 = vpack.c.bf16 %v730_v49, %v730_v49  ;;  %v712_v53 = vmax.f32 %v680_v50, 0.0 }
 0x103   : > { %v728_v54 = vmax.f32 %v696_v51, 0.0 }
 0x104   : > { %875 = vst.msk [vmem:[%s1378_s12 + $0x3c] sm:$0xf] %vm859_vm1, %v1105_v20  ;;  %891 = vst.msk [vmem:[%s1378_s12 + $0x7c] sm:$0xf] %vm859_vm1, %v1121_v52  ;;  %v1103_v55 = vpack.c.bf16 %v712_v53, %v712_v53 }
 0x105   : > { %v1119_v56 = vpack.c.bf16 %v728_v54, %v728_v54 }
 0x106   : > { %873 = vst.msk [vmem:[%s1378_s12 + $0x34] sm:$0xf] %vm859_vm1, %v1103_v55 }
 0x107   : > { %889 = vst.msk [vmem:[%s1378_s12 + $0x74] sm:$0xf] %vm859_vm1, %v1119_v56 }
 0x108 PF: > { %s14_s17 = sadd.s32 1, %s1256_s17   ;;  %s1514_s15 = smov %s1252_s16 }
 0x109   : > { %p11_p5 = scmp.ge.s32.totalorder %s14_s17, 36   ;;  %s1515_s16 = smov %s1517_s18 }
 0x10b   :  { %13 = sbr.rel (!%p11_p5) target bundleno = 2 (0x2), region = 75 }

// kernel: generator_forward.17
= control target key start
LH: loop header
LB: loop body
LE: loop exit
PB: predicated region body
PF: predicated region fallthrough
CT: control target
= control target key end

     0   :  { %s2249_s15 = smov 0   ;;  %s2251_s16 = smov 0   ;;  %s2916_s0 = inlined_call_operand.vmem [shape: bf16[224,128], index: 0, kind: input, shape index: {}]   ;;  %s2917_s1 = inlined_call_operand.vmem [shape: bf16[128,4096], index: 1, kind: input, shape index: {}]   ;;  %s2918_s2 = inlined_call_operand.vmem [shape: f32[1,4096], index: 2, kind: input, shape index: {}]   ;;  %s2919_s3 = inlined_call_operand.vmem [shape: f32[1,4096], index: 3, kind: input, shape index: {}]   ;;  %s2920_s4 = inlined_call_operand.vmem [shape: bf16[224,4096], index: 4, kind: output, shape index: {}]  }
   0x1   :  { %s2253_s17 = smov 0   ;;  %s2255_s18 = smov 0  }
   0x2   :  { %s2257_s19 = smov 0  }
   0x3 LB: > { %s23_s20 = sadd.s32 1, %s2217_s18  ;;  %s1903_s21 = sadd.s32 4294967295, %s2221_s19   ;;  %s2221_s19 = sphi %s2257_s19, %s14_s19   ;;  %s2217_s18 = sphi %s2255_s18, %s2925_s18   ;;  %s2213_s17 = sphi %s2253_s17, %s2924_s17   ;;  %s2209_s16 = sphi %s2251_s16, %s2923_s16   ;;  %s2205_s15 = sphi %s2249_s15, %s2922_s15  }
   0x4   : > { %p24_p0 = scmp.ge.s32.totalorder %s23_s20, 8  ;;  %p66_p1 = scmp.ne.s32.totalorder %s2209_s16, %s2205_s15 }
   0x5   : > { %p67_p2 = scmp.eq.s32.totalorder %s2221_s19, 0  ;;  %p150_p4 = scmp.eq.s32.totalorder %s1903_s21, 7 }
   0x6   : > { %s2927_s20 = smov (%p24_p0, %s23_s20), 0  ;;  %s59_s23 = sadd.s32 1, %s2209_s16 }
   0x7   : > { %p68_p3 = por %p67_p2, %p66_p1  ;;  %s56_s22 = ssub.s32 %s2217_s18, %s2927_s20 }
   0x8   : > { %p57_p5 = scmp.eq.s32.totalorder %s56_s22, 0  ;;  %p2284_p6 = por %p150_p4, %p66_p1 }
   0x9   : > { %p1907_p7 = scmp.ge.s32.totalorder %s2221_s19, 8 }
   0xa   : > { %s2289_s25 = scalar_select %p57_p5, %s2209_s16, %s59_s23  }
   0xb   : > { %181 = sbr.rel (%p1907_p7) target bundleno = 36 (0x24), region = 20 }
  0x10   : > { %184 = sbr.rel (!%p68_p3) target bundleno = 36 (0x24), region = 24  ;;  %s186_s26 = sand.u32 (%p68_p3), 1, %s2209_s16  }
  0x11   : > { %s2021_s27 = sshll.u32 (%p68_p3), %s2217_s18, 4  ;;  %s1908_s28 = sshll.u32 (%p68_p3), %s186_s26, 8 }
  0x12   : > { %s2297_s5 = scalar_lea.vmem (%p68_p3), %s2917_s1, %s2021_s27  ;;  %s2302_s6 = scalar_lea.vmem (%p68_p3), [#allocation2], %s1908_s28 }
  0x13   : > { %v204_v0 = vld [vmem:[%s2297_s5] sm:$0xff] (%p68_p3)  ;;  %v206_v1 = vld [vmem:[%s2297_s5 + $0x8] sm:$0xff] (%p68_p3) }
  0x14   : > { %v208_v2 = vld [vmem:[%s2297_s5 + $0x80] sm:$0xff] (%p68_p3)  ;;  %205 = vst [vmem:[%s2302_s6] sm:$0xff] (%p68_p3), %v204_v0  ;;  %207 = vst [vmem:[%s2302_s6 + $0x8] sm:$0xff] (%p68_p3), %v206_v1  ;;  %v210_v3 = vld [vmem:[%s2297_s5 + $0x88] sm:$0xff] (%p68_p3) }
  0x15   : > { %209 = vst [vmem:[%s2302_s6 + $0x10] sm:$0xff] %v208_v2  ;;  %v212_v4 = vld [vmem:[%s2297_s5 + $0x100] sm:$0xff]  ;;  %v214_v5 = vld [vmem:[%s2297_s5 + $0x108] sm:$0xff]  ;;  %211 = vst [vmem:[%s2302_s6 + $0x18] sm:$0xff] %v210_v3 }
  0x16   : > { %213 = vst [vmem:[%s2302_s6 + $0x20] sm:$0xff] %v212_v4  ;;  %215 = vst [vmem:[%s2302_s6 + $0x28] sm:$0xff] %v214_v5  ;;  %v216_v6 = vld [vmem:[%s2297_s5 + $0x180] sm:$0xff]  ;;  %v218_v7 = vld [vmem:[%s2297_s5 + $0x188] sm:$0xff] }
  0x17   : > { %v220_v8 = vld [vmem:[%s2297_s5 + $0x200] sm:$0xff]  ;;  %217 = vst [vmem:[%s2302_s6 + $0x30] sm:$0xff] %v216_v6  ;;  %219 = vst [vmem:[%s2302_s6 + $0x38] sm:$0xff] %v218_v7  ;;  %v222_v9 = vld [vmem:[%s2297_s5 + $0x208] sm:$0xff] }
  0x18   : > { %221 = vst [vmem:[%s2302_s6 + $0x40] sm:$0xff] %v220_v8  ;;  %v224_v10 = vld [vmem:[%s2297_s5 + $0x280] sm:$0xff]  ;;  %v226_v11 = vld [vmem:[%s2297_s5 + $0x288] sm:$0xff]  ;;  %223 = vst [vmem:[%s2302_s6 + $0x48] sm:$0xff] %v222_v9 }
  0x19   : > { %225 = vst [vmem:[%s2302_s6 + $0x50] sm:$0xff] %v224_v10  ;;  %227 = vst [vmem:[%s2302_s6 + $0x58] sm:$0xff] %v226_v11  ;;  %v228_v12 = vld [vmem:[%s2297_s5 + $0x300] sm:$0xff]  ;;  %v230_v13 = vld [vmem:[%s2297_s5 + $0x308] sm:$0xff] }
  0x1a   : > { %v232_v14 = vld [vmem:[%s2297_s5 + $0x380] sm:$0xff]  ;;  %229 = vst [vmem:[%s2302_s6 + $0x60] sm:$0xff] %v228_v12  ;;  %231 = vst [vmem:[%s2302_s6 + $0x68] sm:$0xff] %v230_v13  ;;  %v234_v15 = vld [vmem:[%s2297_s5 + $0x388] sm:$0xff] }
  0x1b   : > { %233 = vst [vmem:[%s2302_s6 + $0x70] sm:$0xff] %v232_v14  ;;  %v236_v16 = vld [vmem:[%s2297_s5 + $0x400] sm:$0xff]  ;;  %v238_v17 = vld [vmem:[%s2297_s5 + $0x408] sm:$0xff]  ;;  %235 = vst [vmem:[%s2302_s6 + $0x78] sm:$0xff] %v234_v15 }
  0x1c   : > { %237 = vst [vmem:[%s2302_s6 + $0x80] sm:$0xff] %v236_v16  ;;  %239 = vst [vmem:[%s2302_s6 + $0x88] sm:$0xff] %v238_v17  ;;  %v240_v18 = vld [vmem:[%s2297_s5 + $0x480] sm:$0xff]  ;;  %v242_v19 = vld [vmem:[%s2297_s5 + $0x488] sm:$0xff] }
  0x1d   : > { %v244_v20 = vld [vmem:[%s2297_s5 + $0x500] sm:$0xff]  ;;  %241 = vst [vmem:[%s2302_s6 + $0x90] sm:$0xff] %v240_v18  ;;  %243 = vst [vmem:[%s2302_s6 + $0x98] sm:$0xff] %v242_v19  ;;  %v246_v21 = vld [vmem:[%s2297_s5 + $0x508] sm:$0xff] }
  0x1e   : > { %245 = vst [vmem:[%s2302_s6 + $0xa0] sm:$0xff] %v244_v20  ;;  %v248_v22 = vld [vmem:[%s2297_s5 + $0x580] sm:$0xff]  ;;  %v250_v23 = vld [vmem:[%s2297_s5 + $0x588] sm:$0xff]  ;;  %247 = vst [vmem:[%s2302_s6 + $0xa8] sm:$0xff] %v246_v21 }
  0x1f   : > { %249 = vst [vmem:[%s2302_s6 + $0xb0] sm:$0xff] %v248_v22  ;;  %251 = vst [vmem:[%s2302_s6 + $0xb8] sm:$0xff] %v250_v23  ;;  %v252_v24 = vld [vmem:[%s2297_s5 + $0x600] sm:$0xff]  ;;  %v254_v25 = vld [vmem:[%s2297_s5 + $0x608] sm:$0xff] }
  0x20   : > { %v256_v26 = vld [vmem:[%s2297_s5 + $0x680] sm:$0xff]  ;;  %253 = vst [vmem:[%s2302_s6 + $0xc0] sm:$0xff] %v252_v24  ;;  %255 = vst [vmem:[%s2302_s6 + $0xc8] sm:$0xff] %v254_v25  ;;  %v258_v27 = vld [vmem:[%s2297_s5 + $0x688] sm:$0xff] }
  0x21   : > { %257 = vst [vmem:[%s2302_s6 + $0xd0] sm:$0xff] %v256_v26  ;;  %v260_v28 = vld [vmem:[%s2297_s5 + $0x700] sm:$0xff]  ;;  %v262_v29 = vld [vmem:[%s2297_s5 + $0x708] sm:$0xff]  ;;  %259 = vst [vmem:[%s2302_s6 + $0xd8] sm:$0xff] %v258_v27 }
  0x22   : > { %261 = vst [vmem:[%s2302_s6 + $0xe0] sm:$0xff] %v260_v28  ;;  %263 = vst [vmem:[%s2302_s6 + $0xe8] sm:$0xff] %v262_v29  ;;  %v264_v30 = vld [vmem:[%s2297_s5 + $0x780] sm:$0xff]  ;;  %v266_v31 = vld [vmem:[%s2297_s5 + $0x788] sm:$0xff] }
  0x23   : > { %265 = vst [vmem:[%s2302_s6 + $0xf0] sm:$0xff] %v264_v30  ;;  %267 = vst [vmem:[%s2302_s6 + $0xf8] sm:$0xff] %v266_v31 }
  0x24 PF: > { %p1911_p8 = scmp.ge.s32.totalorder %s2221_s19, 1  ;;  %p288_p9 = scmp.lt.s32.totalorder %s2221_s19, 9 }
  0x26   : > { %p289_p10 = pnand %p1911_p8, %p288_p9 }
  0x27   : > { %s295_s7 = sand.u32 (!%p289_p10), 1, %s2205_s15   ;;  %s1913_s29 = sshll.u32 (!%p289_p10), %s2213_s17, 2 }
  0x28   : > { %292 = sbr.rel (%p289_p10) target bundleno = 407 (0x197), region = 55  ;;  %s1912_s8 = sshll.u32 (!%p289_p10), %s295_s7, 8 }
  0x29   : > { %s2372_s9 = scalar_lea.vmem (!%p289_p10), [#allocation2], %s1912_s8  ;;  %p340_p11 = scmp.lt.s32.totalorder (!%p289_p10), %s1913_s29, 31 }
  0x2a   : > { %s2079_s11 = smul.u32 (!%p289_p10), 448, %s295_s7 }
  0x2c   : > { %s2511_s15 = scalar_lea.vmem (!%p289_p10), [#allocation3], %s2079_s11 }
  0x2d   : > { %v2223_v32 = vmov 0   ;;  %v2121_v33 = vld [vmem:[%s2372_s9 + $0xe4] ss:$16 sps:$4 sm:$0xff]   ;;  %v2123_v34 = vld [vmem:[%s2372_s9 + $0xec] ss:$16 sps:$4 sm:$0xff]   ;;  %v1004_v15 = vlaneseq  ;;  %s2929_s29 = smov (!%p340_p11, %s1913_s29), 31 }
  0x2e   : > { %688 = vmatprep.mubr.bf16.mxu0 %v2223_v32  ;;  %861 = vmatprep.mubr.bf16.mxu1 %v2223_v32  ;;  %v2125_v35 = vld [vmem:[%s2372_s9 + $0xe0] ss:$16 sps:$4 sm:$0xff]   ;;  %v2126_v36 = vld [vmem:[%s2372_s9 + $0xe8] ss:$16 sps:$4 sm:$0xff]   ;;  %v2127_v37 = vld [vmem:[%s2372_s9 + $0xc4] ss:$16 sps:$4 sm:$0xff]   ;;  %s342_s6 = scalar_lea.vmem %s2918_s2, %s2929_s29  ;;  %s347_s10 = scalar_lea.vmem %s2919_s3, %s2929_s29 }
  0x2f   : > { %656 = vmatprep.subr.bf16.mxu0 %v2121_v33  ;;  %829 = vmatprep.subr.bf16.mxu1 %v2123_v34  ;;  %v2129_v38 = vld [vmem:[%s2372_s9 + $0xcc] ss:$16 sps:$4 sm:$0xff]   ;;  %v2131_v39 = vld [vmem:[%s2372_s9 + $0xc0] ss:$16 sps:$4 sm:$0xff]   ;;  %v2132_v40 = vld [vmem:[%s2372_s9 + $0xc8] ss:$16 sps:$4 sm:$0xff]  }
  0x30   : > { %657 = vmatpush1.bf16.msra.mxu0 %v2125_v35  ;;  %830 = vmatpush1.bf16.msra.mxu1 %v2126_v36  ;;  %v2133_v41 = vld [vmem:[%s2372_s9 + $0xa4] ss:$16 sps:$4 sm:$0xff]   ;;  %v2135_v42 = vld [vmem:[%s2372_s9 + $0xac] ss:$16 sps:$4 sm:$0xff]   ;;  %v2137_v43 = vld [vmem:[%s2372_s9 + $0xa0] ss:$16 sps:$4 sm:$0xff]  }
  0x31   : > { %658 = vmatprep.subr.bf16.mxu0 %v2127_v37  ;;  %831 = vmatprep.subr.bf16.mxu1 %v2129_v38  ;;  %v2138_v44 = vld [vmem:[%s2372_s9 + $0xa8] ss:$16 sps:$4 sm:$0xff]   ;;  %v2139_v45 = vld [vmem:[%s2372_s9 + $0x84] ss:$16 sps:$4 sm:$0xff]   ;;  %v2141_v46 = vld [vmem:[%s2372_s9 + $0x8c] ss:$16 sps:$4 sm:$0xff]  }
  0x32   : > { %v2143_v47 = vld [vmem:[%s2372_s9 + $0x80] ss:$16 sps:$4 sm:$0xff]   ;;  %v2144_v48 = vld [vmem:[%s2372_s9 + $0x88] ss:$16 sps:$4 sm:$0xff]   ;;  %v2145_v49 = vld [vmem:[%s2372_s9 + $0x64] ss:$16 sps:$4 sm:$0xff]  }
  0x33   : > { %v2147_v50 = vld [vmem:[%s2372_s9 + $0x6c] ss:$16 sps:$4 sm:$0xff]   ;;  %v2149_v51 = vld [vmem:[%s2372_s9 + $0x60] ss:$16 sps:$4 sm:$0xff]   ;;  %v2150_v52 = vld [vmem:[%s2372_s9 + $0x68] ss:$16 sps:$4 sm:$0xff]  }
  0x34   : > { %659 = vmatpush1.bf16.msra.mxu0 %v2131_v39  ;;  %832 = vmatpush1.bf16.msra.mxu1 %v2132_v40  ;;  %v2151_v53 = vld [vmem:[%s2372_s9 + $0x44] ss:$16 sps:$4 sm:$0xff]   ;;  %v2153_v54 = vld [vmem:[%s2372_s9 + $0x4c] ss:$16 sps:$4 sm:$0xff]   ;;  %v2155_v55 = vld [vmem:[%s2372_s9 + $0x40] ss:$16 sps:$4 sm:$0xff]  }
  0x35   : > { %660 = vmatprep.subr.bf16.mxu0 %v2133_v41  ;;  %833 = vmatprep.subr.bf16.mxu1 %v2135_v42  ;;  %v2156_v56 = vld [vmem:[%s2372_s9 + $0x48] ss:$16 sps:$4 sm:$0xff]   ;;  %v2157_v57 = vld [vmem:[%s2372_s9 + $0x24] ss:$16 sps:$4 sm:$0xff]   ;;  %v2159_v58 = vld [vmem:[%s2372_s9 + $0x2c] ss:$16 sps:$4 sm:$0xff]  }
  0x36   : > { %v2161_v59 = vld [vmem:[%s2372_s9 + $0x20] ss:$16 sps:$4 sm:$0xff]   ;;  %v2162_v60 = vld [vmem:[%s2372_s9 + $0x28] ss:$16 sps:$4 sm:$0xff]   ;;  %v2163_v61 = vld [vmem:[%s2372_s9 + $0x4] ss:$16 sps:$4 sm:$0xff]  }
  0x37   : > { %v2165_v62 = vld [vmem:[%s2372_s9 + $0xc] ss:$16 sps:$4 sm:$0xff]   ;;  %v2167_v63 = vld [vmem:[%s2372_s9] ss:$16 sps:$4 sm:$0xff]   ;;  %v2168_v0 = vld [vmem:[%s2372_s9 + $0x8] ss:$16 sps:$4 sm:$0xff]  }
  0x38   : > { %661 = vmatpush1.bf16.msra.mxu0 %v2137_v43  ;;  %834 = vmatpush1.bf16.msra.mxu1 %v2138_v44  ;;  %v2169_v1 = vld [vmem:[%s2916_s0] sm:$0xff]   ;;  %v2170_v2 = vld [vmem:[%s2916_s0 + $0x8] sm:$0xff]   ;;  %v2171_v3 = vld [vmem:[%s2916_s0 + $0x10] sm:$0xff]   ;;  %v1005_v16 = vshrl.u32 %v1004_v15, 7  ;;  %s2078_s7 = sshll.u32 (%p2284_p6), %s2213_s17, 4 }
  0x39   : > { %662 = vmatprep.subr.bf16.mxu0 %v2139_v45  ;;  %835 = vmatprep.subr.bf16.mxu1 %v2141_v46  ;;  %v2172_v4 = vld [vmem:[%s2916_s0 + $0x18] sm:$0xff]   ;;  %v2173_v5 = vld [vmem:[%s2916_s0 + $0x20] sm:$0xff]   ;;  %v2174_v6 = vld [vmem:[%s2916_s0 + $0x28] sm:$0xff]   ;;  %s2790_s14 = scalar_lea.vmem (%p2284_p6), %s2920_s4, %s2078_s7 }
  0x3a   : > { %v2175_v7 = vld [vmem:[%s2916_s0 + $0x30] sm:$0xff]   ;;  %v2176_v8 = vld [vmem:[%s2916_s0 + $0x38] sm:$0xff]   ;;  %v2177_v9 = vld [vmem:[%s2916_s0 + $0x40] sm:$0xff]   ;;  %v1006_v17 = vsub.s32 0, %v1005_v16  ;;  %v1014_v18 = vsub.s32 2, %v1005_v16  ;;  %v1010_v20 = vsub.s32 1, %v1005_v16 }
  0x3b   : > { %v2178_v10 = vld [vmem:[%s2916_s0 + $0x48] sm:$0xff]   ;;  %v2179_v11 = vld [vmem:[%s2916_s0 + $0x50] sm:$0xff]   ;;  %v2180_v12 = vld [vmem:[%s2916_s0 + $0x58] sm:$0xff]   ;;  %v1018_v21 = vsub.s32 3, %v1005_v16 }
  0x3c   : > { %663 = vmatpush1.bf16.msra.mxu0 %v2143_v47  ;;  %836 = vmatpush1.bf16.msra.mxu1 %v2144_v48  ;;  %v2181_v13 = vld [vmem:[%s2916_s0 + $0x60] sm:$0xff]   ;;  %v2182_v14 = vld [vmem:[%s2916_s0 + $0x68] sm:$0xff]  }
  0x3d   : > { %664 = vmatprep.subr.bf16.mxu0 %v2145_v49  ;;  %837 = vmatprep.subr.bf16.mxu1 %v2147_v50  ;;  %v1002_v19 = vld [vmem:[%s342_s6] sm:$0xf] }
  0x3e   : > { %v2481_v22 = vrot.slane %v1002_v19, %v1006_v17  ;;  %v1136_v23 = vld [vmem:[%s347_s10] sm:$0xf]  ;;  %v2483_v24 = vrot.slane %v1002_v19, %v1014_v18  ;;  %v2485_v25 = vrot.slane %v1002_v19, %v1010_v20  ;;  %v2487_v26 = vrot.slane %v1002_v19, %v1018_v21 }
  0x3f   : > { %v2489_v28 = vrot.slane %v1136_v23, %v1006_v17  ;;  %v2491_v30 = vrot.slane %v1136_v23, %v1014_v18  ;;  %v2495_v33 = vrot.slane %v1136_v23, %v1010_v20  ;;  %v2497_v34 = vrot.slane %v1136_v23, %v1018_v21 }
  0x40   : > { %665 = vmatpush1.bf16.msra.mxu0 %v2149_v51  ;;  %838 = vmatpush1.bf16.msra.mxu1 %v2150_v52 }
  0x41   : > { %666 = vmatprep.subr.bf16.mxu0 %v2151_v53  ;;  %839 = vmatprep.subr.bf16.mxu1 %v2153_v54 }
  0x44   : > { %667 = vmatpush1.bf16.msra.mxu0 %v2155_v55  ;;  %840 = vmatpush1.bf16.msra.mxu1 %v2156_v56 }
  0x45   : > { %668 = vmatprep.subr.bf16.mxu0 %v2157_v57  ;;  %841 = vmatprep.subr.bf16.mxu1 %v2159_v58 }
  0x48   : > { %669 = vmatpush1.bf16.msra.mxu0 %v2161_v59  ;;  %842 = vmatpush1.bf16.msra.mxu1 %v2162_v60 }
  0x49   : > { %670 = vmatprep.subr.bf16.mxu0 %v2163_v61  ;;  %843 = vmatprep.subr.bf16.mxu1 %v2165_v62 }
  0x4c   : > { %671 = vmatpush1.bf16.msra.mxu0 %v2167_v63  ;;  %844 = vmatpush1.bf16.msra.mxu1 %v2168_v0 }
  0x4f   : > { %689 = vmatmul.mubr.bf16.vlgmr.msra.gmra.mxu0 %v2169_v1  ;;  %862 = vmatmul.mubr.bf16.vlgmr.msra.gmra.mxu1 %v2169_v1 }
  0x50   : > { %698 = vmatprep.mubr.bf16.mxu0 %v2223_v32  ;;  %871 = vmatprep.mubr.bf16.mxu1 %v2223_v32 }
  0x57   : > { %699 = vmatmul.mubr.bf16.gmra.mxu0 %v2170_v2  ;;  %872 = vmatmul.mubr.bf16.gmra.mxu1 %v2170_v2 }
  0x58   : > { %708 = vmatprep.mubr.bf16.mxu0 %v2223_v32  ;;  %881 = vmatprep.mubr.bf16.mxu1 %v2223_v32 }
  0x5f   : > { %709 = vmatmul.mubr.bf16.gmra.mxu0 %v2171_v3  ;;  %882 = vmatmul.mubr.bf16.gmra.mxu1 %v2171_v3 }
  0x60   : > { %718 = vmatprep.mubr.bf16.mxu0 %v2223_v32  ;;  %891 = vmatprep.mubr.bf16.mxu1 %v2223_v32 }
  0x67   : > { %719 = vmatmul.mubr.bf16.gmra.mxu0 %v2172_v4  ;;  %892 = vmatmul.mubr.bf16.gmra.mxu1 %v2172_v4 }
  0x68   : > { %728 = vmatprep.mubr.bf16.mxu0 %v2223_v32  ;;  %901 = vmatprep.mubr.bf16.mxu1 %v2223_v32 }
  0x6f   : > { %729 = vmatmul.mubr.bf16.gmra.mxu0 %v2173_v5  ;;  %902 = vmatmul.mubr.bf16.gmra.mxu1 %v2173_v5 }
  0x70   : > { %738 = vmatprep.mubr.bf16.mxu0 %v2223_v32  ;;  %911 = vmatprep.mubr.bf16.mxu1 %v2223_v32 }
  0x77   : > { %739 = vmatmul.mubr.bf16.gmra.mxu0 %v2174_v6  ;;  %912 = vmatmul.mubr.bf16.gmra.mxu1 %v2174_v6 }
  0x78   : > { %748 = vmatprep.mubr.bf16.mxu0 %v2223_v32  ;;  %921 = vmatprep.mubr.bf16.mxu1 %v2223_v32 }
  0x7f   : > { %749 = vmatmul.mubr.bf16.gmra.mxu0 %v2175_v7  ;;  %922 = vmatmul.mubr.bf16.gmra.mxu1 %v2175_v7 }
  0x80   : > { %758 = vmatprep.mubr.bf16.mxu0 %v2223_v32  ;;  %931 = vmatprep.mubr.bf16.mxu1 %v2223_v32 }
  0x87   : > { %759 = vmatmul.mubr.bf16.gmra.mxu0 %v2176_v8  ;;  %932 = vmatmul.mubr.bf16.gmra.mxu1 %v2176_v8 }
  0x88   : > { %768 = vmatprep.mubr.bf16.mxu0 %v2223_v32  ;;  %941 = vmatprep.mubr.bf16.mxu1 %v2223_v32 }
  0x8f   : > { %769 = vmatmul.mubr.bf16.gmra.mxu0 %v2177_v9  ;;  %942 = vmatmul.mubr.bf16.gmra.mxu1 %v2177_v9 }
  0x90   : > { %778 = vmatprep.mubr.bf16.mxu0 %v2223_v32  ;;  %951 = vmatprep.mubr.bf16.mxu1 %v2223_v32 }
  0x97   : > { %779 = vmatmul.mubr.bf16.gmra.mxu0 %v2178_v10  ;;  %952 = vmatmul.mubr.bf16.gmra.mxu1 %v2178_v10 }
  0x98   : > { %788 = vmatprep.mubr.bf16.mxu0 %v2223_v32  ;;  %961 = vmatprep.mubr.bf16.mxu1 %v2223_v32 }
  0x9f   : > { %789 = vmatmul.mubr.bf16.gmra.mxu0 %v2179_v11  ;;  %962 = vmatmul.mubr.bf16.gmra.mxu1 %v2179_v11 }
  0xa0   : > { %798 = vmatprep.mubr.bf16.mxu0 %v2223_v32  ;;  %971 = vmatprep.mubr.bf16.mxu1 %v2223_v32 }
  0xa7   : > { %799 = vmatmul.mubr.bf16.gmra.mxu0 %v2180_v12  ;;  %972 = vmatmul.mubr.bf16.gmra.mxu1 %v2180_v12 }
  0xa8   : > { %808 = vmatprep.mubr.bf16.mxu0 %v2223_v32  ;;  %981 = vmatprep.mubr.bf16.mxu1 %v2223_v32 }
  0xaf   : > { %809 = vmatmul.mubr.bf16.gmra.mxu0 %v2181_v13  ;;  %982 = vmatmul.mubr.bf16.gmra.mxu1 %v2181_v13 }
  0xb0   : > { %818 = vmatprep.mubr.bf16.mxu0 %v2223_v32  ;;  %991 = vmatprep.mubr.bf16.mxu1 %v2223_v32 }
  0xb7   : > { %819 = vmatmul.mubr.bf16.gmra.mxu0 %v2182_v14  ;;  %992 = vmatmul.mubr.bf16.gmra.mxu1 %v2182_v14 }
 0x10f   : > { %v690_v27 = vpop.f32.mrf.mxu0  ;;  %v863_v29 = vpop.f32.mrf.mxu1 }
 0x110   : > { %v1024_v31 = vmul.f32 %v2481_v22, %v690_v27  ;;  %v1026_v32 = vmul.f32 %v2483_v24, %v863_v29 }
 0x111   : > { %v692_v35 = vpop.f32.mrf.mxu0  ;;  %v865_v36 = vpop.f32.mrf.mxu1 }
 0x112   : > { %v1025_v37 = vmul.f32 %v2485_v25, %v692_v35  ;;  %v1027_v38 = vmul.f32 %v2487_v26, %v865_v36  ;;  %v1158_v41 = vadd.f32 %v2489_v28, %v1024_v31  ;;  %v1160_v42 = vadd.f32 %v2491_v30, %v1026_v32 }
 0x113   : > { %v694_v39 = vpop.f32.mrf.mxu0  ;;  %v867_v40 = vpop.f32.mrf.mxu1 }
 0x114   : > { %v1159_v43 = vadd.f32 %v2495_v33, %v1025_v37  ;;  %v1161_v44 = vadd.f32 %v2497_v34, %v1027_v38  ;;  %v1028_v45 = vmul.f32 %v2481_v22, %v694_v39  ;;  %v1030_v46 = vmul.f32 %v2483_v24, %v867_v40 }
 0x115   : > { %v696_v47 = vpop.f32.mrf.mxu0  ;;  %v869_v48 = vpop.f32.mrf.mxu1 }
 0x116   : > { %v2022_v49 = vpack.c.bf16 %v1159_v43, %v1158_v41  ;;  %v2023_v50 = vpack.c.bf16 %v1161_v44, %v1160_v42  ;;  %v1029_v51 = vmul.f32 %v2485_v25, %v696_v47  ;;  %v1031_v52 = vmul.f32 %v2487_v26, %v869_v48 }
 0x117   : > { %v700_v53 = vpop.f32.mrf.mxu0  ;;  %v873_v54 = vpop.f32.mrf.mxu1  ;;  %v1162_v57 = vadd.f32 %v2489_v28, %v1028_v45  ;;  %v1164_v58 = vadd.f32 %v2491_v30, %v1030_v46 }
 0x118   : > { %1606 = vst [vmem:[%s2511_s15] sm:$0xff] %v2022_v49  ;;  %1607 = vst [vmem:[%s2511_s15 + $0x8] sm:$0xff] %v2023_v50  ;;  %v1032_v55 = vmul.f32 %v2481_v22, %v700_v53  ;;  %v1034_v56 = vmul.f32 %v2483_v24, %v873_v54  ;;  %v1163_v59 = vadd.f32 %v2495_v33, %v1029_v51 }
 0x119   : > { %v1165_v60 = vadd.f32 %v2497_v34, %v1031_v52  ;;  %v702_v61 = vpop.f32.mrf.mxu0  ;;  %v875_v62 = vpop.f32.mrf.mxu1 }
 0x11a   : > { %v1033_v63 = vmul.f32 %v2485_v25, %v702_v61  ;;  %v1035_v0 = vmul.f32 %v2487_v26, %v875_v62  ;;  %v2024_v1 = vpack.c.bf16 %v1163_v59, %v1162_v57  ;;  %v1166_v5 = vadd.f32 %v2489_v28, %v1032_v55 }
 0x11b   : > { %v2025_v2 = vpack.c.bf16 %v1165_v60, %v1164_v58  ;;  %v704_v3 = vpop.f32.mrf.mxu0  ;;  %v877_v4 = vpop.f32.mrf.mxu1  ;;  %v1168_v6 = vadd.f32 %v2491_v30, %v1034_v56 }
 0x11c   : > { %v1167_v7 = vadd.f32 %v2495_v33, %v1033_v63  ;;  %v1169_v8 = vadd.f32 %v2497_v34, %v1035_v0  ;;  %1608 = vst [vmem:[%s2511_s15 + $0x10] sm:$0xff] %v2024_v1  ;;  %v1036_v9 = vmul.f32 %v2481_v22, %v704_v3  ;;  %v1038_v10 = vmul.f32 %v2483_v24, %v877_v4 }
 0x11d   : > { %1609 = vst [vmem:[%s2511_s15 + $0x18] sm:$0xff] %v2025_v2  ;;  %v706_v11 = vpop.f32.mrf.mxu0  ;;  %v879_v12 = vpop.f32.mrf.mxu1 }
 0x11e   : > { %v2026_v13 = vpack.c.bf16 %v1167_v7, %v1166_v5  ;;  %v2027_v14 = vpack.c.bf16 %v1169_v8, %v1168_v6  ;;  %v1037_v15 = vmul.f32 %v2485_v25, %v706_v11  ;;  %v1039_v16 = vmul.f32 %v2487_v26, %v879_v12 }
 0x11f   : > { %v710_v17 = vpop.f32.mrf.mxu0  ;;  %v883_v18 = vpop.f32.mrf.mxu1  ;;  %v1170_v21 = vadd.f32 %v2489_v28, %v1036_v9  ;;  %v1172_v23 = vadd.f32 %v2491_v30, %v1038_v10 }
 0x120   : > { %1610 = vst [vmem:[%s2511_s15 + $0x20] sm:$0xff] %v2026_v13  ;;  %1611 = vst [vmem:[%s2511_s15 + $0x28] sm:$0xff] %v2027_v14  ;;  %v1040_v19 = vmul.f32 %v2481_v22, %v710_v17  ;;  %v1042_v20 = vmul.f32 %v2483_v24, %v883_v18  ;;  %v1171_v27 = vadd.f32 %v2495_v33, %v1037_v15 }
 0x121   : > { %v1173_v29 = vadd.f32 %v2497_v34, %v1039_v16  ;;  %v712_v31 = vpop.f32.mrf.mxu0  ;;  %v885_v32 = vpop.f32.mrf.mxu1 }
 0x122   : > { %v1041_v35 = vmul.f32 %v2485_v25, %v712_v31  ;;  %v1043_v36 = vmul.f32 %v2487_v26, %v885_v32  ;;  %v2028_v37 = vpack.c.bf16 %v1171_v27, %v1170_v21  ;;  %v1174_v41 = vadd.f32 %v2489_v28, %v1040_v19 }
 0x123   : > { %v2029_v38 = vpack.c.bf16 %v1173_v29, %v1172_v23  ;;  %v714_v39 = vpop.f32.mrf.mxu0  ;;  %v887_v40 = vpop.f32.mrf.mxu1  ;;  %v1176_v42 = vadd.f32 %v2491_v30, %v1042_v20 }
 0x124   : > { %v1175_v43 = vadd.f32 %v2495_v33, %v1041_v35  ;;  %v1177_v44 = vadd.f32 %v2497_v34, %v1043_v36  ;;  %1612 = vst [vmem:[%s2511_s15 + $0x30] sm:$0xff] %v2028_v37  ;;  %v1044_v45 = vmul.f32 %v2481_v22, %v714_v39  ;;  %v1046_v46 = vmul.f32 %v2483_v24, %v887_v40 }
 0x125   : > { %1613 = vst [vmem:[%s2511_s15 + $0x38] sm:$0xff] %v2029_v38  ;;  %v716_v47 = vpop.f32.mrf.mxu0  ;;  %v889_v48 = vpop.f32.mrf.mxu1 }
 0x126   : > { %v2030_v49 = vpack.c.bf16 %v1175_v43, %v1174_v41  ;;  %v2031_v50 = vpack.c.bf16 %v1177_v44, %v1176_v42  ;;  %v1045_v51 = vmul.f32 %v2485_v25, %v716_v47  ;;  %v1047_v52 = vmul.f32 %v2487_v26, %v889_v48 }
 0x127   : > { %v720_v53 = vpop.f32.mrf.mxu0  ;;  %v893_v54 = vpop.f32.mrf.mxu1  ;;  %v1178_v57 = vadd.f32 %v2489_v28, %v1044_v45  ;;  %v1180_v58 = vadd.f32 %v2491_v30, %v1046_v46 }
 0x128   : > { %1614 = vst [vmem:[%s2511_s15 + $0x40] sm:$0xff] %v2030_v49  ;;  %1615 = vst [vmem:[%s2511_s15 + $0x48] sm:$0xff] %v2031_v50  ;;  %v1048_v55 = vmul.f32 %v2481_v22, %v720_v53  ;;  %v1050_v56 = vmul.f32 %v2483_v24, %v893_v54  ;;  %v1179_v59 = vadd.f32 %v2495_v33, %v1045_v51 }
 0x129   : > { %v1181_v60 = vadd.f32 %v2497_v34, %v1047_v52  ;;  %v722_v61 = vpop.f32.mrf.mxu0  ;;  %v895_v62 = vpop.f32.mrf.mxu1 }
 0x12a   : > { %v1049_v63 = vmul.f32 %v2485_v25, %v722_v61  ;;  %v1051_v0 = vmul.f32 %v2487_v26, %v895_v62  ;;  %v2032_v1 = vpack.c.bf16 %v1179_v59, %v1178_v57  ;;  %v1182_v5 = vadd.f32 %v2489_v28, %v1048_v55 }
 0x12b   : > { %v2033_v2 = vpack.c.bf16 %v1181_v60, %v1180_v58  ;;  %v724_v3 = vpop.f32.mrf.mxu0  ;;  %v897_v4 = vpop.f32.mrf.mxu1  ;;  %v1184_v6 = vadd.f32 %v2491_v30, %v1050_v56 }
 0x12c   : > { %v1183_v7 = vadd.f32 %v2495_v33, %v1049_v63  ;;  %v1185_v8 = vadd.f32 %v2497_v34, %v1051_v0  ;;  %1616 = vst [vmem:[%s2511_s15 + $0x50] sm:$0xff] %v2032_v1  ;;  %v1052_v9 = vmul.f32 %v2481_v22, %v724_v3  ;;  %v1054_v10 = vmul.f32 %v2483_v24, %v897_v4 }
 0x12d   : > { %1617 = vst [vmem:[%s2511_s15 + $0x58] sm:$0xff] %v2033_v2  ;;  %v726_v11 = vpop.f32.mrf.mxu0  ;;  %v899_v12 = vpop.f32.mrf.mxu1 }
 0x12e   : > { %v2034_v13 = vpack.c.bf16 %v1183_v7, %v1182_v5  ;;  %v2035_v14 = vpack.c.bf16 %v1185_v8, %v1184_v6  ;;  %v1053_v15 = vmul.f32 %v2485_v25, %v726_v11  ;;  %v1055_v16 = vmul.f32 %v2487_v26, %v899_v12 }
 0x12f   : > { %v730_v17 = vpop.f32.mrf.mxu0  ;;  %v903_v18 = vpop.f32.mrf.mxu1  ;;  %v1186_v21 = vadd.f32 %v2489_v28, %v1052_v9  ;;  %v1188_v23 = vadd.f32 %v2491_v30, %v1054_v10 }
 0x130   : > { %1618 = vst [vmem:[%s2511_s15 + $0x60] sm:$0xff] %v2034_v13  ;;  %1619 = vst [vmem:[%s2511_s15 + $0x68] sm:$0xff] %v2035_v14  ;;  %v1056_v19 = vmul.f32 %v2481_v22, %v730_v17  ;;  %v1058_v20 = vmul.f32 %v2483_v24, %v903_v18  ;;  %v1187_v27 = vadd.f32 %v2495_v33, %v1053_v15 }
 0x131   : > { %v1189_v29 = vadd.f32 %v2497_v34, %v1055_v16  ;;  %v732_v31 = vpop.f32.mrf.mxu0  ;;  %v905_v32 = vpop.f32.mrf.mxu1 }
 0x132   : > { %v1057_v35 = vmul.f32 %v2485_v25, %v732_v31  ;;  %v1059_v36 = vmul.f32 %v2487_v26, %v905_v32  ;;  %v2036_v37 = vpack.c.bf16 %v1187_v27, %v1186_v21  ;;  %v1190_v41 = vadd.f32 %v2489_v28, %v1056_v19 }
 0x133   : > { %v2037_v38 = vpack.c.bf16 %v1189_v29, %v1188_v23  ;;  %v734_v39 = vpop.f32.mrf.mxu0  ;;  %v907_v40 = vpop.f32.mrf.mxu1  ;;  %v1192_v42 = vadd.f32 %v2491_v30, %v1058_v20 }
 0x134   : > { %v1191_v43 = vadd.f32 %v2495_v33, %v1057_v35  ;;  %v1193_v44 = vadd.f32 %v2497_v34, %v1059_v36  ;;  %1620 = vst [vmem:[%s2511_s15 + $0x70] sm:$0xff] %v2036_v37  ;;  %v1060_v45 = vmul.f32 %v2481_v22, %v734_v39  ;;  %v1062_v46 = vmul.f32 %v2483_v24, %v907_v40 }
 0x135   : > { %1621 = vst [vmem:[%s2511_s15 + $0x78] sm:$0xff] %v2037_v38  ;;  %v736_v47 = vpop.f32.mrf.mxu0  ;;  %v909_v48 = vpop.f32.mrf.mxu1 }
 0x136   : > { %v2038_v49 = vpack.c.bf16 %v1191_v43, %v1190_v41  ;;  %v2039_v50 = vpack.c.bf16 %v1193_v44, %v1192_v42  ;;  %v1061_v51 = vmul.f32 %v2485_v25, %v736_v47  ;;  %v1063_v52 = vmul.f32 %v2487_v26, %v909_v48 }
 0x137   : > { %v740_v53 = vpop.f32.mrf.mxu0  ;;  %v913_v54 = vpop.f32.mrf.mxu1  ;;  %v1194_v57 = vadd.f32 %v2489_v28, %v1060_v45  ;;  %v1196_v58 = vadd.f32 %v2491_v30, %v1062_v46 }
 0x138   : > { %1622 = vst [vmem:[%s2511_s15 + $0x80] sm:$0xff] %v2038_v49  ;;  %1623 = vst [vmem:[%s2511_s15 + $0x88] sm:$0xff] %v2039_v50  ;;  %v1064_v55 = vmul.f32 %v2481_v22, %v740_v53  ;;  %v1066_v56 = vmul.f32 %v2483_v24, %v913_v54  ;;  %v1195_v59 = vadd.f32 %v2495_v33, %v1061_v51 }
 0x139   : > { %v1197_v60 = vadd.f32 %v2497_v34, %v1063_v52  ;;  %v742_v61 = vpop.f32.mrf.mxu0  ;;  %v915_v62 = vpop.f32.mrf.mxu1 }
 0x13a   : > { %v1065_v63 = vmul.f32 %v2485_v25, %v742_v61  ;;  %v1067_v0 = vmul.f32 %v2487_v26, %v915_v62  ;;  %v2040_v1 = vpack.c.bf16 %v1195_v59, %v1194_v57  ;;  %v1198_v5 = vadd.f32 %v2489_v28, %v1064_v55 }
 0x13b   : > { %v2041_v2 = vpack.c.bf16 %v1197_v60, %v1196_v58  ;;  %v744_v3 = vpop.f32.mrf.mxu0  ;;  %v917_v4 = vpop.f32.mrf.mxu1  ;;  %v1200_v6 = vadd.f32 %v2491_v30, %v1066_v56 }
 0x13c   : > { %v1199_v7 = vadd.f32 %v2495_v33, %v1065_v63  ;;  %v1201_v8 = vadd.f32 %v2497_v34, %v1067_v0  ;;  %1624 = vst [vmem:[%s2511_s15 + $0x90] sm:$0xff] %v2040_v1  ;;  %v1068_v9 = vmul.f32 %v2481_v22, %v744_v3  ;;  %v1070_v10 = vmul.f32 %v2483_v24, %v917_v4 }
 0x13d   : > { %1625 = vst [vmem:[%s2511_s15 + $0x98] sm:$0xff] %v2041_v2  ;;  %v746_v11 = vpop.f32.mrf.mxu0  ;;  %v919_v12 = vpop.f32.mrf.mxu1 }
 0x13e   : > { %v2042_v13 = vpack.c.bf16 %v1199_v7, %v1198_v5  ;;  %v2043_v14 = vpack.c.bf16 %v1201_v8, %v1200_v6  ;;  %v1069_v15 = vmul.f32 %v2485_v25, %v746_v11  ;;  %v1071_v16 = vmul.f32 %v2487_v26, %v919_v12 }
 0x13f   : > { %v750_v17 = vpop.f32.mrf.mxu0  ;;  %v923_v18 = vpop.f32.mrf.mxu1  ;;  %v1202_v21 = vadd.f32 %v2489_v28, %v1068_v9  ;;  %v1204_v23 = vadd.f32 %v2491_v30, %v1070_v10 }
 0x140   : > { %1626 = vst [vmem:[%s2511_s15 + $0xa0] sm:$0xff] %v2042_v13  ;;  %1627 = vst [vmem:[%s2511_s15 + $0xa8] sm:$0xff] %v2043_v14  ;;  %v1072_v19 = vmul.f32 %v2481_v22, %v750_v17  ;;  %v1074_v20 = vmul.f32 %v2483_v24, %v923_v18  ;;  %v1203_v27 = vadd.f32 %v2495_v33, %v1069_v15 }
 0x141   : > { %v1205_v29 = vadd.f32 %v2497_v34, %v1071_v16  ;;  %v752_v31 = vpop.f32.mrf.mxu0  ;;  %v925_v32 = vpop.f32.mrf.mxu1 }
 0x142   : > { %v1073_v35 = vmul.f32 %v2485_v25, %v752_v31  ;;  %v1075_v36 = vmul.f32 %v2487_v26, %v925_v32  ;;  %v2044_v37 = vpack.c.bf16 %v1203_v27, %v1202_v21  ;;  %v1206_v41 = vadd.f32 %v2489_v28, %v1072_v19 }
 0x143   : > { %v2045_v38 = vpack.c.bf16 %v1205_v29, %v1204_v23  ;;  %v754_v39 = vpop.f32.mrf.mxu0  ;;  %v927_v40 = vpop.f32.mrf.mxu1  ;;  %v1208_v42 = vadd.f32 %v2491_v30, %v1074_v20 }
 0x144   : > { %v1207_v43 = vadd.f32 %v2495_v33, %v1073_v35  ;;  %v1209_v44 = vadd.f32 %v2497_v34, %v1075_v36  ;;  %1628 = vst [vmem:[%s2511_s15 + $0xb0] sm:$0xff] %v2044_v37  ;;  %v1076_v45 = vmul.f32 %v2481_v22, %v754_v39  ;;  %v1078_v46 = vmul.f32 %v2483_v24, %v927_v40 }
 0x145   : > { %1629 = vst [vmem:[%s2511_s15 + $0xb8] sm:$0xff] %v2045_v38  ;;  %v756_v47 = vpop.f32.mrf.mxu0  ;;  %v929_v48 = vpop.f32.mrf.mxu1 }
 0x146   : > { %v2046_v49 = vpack.c.bf16 %v1207_v43, %v1206_v41  ;;  %v2047_v50 = vpack.c.bf16 %v1209_v44, %v1208_v42  ;;  %v1077_v51 = vmul.f32 %v2485_v25, %v756_v47  ;;  %v1079_v52 = vmul.f32 %v2487_v26, %v929_v48 }
 0x147   : > { %v760_v53 = vpop.f32.mrf.mxu0  ;;  %v933_v54 = vpop.f32.mrf.mxu1  ;;  %v1210_v57 = vadd.f32 %v2489_v28, %v1076_v45  ;;  %v1212_v58 = vadd.f32 %v2491_v30, %v1078_v46 }
 0x148   : > { %1630 = vst [vmem:[%s2511_s15 + $0xc0] sm:$0xff] %v2046_v49  ;;  %1631 = vst [vmem:[%s2511_s15 + $0xc8] sm:$0xff] %v2047_v50  ;;  %v1080_v55 = vmul.f32 %v2481_v22, %v760_v53  ;;  %v1082_v56 = vmul.f32 %v2483_v24, %v933_v54  ;;  %v1211_v59 = vadd.f32 %v2495_v33, %v1077_v51 }
 0x149   : > { %v1213_v60 = vadd.f32 %v2497_v34, %v1079_v52  ;;  %v762_v61 = vpop.f32.mrf.mxu0  ;;  %v935_v62 = vpop.f32.mrf.mxu1 }
 0x14a   : > { %v1081_v63 = vmul.f32 %v2485_v25, %v762_v61  ;;  %v1083_v0 = vmul.f32 %v2487_v26, %v935_v62  ;;  %v2048_v1 = vpack.c.bf16 %v1211_v59, %v1210_v57  ;;  %v1214_v5 = vadd.f32 %v2489_v28, %v1080_v55 }
 0x14b   : > { %v2049_v2 = vpack.c.bf16 %v1213_v60, %v1212_v58  ;;  %v764_v3 = vpop.f32.mrf.mxu0  ;;  %v937_v4 = vpop.f32.mrf.mxu1  ;;  %v1216_v6 = vadd.f32 %v2491_v30, %v1082_v56 }
 0x14c   : > { %v1215_v7 = vadd.f32 %v2495_v33, %v1081_v63  ;;  %v1217_v8 = vadd.f32 %v2497_v34, %v1083_v0  ;;  %1632 = vst [vmem:[%s2511_s15 + $0xd0] sm:$0xff] %v2048_v1  ;;  %v1084_v9 = vmul.f32 %v2481_v22, %v764_v3  ;;  %v1086_v10 = vmul.f32 %v2483_v24, %v937_v4 }
 0x14d   : > { %1633 = vst [vmem:[%s2511_s15 + $0xd8] sm:$0xff] %v2049_v2  ;;  %v766_v11 = vpop.f32.mrf.mxu0  ;;  %v939_v12 = vpop.f32.mrf.mxu1 }
 0x14e   : > { %v2050_v13 = vpack.c.bf16 %v1215_v7, %v1214_v5  ;;  %v2051_v14 = vpack.c.bf16 %v1217_v8, %v1216_v6  ;;  %v1085_v15 = vmul.f32 %v2485_v25, %v766_v11  ;;  %v1087_v16 = vmul.f32 %v2487_v26, %v939_v12 }
 0x14f   : > { %v770_v17 = vpop.f32.mrf.mxu0  ;;  %v943_v18 = vpop.f32.mrf.mxu1  ;;  %v1218_v21 = vadd.f32 %v2489_v28, %v1084_v9  ;;  %v1220_v23 = vadd.f32 %v2491_v30, %v1086_v10 }
 0x150   : > { %1634 = vst [vmem:[%s2511_s15 + $0xe0] sm:$0xff] %v2050_v13  ;;  %1635 = vst [vmem:[%s2511_s15 + $0xe8] sm:$0xff] %v2051_v14  ;;  %v1088_v19 = vmul.f32 %v2481_v22, %v770_v17  ;;  %v1090_v20 = vmul.f32 %v2483_v24, %v943_v18  ;;  %v1219_v27 = vadd.f32 %v2495_v33, %v1085_v15 }
 0x151   : > { %v1221_v29 = vadd.f32 %v2497_v34, %v1087_v16  ;;  %v772_v31 = vpop.f32.mrf.mxu0  ;;  %v945_v32 = vpop.f32.mrf.mxu1 }
 0x152   : > { %v1089_v35 = vmul.f32 %v2485_v25, %v772_v31  ;;  %v1091_v36 = vmul.f32 %v2487_v26, %v945_v32  ;;  %v2052_v37 = vpack.c.bf16 %v1219_v27, %v1218_v21  ;;  %v1222_v41 = vadd.f32 %v2489_v28, %v1088_v19 }
 0x153   : > { %v2053_v38 = vpack.c.bf16 %v1221_v29, %v1220_v23  ;;  %v774_v39 = vpop.f32.mrf.mxu0  ;;  %v947_v40 = vpop.f32.mrf.mxu1  ;;  %v1224_v42 = vadd.f32 %v2491_v30, %v1090_v20 }
 0x154   : > { %v1223_v43 = vadd.f32 %v2495_v33, %v1089_v35  ;;  %v1225_v44 = vadd.f32 %v2497_v34, %v1091_v36  ;;  %1636 = vst [vmem:[%s2511_s15 + $0xf0] sm:$0xff] %v2052_v37  ;;  %v1092_v45 = vmul.f32 %v2481_v22, %v774_v39  ;;  %v1094_v46 = vmul.f32 %v2483_v24, %v947_v40 }
 0x155   : > { %1637 = vst [vmem:[%s2511_s15 + $0xf8] sm:$0xff] %v2053_v38  ;;  %v776_v47 = vpop.f32.mrf.mxu0  ;;  %v949_v48 = vpop.f32.mrf.mxu1 }
 0x156   : > { %v2054_v49 = vpack.c.bf16 %v1223_v43, %v1222_v41  ;;  %v2055_v50 = vpack.c.bf16 %v1225_v44, %v1224_v42  ;;  %v1093_v51 = vmul.f32 %v2485_v25, %v776_v47  ;;  %v1095_v52 = vmul.f32 %v2487_v26, %v949_v48 }
 0x157   : > { %v780_v53 = vpop.f32.mrf.mxu0  ;;  %v953_v54 = vpop.f32.mrf.mxu1  ;;  %v1226_v57 = vadd.f32 %v2489_v28, %v1092_v45  ;;  %v1228_v58 = vadd.f32 %v2491_v30, %v1094_v46 }
 0x158   : > { %1638 = vst [vmem:[%s2511_s15 + $0x100] sm:$0xff] %v2054_v49  ;;  %1639 = vst [vmem:[%s2511_s15 + $0x108] sm:$0xff] %v2055_v50  ;;  %v1096_v55 = vmul.f32 %v2481_v22, %v780_v53  ;;  %v1098_v56 = vmul.f32 %v2483_v24, %v953_v54  ;;  %v1227_v59 = vadd.f32 %v2495_v33, %v1093_v51 }
 0x159   : > { %v1229_v60 = vadd.f32 %v2497_v34, %v1095_v52  ;;  %v782_v61 = vpop.f32.mrf.mxu0  ;;  %v955_v62 = vpop.f32.mrf.mxu1 }
 0x15a   : > { %v1097_v63 = vmul.f32 %v2485_v25, %v782_v61  ;;  %v1099_v0 = vmul.f32 %v2487_v26, %v955_v62  ;;  %v2056_v1 = vpack.c.bf16 %v1227_v59, %v1226_v57  ;;  %v1230_v5 = vadd.f32 %v2489_v28, %v1096_v55 }
 0x15b   : > { %v2057_v2 = vpack.c.bf16 %v1229_v60, %v1228_v58  ;;  %v784_v3 = vpop.f32.mrf.mxu0  ;;  %v957_v4 = vpop.f32.mrf.mxu1  ;;  %v1232_v6 = vadd.f32 %v2491_v30, %v1098_v56 }
 0x15c   : > { %v1231_v7 = vadd.f32 %v2495_v33, %v1097_v63  ;;  %v1233_v8 = vadd.f32 %v2497_v34, %v1099_v0  ;;  %1640 = vst [vmem:[%s2511_s15 + $0x110] sm:$0xff] %v2056_v1  ;;  %v1100_v9 = vmul.f32 %v2481_v22, %v784_v3  ;;  %v1102_v10 = vmul.f32 %v2483_v24, %v957_v4 }
 0x15d   : > { %1641 = vst [vmem:[%s2511_s15 + $0x118] sm:$0xff] %v2057_v2  ;;  %v786_v11 = vpop.f32.mrf.mxu0  ;;  %v959_v12 = vpop.f32.mrf.mxu1 }
 0x15e   : > { %v2058_v13 = vpack.c.bf16 %v1231_v7, %v1230_v5  ;;  %v2059_v14 = vpack.c.bf16 %v1233_v8, %v1232_v6  ;;  %v1101_v15 = vmul.f32 %v2485_v25, %v786_v11  ;;  %v1103_v16 = vmul.f32 %v2487_v26, %v959_v12 }
 0x15f   : > { %v790_v17 = vpop.f32.mrf.mxu0  ;;  %v963_v18 = vpop.f32.mrf.mxu1  ;;  %v1234_v21 = vadd.f32 %v2489_v28, %v1100_v9  ;;  %v1236_v23 = vadd.f32 %v2491_v30, %v1102_v10 }
 0x160   : > { %1642 = vst [vmem:[%s2511_s15 + $0x120] sm:$0xff] %v2058_v13  ;;  %1643 = vst [vmem:[%s2511_s15 + $0x128] sm:$0xff] %v2059_v14  ;;  %v1104_v19 = vmul.f32 %v2481_v22, %v790_v17  ;;  %v1106_v20 = vmul.f32 %v2483_v24, %v963_v18  ;;  %v1235_v27 = vadd.f32 %v2495_v33, %v1101_v15 }
 0x161   : > { %v1237_v29 = vadd.f32 %v2497_v34, %v1103_v16  ;;  %v792_v31 = vpop.f32.mrf.mxu0  ;;  %v965_v32 = vpop.f32.mrf.mxu1 }
 0x162   : > { %v1105_v35 = vmul.f32 %v2485_v25, %v792_v31  ;;  %v1107_v36 = vmul.f32 %v2487_v26, %v965_v32  ;;  %v2060_v37 = vpack.c.bf16 %v1235_v27, %v1234_v21  ;;  %v1238_v41 = vadd.f32 %v2489_v28, %v1104_v19 }
 0x163   : > { %v2061_v38 = vpack.c.bf16 %v1237_v29, %v1236_v23  ;;  %v794_v39 = vpop.f32.mrf.mxu0  ;;  %v967_v40 = vpop.f32.mrf.mxu1  ;;  %v1240_v42 = vadd.f32 %v2491_v30, %v1106_v20 }
 0x164   : > { %v1239_v43 = vadd.f32 %v2495_v33, %v1105_v35  ;;  %v1241_v44 = vadd.f32 %v2497_v34, %v1107_v36  ;;  %1644 = vst [vmem:[%s2511_s15 + $0x130] sm:$0xff] %v2060_v37  ;;  %v1108_v45 = vmul.f32 %v2481_v22, %v794_v39  ;;  %v1110_v46 = vmul.f32 %v2483_v24, %v967_v40 }
 0x165   : > { %1645 = vst [vmem:[%s2511_s15 + $0x138] sm:$0xff] %v2061_v38  ;;  %v796_v47 = vpop.f32.mrf.mxu0  ;;  %v969_v48 = vpop.f32.mrf.mxu1 }
 0x166   : > { %v2062_v49 = vpack.c.bf16 %v1239_v43, %v1238_v41  ;;  %v2063_v50 = vpack.c.bf16 %v1241_v44, %v1240_v42  ;;  %v1109_v51 = vmul.f32 %v2485_v25, %v796_v47  ;;  %v1111_v52 = vmul.f32 %v2487_v26, %v969_v48 }
 0x167   : > { %v800_v53 = vpop.f32.mrf.mxu0  ;;  %v973_v54 = vpop.f32.mrf.mxu1  ;;  %v1242_v57 = vadd.f32 %v2489_v28, %v1108_v45  ;;  %v1244_v58 = vadd.f32 %v2491_v30, %v1110_v46 }
 0x168   : > { %1646 = vst [vmem:[%s2511_s15 + $0x140] sm:$0xff] %v2062_v49  ;;  %1647 = vst [vmem:[%s2511_s15 + $0x148] sm:$0xff] %v2063_v50  ;;  %v1112_v55 = vmul.f32 %v2481_v22, %v800_v53  ;;  %v1114_v56 = vmul.f32 %v2483_v24, %v973_v54  ;;  %v1243_v59 = vadd.f32 %v2495_v33, %v1109_v51 }
 0x169   : > { %v1245_v60 = vadd.f32 %v2497_v34, %v1111_v52  ;;  %v802_v61 = vpop.f32.mrf.mxu0  ;;  %v975_v62 = vpop.f32.mrf.mxu1 }
 0x16a   : > { %v1113_v63 = vmul.f32 %v2485_v25, %v802_v61  ;;  %v1115_v0 = vmul.f32 %v2487_v26, %v975_v62  ;;  %v2064_v1 = vpack.c.bf16 %v1243_v59, %v1242_v57  ;;  %v1246_v5 = vadd.f32 %v2489_v28, %v1112_v55 }
 0x16b   : > { %v2065_v2 = vpack.c.bf16 %v1245_v60, %v1244_v58  ;;  %v804_v3 = vpop.f32.mrf.mxu0  ;;  %v977_v4 = vpop.f32.mrf.mxu1  ;;  %v1248_v6 = vadd.f32 %v2491_v30, %v1114_v56 }
 0x16c   : > { %v1247_v7 = vadd.f32 %v2495_v33, %v1113_v63  ;;  %v1249_v8 = vadd.f32 %v2497_v34, %v1115_v0  ;;  %1648 = vst [vmem:[%s2511_s15 + $0x150] sm:$0xff] %v2064_v1  ;;  %v1116_v9 = vmul.f32 %v2481_v22, %v804_v3  ;;  %v1118_v10 = vmul.f32 %v2483_v24, %v977_v4 }
 0x16d   : > { %1649 = vst [vmem:[%s2511_s15 + $0x158] sm:$0xff] %v2065_v2  ;;  %v806_v11 = vpop.f32.mrf.mxu0  ;;  %v979_v12 = vpop.f32.mrf.mxu1 }
 0x16e   : > { %v2066_v13 = vpack.c.bf16 %v1247_v7, %v1246_v5  ;;  %v2067_v14 = vpack.c.bf16 %v1249_v8, %v1248_v6  ;;  %v1117_v15 = vmul.f32 %v2485_v25, %v806_v11  ;;  %v1119_v16 = vmul.f32 %v2487_v26, %v979_v12 }
 0x16f   : > { %v810_v17 = vpop.f32.mrf.mxu0  ;;  %v983_v18 = vpop.f32.mrf.mxu1  ;;  %v1250_v21 = vadd.f32 %v2489_v28, %v1116_v9  ;;  %v1252_v23 = vadd.f32 %v2491_v30, %v1118_v10 }
 0x170   : > { %1650 = vst [vmem:[%s2511_s15 + $0x160] sm:$0xff] %v2066_v13  ;;  %1651 = vst [vmem:[%s2511_s15 + $0x168] sm:$0xff] %v2067_v14  ;;  %v1120_v19 = vmul.f32 %v2481_v22, %v810_v17  ;;  %v1122_v20 = vmul.f32 %v2483_v24, %v983_v18  ;;  %v1251_v27 = vadd.f32 %v2495_v33, %v1117_v15 }
 0x171   : > { %v1253_v29 = vadd.f32 %v2497_v34, %v1119_v16  ;;  %v812_v31 = vpop.f32.mrf.mxu0  ;;  %v985_v32 = vpop.f32.mrf.mxu1 }
 0x172   : > { %v1121_v35 = vmul.f32 %v2485_v25, %v812_v31  ;;  %v1123_v36 = vmul.f32 %v2487_v26, %v985_v32  ;;  %v2068_v37 = vpack.c.bf16 %v1251_v27, %v1250_v21  ;;  %v1254_v41 = vadd.f32 %v2489_v28, %v1120_v19  ;;  %v1699_v21 = vld [vmem:[%s2511_s15 + $0x30] sm:$0xff] (%p2284_p6)  ;;  %v1703_v27 = vld [vmem:[%s2511_s15 + $0x40] sm:$0xff] (%p2284_p6)  ;;  %v1709_v32 = vld [vmem:[%s2511_s15 + $0x58] sm:$0xff] (%p2284_p6) }
 0x173   : > { %v2069_v38 = vpack.c.bf16 %v1253_v29, %v1252_v23  ;;  %v814_v39 = vpop.f32.mrf.mxu0  ;;  %v987_v40 = vpop.f32.mrf.mxu1  ;;  %v1256_v42 = vadd.f32 %v2491_v30, %v1122_v20  ;;  %v1701_v23 = vld [vmem:[%s2511_s15 + $0x38] sm:$0xff] (%p2284_p6)  ;;  %1700 = vst [vmem:[%s2790_s14 + $0x180] sm:$0xff] (%p2284_p6), %v1699_v21  ;;  %1704 = vst [vmem:[%s2790_s14 + $0x200] sm:$0xff] (%p2284_p6), %v1703_v27  ;;  %v1705_v29 = vld [vmem:[%s2511_s15 + $0x48] sm:$0xff] (%p2284_p6) }
 0x174   : > { %v1255_v43 = vadd.f32 %v2495_v33, %v1121_v35  ;;  %v1257_v44 = vadd.f32 %v2497_v34, %v1123_v36  ;;  %1652 = vst [vmem:[%s2511_s15 + $0x170] sm:$0xff] %v2068_v37  ;;  %v1124_v45 = vmul.f32 %v2481_v22, %v814_v39  ;;  %v1126_v46 = vmul.f32 %v2483_v24, %v987_v40  ;;  %v1707_v31 = vld [vmem:[%s2511_s15 + $0x50] sm:$0xff] (%p2284_p6)  ;;  %v1711_v35 = vld [vmem:[%s2511_s15 + $0x60] sm:$0xff] (%p2284_p6)  ;;  %v1713_v36 = vld [vmem:[%s2511_s15 + $0x68] sm:$0xff] (%p2284_p6) }
 0x175   : > { %1653 = vst [vmem:[%s2511_s15 + $0x178] sm:$0xff] %v2069_v38  ;;  %v816_v47 = vpop.f32.mrf.mxu0  ;;  %v989_v48 = vpop.f32.mrf.mxu1  ;;  %1702 = vst [vmem:[%s2790_s14 + $0x188] sm:$0xff] (%p2284_p6), %v1701_v23  ;;  %v1715_v37 = vld [vmem:[%s2511_s15 + $0x70] sm:$0xff] (%p2284_p6)  ;;  %v1717_v38 = vld [vmem:[%s2511_s15 + $0x78] sm:$0xff] (%p2284_p6) }
 0x176   : > { %v2070_v49 = vpack.c.bf16 %v1255_v43, %v1254_v41  ;;  %v2071_v50 = vpack.c.bf16 %v1257_v44, %v1256_v42  ;;  %v1125_v51 = vmul.f32 %v2485_v25, %v816_v47  ;;  %v1127_v52 = vmul.f32 %v2487_v26, %v989_v48  ;;  %1706 = vst [vmem:[%s2790_s14 + $0x208] sm:$0xff] (%p2284_p6), %v1705_v29  ;;  %v1719_v39 = vld [vmem:[%s2511_s15 + $0x80] sm:$0xff] (%p2284_p6)  ;;  %v1721_v40 = vld [vmem:[%s2511_s15 + $0x88] sm:$0xff] (%p2284_p6)  ;;  %v1723_v41 = vld [vmem:[%s2511_s15 + $0x90] sm:$0xff] (%p2284_p6) }
 0x177   : > { %v820_v53 = vpop.f32.mrf.mxu0  ;;  %v993_v54 = vpop.f32.mrf.mxu1  ;;  %v1258_v57 = vadd.f32 %v2489_v28, %v1124_v45  ;;  %v1260_v58 = vadd.f32 %v2491_v30, %v1126_v46  ;;  %1708 = vst [vmem:[%s2790_s14 + $0x280] sm:$0xff] (%p2284_p6), %v1707_v31  ;;  %1710 = vst [vmem:[%s2790_s14 + $0x288] sm:$0xff] (%p2284_p6), %v1709_v32  ;;  %v1725_v42 = vld [vmem:[%s2511_s15 + $0x98] sm:$0xff] (%p2284_p6)  ;;  %v1727_v43 = vld [vmem:[%s2511_s15 + $0xa0] sm:$0xff] (%p2284_p6) }
 0x178   : > { %1654 = vst [vmem:[%s2511_s15 + $0x180] sm:$0xff] %v2070_v49  ;;  %1655 = vst [vmem:[%s2511_s15 + $0x188] sm:$0xff] %v2071_v50  ;;  %v1128_v55 = vmul.f32 %v2481_v22, %v820_v53  ;;  %v1130_v56 = vmul.f32 %v2483_v24, %v993_v54  ;;  %v1259_v59 = vadd.f32 %v2495_v33, %v1125_v51  ;;  %v1729_v44 = vld [vmem:[%s2511_s15 + $0xa8] sm:$0xff] (%p2284_p6)  ;;  %v1731_v45 = vld [vmem:[%s2511_s15 + $0xb0] sm:$0xff] (%p2284_p6) }
 0x179   : > { %v1261_v60 = vadd.f32 %v2497_v34, %v1127_v52  ;;  %v822_v61 = vpop.f32.mrf.mxu0  ;;  %v995_v62 = vpop.f32.mrf.mxu1  ;;  %1712 = vst [vmem:[%s2790_s14 + $0x300] sm:$0xff] (%p2284_p6), %v1711_v35  ;;  %1714 = vst [vmem:[%s2790_s14 + $0x308] sm:$0xff] (%p2284_p6), %v1713_v36  ;;  %v1733_v46 = vld [vmem:[%s2511_s15 + $0xb8] sm:$0xff] (%p2284_p6)  ;;  %v1735_v47 = vld [vmem:[%s2511_s15 + $0xc0] sm:$0xff] (%p2284_p6) }
 0x17a   : > { %v1129_v63 = vmul.f32 %v2485_v25, %v822_v61  ;;  %v1131_v0 = vmul.f32 %v2487_v26, %v995_v62  ;;  %v2072_v1 = vpack.c.bf16 %v1259_v59, %v1258_v57  ;;  %v1262_v5 = vadd.f32 %v2489_v28, %v1128_v55  ;;  %1716 = vst [vmem:[%s2790_s14 + $0x380] sm:$0xff] (%p2284_p6), %v1715_v37  ;;  %v1737_v48 = vld [vmem:[%s2511_s15 + $0xc8] sm:$0xff] (%p2284_p6)  ;;  %v1739_v49 = vld [vmem:[%s2511_s15 + $0xd0] sm:$0xff] (%p2284_p6)  ;;  %v1741_v50 = vld [vmem:[%s2511_s15 + $0xd8] sm:$0xff] (%p2284_p6) }
 0x17b   : > { %v2073_v2 = vpack.c.bf16 %v1261_v60, %v1260_v58  ;;  %v824_v3 = vpop.f32.mrf.mxu0  ;;  %v997_v4 = vpop.f32.mrf.mxu1  ;;  %v1264_v6 = vadd.f32 %v2491_v30, %v1130_v56  ;;  %1718 = vst [vmem:[%s2790_s14 + $0x388] sm:$0xff] (%p2284_p6), %v1717_v38  ;;  %1720 = vst [vmem:[%s2790_s14 + $0x400] sm:$0xff] (%p2284_p6), %v1719_v39  ;;  %v1743_v51 = vld [vmem:[%s2511_s15 + $0xe0] sm:$0xff] (%p2284_p6)  ;;  %v1745_v52 = vld [vmem:[%s2511_s15 + $0xe8] sm:$0xff] (%p2284_p6) }
 0x17c   : > { %v1263_v7 = vadd.f32 %v2495_v33, %v1129_v63  ;;  %v1265_v8 = vadd.f32 %v2497_v34, %v1131_v0  ;;  %1656 = vst [vmem:[%s2511_s15 + $0x190] sm:$0xff] %v2072_v1  ;;  %v1132_v9 = vmul.f32 %v2481_v22, %v824_v3  ;;  %v1134_v10 = vmul.f32 %v2483_v24, %v997_v4  ;;  %v1747_v53 = vld [vmem:[%s2511_s15 + $0xf0] sm:$0xff] (%p2284_p6)  ;;  %v1749_v54 = vld [vmem:[%s2511_s15 + $0xf8] sm:$0xff] (%p2284_p6)  ;;  %v1751_v55 = vld [vmem:[%s2511_s15 + $0x100] sm:$0xff] (%p2284_p6) }
 0x17d   : > { %1657 = vst [vmem:[%s2511_s15 + $0x198] sm:$0xff] %v2073_v2  ;;  %v826_v11 = vpop.f32.mrf.mxu0  ;;  %v999_v12 = vpop.f32.mrf.mxu1  ;;  %1722 = vst [vmem:[%s2790_s14 + $0x408] sm:$0xff] (%p2284_p6), %v1721_v40  ;;  %v1753_v56 = vld [vmem:[%s2511_s15 + $0x108] sm:$0xff] (%p2284_p6)  ;;  %v1755_v57 = vld [vmem:[%s2511_s15 + $0x110] sm:$0xff] (%p2284_p6) }
 0x17e   : > { %v2074_v13 = vpack.c.bf16 %v1263_v7, %v1262_v5  ;;  %v2075_v14 = vpack.c.bf16 %v1265_v8, %v1264_v6  ;;  %v1133_v15 = vmul.f32 %v2485_v25, %v826_v11  ;;  %v1135_v16 = vmul.f32 %v2487_v26, %v999_v12  ;;  %v1687_v25 = vld [vmem:[%s2511_s15] sm:$0xff] (%p2284_p6)  ;;  %v1689_v26 = vld [vmem:[%s2511_s15 + $0x8] sm:$0xff] (%p2284_p6)  ;;  %1724 = vst [vmem:[%s2790_s14 + $0x480] sm:$0xff] (%p2284_p6), %v1723_v41  ;;  %v1757_v58 = vld [vmem:[%s2511_s15 + $0x118] sm:$0xff] (%p2284_p6) }
 0x17f   : > { %v1266_v17 = vadd.f32 %v2489_v28, %v1132_v9  ;;  %v1268_v18 = vadd.f32 %v2491_v30, %v1134_v10  ;;  %v1691_v28 = vld [vmem:[%s2511_s15 + $0x10] sm:$0xff] (%p2284_p6)  ;;  %v1693_v30 = vld [vmem:[%s2511_s15 + $0x18] sm:$0xff] (%p2284_p6)  ;;  %1688 = vst [vmem:[%s2790_s14] sm:$0xff] (%p2284_p6), %v1687_v25  ;;  %1690 = vst [vmem:[%s2790_s14 + $0x8] sm:$0xff] (%p2284_p6), %v1689_v26 }
 0x180   : > { %1658 = vst [vmem:[%s2511_s15 + $0x1a0] sm:$0xff] %v2074_v13  ;;  %1659 = vst [vmem:[%s2511_s15 + $0x1a8] sm:$0xff] %v2075_v14  ;;  %v1267_v22 = vadd.f32 %v2495_v33, %v1133_v15  ;;  %v1269_v19 = vadd.f32 %v2497_v34, %v1135_v16  ;;  %1668 = sbr.rel (!%p2284_p6) target bundleno = 407 (0x197), region = 63  ;;  %v1695_v33 = vld [vmem:[%s2511_s15 + $0x20] sm:$0xff] (%p2284_p6)  ;;  %v1697_v34 = vld [vmem:[%s2511_s15 + $0x28] sm:$0xff] (%p2284_p6) }
 0x181   : > { %1692 = vst [vmem:[%s2790_s14 + $0x80] sm:$0xff] (%p2284_p6), %v1691_v28  ;;  %1694 = vst [vmem:[%s2790_s14 + $0x88] sm:$0xff] (%p2284_p6), %v1693_v30  ;;  %v1759_v59 = vld [vmem:[%s2511_s15 + $0x120] sm:$0xff] (%p2284_p6)  ;;  %v1761_v60 = vld [vmem:[%s2511_s15 + $0x128] sm:$0xff] (%p2284_p6) }
 0x182   : > { %v2076_v24 = vpack.c.bf16 %v1267_v22, %v1266_v17  ;;  %v2077_v20 = vpack.c.bf16 %v1269_v19, %v1268_v18  ;;  %1696 = vst [vmem:[%s2790_s14 + $0x100] sm:$0xff] (%p2284_p6), %v1695_v33  ;;  %1698 = vst [vmem:[%s2790_s14 + $0x108] sm:$0xff] (%p2284_p6), %v1697_v34  ;;  %v1763_v61 = vld [vmem:[%s2511_s15 + $0x130] sm:$0xff] (%p2284_p6)  ;;  %v1765_v62 = vld [vmem:[%s2511_s15 + $0x138] sm:$0xff] (%p2284_p6) }
 0x183   : > { %1726 = vst [vmem:[%s2790_s14 + $0x488] sm:$0xff] (%p2284_p6), %v1725_v42  ;;  %1728 = vst [vmem:[%s2790_s14 + $0x500] sm:$0xff] (%p2284_p6), %v1727_v43  ;;  %v1767_v63 = vld [vmem:[%s2511_s15 + $0x140] sm:$0xff] (%p2284_p6)  ;;  %v1769_v0 = vld [vmem:[%s2511_s15 + $0x148] sm:$0xff] (%p2284_p6) }
 0x184   : > { %1660 = vst [vmem:[%s2511_s15 + $0x1b0] sm:$0xff] %v2076_v24  ;;  %1661 = vst [vmem:[%s2511_s15 + $0x1b8] sm:$0xff] %v2077_v20  ;;  %v1771_v1 = vld [vmem:[%s2511_s15 + $0x150] sm:$0xff] (%p2284_p6)  ;;  %v1773_v2 = vld [vmem:[%s2511_s15 + $0x158] sm:$0xff] (%p2284_p6) }
 0x185   : > { %1730 = vst [vmem:[%s2790_s14 + $0x508] sm:$0xff] %v1729_v44  ;;  %1732 = vst [vmem:[%s2790_s14 + $0x580] sm:$0xff] %v1731_v45  ;;  %v1775_v3 = vld [vmem:[%s2511_s15 + $0x160] sm:$0xff]  ;;  %v1777_v4 = vld [vmem:[%s2511_s15 + $0x168] sm:$0xff] }
 0x186   : > { %1734 = vst [vmem:[%s2790_s14 + $0x588] sm:$0xff] %v1733_v46  ;;  %1736 = vst [vmem:[%s2790_s14 + $0x600] sm:$0xff] %v1735_v47  ;;  %v1779_v5 = vld [vmem:[%s2511_s15 + $0x170] sm:$0xff]  ;;  %v1781_v6 = vld [vmem:[%s2511_s15 + $0x178] sm:$0xff] }
 0x187   : > { %1738 = vst [vmem:[%s2790_s14 + $0x608] sm:$0xff] %v1737_v48  ;;  %1740 = vst [vmem:[%s2790_s14 + $0x680] sm:$0xff] %v1739_v49  ;;  %v1783_v7 = vld [vmem:[%s2511_s15 + $0x180] sm:$0xff]  ;;  %v1785_v8 = vld [vmem:[%s2511_s15 + $0x188] sm:$0xff] }
 0x188   : > { %1742 = vst [vmem:[%s2790_s14 + $0x688] sm:$0xff] %v1741_v50  ;;  %1744 = vst [vmem:[%s2790_s14 + $0x700] sm:$0xff] %v1743_v51  ;;  %v1787_v9 = vld [vmem:[%s2511_s15 + $0x190] sm:$0xff]  ;;  %v1789_v10 = vld [vmem:[%s2511_s15 + $0x198] sm:$0xff] }
 0x189   : > { %1746 = vst [vmem:[%s2790_s14 + $0x708] sm:$0xff] %v1745_v52  ;;  %1748 = vst [vmem:[%s2790_s14 + $0x780] sm:$0xff] %v1747_v53  ;;  %v1791_v11 = vld [vmem:[%s2511_s15 + $0x1a0] sm:$0xff]  ;;  %v1793_v12 = vld [vmem:[%s2511_s15 + $0x1a8] sm:$0xff] }
 0x18a   : > { %1750 = vst [vmem:[%s2790_s14 + $0x788] sm:$0xff] %v1749_v54  ;;  %1752 = vst [vmem:[%s2790_s14 + $0x800] sm:$0xff] %v1751_v55 }
 0x18b   : > { %1754 = vst [vmem:[%s2790_s14 + $0x808] sm:$0xff] %v1753_v56  ;;  %1756 = vst [vmem:[%s2790_s14 + $0x880] sm:$0xff] %v1755_v57  ;;  %v1795_v13 = vld [vmem:[%s2511_s15 + $0x1b0] sm:$0xff]  ;;  %v1797_v14 = vld [vmem:[%s2511_s15 + $0x1b8] sm:$0xff] }
 0x18c   : > { %1758 = vst [vmem:[%s2790_s14 + $0x888] sm:$0xff] %v1757_v58  ;;  %1760 = vst [vmem:[%s2790_s14 + $0x900] sm:$0xff] %v1759_v59 }
 0x18d   : > { %1762 = vst [vmem:[%s2790_s14 + $0x908] sm:$0xff] %v1761_v60  ;;  %1764 = vst [vmem:[%s2790_s14 + $0x980] sm:$0xff] %v1763_v61 }
 0x18e   : > { %1766 = vst [vmem:[%s2790_s14 + $0x988] sm:$0xff] %v1765_v62  ;;  %1768 = vst [vmem:[%s2790_s14 + $0xa00] sm:$0xff] %v1767_v63 }
 0x18f   : > { %1770 = vst [vmem:[%s2790_s14 + $0xa08] sm:$0xff] %v1769_v0  ;;  %1772 = vst [vmem:[%s2790_s14 + $0xa80] sm:$0xff] %v1771_v1 }
 0x190   : > { %1774 = vst [vmem:[%s2790_s14 + $0xa88] sm:$0xff] %v1773_v2  ;;  %1776 = vst [vmem:[%s2790_s14 + $0xb00] sm:$0xff] %v1775_v3 }
 0x191   : > { %1778 = vst [vmem:[%s2790_s14 + $0xb08] sm:$0xff] %v1777_v4  ;;  %1780 = vst [vmem:[%s2790_s14 + $0xb80] sm:$0xff] %v1779_v5 }
 0x192   : > { %1782 = vst [vmem:[%s2790_s14 + $0xb88] sm:$0xff] %v1781_v6  ;;  %1784 = vst [vmem:[%s2790_s14 + $0xc00] sm:$0xff] %v1783_v7 }
 0x193   : > { %1786 = vst [vmem:[%s2790_s14 + $0xc08] sm:$0xff] %v1785_v8  ;;  %1788 = vst [vmem:[%s2790_s14 + $0xc80] sm:$0xff] %v1787_v9 }
 0x194   : > { %1790 = vst [vmem:[%s2790_s14 + $0xc88] sm:$0xff] %v1789_v10  ;;  %1792 = vst [vmem:[%s2790_s14 + $0xd00] sm:$0xff] %v1791_v11 }
 0x195   : > { %1794 = vst [vmem:[%s2790_s14 + $0xd08] sm:$0xff] %v1793_v12  ;;  %1796 = vst [vmem:[%s2790_s14 + $0xd80] sm:$0xff] %v1795_v13 }
 0x196   : > { %1798 = vst [vmem:[%s2790_s14 + $0xd88] sm:$0xff] %v1797_v14 }
 0x197 PF: > { %s14_s19 = sadd.s32 1, %s2221_s19   ;;  %s2922_s15 = smov %s2209_s16 }
 0x198   : > { %p11_p12 = scmp.ge.s32.totalorder %s14_s19, 10   ;;  %s2923_s16 = smov %s2289_s25 }
 0x199   : > { %s2924_s17 = smov %s2217_s18  ;;  %s2925_s18 = smov %s2927_s20 }
 0x19a   :  { %13 = sbr.rel (!%p11_p12) target bundleno = 3 (0x3), region = 126 }

// kernel: generator_forward.18
= control target key start
LH: loop header
LB: loop body
LE: loop exit
PB: predicated region body
PF: predicated region fallthrough
CT: control target
= control target key end

     0   :  { %s1449_s15 = smov 0   ;;  %s1451_s16 = smov 0   ;;  %s1812_s0 = inlined_call_operand.vmem [shape: bf16[7168,128], index: 0, kind: input, shape index: {}]   ;;  %s1813_s1 = inlined_call_operand.vmem [shape: bf16[128,224], index: 1, kind: input, shape index: {}]   ;;  %s1814_s2 = inlined_call_operand.vmem [shape: f32[1,224], index: 2, kind: input, shape index: {}]   ;;  %s1815_s3 = inlined_call_operand.vmem [shape: f32[1,224], index: 3, kind: input, shape index: {}]   ;;  %s1816_s4 = inlined_call_operand.vmem [shape: bf16[7168,224], index: 4, kind: output, shape index: {}]  }
   0x1   :  { %s1453_s17 = smov 0  }
   0x2 LB: > { %s26_s18 = sadd.s32 1, %s1417_s16  ;;  %p1213_p0 = scmp.ge.s32.totalorder %s1421_s17, 1  ;;  %s1421_s17 = sphi %s1453_s17, %s14_s17   ;;  %s1417_s16 = sphi %s1451_s16, %s1820_s16   ;;  %s1413_s15 = sphi %s1449_s15, %s1819_s15  }
   0x3   : > { %p28_p1 = scmp.ge.s32.totalorder %s26_s18, 28  ;;  %p208_p2 = scmp.lt.s32.totalorder %s1421_s17, 29 }
   0x5   : > { %s1822_s18 = smov (%p28_p1, %s26_s18), 0  ;;  %p209_p3 = pnand %p1213_p0, %p208_p2 }
   0x6   : > { %s1214_s21 = sshll.u32 (!%p209_p3), %s1413_s15, 5 }
   0x7   : > { %212 = sbr.rel (%p209_p3) target bundleno = 308 (0x134), region = 36  ;;  %p253_p4 = scmp.lt.s32.totalorder (!%p209_p3), %s1214_s21, 895 }
   0xc   : > { %v1359_v0 = vld [vmem:[%s1813_s1 + $0x74] ss:$8 sps:$4 sm:$0xff]   ;;  %v1361_v1 = vld [vmem:[%s1813_s1 + $0x70] ss:$8 sps:$4 sm:$0xff]   ;;  %v1423_v2 = vmov 0   ;;  %s1824_s21 = smov (!%p253_p4, %s1214_s21), 895  ;;  %v706_v33 = vlaneseq }
   0xd   : > { %543 = vmatprep.mubr.bf16.mxu0 %v1423_v2  ;;  %623 = vmatprep.mubr.bf16.mxu1 %v1423_v2  ;;  %v1362_v3 = vld [vmem:[%s1813_s1 + $0x64] ss:$8 sps:$4 sm:$0xff]   ;;  %v1364_v4 = vld [vmem:[%s1813_s1 + $0x60] ss:$8 sps:$4 sm:$0xff]   ;;  %v1365_v5 = vld [vmem:[%s1813_s1 + $0x54] ss:$8 sps:$4 sm:$0xff]  }
   0xe   : > { %511 = vmatprep.subr.bf16.mxu0 %v1359_v0  ;;  %1318 = vmatprep.subr.bf16.mxu1 %v1359_v0  ;;  %s1215_s30 = sshll.u32 %s1824_s21, 2  ;;  %v1367_v6 = vld [vmem:[%s1813_s1 + $0x50] ss:$8 sps:$4 sm:$0xff]   ;;  %v1368_v7 = vld [vmem:[%s1813_s1 + $0x44] ss:$8 sps:$4 sm:$0xff]   ;;  %v707_v34 = vshrl.u32 %v706_v33, 7 }
   0xf   : > { %512 = vmatpush1.bf16.msra.mxu0 %v1361_v1  ;;  %1326 = vmatpush1.bf16.msra.mxu1 %v1361_v1  ;;  %s1496_s11 = scalar_lea.vmem %s1812_s0, %s1215_s30  ;;  %v1370_v8 = vld [vmem:[%s1813_s1 + $0x40] ss:$8 sps:$4 sm:$0xff]   ;;  %v1371_v9 = vld [vmem:[%s1813_s1 + $0x34] ss:$8 sps:$4 sm:$0xff]   ;;  %v1373_v10 = vld [vmem:[%s1813_s1 + $0x30] ss:$8 sps:$4 sm:$0xff]  }
  0x10   : > { %513 = vmatprep.subr.bf16.mxu0 %v1362_v3  ;;  %1319 = vmatprep.subr.bf16.mxu1 %v1362_v3  ;;  %v1374_v11 = vld [vmem:[%s1813_s1 + $0x24] ss:$8 sps:$4 sm:$0xff]   ;;  %v1376_v12 = vld [vmem:[%s1813_s1 + $0x20] ss:$8 sps:$4 sm:$0xff]   ;;  %v1377_v13 = vld [vmem:[%s1813_s1 + $0x14] ss:$8 sps:$4 sm:$0xff]  }
  0x11   : > { %v1379_v14 = vld [vmem:[%s1813_s1 + $0x10] ss:$8 sps:$4 sm:$0xff]   ;;  %v1380_v15 = vld [vmem:[%s1813_s1 + $0x4] ss:$8 sps:$4 sm:$0xff]   ;;  %v1382_v16 = vld [vmem:[%s1813_s1] ss:$8 sps:$4 sm:$0xff]  }
  0x12   : > { %v1383_v17 = vld [vmem:[%s1496_s11] sm:$0xff]   ;;  %v1385_v19 = vld [vmem:[%s1496_s11 + $0x8] sm:$0xff]   ;;  %v1387_v21 = vld [vmem:[%s1496_s11 + $0x10] sm:$0xff]   ;;  %v708_v35 = vsub.s32 0, %v707_v34  ;;  %v712_v37 = vsub.s32 1, %v707_v34  ;;  %vm1048_vm0 = vcmask 1043456  }
  0x13   : > { %514 = vmatpush1.bf16.msra.mxu0 %v1364_v4  ;;  %1327 = vmatpush1.bf16.msra.mxu1 %v1364_v4  ;;  %v1384_v18 = vld [vmem:[%s1496_s11 + $0x40] sm:$0xff]   ;;  %v1386_v20 = vld [vmem:[%s1496_s11 + $0x48] sm:$0xff]   ;;  %v1388_v22 = vld [vmem:[%s1496_s11 + $0x50] sm:$0xff]   ;;  %vm1049_vm1 = vcmask 785412  }
  0x14   : > { %515 = vmatprep.subr.bf16.mxu0 %v1365_v5  ;;  %1320 = vmatprep.subr.bf16.mxu1 %v1365_v5  ;;  %v1389_v23 = vld [vmem:[%s1496_s11 + $0x18] sm:$0xff]   ;;  %v1391_v25 = vld [vmem:[%s1496_s11 + $0x20] sm:$0xff]   ;;  %v1393_v27 = vld [vmem:[%s1496_s11 + $0x28] sm:$0xff]  }
  0x15   : > { %v1390_v24 = vld [vmem:[%s1496_s11 + $0x58] sm:$0xff]   ;;  %v1392_v26 = vld [vmem:[%s1496_s11 + $0x60] sm:$0xff]   ;;  %v1394_v28 = vld [vmem:[%s1496_s11 + $0x68] sm:$0xff]  }
  0x16   : > { %v1395_v29 = vld [vmem:[%s1496_s11 + $0x30] sm:$0xff]   ;;  %v1397_v31 = vld [vmem:[%s1496_s11 + $0x38] sm:$0xff]   ;;  %v704_v36 = vld [vmem:[%s1814_s2] sm:$0x3] }
  0x17   : > { %516 = vmatpush1.bf16.msra.mxu0 %v1367_v6  ;;  %1328 = vmatpush1.bf16.msra.mxu1 %v1367_v6  ;;  %v1396_v30 = vld [vmem:[%s1496_s11 + $0x70] sm:$0xff]   ;;  %v1398_v32 = vld [vmem:[%s1496_s11 + $0x78] sm:$0xff]   ;;  %v1558_v38 = vrot.slane %v704_v36, %v708_v35  ;;  %v780_v39 = vld [vmem:[%s1815_s3] sm:$0x3]  ;;  %v1563_v40 = vrot.slane %v704_v36, %v712_v37  ;;  %s1285_s11 = sshll.u32 %s1824_s21, 3 }
  0x18   : > { %517 = vmatprep.subr.bf16.mxu0 %v1368_v7  ;;  %1321 = vmatprep.subr.bf16.mxu1 %v1368_v7  ;;  %v1566_v44 = vrot.slane %v780_v39, %v708_v35  ;;  %v1569_v46 = vrot.slane %v780_v39, %v712_v37  ;;  %s1581_s21 = scalar_lea.vmem %s1816_s4, %s1285_s11  ;;  %vm1583_vm2 = vmor %vm1049_vm1, %vm1048_vm0 }
  0x1b   : > { %518 = vmatpush1.bf16.msra.mxu0 %v1370_v8  ;;  %1329 = vmatpush1.bf16.msra.mxu1 %v1370_v8 }
  0x1c   : > { %519 = vmatprep.subr.bf16.mxu0 %v1371_v9  ;;  %1322 = vmatprep.subr.bf16.mxu1 %v1371_v9 }
  0x1f   : > { %520 = vmatpush1.bf16.msra.mxu0 %v1373_v10  ;;  %1330 = vmatpush1.bf16.msra.mxu1 %v1373_v10 }
  0x20   : > { %521 = vmatprep.subr.bf16.mxu0 %v1374_v11  ;;  %1323 = vmatprep.subr.bf16.mxu1 %v1374_v11 }
  0x23   : > { %522 = vmatpush1.bf16.msra.mxu0 %v1376_v12  ;;  %1331 = vmatpush1.bf16.msra.mxu1 %v1376_v12 }
  0x24   : > { %523 = vmatprep.subr.bf16.mxu0 %v1377_v13  ;;  %1324 = vmatprep.subr.bf16.mxu1 %v1377_v13 }
  0x27   : > { %524 = vmatpush1.bf16.msra.mxu0 %v1379_v14  ;;  %1332 = vmatpush1.bf16.msra.mxu1 %v1379_v14 }
  0x28   : > { %525 = vmatprep.subr.bf16.mxu0 %v1380_v15  ;;  %1325 = vmatprep.subr.bf16.mxu1 %v1380_v15 }
  0x2b   : > { %526 = vmatpush1.bf16.msra.mxu0 %v1382_v16  ;;  %1333 = vmatpush1.bf16.msra.mxu1 %v1382_v16 }
  0x2e   : > { %544 = vmatmul.mubr.bf16.vlgmr.msra.gmra.mxu0 %v1383_v17  ;;  %624 = vmatmul.mubr.bf16.vlgmr.msra.gmra.mxu1 %v1384_v18 }
  0x2f   : > { %553 = vmatprep.mubr.bf16.mxu0 %v1423_v2  ;;  %633 = vmatprep.mubr.bf16.mxu1 %v1423_v2 }
  0x36   : > { %554 = vmatmul.mubr.bf16.gmra.mxu0 %v1385_v19  ;;  %634 = vmatmul.mubr.bf16.gmra.mxu1 %v1386_v20 }
  0x37   : > { %563 = vmatprep.mubr.bf16.mxu0 %v1423_v2  ;;  %643 = vmatprep.mubr.bf16.mxu1 %v1423_v2 }
  0x3e   : > { %564 = vmatmul.mubr.bf16.gmra.mxu0 %v1387_v21  ;;  %644 = vmatmul.mubr.bf16.gmra.mxu1 %v1388_v22 }
  0x3f   : > { %573 = vmatprep.mubr.bf16.mxu0 %v1423_v2  ;;  %653 = vmatprep.mubr.bf16.mxu1 %v1423_v2 }
  0x46   : > { %574 = vmatmul.mubr.bf16.gmra.mxu0 %v1389_v23  ;;  %654 = vmatmul.mubr.bf16.gmra.mxu1 %v1390_v24 }
  0x47   : > { %583 = vmatprep.mubr.bf16.mxu0 %v1423_v2  ;;  %663 = vmatprep.mubr.bf16.mxu1 %v1423_v2 }
  0x4e   : > { %584 = vmatmul.mubr.bf16.gmra.mxu0 %v1391_v25  ;;  %664 = vmatmul.mubr.bf16.gmra.mxu1 %v1392_v26 }
  0x4f   : > { %593 = vmatprep.mubr.bf16.mxu0 %v1423_v2  ;;  %673 = vmatprep.mubr.bf16.mxu1 %v1423_v2 }
  0x56   : > { %594 = vmatmul.mubr.bf16.gmra.mxu0 %v1393_v27  ;;  %674 = vmatmul.mubr.bf16.gmra.mxu1 %v1394_v28 }
  0x57   : > { %603 = vmatprep.mubr.bf16.mxu0 %v1423_v2  ;;  %683 = vmatprep.mubr.bf16.mxu1 %v1423_v2 }
  0x5e   : > { %604 = vmatmul.mubr.bf16.gmra.mxu0 %v1395_v29  ;;  %684 = vmatmul.mubr.bf16.gmra.mxu1 %v1396_v30 }
  0x5f   : > { %613 = vmatprep.mubr.bf16.mxu0 %v1423_v2  ;;  %693 = vmatprep.mubr.bf16.mxu1 %v1423_v2 }
  0x66   : > { %614 = vmatmul.mubr.bf16.gmra.mxu0 %v1397_v31  ;;  %694 = vmatmul.mubr.bf16.gmra.mxu1 %v1398_v32 }
  0xee   : > { %v545_v41 = vpop.f32.mrf.mxu0  ;;  %v625_v42 = vpop.f32.mrf.mxu1 }
  0xef   : > { %v716_v43 = vmul.f32 %v1558_v38, %v545_v41  ;;  %v748_v45 = vmul.f32 %v1558_v38, %v625_v42 }
  0xf0   : > { %v547_v47 = vpop.f32.mrf.mxu0  ;;  %v627_v48 = vpop.f32.mrf.mxu1 }
  0xf1   : > { %v717_v49 = vmul.f32 %v1563_v40, %v547_v47  ;;  %v749_v50 = vmul.f32 %v1563_v40, %v627_v48  ;;  %v792_v53 = vadd.f32 %v1566_v44, %v716_v43  ;;  %v824_v54 = vadd.f32 %v1566_v44, %v748_v45 }
  0xf2   : > { %v549_v51 = vpop.f32.mrf.mxu0  ;;  %v629_v52 = vpop.f32.mrf.mxu1 }
  0xf3   : > { %v793_v55 = vadd.f32 %v1569_v46, %v717_v49  ;;  %v825_v56 = vadd.f32 %v1569_v46, %v749_v50  ;;  %v718_v58 = vmul.f32 %v1558_v38, %v549_v51  ;;  %v750_v59 = vmul.f32 %v1558_v38, %v629_v52 }
  0xf4   : > { %v551_v60 = vpop.f32.mrf.mxu0  ;;  %v631_v61 = vpop.f32.mrf.mxu1 }
  0xf5   : > { %v1286_v62 = vpack.c.bf16 %v793_v55, %v792_v53  ;;  %v1302_v63 = vpack.c.bf16 %v825_v56, %v824_v54  ;;  %v719_v0 = vmul.f32 %v1563_v40, %v551_v60  ;;  %v751_v1 = vmul.f32 %v1563_v40, %v631_v61 }
  0xf6   : > { %v555_v2 = vpop.f32.mrf.mxu0  ;;  %v635_v3 = vpop.f32.mrf.mxu1  ;;  %v794_v6 = vadd.f32 %v1566_v44, %v718_v58  ;;  %v826_v7 = vadd.f32 %v1566_v44, %v750_v59 }
  0xf7   : > { %1051 = vst.msk [vmem:[%s1581_s21] sm:$0xff] %vm1583_vm2, %v1286_v62  ;;  %1067 = vst.msk [vmem:[%s1581_s21 + $0x80] sm:$0xff] %vm1583_vm2, %v1302_v63  ;;  %v720_v4 = vmul.f32 %v1558_v38, %v555_v2  ;;  %v752_v5 = vmul.f32 %v1558_v38, %v635_v3  ;;  %v795_v8 = vadd.f32 %v1569_v46, %v719_v0 }
  0xf8   : > { %v827_v9 = vadd.f32 %v1569_v46, %v751_v1  ;;  %v557_v10 = vpop.f32.mrf.mxu0  ;;  %v637_v11 = vpop.f32.mrf.mxu1 }
  0xf9   : > { %v721_v12 = vmul.f32 %v1563_v40, %v557_v10  ;;  %v753_v13 = vmul.f32 %v1563_v40, %v637_v11  ;;  %v1287_v14 = vpack.c.bf16 %v795_v8, %v794_v6  ;;  %v796_v18 = vadd.f32 %v1566_v44, %v720_v4 }
  0xfa   : > { %v1303_v15 = vpack.c.bf16 %v827_v9, %v826_v7  ;;  %v559_v16 = vpop.f32.mrf.mxu0  ;;  %v639_v17 = vpop.f32.mrf.mxu1  ;;  %v828_v19 = vadd.f32 %v1566_v44, %v752_v5 }
  0xfb   : > { %v797_v20 = vadd.f32 %v1569_v46, %v721_v12  ;;  %v829_v21 = vadd.f32 %v1569_v46, %v753_v13  ;;  %1052 = vst.msk [vmem:[%s1581_s21 + $0x8] sm:$0xff] %vm1583_vm2, %v1287_v14  ;;  %v722_v22 = vmul.f32 %v1558_v38, %v559_v16  ;;  %v754_v23 = vmul.f32 %v1558_v38, %v639_v17 }
  0xfc   : > { %1068 = vst.msk [vmem:[%s1581_s21 + $0x88] sm:$0xff] %vm1583_vm2, %v1303_v15  ;;  %v561_v24 = vpop.f32.mrf.mxu0  ;;  %v641_v25 = vpop.f32.mrf.mxu1 }
  0xfd   : > { %v1288_v26 = vpack.c.bf16 %v797_v20, %v796_v18  ;;  %v1304_v27 = vpack.c.bf16 %v829_v21, %v828_v19  ;;  %v723_v28 = vmul.f32 %v1563_v40, %v561_v24  ;;  %v755_v29 = vmul.f32 %v1563_v40, %v641_v25 }
  0xfe   : > { %v565_v30 = vpop.f32.mrf.mxu0  ;;  %v645_v31 = vpop.f32.mrf.mxu1  ;;  %v798_v34 = vadd.f32 %v1566_v44, %v722_v22  ;;  %v830_v35 = vadd.f32 %v1566_v44, %v754_v23 }
  0xff   : > { %1053 = vst.msk [vmem:[%s1581_s21 + $0x10] sm:$0xff] %vm1583_vm2, %v1288_v26  ;;  %1069 = vst.msk [vmem:[%s1581_s21 + $0x90] sm:$0xff] %vm1583_vm2, %v1304_v27  ;;  %v724_v32 = vmul.f32 %v1558_v38, %v565_v30  ;;  %v756_v33 = vmul.f32 %v1558_v38, %v645_v31  ;;  %v799_v36 = vadd.f32 %v1569_v46, %v723_v28 }
 0x100   : > { %v831_v37 = vadd.f32 %v1569_v46, %v755_v29  ;;  %v567_v39 = vpop.f32.mrf.mxu0  ;;  %v647_v41 = vpop.f32.mrf.mxu1 }
 0x101   : > { %v725_v42 = vmul.f32 %v1563_v40, %v567_v39  ;;  %v757_v43 = vmul.f32 %v1563_v40, %v647_v41  ;;  %v1289_v45 = vpack.c.bf16 %v799_v36, %v798_v34  ;;  %v800_v50 = vadd.f32 %v1566_v44, %v724_v32 }
 0x102   : > { %v1305_v47 = vpack.c.bf16 %v831_v37, %v830_v35  ;;  %v569_v48 = vpop.f32.mrf.mxu0  ;;  %v649_v49 = vpop.f32.mrf.mxu1  ;;  %v832_v51 = vadd.f32 %v1566_v44, %v756_v33 }
 0x103   : > { %v801_v52 = vadd.f32 %v1569_v46, %v725_v42  ;;  %v833_v53 = vadd.f32 %v1569_v46, %v757_v43  ;;  %1054 = vst.msk [vmem:[%s1581_s21 + $0x18] sm:$0xff] %vm1583_vm2, %v1289_v45  ;;  %v726_v54 = vmul.f32 %v1558_v38, %v569_v48  ;;  %v758_v55 = vmul.f32 %v1558_v38, %v649_v49 }
 0x104   : > { %1070 = vst.msk [vmem:[%s1581_s21 + $0x98] sm:$0xff] %vm1583_vm2, %v1305_v47  ;;  %v571_v56 = vpop.f32.mrf.mxu0  ;;  %v651_v58 = vpop.f32.mrf.mxu1 }
 0x105   : > { %v1290_v59 = vpack.c.bf16 %v801_v52, %v800_v50  ;;  %v1306_v60 = vpack.c.bf16 %v833_v53, %v832_v51  ;;  %v727_v61 = vmul.f32 %v1563_v40, %v571_v56  ;;  %v759_v62 = vmul.f32 %v1563_v40, %v651_v58 }
 0x106   : > { %v575_v63 = vpop.f32.mrf.mxu0  ;;  %v655_v0 = vpop.f32.mrf.mxu1  ;;  %v802_v3 = vadd.f32 %v1566_v44, %v726_v54  ;;  %v834_v4 = vadd.f32 %v1566_v44, %v758_v55 }
 0x107   : > { %1055 = vst.msk [vmem:[%s1581_s21 + $0x20] sm:$0xff] %vm1583_vm2, %v1290_v59  ;;  %1071 = vst.msk [vmem:[%s1581_s21 + $0xa0] sm:$0xff] %vm1583_vm2, %v1306_v60  ;;  %v728_v1 = vmul.f32 %v1558_v38, %v575_v63  ;;  %v760_v2 = vmul.f32 %v1558_v38, %v655_v0  ;;  %v803_v5 = vadd.f32 %v1569_v46, %v727_v61 }
 0x108   : > { %v835_v6 = vadd.f32 %v1569_v46, %v759_v62  ;;  %v577_v7 = vpop.f32.mrf.mxu0  ;;  %v657_v8 = vpop.f32.mrf.mxu1 }
 0x109   : > { %v729_v9 = vmul.f32 %v1563_v40, %v577_v7  ;;  %v761_v10 = vmul.f32 %v1563_v40, %v657_v8  ;;  %v1291_v11 = vpack.c.bf16 %v803_v5, %v802_v3  ;;  %v804_v15 = vadd.f32 %v1566_v44, %v728_v1 }
 0x10a   : > { %v1307_v12 = vpack.c.bf16 %v835_v6, %v834_v4  ;;  %v579_v13 = vpop.f32.mrf.mxu0  ;;  %v659_v14 = vpop.f32.mrf.mxu1  ;;  %v836_v16 = vadd.f32 %v1566_v44, %v760_v2 }
 0x10b   : > { %v805_v17 = vadd.f32 %v1569_v46, %v729_v9  ;;  %v837_v18 = vadd.f32 %v1569_v46, %v761_v10  ;;  %1056 = vst.msk [vmem:[%s1581_s21 + $0x28] sm:$0xff] %vm1583_vm2, %v1291_v11  ;;  %v730_v19 = vmul.f32 %v1558_v38, %v579_v13  ;;  %v762_v20 = vmul.f32 %v1558_v38, %v659_v14 }
 0x10c   : > { %1072 = vst.msk [vmem:[%s1581_s21 + $0xa8] sm:$0xff] %vm1583_vm2, %v1307_v12  ;;  %v581_v21 = vpop.f32.mrf.mxu0  ;;  %v661_v22 = vpop.f32.mrf.mxu1 }
 0x10d   : > { %v1292_v23 = vpack.c.bf16 %v805_v17, %v804_v15  ;;  %v1308_v24 = vpack.c.bf16 %v837_v18, %v836_v16  ;;  %v731_v25 = vmul.f32 %v1563_v40, %v581_v21  ;;  %v763_v26 = vmul.f32 %v1563_v40, %v661_v22 }
 0x10e   : > { %v585_v27 = vpop.f32.mrf.mxu0  ;;  %v665_v28 = vpop.f32.mrf.mxu1  ;;  %v806_v31 = vadd.f32 %v1566_v44, %v730_v19  ;;  %v838_v32 = vadd.f32 %v1566_v44, %v762_v20 }
 0x10f   : > { %1057 = vst.msk [vmem:[%s1581_s21 + $0x30] sm:$0xff] %vm1583_vm2, %v1292_v23  ;;  %1073 = vst.msk [vmem:[%s1581_s21 + $0xb0] sm:$0xff] %vm1583_vm2, %v1308_v24  ;;  %v732_v29 = vmul.f32 %v1558_v38, %v585_v27  ;;  %v764_v30 = vmul.f32 %v1558_v38, %v665_v28  ;;  %v807_v33 = vadd.f32 %v1569_v46, %v731_v25 }
 0x110   : > { %v839_v34 = vadd.f32 %v1569_v46, %v763_v26  ;;  %v587_v35 = vpop.f32.mrf.mxu0  ;;  %v667_v36 = vpop.f32.mrf.mxu1 }
 0x111   : > { %v733_v37 = vmul.f32 %v1563_v40, %v587_v35  ;;  %v765_v39 = vmul.f32 %v1563_v40, %v667_v36  ;;  %v1293_v41 = vpack.c.bf16 %v807_v33, %v806_v31  ;;  %v808_v47 = vadd.f32 %v1566_v44, %v732_v29 }
 0x112   : > { %v1309_v42 = vpack.c.bf16 %v839_v34, %v838_v32  ;;  %v589_v43 = vpop.f32.mrf.mxu0  ;;  %v669_v45 = vpop.f32.mrf.mxu1  ;;  %v840_v48 = vadd.f32 %v1566_v44, %v764_v30 }
 0x113   : > { %v809_v49 = vadd.f32 %v1569_v46, %v733_v37  ;;  %v841_v50 = vadd.f32 %v1569_v46, %v765_v39  ;;  %1058 = vst.msk [vmem:[%s1581_s21 + $0x38] sm:$0xff] %vm1583_vm2, %v1293_v41  ;;  %v734_v51 = vmul.f32 %v1558_v38, %v589_v43  ;;  %v766_v52 = vmul.f32 %v1558_v38, %v669_v45 }
 0x114   : > { %1074 = vst.msk [vmem:[%s1581_s21 + $0xb8] sm:$0xff] %vm1583_vm2, %v1309_v42  ;;  %v591_v53 = vpop.f32.mrf.mxu0  ;;  %v671_v54 = vpop.f32.mrf.mxu1 }
 0x115   : > { %v1294_v55 = vpack.c.bf16 %v809_v49, %v808_v47  ;;  %v1310_v56 = vpack.c.bf16 %v841_v50, %v840_v48  ;;  %v735_v58 = vmul.f32 %v1563_v40, %v591_v53  ;;  %v767_v59 = vmul.f32 %v1563_v40, %v671_v54 }
 0x116   : > { %v595_v60 = vpop.f32.mrf.mxu0  ;;  %v675_v61 = vpop.f32.mrf.mxu1  ;;  %v810_v0 = vadd.f32 %v1566_v44, %v734_v51  ;;  %v842_v1 = vadd.f32 %v1566_v44, %v766_v52 }
 0x117   : > { %1059 = vst.msk [vmem:[%s1581_s21 + $0x40] sm:$0xff] %vm1583_vm2, %v1294_v55  ;;  %1075 = vst.msk [vmem:[%s1581_s21 + $0xc0] sm:$0xff] %vm1583_vm2, %v1310_v56  ;;  %v736_v62 = vmul.f32 %v1558_v38, %v595_v60  ;;  %v768_v63 = vmul.f32 %v1558_v38, %v675_v61  ;;  %v811_v2 = vadd.f32 %v1569_v46, %v735_v58 }
 0x118   : > { %v843_v3 = vadd.f32 %v1569_v46, %v767_v59  ;;  %v597_v4 = vpop.f32.mrf.mxu0  ;;  %v677_v5 = vpop.f32.mrf.mxu1 }
 0x119   : > { %v737_v6 = vmul.f32 %v1563_v40, %v597_v4  ;;  %v769_v7 = vmul.f32 %v1563_v40, %v677_v5  ;;  %v1295_v8 = vpack.c.bf16 %v811_v2, %v810_v0  ;;  %v812_v12 = vadd.f32 %v1566_v44, %v736_v62 }
 0x11a   : > { %v1311_v9 = vpack.c.bf16 %v843_v3, %v842_v1  ;;  %v599_v10 = vpop.f32.mrf.mxu0  ;;  %v679_v11 = vpop.f32.mrf.mxu1  ;;  %v844_v13 = vadd.f32 %v1566_v44, %v768_v63 }
 0x11b   : > { %v813_v14 = vadd.f32 %v1569_v46, %v737_v6  ;;  %v845_v15 = vadd.f32 %v1569_v46, %v769_v7  ;;  %1060 = vst.msk [vmem:[%s1581_s21 + $0x48] sm:$0xff] %vm1583_vm2, %v1295_v8  ;;  %v738_v16 = vmul.f32 %v1558_v38, %v599_v10  ;;  %v770_v17 = vmul.f32 %v1558_v38, %v679_v11 }
 0x11c   : > { %1076 = vst.msk [vmem:[%s1581_s21 + $0xc8] sm:$0xff] %vm1583_vm2, %v1311_v9  ;;  %v601_v18 = vpop.f32.mrf.mxu0  ;;  %v681_v19 = vpop.f32.mrf.mxu1 }
 0x11d   : > { %v1296_v20 = vpack.c.bf16 %v813_v14, %v812_v12  ;;  %v1312_v21 = vpack.c.bf16 %v845_v15, %v844_v13  ;;  %v739_v22 = vmul.f32 %v1563_v40, %v601_v18  ;;  %v771_v23 = vmul.f32 %v1563_v40, %v681_v19 }
 0x11e   : > { %v605_v24 = vpop.f32.mrf.mxu0  ;;  %v685_v25 = vpop.f32.mrf.mxu1  ;;  %v814_v28 = vadd.f32 %v1566_v44, %v738_v16  ;;  %v846_v29 = vadd.f32 %v1566_v44, %v770_v17 }
 0x11f   : > { %1061 = vst.msk [vmem:[%s1581_s21 + $0x50] sm:$0xff] %vm1583_vm2, %v1296_v20  ;;  %1077 = vst.msk [vmem:[%s1581_s21 + $0xd0] sm:$0xff] %vm1583_vm2, %v1312_v21  ;;  %v740_v26 = vmul.f32 %v1558_v38, %v605_v24  ;;  %v772_v27 = vmul.f32 %v1558_v38, %v685_v25  ;;  %v815_v30 = vadd.f32 %v1569_v46, %v739_v22 }
 0x120   : > { %v847_v31 = vadd.f32 %v1569_v46, %v771_v23  ;;  %v607_v32 = vpop.f32.mrf.mxu0  ;;  %v687_v33 = vpop.f32.mrf.mxu1 }
 0x121   : > { %v741_v34 = vmul.f32 %v1563_v40, %v607_v32  ;;  %v773_v35 = vmul.f32 %v1563_v40, %v687_v33  ;;  %v1297_v36 = vpack.c.bf16 %v815_v30, %v814_v28  ;;  %v816_v42 = vadd.f32 %v1566_v44, %v740_v26 }
 0x122   : > { %v1313_v37 = vpack.c.bf16 %v847_v31, %v846_v29  ;;  %v609_v39 = vpop.f32.mrf.mxu0  ;;  %v689_v41 = vpop.f32.mrf.mxu1  ;;  %v848_v43 = vadd.f32 %v1566_v44, %v772_v27 }
 0x123   : > { %v817_v45 = vadd.f32 %v1569_v46, %v741_v34  ;;  %v849_v47 = vadd.f32 %v1569_v46, %v773_v35  ;;  %1062 = vst.msk [vmem:[%s1581_s21 + $0x58] sm:$0xff] %vm1583_vm2, %v1297_v36  ;;  %v742_v48 = vmul.f32 %v1558_v38, %v609_v39  ;;  %v774_v49 = vmul.f32 %v1558_v38, %v689_v41 }
 0x124   : > { %1078 = vst.msk [vmem:[%s1581_s21 + $0xd8] sm:$0xff] %vm1583_vm2, %v1313_v37  ;;  %v611_v50 = vpop.f32.mrf.mxu0  ;;  %v691_v51 = vpop.f32.mrf.mxu1 }
 0x125   : > { %v1298_v52 = vpack.c.bf16 %v817_v45, %v816_v42  ;;  %v1314_v53 = vpack.c.bf16 %v849_v47, %v848_v43  ;;  %v743_v54 = vmul.f32 %v1563_v40, %v611_v50  ;;  %v775_v55 = vmul.f32 %v1563_v40, %v691_v51 }
 0x126   : > { %v615_v56 = vpop.f32.mrf.mxu0  ;;  %v695_v58 = vpop.f32.mrf.mxu1  ;;  %v818_v61 = vadd.f32 %v1566_v44, %v742_v48  ;;  %v850_v62 = vadd.f32 %v1566_v44, %v774_v49 }
 0x127   : > { %1063 = vst.msk [vmem:[%s1581_s21 + $0x60] sm:$0xff] %vm1583_vm2, %v1298_v52  ;;  %1079 = vst.msk [vmem:[%s1581_s21 + $0xe0] sm:$0xff] %vm1583_vm2, %v1314_v53  ;;  %v744_v59 = vmul.f32 %v1558_v38, %v615_v56  ;;  %v776_v60 = vmul.f32 %v1558_v38, %v695_v58  ;;  %v819_v63 = vadd.f32 %v1569_v46, %v743_v54 }
 0x128   : > { %v851_v0 = vadd.f32 %v1569_v46, %v775_v55  ;;  %v617_v1 = vpop.f32.mrf.mxu0  ;;  %v697_v2 = vpop.f32.mrf.mxu1 }
 0x129   : > { %v745_v3 = vmul.f32 %v1563_v40, %v617_v1  ;;  %v777_v4 = vmul.f32 %v1563_v40, %v697_v2  ;;  %v1299_v5 = vpack.c.bf16 %v819_v63, %v818_v61  ;;  %v820_v9 = vadd.f32 %v1566_v44, %v744_v59 }
 0x12a   : > { %v1315_v6 = vpack.c.bf16 %v851_v0, %v850_v62  ;;  %v619_v7 = vpop.f32.mrf.mxu0  ;;  %v699_v8 = vpop.f32.mrf.mxu1  ;;  %v852_v10 = vadd.f32 %v1566_v44, %v776_v60 }
 0x12b   : > { %v821_v11 = vadd.f32 %v1569_v46, %v745_v3  ;;  %v853_v12 = vadd.f32 %v1569_v46, %v777_v4  ;;  %1064 = vst.msk [vmem:[%s1581_s21 + $0x68] sm:$0xff] %vm1583_vm2, %v1299_v5  ;;  %v746_v13 = vmul.f32 %v1558_v38, %v619_v7  ;;  %v778_v14 = vmul.f32 %v1558_v38, %v699_v8 }
 0x12c   : > { %1080 = vst.msk [vmem:[%s1581_s21 + $0xe8] sm:$0xff] %vm1583_vm2, %v1315_v6  ;;  %v621_v15 = vpop.f32.mrf.mxu0  ;;  %v701_v16 = vpop.f32.mrf.mxu1 }
 0x12d   : > { %v1300_v17 = vpack.c.bf16 %v821_v11, %v820_v9  ;;  %v1316_v18 = vpack.c.bf16 %v853_v12, %v852_v10  ;;  %v747_v19 = vmul.f32 %v1563_v40, %v621_v15  ;;  %v779_v20 = vmul.f32 %v1563_v40, %v701_v16 }
 0x12e   : > { %v822_v21 = vadd.f32 %v1566_v44, %v746_v13  ;;  %v854_v22 = vadd.f32 %v1566_v44, %v778_v14 }
 0x12f   : > { %1065 = vst.msk [vmem:[%s1581_s21 + $0x70] sm:$0xff] %vm1583_vm2, %v1300_v17  ;;  %1081 = vst.msk [vmem:[%s1581_s21 + $0xf0] sm:$0xff] %vm1583_vm2, %v1316_v18  ;;  %v823_v38 = vadd.f32 %v1569_v46, %v747_v19  ;;  %v855_v23 = vadd.f32 %v1569_v46, %v779_v20 }
 0x131   : > { %v1301_v24 = vpack.c.bf16 %v823_v38, %v822_v21  ;;  %v1317_v25 = vpack.c.bf16 %v855_v23, %v854_v22 }
 0x133   : > { %1066 = vst.msk [vmem:[%s1581_s21 + $0x78] sm:$0xff] %vm1583_vm2, %v1301_v24  ;;  %1082 = vst.msk [vmem:[%s1581_s21 + $0xf8] sm:$0xff] %vm1583_vm2, %v1317_v25 }
 0x134 PF: > { %s14_s17 = sadd.s32 1, %s1421_s17   ;;  %s1819_s15 = smov %s1417_s16 }
 0x135   : > { %p11_p5 = scmp.ge.s32.totalorder %s14_s17, 30   ;;  %s1820_s16 = smov %s1822_s18 }
 0x137   :  { %13 = sbr.rel (!%p11_p5) target bundleno = 2 (0x2), region = 75 }

// kernel: generator_forward.19
= control target key start
LH: loop header
LB: loop body
LE: loop exit
PB: predicated region body
PF: predicated region fallthrough
CT: control target
= control target key end

     0   :  { %s2381_s18 = smov 0   ;;  %s2383_s19 = smov 0   ;;  %s3005_s0 = inlined_call_operand.vmem [shape: bf16[8,144], index: 0, kind: input, shape index: {}]   ;;  %s3006_s1 = inlined_call_operand.vmem [shape: bf16[144,100352], index: 1, kind: input, shape index: {}]   ;;  %s3007_s2 = inlined_call_operand.vmem [shape: f32[3,1], index: 2, kind: input, shape index: {}]   ;;  %s3008_s3 = inlined_call_operand.vmem [shape: f32[1,100352], index: 3, kind: input, shape index: {}]   ;;  %s3009_s4 = inlined_call_operand.vmem [shape: f32[3,100352], index: 4, kind: input, shape index: {}]   ;;  %s3010_s5 = inlined_call_operand.vmem [shape: f32[3,100352], index: 5, kind: output, shape index: {}]  }
   0x1   :  { %s2385_s20 = smov 0  }
   0x2 LB: > { %s2087_s21 = sadd.s32 4294967295, %s2348_s20   ;;  %s2398_s22 = sadd.s32 1, %s2348_s20   ;;  %s2348_s20 = sphi %s2385_s20, %s3013_s20   ;;  %s2344_s19 = sphi %s2383_s19, %s3012_s19   ;;  %s2340_s18 = sphi %s2381_s18, %s3011_s18  }
   0x3   : > { %s40_s23 = ssub.s32 %s2348_s20, %s2398_s22  ;;  %s43_s24 = sadd.s32 1, %s2344_s19 }
   0x4   : > { %p41_p0 = scmp.eq.s32.totalorder %s40_s23, 0  ;;  %p50_p1 = scmp.ne.s32.totalorder %s2344_s19, %s2340_s18 }
   0x5   : > { %p51_p2 = scmp.eq.s32.totalorder %s2348_s20, 0  ;;  %p2090_p4 = scmp.ge.s32.totalorder %s2348_s20, 49 }
   0x6   : > { %s2407_s25 = scalar_select %p41_p0, %s2344_s19, %s43_s24  }
   0x7   : > { %p52_p3 = por %p51_p2, %p50_p1  ;;  %181 = sbr.rel (%p2090_p4) target bundleno = 89 (0x59), region = 24 }
   0xc   : > { %184 = sbr.rel (!%p52_p3) target bundleno = 89 (0x59), region = 28  ;;  %s186_s26 = sand.u32 (%p52_p3), 1, %s2344_s19  }
   0xd   : > { %s2255_s27 = sshll.u32 (%p52_p3), %s2348_s20, 6  ;;  %s2256_s28 = smul.u32 (%p52_p3), 1152, %s186_s26 }
   0xe   : > { %s2415_s6 = scalar_lea.vmem (%p52_p3), %s3006_s1, %s2255_s27 }
   0xf   : > { %v204_v0 = vld [vmem:[%s2415_s6] sm:$0xff] (%p52_p3)  ;;  %v206_v1 = vld [vmem:[%s2415_s6 + $0x8] sm:$0xff] (%p52_p3)  ;;  %v208_v2 = vld [vmem:[%s2415_s6 + $0x10] sm:$0xff] (%p52_p3)  ;;  %s2423_s7 = scalar_lea.vmem (%p52_p3), [#allocation2], %s2256_s28 }
  0x10   : > { %v210_v3 = vld [vmem:[%s2415_s6 + $0x18] sm:$0xff] (%p52_p3)  ;;  %v212_v4 = vld [vmem:[%s2415_s6 + $0x20] sm:$0xff] (%p52_p3)  ;;  %v214_v5 = vld [vmem:[%s2415_s6 + $0x28] sm:$0xff] (%p52_p3)  ;;  %205 = vst [vmem:[%s2423_s7] sm:$0xff] (%p52_p3), %v204_v0 }
  0x11   : > { %207 = vst [vmem:[%s2423_s7 + $0x8] sm:$0xff] %v206_v1  ;;  %209 = vst [vmem:[%s2423_s7 + $0x10] sm:$0xff] %v208_v2  ;;  %v216_v6 = vld [vmem:[%s2415_s6 + $0x30] sm:$0xff]  ;;  %v218_v7 = vld [vmem:[%s2415_s6 + $0x38] sm:$0xff] }
  0x12   : > { %211 = vst [vmem:[%s2423_s7 + $0x18] sm:$0xff] %v210_v3  ;;  %213 = vst [vmem:[%s2423_s7 + $0x20] sm:$0xff] %v212_v4  ;;  %v220_v8 = vld [vmem:[%s2415_s6 + $0xc40] sm:$0xff]  ;;  %v222_v9 = vld [vmem:[%s2415_s6 + $0xc48] sm:$0xff] }
  0x13   : > { %215 = vst [vmem:[%s2423_s7 + $0x28] sm:$0xff] %v214_v5  ;;  %217 = vst [vmem:[%s2423_s7 + $0x30] sm:$0xff] %v216_v6  ;;  %v224_v10 = vld [vmem:[%s2415_s6 + $0xc50] sm:$0xff]  ;;  %v226_v11 = vld [vmem:[%s2415_s6 + $0xc58] sm:$0xff] }
  0x14   : > { %219 = vst [vmem:[%s2423_s7 + $0x38] sm:$0xff] %v218_v7  ;;  %221 = vst [vmem:[%s2423_s7 + $0x40] sm:$0xff] %v220_v8  ;;  %v228_v12 = vld [vmem:[%s2415_s6 + $0xc60] sm:$0xff]  ;;  %v230_v13 = vld [vmem:[%s2415_s6 + $0xc68] sm:$0xff] }
  0x15   : > { %223 = vst [vmem:[%s2423_s7 + $0x48] sm:$0xff] %v222_v9  ;;  %225 = vst [vmem:[%s2423_s7 + $0x50] sm:$0xff] %v224_v10  ;;  %v232_v14 = vld [vmem:[%s2415_s6 + $0xc70] sm:$0xff]  ;;  %v234_v15 = vld [vmem:[%s2415_s6 + $0xc78] sm:$0xff] }
  0x16   : > { %227 = vst [vmem:[%s2423_s7 + $0x58] sm:$0xff] %v226_v11  ;;  %229 = vst [vmem:[%s2423_s7 + $0x60] sm:$0xff] %v228_v12  ;;  %v236_v16 = vld [vmem:[%s2415_s6 + $0x1880] sm:$0xff]  ;;  %v238_v17 = vld [vmem:[%s2415_s6 + $0x1888] sm:$0xff] }
  0x17   : > { %231 = vst [vmem:[%s2423_s7 + $0x68] sm:$0xff] %v230_v13  ;;  %233 = vst [vmem:[%s2423_s7 + $0x70] sm:$0xff] %v232_v14  ;;  %v240_v18 = vld [vmem:[%s2415_s6 + $0x1890] sm:$0xff]  ;;  %v242_v19 = vld [vmem:[%s2415_s6 + $0x1898] sm:$0xff] }
  0x18   : > { %235 = vst [vmem:[%s2423_s7 + $0x78] sm:$0xff] %v234_v15  ;;  %237 = vst [vmem:[%s2423_s7 + $0x80] sm:$0xff] %v236_v16  ;;  %v244_v20 = vld [vmem:[%s2415_s6 + $0x18a0] sm:$0xff]  ;;  %v246_v21 = vld [vmem:[%s2415_s6 + $0x18a8] sm:$0xff] }
  0x19   : > { %239 = vst [vmem:[%s2423_s7 + $0x88] sm:$0xff] %v238_v17  ;;  %241 = vst [vmem:[%s2423_s7 + $0x90] sm:$0xff] %v240_v18  ;;  %v248_v22 = vld [vmem:[%s2415_s6 + $0x18b0] sm:$0xff]  ;;  %v250_v23 = vld [vmem:[%s2415_s6 + $0x18b8] sm:$0xff] }
  0x1a   : > { %243 = vst [vmem:[%s2423_s7 + $0x98] sm:$0xff] %v242_v19  ;;  %245 = vst [vmem:[%s2423_s7 + $0xa0] sm:$0xff] %v244_v20  ;;  %v252_v24 = vld [vmem:[%s2415_s6 + $0x24c0] sm:$0xff]  ;;  %v254_v25 = vld [vmem:[%s2415_s6 + $0x24c8] sm:$0xff] }
  0x1b   : > { %247 = vst [vmem:[%s2423_s7 + $0xa8] sm:$0xff] %v246_v21  ;;  %249 = vst [vmem:[%s2423_s7 + $0xb0] sm:$0xff] %v248_v22  ;;  %v256_v26 = vld [vmem:[%s2415_s6 + $0x24d0] sm:$0xff]  ;;  %v258_v27 = vld [vmem:[%s2415_s6 + $0x24d8] sm:$0xff] }
  0x1c   : > { %251 = vst [vmem:[%s2423_s7 + $0xb8] sm:$0xff] %v250_v23  ;;  %253 = vst [vmem:[%s2423_s7 + $0xc0] sm:$0xff] %v252_v24  ;;  %v260_v28 = vld [vmem:[%s2415_s6 + $0x24e0] sm:$0xff]  ;;  %v262_v29 = vld [vmem:[%s2415_s6 + $0x24e8] sm:$0xff] }
  0x1d   : > { %255 = vst [vmem:[%s2423_s7 + $0xc8] sm:$0xff] %v254_v25  ;;  %257 = vst [vmem:[%s2423_s7 + $0xd0] sm:$0xff] %v256_v26  ;;  %v264_v30 = vld [vmem:[%s2415_s6 + $0x24f0] sm:$0xff]  ;;  %v266_v31 = vld [vmem:[%s2415_s6 + $0x24f8] sm:$0xff] }
  0x1e   : > { %259 = vst [vmem:[%s2423_s7 + $0xd8] sm:$0xff] %v258_v27  ;;  %261 = vst [vmem:[%s2423_s7 + $0xe0] sm:$0xff] %v260_v28  ;;  %v268_v32 = vld [vmem:[%s2415_s6 + $0x3100] sm:$0xff]  ;;  %v270_v33 = vld [vmem:[%s2415_s6 + $0x3108] sm:$0xff] }
  0x1f   : > { %263 = vst [vmem:[%s2423_s7 + $0xe8] sm:$0xff] %v262_v29  ;;  %265 = vst [vmem:[%s2423_s7 + $0xf0] sm:$0xff] %v264_v30  ;;  %v272_v34 = vld [vmem:[%s2415_s6 + $0x3110] sm:$0xff]  ;;  %v274_v35 = vld [vmem:[%s2415_s6 + $0x3118] sm:$0xff] }
  0x20   : > { %267 = vst [vmem:[%s2423_s7 + $0xf8] sm:$0xff] %v266_v31  ;;  %269 = vst [vmem:[%s2423_s7 + $0x100] sm:$0xff] %v268_v32  ;;  %v276_v36 = vld [vmem:[%s2415_s6 + $0x3120] sm:$0xff]  ;;  %v278_v37 = vld [vmem:[%s2415_s6 + $0x3128] sm:$0xff] }
  0x21   : > { %271 = vst [vmem:[%s2423_s7 + $0x108] sm:$0xff] %v270_v33  ;;  %273 = vst [vmem:[%s2423_s7 + $0x110] sm:$0xff] %v272_v34  ;;  %v280_v38 = vld [vmem:[%s2415_s6 + $0x3130] sm:$0xff]  ;;  %v282_v39 = vld [vmem:[%s2415_s6 + $0x3138] sm:$0xff] }
  0x22   : > { %275 = vst [vmem:[%s2423_s7 + $0x118] sm:$0xff] %v274_v35  ;;  %277 = vst [vmem:[%s2423_s7 + $0x120] sm:$0xff] %v276_v36  ;;  %v284_v40 = vld [vmem:[%s2415_s6 + $0x3d40] sm:$0xff]  ;;  %v286_v41 = vld [vmem:[%s2415_s6 + $0x3d48] sm:$0xff] }
  0x23   : > { %279 = vst [vmem:[%s2423_s7 + $0x128] sm:$0xff] %v278_v37  ;;  %281 = vst [vmem:[%s2423_s7 + $0x130] sm:$0xff] %v280_v38  ;;  %v288_v42 = vld [vmem:[%s2415_s6 + $0x3d50] sm:$0xff]  ;;  %v290_v43 = vld [vmem:[%s2415_s6 + $0x3d58] sm:$0xff] }
  0x24   : > { %283 = vst [vmem:[%s2423_s7 + $0x138] sm:$0xff] %v282_v39  ;;  %285 = vst [vmem:[%s2423_s7 + $0x140] sm:$0xff] %v284_v40  ;;  %v292_v44 = vld [vmem:[%s2415_s6 + $0x3d60] sm:$0xff]  ;;  %v294_v45 = vld [vmem:[%s2415_s6 + $0x3d68] sm:$0xff] }
  0x25   : > { %287 = vst [vmem:[%s2423_s7 + $0x148] sm:$0xff] %v286_v41  ;;  %289 = vst [vmem:[%s2423_s7 + $0x150] sm:$0xff] %v288_v42  ;;  %v296_v46 = vld [vmem:[%s2415_s6 + $0x3d70] sm:$0xff]  ;;  %v298_v47 = vld [vmem:[%s2415_s6 + $0x3d78] sm:$0xff] }
  0x26   : > { %291 = vst [vmem:[%s2423_s7 + $0x158] sm:$0xff] %v290_v43  ;;  %293 = vst [vmem:[%s2423_s7 + $0x160] sm:$0xff] %v292_v44  ;;  %v300_v48 = vld [vmem:[%s2415_s6 + $0x4980] sm:$0xff]  ;;  %v302_v49 = vld [vmem:[%s2415_s6 + $0x4988] sm:$0xff] }
  0x27   : > { %295 = vst [vmem:[%s2423_s7 + $0x168] sm:$0xff] %v294_v45  ;;  %297 = vst [vmem:[%s2423_s7 + $0x170] sm:$0xff] %v296_v46  ;;  %v304_v50 = vld [vmem:[%s2415_s6 + $0x4990] sm:$0xff]  ;;  %v306_v51 = vld [vmem:[%s2415_s6 + $0x4998] sm:$0xff] }
  0x28   : > { %299 = vst [vmem:[%s2423_s7 + $0x178] sm:$0xff] %v298_v47  ;;  %301 = vst [vmem:[%s2423_s7 + $0x180] sm:$0xff] %v300_v48  ;;  %v308_v52 = vld [vmem:[%s2415_s6 + $0x49a0] sm:$0xff]  ;;  %v310_v53 = vld [vmem:[%s2415_s6 + $0x49a8] sm:$0xff] }
  0x29   : > { %303 = vst [vmem:[%s2423_s7 + $0x188] sm:$0xff] %v302_v49  ;;  %305 = vst [vmem:[%s2423_s7 + $0x190] sm:$0xff] %v304_v50  ;;  %v312_v54 = vld [vmem:[%s2415_s6 + $0x49b0] sm:$0xff]  ;;  %v314_v55 = vld [vmem:[%s2415_s6 + $0x49b8] sm:$0xff] }
  0x2a   : > { %307 = vst [vmem:[%s2423_s7 + $0x198] sm:$0xff] %v306_v51  ;;  %309 = vst [vmem:[%s2423_s7 + $0x1a0] sm:$0xff] %v308_v52  ;;  %v316_v56 = vld [vmem:[%s2415_s6 + $0x55c0] sm:$0xff]  ;;  %v318_v57 = vld [vmem:[%s2415_s6 + $0x55c8] sm:$0xff] }
  0x2b   : > { %311 = vst [vmem:[%s2423_s7 + $0x1a8] sm:$0xff] %v310_v53  ;;  %313 = vst [vmem:[%s2423_s7 + $0x1b0] sm:$0xff] %v312_v54  ;;  %v320_v58 = vld [vmem:[%s2415_s6 + $0x55d0] sm:$0xff]  ;;  %v322_v59 = vld [vmem:[%s2415_s6 + $0x55d8] sm:$0xff] }
  0x2c   : > { %315 = vst [vmem:[%s2423_s7 + $0x1b8] sm:$0xff] %v314_v55  ;;  %317 = vst [vmem:[%s2423_s7 + $0x1c0] sm:$0xff] %v316_v56  ;;  %v324_v60 = vld [vmem:[%s2415_s6 + $0x55e0] sm:$0xff]  ;;  %v326_v61 = vld [vmem:[%s2415_s6 + $0x55e8] sm:$0xff] }
  0x2d   : > { %319 = vst [vmem:[%s2423_s7 + $0x1c8] sm:$0xff] %v318_v57  ;;  %321 = vst [vmem:[%s2423_s7 + $0x1d0] sm:$0xff] %v320_v58  ;;  %v328_v62 = vld [vmem:[%s2415_s6 + $0x55f0] sm:$0xff]  ;;  %v330_v63 = vld [vmem:[%s2415_s6 + $0x55f8] sm:$0xff] }
  0x2e   : > { %323 = vst [vmem:[%s2423_s7 + $0x1d8] sm:$0xff] %v322_v59  ;;  %325 = vst [vmem:[%s2423_s7 + $0x1e0] sm:$0xff] %v324_v60  ;;  %v332_v0 = vld [vmem:[%s2415_s6 + $0x6200] sm:$0xff]  ;;  %v334_v1 = vld [vmem:[%s2415_s6 + $0x6208] sm:$0xff] }
  0x2f   : > { %327 = vst [vmem:[%s2423_s7 + $0x1e8] sm:$0xff] %v326_v61  ;;  %329 = vst [vmem:[%s2423_s7 + $0x1f0] sm:$0xff] %v328_v62  ;;  %v336_v2 = vld [vmem:[%s2415_s6 + $0x6210] sm:$0xff]  ;;  %v338_v3 = vld [vmem:[%s2415_s6 + $0x6218] sm:$0xff] }
  0x30   : > { %331 = vst [vmem:[%s2423_s7 + $0x1f8] sm:$0xff] %v330_v63  ;;  %333 = vst [vmem:[%s2423_s7 + $0x200] sm:$0xff] %v332_v0  ;;  %v340_v4 = vld [vmem:[%s2415_s6 + $0x6220] sm:$0xff]  ;;  %v342_v5 = vld [vmem:[%s2415_s6 + $0x6228] sm:$0xff] }
  0x31   : > { %335 = vst [vmem:[%s2423_s7 + $0x208] sm:$0xff] %v334_v1  ;;  %337 = vst [vmem:[%s2423_s7 + $0x210] sm:$0xff] %v336_v2  ;;  %v344_v6 = vld [vmem:[%s2415_s6 + $0x6230] sm:$0xff]  ;;  %v346_v7 = vld [vmem:[%s2415_s6 + $0x6238] sm:$0xff] }
  0x32   : > { %339 = vst [vmem:[%s2423_s7 + $0x218] sm:$0xff] %v338_v3  ;;  %341 = vst [vmem:[%s2423_s7 + $0x220] sm:$0xff] %v340_v4  ;;  %v348_v8 = vld [vmem:[%s2415_s6 + $0x6e40] sm:$0xff]  ;;  %v350_v9 = vld [vmem:[%s2415_s6 + $0x6e48] sm:$0xff] }
  0x33   : > { %343 = vst [vmem:[%s2423_s7 + $0x228] sm:$0xff] %v342_v5  ;;  %345 = vst [vmem:[%s2423_s7 + $0x230] sm:$0xff] %v344_v6  ;;  %v352_v10 = vld [vmem:[%s2415_s6 + $0x6e50] sm:$0xff]  ;;  %v354_v11 = vld [vmem:[%s2415_s6 + $0x6e58] sm:$0xff] }
  0x34   : > { %347 = vst [vmem:[%s2423_s7 + $0x238] sm:$0xff] %v346_v7  ;;  %349 = vst [vmem:[%s2423_s7 + $0x240] sm:$0xff] %v348_v8  ;;  %v356_v12 = vld [vmem:[%s2415_s6 + $0x6e60] sm:$0xff]  ;;  %v358_v13 = vld [vmem:[%s2415_s6 + $0x6e68] sm:$0xff] }
  0x35   : > { %351 = vst [vmem:[%s2423_s7 + $0x248] sm:$0xff] %v350_v9  ;;  %353 = vst [vmem:[%s2423_s7 + $0x250] sm:$0xff] %v352_v10  ;;  %v360_v14 = vld [vmem:[%s2415_s6 + $0x6e70] sm:$0xff]  ;;  %v362_v15 = vld [vmem:[%s2415_s6 + $0x6e78] sm:$0xff] }
  0x36   : > { %355 = vst [vmem:[%s2423_s7 + $0x258] sm:$0xff] %v354_v11  ;;  %357 = vst [vmem:[%s2423_s7 + $0x260] sm:$0xff] %v356_v12  ;;  %v364_v16 = vld [vmem:[%s2415_s6 + $0x7a80] sm:$0xff]  ;;  %v366_v17 = vld [vmem:[%s2415_s6 + $0x7a88] sm:$0xff] }
  0x37   : > { %359 = vst [vmem:[%s2423_s7 + $0x268] sm:$0xff] %v358_v13  ;;  %361 = vst [vmem:[%s2423_s7 + $0x270] sm:$0xff] %v360_v14  ;;  %v368_v18 = vld [vmem:[%s2415_s6 + $0x7a90] sm:$0xff]  ;;  %v370_v19 = vld [vmem:[%s2415_s6 + $0x7a98] sm:$0xff] }
  0x38   : > { %363 = vst [vmem:[%s2423_s7 + $0x278] sm:$0xff] %v362_v15  ;;  %365 = vst [vmem:[%s2423_s7 + $0x280] sm:$0xff] %v364_v16  ;;  %v372_v20 = vld [vmem:[%s2415_s6 + $0x7aa0] sm:$0xff]  ;;  %v374_v21 = vld [vmem:[%s2415_s6 + $0x7aa8] sm:$0xff] }
  0x39   : > { %367 = vst [vmem:[%s2423_s7 + $0x288] sm:$0xff] %v366_v17  ;;  %369 = vst [vmem:[%s2423_s7 + $0x290] sm:$0xff] %v368_v18  ;;  %v376_v22 = vld [vmem:[%s2415_s6 + $0x7ab0] sm:$0xff]  ;;  %v378_v23 = vld [vmem:[%s2415_s6 + $0x7ab8] sm:$0xff] }
  0x3a   : > { %371 = vst [vmem:[%s2423_s7 + $0x298] sm:$0xff] %v370_v19  ;;  %373 = vst [vmem:[%s2423_s7 + $0x2a0] sm:$0xff] %v372_v20  ;;  %v380_v24 = vld [vmem:[%s2415_s6 + $0x86c0] sm:$0xff]  ;;  %v382_v25 = vld [vmem:[%s2415_s6 + $0x86c8] sm:$0xff] }
  0x3b   : > { %375 = vst [vmem:[%s2423_s7 + $0x2a8] sm:$0xff] %v374_v21  ;;  %377 = vst [vmem:[%s2423_s7 + $0x2b0] sm:$0xff] %v376_v22  ;;  %v384_v26 = vld [vmem:[%s2415_s6 + $0x86d0] sm:$0xff]  ;;  %v386_v27 = vld [vmem:[%s2415_s6 + $0x86d8] sm:$0xff] }
  0x3c   : > { %379 = vst [vmem:[%s2423_s7 + $0x2b8] sm:$0xff] %v378_v23  ;;  %381 = vst [vmem:[%s2423_s7 + $0x2c0] sm:$0xff] %v380_v24  ;;  %v388_v28 = vld [vmem:[%s2415_s6 + $0x86e0] sm:$0xff]  ;;  %v390_v29 = vld [vmem:[%s2415_s6 + $0x86e8] sm:$0xff] }
  0x3d   : > { %383 = vst [vmem:[%s2423_s7 + $0x2c8] sm:$0xff] %v382_v25  ;;  %385 = vst [vmem:[%s2423_s7 + $0x2d0] sm:$0xff] %v384_v26  ;;  %v392_v30 = vld [vmem:[%s2415_s6 + $0x86f0] sm:$0xff]  ;;  %v394_v31 = vld [vmem:[%s2415_s6 + $0x86f8] sm:$0xff] }
  0x3e   : > { %387 = vst [vmem:[%s2423_s7 + $0x2d8] sm:$0xff] %v386_v27  ;;  %389 = vst [vmem:[%s2423_s7 + $0x2e0] sm:$0xff] %v388_v28  ;;  %v396_v32 = vld [vmem:[%s2415_s6 + $0x9300] sm:$0xff]  ;;  %v398_v33 = vld [vmem:[%s2415_s6 + $0x9308] sm:$0xff] }
  0x3f   : > { %391 = vst [vmem:[%s2423_s7 + $0x2e8] sm:$0xff] %v390_v29  ;;  %393 = vst [vmem:[%s2423_s7 + $0x2f0] sm:$0xff] %v392_v30  ;;  %v400_v34 = vld [vmem:[%s2415_s6 + $0x9310] sm:$0xff]  ;;  %v402_v35 = vld [vmem:[%s2415_s6 + $0x9318] sm:$0xff] }
  0x40   : > { %395 = vst [vmem:[%s2423_s7 + $0x2f8] sm:$0xff] %v394_v31  ;;  %397 = vst [vmem:[%s2423_s7 + $0x300] sm:$0xff] %v396_v32  ;;  %v404_v36 = vld [vmem:[%s2415_s6 + $0x9320] sm:$0xff]  ;;  %v406_v37 = vld [vmem:[%s2415_s6 + $0x9328] sm:$0xff] }
  0x41   : > { %399 = vst [vmem:[%s2423_s7 + $0x308] sm:$0xff] %v398_v33  ;;  %401 = vst [vmem:[%s2423_s7 + $0x310] sm:$0xff] %v400_v34  ;;  %v408_v38 = vld [vmem:[%s2415_s6 + $0x9330] sm:$0xff]  ;;  %v410_v39 = vld [vmem:[%s2415_s6 + $0x9338] sm:$0xff] }
  0x42   : > { %403 = vst [vmem:[%s2423_s7 + $0x318] sm:$0xff] %v402_v35  ;;  %405 = vst [vmem:[%s2423_s7 + $0x320] sm:$0xff] %v404_v36  ;;  %v412_v40 = vld [vmem:[%s2415_s6 + $0x9f40] sm:$0xff]  ;;  %v414_v41 = vld [vmem:[%s2415_s6 + $0x9f48] sm:$0xff] }
  0x43   : > { %407 = vst [vmem:[%s2423_s7 + $0x328] sm:$0xff] %v406_v37  ;;  %409 = vst [vmem:[%s2423_s7 + $0x330] sm:$0xff] %v408_v38  ;;  %v416_v42 = vld [vmem:[%s2415_s6 + $0x9f50] sm:$0xff]  ;;  %v418_v43 = vld [vmem:[%s2415_s6 + $0x9f58] sm:$0xff] }
  0x44   : > { %411 = vst [vmem:[%s2423_s7 + $0x338] sm:$0xff] %v410_v39  ;;  %413 = vst [vmem:[%s2423_s7 + $0x340] sm:$0xff] %v412_v40  ;;  %v420_v44 = vld [vmem:[%s2415_s6 + $0x9f60] sm:$0xff]  ;;  %v422_v45 = vld [vmem:[%s2415_s6 + $0x9f68] sm:$0xff] }
  0x45   : > { %415 = vst [vmem:[%s2423_s7 + $0x348] sm:$0xff] %v414_v41  ;;  %417 = vst [vmem:[%s2423_s7 + $0x350] sm:$0xff] %v416_v42  ;;  %v424_v46 = vld [vmem:[%s2415_s6 + $0x9f70] sm:$0xff]  ;;  %v426_v47 = vld [vmem:[%s2415_s6 + $0x9f78] sm:$0xff] }
  0x46   : > { %419 = vst [vmem:[%s2423_s7 + $0x358] sm:$0xff] %v418_v43  ;;  %421 = vst [vmem:[%s2423_s7 + $0x360] sm:$0xff] %v420_v44  ;;  %v428_v48 = vld [vmem:[%s2415_s6 + $0xab80] sm:$0xff]  ;;  %v430_v49 = vld [vmem:[%s2415_s6 + $0xab88] sm:$0xff] }
  0x47   : > { %423 = vst [vmem:[%s2423_s7 + $0x368] sm:$0xff] %v422_v45  ;;  %425 = vst [vmem:[%s2423_s7 + $0x370] sm:$0xff] %v424_v46  ;;  %v432_v50 = vld [vmem:[%s2415_s6 + $0xab90] sm:$0xff]  ;;  %v434_v51 = vld [vmem:[%s2415_s6 + $0xab98] sm:$0xff] }
  0x48   : > { %427 = vst [vmem:[%s2423_s7 + $0x378] sm:$0xff] %v426_v47  ;;  %429 = vst [vmem:[%s2423_s7 + $0x380] sm:$0xff] %v428_v48  ;;  %v436_v52 = vld [vmem:[%s2415_s6 + $0xaba0] sm:$0xff]  ;;  %v438_v53 = vld [vmem:[%s2415_s6 + $0xaba8] sm:$0xff] }
  0x49   : > { %431 = vst [vmem:[%s2423_s7 + $0x388] sm:$0xff] %v430_v49  ;;  %433 = vst [vmem:[%s2423_s7 + $0x390] sm:$0xff] %v432_v50  ;;  %v440_v54 = vld [vmem:[%s2415_s6 + $0xabb0] sm:$0xff]  ;;  %v442_v55 = vld [vmem:[%s2415_s6 + $0xabb8] sm:$0xff] }
  0x4a   : > { %435 = vst [vmem:[%s2423_s7 + $0x398] sm:$0xff] %v434_v51  ;;  %437 = vst [vmem:[%s2423_s7 + $0x3a0] sm:$0xff] %v436_v52  ;;  %v444_v56 = vld [vmem:[%s2415_s6 + $0xb7c0] sm:$0xff]  ;;  %v446_v57 = vld [vmem:[%s2415_s6 + $0xb7c8] sm:$0xff] }
  0x4b   : > { %439 = vst [vmem:[%s2423_s7 + $0x3a8] sm:$0xff] %v438_v53  ;;  %441 = vst [vmem:[%s2423_s7 + $0x3b0] sm:$0xff] %v440_v54  ;;  %v448_v58 = vld [vmem:[%s2415_s6 + $0xb7d0] sm:$0xff]  ;;  %v450_v59 = vld [vmem:[%s2415_s6 + $0xb7d8] sm:$0xff] }
  0x4c   : > { %443 = vst [vmem:[%s2423_s7 + $0x3b8] sm:$0xff] %v442_v55  ;;  %445 = vst [vmem:[%s2423_s7 + $0x3c0] sm:$0xff] %v444_v56  ;;  %v452_v60 = vld [vmem:[%s2415_s6 + $0xb7e0] sm:$0xff]  ;;  %v454_v61 = vld [vmem:[%s2415_s6 + $0xb7e8] sm:$0xff] }
  0x4d   : > { %447 = vst [vmem:[%s2423_s7 + $0x3c8] sm:$0xff] %v446_v57  ;;  %449 = vst [vmem:[%s2423_s7 + $0x3d0] sm:$0xff] %v448_v58  ;;  %v456_v62 = vld [vmem:[%s2415_s6 + $0xb7f0] sm:$0xff]  ;;  %v458_v63 = vld [vmem:[%s2415_s6 + $0xb7f8] sm:$0xff] }
  0x4e   : > { %451 = vst [vmem:[%s2423_s7 + $0x3d8] sm:$0xff] %v450_v59  ;;  %453 = vst [vmem:[%s2423_s7 + $0x3e0] sm:$0xff] %v452_v60  ;;  %v460_v0 = vld [vmem:[%s2415_s6 + $0xc400] sm:$0xff]  ;;  %v462_v1 = vld [vmem:[%s2415_s6 + $0xc408] sm:$0xff] }
  0x4f   : > { %455 = vst [vmem:[%s2423_s7 + $0x3e8] sm:$0xff] %v454_v61  ;;  %457 = vst [vmem:[%s2423_s7 + $0x3f0] sm:$0xff] %v456_v62  ;;  %v464_v2 = vld [vmem:[%s2415_s6 + $0xc410] sm:$0xff]  ;;  %v466_v3 = vld [vmem:[%s2415_s6 + $0xc418] sm:$0xff] }
  0x50   : > { %459 = vst [vmem:[%s2423_s7 + $0x3f8] sm:$0xff] %v458_v63  ;;  %461 = vst [vmem:[%s2423_s7 + $0x400] sm:$0xff] %v460_v0  ;;  %v468_v4 = vld [vmem:[%s2415_s6 + $0xc420] sm:$0xff]  ;;  %v470_v5 = vld [vmem:[%s2415_s6 + $0xc428] sm:$0xff] }
  0x51   : > { %463 = vst [vmem:[%s2423_s7 + $0x408] sm:$0xff] %v462_v1  ;;  %465 = vst [vmem:[%s2423_s7 + $0x410] sm:$0xff] %v464_v2  ;;  %v472_v6 = vld [vmem:[%s2415_s6 + $0xc430] sm:$0xff]  ;;  %v474_v7 = vld [vmem:[%s2415_s6 + $0xc438] sm:$0xff] }
  0x52   : > { %467 = vst [vmem:[%s2423_s7 + $0x418] sm:$0xff] %v466_v3  ;;  %469 = vst [vmem:[%s2423_s7 + $0x420] sm:$0xff] %v468_v4  ;;  %v476_v8 = vld [vmem:[%s2415_s6 + $0xd040] sm:$0xff]  ;;  %v478_v9 = vld [vmem:[%s2415_s6 + $0xd048] sm:$0xff] }
  0x53   : > { %471 = vst [vmem:[%s2423_s7 + $0x428] sm:$0xff] %v470_v5  ;;  %473 = vst [vmem:[%s2423_s7 + $0x430] sm:$0xff] %v472_v6  ;;  %v480_v10 = vld [vmem:[%s2415_s6 + $0xd050] sm:$0xff]  ;;  %v482_v11 = vld [vmem:[%s2415_s6 + $0xd058] sm:$0xff] }
  0x54   : > { %475 = vst [vmem:[%s2423_s7 + $0x438] sm:$0xff] %v474_v7  ;;  %477 = vst [vmem:[%s2423_s7 + $0x440] sm:$0xff] %v476_v8  ;;  %v484_v12 = vld [vmem:[%s2415_s6 + $0xd060] sm:$0xff]  ;;  %v486_v13 = vld [vmem:[%s2415_s6 + $0xd068] sm:$0xff] }
  0x55   : > { %479 = vst [vmem:[%s2423_s7 + $0x448] sm:$0xff] %v478_v9  ;;  %481 = vst [vmem:[%s2423_s7 + $0x450] sm:$0xff] %v480_v10  ;;  %v488_v14 = vld [vmem:[%s2415_s6 + $0xd070] sm:$0xff]  ;;  %v490_v15 = vld [vmem:[%s2415_s6 + $0xd078] sm:$0xff] }
  0x56   : > { %483 = vst [vmem:[%s2423_s7 + $0x458] sm:$0xff] %v482_v11  ;;  %485 = vst [vmem:[%s2423_s7 + $0x460] sm:$0xff] %v484_v12 }
  0x57   : > { %487 = vst [vmem:[%s2423_s7 + $0x468] sm:$0xff] %v486_v13  ;;  %489 = vst [vmem:[%s2423_s7 + $0x470] sm:$0xff] %v488_v14 }
  0x58   : > { %491 = vst [vmem:[%s2423_s7 + $0x478] sm:$0xff] %v490_v15 }
  0x59 PF: > { %p2093_p5 = scmp.ge.s32.totalorder %s2348_s20, 1  ;;  %p513_p6 = scmp.lt.s32.totalorder %s2348_s20, 50 }
  0x5b   : > { %p514_p7 = pnand %p2093_p5, %p513_p6 }
  0x5c   : > { %s520_s8 = sand.u32 (!%p514_p7), 1, %s2340_s18   ;;  %s2094_s15 = sshll.u32 (!%p514_p7), %s2087_s21, 4 }
  0x5d   : > { %517 = sbr.rel (%p514_p7) target bundleno = 467 (0x1d3), region = 59  ;;  %p558_p8 = scmp.lt.s32.totalorder (!%p514_p7), %s2094_s15, 783 }
  0x5e   : > { %s2257_s13 = smul.u32 (!%p514_p7), 1152, %s520_s8 }
  0x60   : > { %s2726_s14 = scalar_lea.vmem (!%p514_p7), [#allocation2], %s2257_s13 }
  0x62   : > { %v2713_v16 = vld [vmem:[%s3005_s0] sm:$0xff]  ;;  %vm1446_vm0 = vcmask 130048   ;;  %v2350_v19 = vmov 0   ;;  %v689_v22 = vld [vmem:[%s2726_s14 + $0x388] sm:$0xff]  ;;  %s3015_s15 = smov (!%p558_p8, %s2094_s15), 783 }
  0x63   : > { %v1778_v17 = vld [vmem:[%s3007_s2] sm:$0x7]  ;;  %v2720_v18 = vcombine.high %v2713_v16, %v2713_v16  ;;  %2283 = vset.pattern.permute.xlu0 %v2350_v19  ;;  %v697_v24 = vld [vmem:[%s2726_s14 + $0x3c8] sm:$0xff]  ;;  %s2912_s18 = scalar_lea.vmem %s3008_s3, %s3015_s15  ;;  %s2096_s20 = sshll.u32 %s3015_s15, 2 }
  0x64   : > { %1781 = vperm.xlu0 %2283, %v1778_v17   ;;  %v688_v20 = vld [vmem:[%s2726_s14 + $0x380] sm:$0xff]  ;;  %v2216_v28 = vcombine.high %v689_v22, %v697_v24  ;;  %v2215_v29 = vcombine.low %v689_v22, %v697_v24  ;;  %v673_v31 = vld [vmem:[%s2726_s14 + $0x308] sm:$0xff]  ;;  %s2921_s24 = scalar_lea.vmem %s3009_s4, %s2096_s20  ;;  %s2938_s28 = scalar_lea.vmem %s3010_s5, %s2096_s20 }
  0x65   : > { %2245 = vmatprep.mubr.msk.bf16.mxu0 %vm1446_vm0, %v2720_v18  ;;  %2246 = vmatprep.mubr.msk.bf16.mxu1 %vm1446_vm0, %v2720_v18  ;;  %v696_v21 = vld [vmem:[%s2726_s14 + $0x3c0] sm:$0xff]  ;;  %v681_v32 = vld [vmem:[%s2726_s14 + $0x348] sm:$0xff] }
  0x66   : > { %v2214_v23 = vcombine.high %v688_v20, %v696_v21  ;;  %v2213_v25 = vcombine.low %v688_v20, %v696_v21  ;;  %v672_v26 = vld [vmem:[%s2726_s14 + $0x300] sm:$0xff]  ;;  %v2200_v34 = vcombine.high %v673_v31, %v681_v32  ;;  %v657_v36 = vld [vmem:[%s2726_s14 + $0x288] sm:$0xff]  ;;  %1491 = vmatprep.subr.bf16.mxu1 %v2216_v28  ;;  %v2199_v39 = vcombine.low %v673_v31, %v681_v32  ;;  %v690_v28 = vld [vmem:[%s2726_s14 + $0x390] sm:$0xff] }
  0x67   : > { %v680_v27 = vld [vmem:[%s2726_s14 + $0x340] sm:$0xff]  ;;  %v665_v37 = vld [vmem:[%s2726_s14 + $0x2c8] sm:$0xff]  ;;  %1492 = vmatpush1.bf16.msra.mxu1 %v2215_v29  ;;  %v698_v29 = vld [vmem:[%s2726_s14 + $0x3d0] sm:$0xff] }
  0x68   : > { %v2198_v30 = vcombine.high %v672_v26, %v680_v27  ;;  %v656_v33 = vld [vmem:[%s2726_s14 + $0x280] sm:$0xff]  ;;  %1450 = vmatprep.subr.bf16.mxu0 %v2214_v23  ;;  %v2197_v38 = vcombine.low %v672_v26, %v680_v27  ;;  %1493 = vmatprep.subr.bf16.mxu1 %v2200_v34  ;;  %v2184_v41 = vcombine.high %v657_v36, %v665_v37  ;;  %v641_v44 = vld [vmem:[%s2726_s14 + $0x208] sm:$0xff]  ;;  %v699_v31 = vld [vmem:[%s2726_s14 + $0x3d8] sm:$0xff] }
  0x69   : > { %v664_v35 = vld [vmem:[%s2726_s14 + $0x2c0] sm:$0xff]  ;;  %1451 = vmatpush1.bf16.msra.mxu0 %v2213_v25  ;;  %v649_v45 = vld [vmem:[%s2726_s14 + $0x248] sm:$0xff]  ;;  %v2183_v47 = vcombine.low %v657_v36, %v665_v37  ;;  %v2218_v34 = vcombine.high %v690_v28, %v698_v29  ;;  %v674_v36 = vld [vmem:[%s2726_s14 + $0x310] sm:$0xff] }
  0x6a   : > { %1452 = vmatprep.subr.bf16.mxu0 %v2198_v30  ;;  %v2182_v40 = vcombine.high %v656_v33, %v664_v35  ;;  %v640_v42 = vld [vmem:[%s2726_s14 + $0x200] sm:$0xff]  ;;  %v2181_v46 = vcombine.low %v656_v33, %v664_v35  ;;  %v2168_v49 = vcombine.high %v641_v44, %v649_v45  ;;  %v625_v52 = vld [vmem:[%s2726_s14 + $0x188] sm:$0xff]  ;;  %v2167_v55 = vcombine.low %v641_v44, %v649_v45  ;;  %v691_v30 = vld [vmem:[%s2726_s14 + $0x398] sm:$0xff] }
  0x6b   : > { %v648_v43 = vld [vmem:[%s2726_s14 + $0x240] sm:$0xff]  ;;  %1494 = vmatpush1.bf16.msra.mxu1 %v2199_v39  ;;  %v633_v53 = vld [vmem:[%s2726_s14 + $0x1c8] sm:$0xff]  ;;  %v2220_v35 = vcombine.high %v691_v30, %v699_v31  ;;  %v682_v37 = vld [vmem:[%s2726_s14 + $0x350] sm:$0xff] }
  0x6c   : > { %v2166_v48 = vcombine.high %v640_v42, %v648_v43  ;;  %1495 = vmatprep.subr.bf16.mxu1 %v2184_v41  ;;  %v624_v50 = vld [vmem:[%s2726_s14 + $0x180] sm:$0xff]  ;;  %v2165_v54 = vcombine.low %v640_v42, %v648_v43  ;;  %v2152_v57 = vcombine.high %v625_v52, %v633_v53  ;;  %v609_v60 = vld [vmem:[%s2726_s14 + $0x108] sm:$0xff]  ;;  %v2151_v63 = vcombine.low %v625_v52, %v633_v53  ;;  %v675_v39 = vld [vmem:[%s2726_s14 + $0x318] sm:$0xff] }
  0x6d   : > { %1453 = vmatpush1.bf16.msra.mxu0 %v2197_v38  ;;  %v632_v51 = vld [vmem:[%s2726_s14 + $0x1c0] sm:$0xff]  ;;  %v617_v61 = vld [vmem:[%s2726_s14 + $0x148] sm:$0xff]  ;;  %v2772_v38 = vcombine.low %v2713_v16, %v2713_v16  ;;  %v2217_v41 = vcombine.low %v690_v28, %v698_v29  ;;  %v2219_v42 = vcombine.low %v691_v30, %v699_v31  ;;  %v2202_v43 = vcombine.high %v674_v36, %v682_v37  ;;  %v658_v45 = vld [vmem:[%s2726_s14 + $0x290] sm:$0xff] }
  0x6e   : > { %1454 = vmatprep.subr.bf16.mxu0 %v2182_v40  ;;  %v2150_v56 = vcombine.high %v624_v50, %v632_v51  ;;  %v608_v58 = vld [vmem:[%s2726_s14 + $0x100] sm:$0xff]  ;;  %v2149_v62 = vcombine.low %v624_v50, %v632_v51  ;;  %v2136_v1 = vcombine.high %v609_v60, %v617_v61  ;;  %v593_v4 = vld [vmem:[%s2726_s14 + $0x88] sm:$0xff]  ;;  %v2135_v7 = vcombine.low %v609_v60, %v617_v61  ;;  %v683_v40 = vld [vmem:[%s2726_s14 + $0x358] sm:$0xff] }
  0x6f   : > { %1496 = vmatpush1.bf16.msra.mxu1 %v2183_v47  ;;  %v616_v59 = vld [vmem:[%s2726_s14 + $0x140] sm:$0xff]  ;;  %v601_v5 = vld [vmem:[%s2726_s14 + $0xc8] sm:$0xff]  ;;  %v2204_v44 = vcombine.high %v675_v39, %v683_v40  ;;  %v659_v16 = vld [vmem:[%s2726_s14 + $0x298] sm:$0xff] }
  0x70   : > { %1497 = vmatprep.subr.bf16.mxu1 %v2168_v49  ;;  %v2134_v0 = vcombine.high %v608_v58, %v616_v59  ;;  %v592_v2 = vld [vmem:[%s2726_s14 + $0x80] sm:$0xff]  ;;  %v2133_v6 = vcombine.low %v608_v58, %v616_v59  ;;  %v2120_v9 = vcombine.high %v593_v4, %v601_v5  ;;  %v577_v12 = vld [vmem:[%s2726_s14 + $0x8] sm:$0xff]  ;;  %v2119_v15 = vcombine.low %v593_v4, %v601_v5  ;;  %v667_v47 = vld [vmem:[%s2726_s14 + $0x2d8] sm:$0xff] }
  0x71   : > { %1455 = vmatpush1.bf16.msra.mxu0 %v2181_v46  ;;  %v600_v3 = vld [vmem:[%s2726_s14 + $0xc0] sm:$0xff]  ;;  %v585_v13 = vld [vmem:[%s2726_s14 + $0x48] sm:$0xff]  ;;  %v666_v46 = vld [vmem:[%s2726_s14 + $0x2d0] sm:$0xff]  ;;  %v2203_v49 = vcombine.low %v675_v39, %v683_v40  ;;  %v2188_v51 = vcombine.high %v659_v16, %v667_v47 }
  0x72   : > { %1456 = vmatprep.subr.bf16.mxu0 %v2166_v48  ;;  %v2118_v8 = vcombine.high %v592_v2, %v600_v3  ;;  %v576_v10 = vld [vmem:[%s2726_s14] sm:$0xff]  ;;  %v2117_v14 = vcombine.low %v592_v2, %v600_v3  ;;  %v2104_v19 = vcombine.high %v577_v12, %v585_v13  ;;  %v705_v22 = vld [vmem:[%s2726_s14 + $0x408] sm:$0xff]  ;;  %v2103_v25 = vcombine.low %v577_v12, %v585_v13  ;;  %v642_v52 = vld [vmem:[%s2726_s14 + $0x210] sm:$0xff] }
  0x73   : > { %1498 = vmatpush1.bf16.msra.mxu1 %v2167_v55  ;;  %v584_v11 = vld [vmem:[%s2726_s14 + $0x40] sm:$0xff]  ;;  %v713_v23 = vld [vmem:[%s2726_s14 + $0x448] sm:$0xff]  ;;  %v2201_v48 = vcombine.low %v674_v36, %v682_v37  ;;  %v2186_v50 = vcombine.high %v658_v45, %v666_v46  ;;  %v650_v53 = vld [vmem:[%s2726_s14 + $0x250] sm:$0xff] }
  0x74   : > { %1499 = vmatprep.subr.bf16.mxu1 %v2152_v57  ;;  %v2102_v17 = vcombine.high %v576_v10, %v584_v11  ;;  %v704_v20 = vld [vmem:[%s2726_s14 + $0x400] sm:$0xff]  ;;  %v2101_v24 = vcombine.low %v576_v10, %v584_v11  ;;  %v2232_v27 = vcombine.high %v705_v22, %v713_v23  ;;  %v2231_v33 = vcombine.low %v705_v22, %v713_v23  ;;  %v651_v55 = vld [vmem:[%s2726_s14 + $0x258] sm:$0xff]  ;;  %v626_v60 = vld [vmem:[%s2726_s14 + $0x190] sm:$0xff] }
  0x75   : > { %1457 = vmatpush1.bf16.msra.mxu0 %v2165_v54  ;;  %v712_v21 = vld [vmem:[%s2726_s14 + $0x440] sm:$0xff]  ;;  %v643_v54 = vld [vmem:[%s2726_s14 + $0x218] sm:$0xff]  ;;  %v2187_v57 = vcombine.low %v659_v16, %v667_v47  ;;  %v2170_v58 = vcombine.high %v642_v52, %v650_v53  ;;  %v634_v61 = vld [vmem:[%s2726_s14 + $0x1d0] sm:$0xff] }
  0x76   : > { %1458 = vmatprep.subr.bf16.mxu0 %v2150_v56  ;;  %v2230_v26 = vcombine.high %v704_v20, %v712_v21  ;;  %v2229_v32 = vcombine.low %v704_v20, %v712_v21  ;;  %v2185_v56 = vcombine.low %v658_v45, %v666_v46  ;;  %v2172_v59 = vcombine.high %v643_v54, %v651_v55  ;;  %v610_v4 = vld [vmem:[%s2726_s14 + $0x110] sm:$0xff]  ;;  %v692_v39 = vld [vmem:[%s2726_s14 + $0x3a0] sm:$0xff] }
  0x77   : > { %1500 = vmatpush1.bf16.msra.mxu1 %v2151_v63  ;;  %v635_v63 = vld [vmem:[%s2726_s14 + $0x1d8] sm:$0xff]  ;;  %v2154_v2 = vcombine.high %v626_v60, %v634_v61  ;;  %v618_v5 = vld [vmem:[%s2726_s14 + $0x150] sm:$0xff]  ;;  %v700_v40 = vld [vmem:[%s2726_s14 + $0x3e0] sm:$0xff] }
  0x78   : > { %1501 = vmatprep.subr.bf16.mxu1 %v2136_v1  ;;  %v2171_v1 = vcombine.low %v643_v54, %v651_v55  ;;  %v2138_v10 = vcombine.high %v610_v4, %v618_v5  ;;  %v594_v12 = vld [vmem:[%s2726_s14 + $0x90] sm:$0xff]  ;;  %v2222_v45 = vcombine.high %v692_v39, %v700_v40  ;;  %v676_v16 = vld [vmem:[%s2726_s14 + $0x320] sm:$0xff] }
  0x79   : > { %1459 = vmatpush1.bf16.msra.mxu0 %v2149_v62  ;;  %v627_v62 = vld [vmem:[%s2726_s14 + $0x198] sm:$0xff]  ;;  %v602_v13 = vld [vmem:[%s2726_s14 + $0xd0] sm:$0xff]  ;;  %v684_v47 = vld [vmem:[%s2726_s14 + $0x360] sm:$0xff] }
  0x7a   : > { %1460 = vmatprep.subr.bf16.mxu0 %v2134_v0  ;;  %v2169_v0 = vcombine.low %v642_v52, %v650_v53  ;;  %v2156_v3 = vcombine.high %v627_v62, %v635_v63  ;;  %v2122_v20 = vcombine.high %v594_v12, %v602_v13  ;;  %v578_v22 = vld [vmem:[%s2726_s14 + $0x10] sm:$0xff]  ;;  %v2206_v52 = vcombine.high %v676_v16, %v684_v47  ;;  %v660_v54 = vld [vmem:[%s2726_s14 + $0x2a0] sm:$0xff] }
  0x7b   : > { %1502 = vmatpush1.bf16.msra.mxu1 %v2135_v7  ;;  %v619_v7 = vld [vmem:[%s2726_s14 + $0x158] sm:$0xff]  ;;  %v586_v23 = vld [vmem:[%s2726_s14 + $0x50] sm:$0xff]  ;;  %v668_v55 = vld [vmem:[%s2726_s14 + $0x2e0] sm:$0xff] }
  0x7c   : > { %1503 = vmatprep.subr.bf16.mxu1 %v2120_v9  ;;  %v2155_v9 = vcombine.low %v627_v62, %v635_v63  ;;  %v2106_v28 = vcombine.high %v578_v22, %v586_v23  ;;  %v706_v30 = vld [vmem:[%s2726_s14 + $0x410] sm:$0xff]  ;;  %v644_v62 = vld [vmem:[%s2726_s14 + $0x220] sm:$0xff] }
  0x7d   : > { %1461 = vmatpush1.bf16.msra.mxu0 %v2133_v6  ;;  %v611_v6 = vld [vmem:[%s2726_s14 + $0x118] sm:$0xff]  ;;  %v714_v31 = vld [vmem:[%s2726_s14 + $0x450] sm:$0xff]  ;;  %v652_v63 = vld [vmem:[%s2726_s14 + $0x260] sm:$0xff] }
  0x7e   : > { %1462 = vmatprep.subr.bf16.mxu0 %v2118_v8  ;;  %v2153_v8 = vcombine.low %v626_v60, %v634_v61  ;;  %v2140_v11 = vcombine.high %v611_v6, %v619_v7  ;;  %v2234_v36 = vcombine.high %v706_v30, %v714_v31  ;;  %v2190_v60 = vcombine.high %v660_v54, %v668_v55 }
  0x7f   : > { %1504 = vmatpush1.bf16.msra.mxu1 %v2119_v15  ;;  %v603_v15 = vld [vmem:[%s2726_s14 + $0xd8] sm:$0xff] }
  0x80   : > { %1505 = vmatprep.subr.bf16.mxu1 %v2104_v19  ;;  %v2139_v19 = vcombine.low %v611_v6, %v619_v7  ;;  %v628_v6 = vld [vmem:[%s2726_s14 + $0x1a0] sm:$0xff] }
  0x81   : > { %1463 = vmatpush1.bf16.msra.mxu0 %v2117_v14  ;;  %v595_v14 = vld [vmem:[%s2726_s14 + $0x98] sm:$0xff]  ;;  %v636_v7 = vld [vmem:[%s2726_s14 + $0x1e0] sm:$0xff] }
  0x82   : > { %1464 = vmatprep.subr.bf16.mxu0 %v2102_v17  ;;  %v2137_v17 = vcombine.low %v610_v4, %v618_v5  ;;  %v2124_v21 = vcombine.high %v595_v14, %v603_v15  ;;  %v2174_v4 = vcombine.high %v644_v62, %v652_v63 }
  0x83   : > { %1506 = vmatpush1.bf16.msra.mxu1 %v2103_v25  ;;  %v587_v25 = vld [vmem:[%s2726_s14 + $0x58] sm:$0xff] }
  0x84   : > { %1521 = vmatprep.subr.bf16.mxu1 %v2232_v27  ;;  %v2123_v27 = vcombine.low %v595_v14, %v603_v15  ;;  %v612_v14 = vld [vmem:[%s2726_s14 + $0x120] sm:$0xff] }
  0x85   : > { %1465 = vmatpush1.bf16.msra.mxu0 %v2101_v24  ;;  %v579_v24 = vld [vmem:[%s2726_s14 + $0x18] sm:$0xff]  ;;  %v620_v15 = vld [vmem:[%s2726_s14 + $0x160] sm:$0xff] }
  0x86   : > { %1480 = vmatprep.subr.bf16.mxu0 %v2230_v26  ;;  %v2121_v26 = vcombine.low %v594_v12, %v602_v13  ;;  %v2108_v29 = vcombine.high %v579_v24, %v587_v25  ;;  %v2158_v12 = vcombine.high %v628_v6, %v636_v7 }
  0x87   : > { %1522 = vmatpush2.bf16.msra.mxu1 %v2231_v33  ;;  %v715_v33 = vld [vmem:[%s2726_s14 + $0x458] sm:$0xff] }
  0x88   : > { %1573 = vmatprep.subr.bf16.mxu1 %v2220_v35  ;;  %v2107_v35 = vcombine.low %v579_v24, %v587_v25  ;;  %v596_v24 = vld [vmem:[%s2726_s14 + $0xa0] sm:$0xff] }
  0x89   : > { %1481 = vmatpush2.bf16.msra.mxu0 %v2229_v32  ;;  %v707_v32 = vld [vmem:[%s2726_s14 + $0x418] sm:$0xff]  ;;  %v604_v25 = vld [vmem:[%s2726_s14 + $0xe0] sm:$0xff] }
  0x8a   : > { %1532 = vmatprep.subr.bf16.mxu0 %v2218_v34  ;;  %1524 = vmatmul.mubr.bf16.vlgmr.msra.gmra.mxu1 %v2772_v38  ;;  %v2105_v34 = vcombine.low %v578_v22, %v586_v23  ;;  %v2236_v37 = vcombine.high %v707_v32, %v715_v33  ;;  %v2142_v22 = vcombine.high %v612_v14, %v620_v15 }
  0x8b   : > { %1574 = vmatpush1.bf16.msra.mxu1 %v2219_v42  ;;  %2248 = vmatprep.mubr.msk.bf16.mxu1 %vm1446_vm0, %v2720_v18  ;;  %v701_v42 = vld [vmem:[%s2726_s14 + $0x3e8] sm:$0xff] }
  0x8c   : > { %1483 = vmatmul.mubr.bf16.vlgmr.msra.gmra.mxu0 %v2772_v38  ;;  %1575 = vmatprep.subr.bf16.mxu1 %v2204_v44  ;;  %v2235_v44 = vcombine.low %v707_v32, %v715_v33  ;;  %v580_v32 = vld [vmem:[%s2726_s14 + $0x20] sm:$0xff] }
  0x8d   : > { %1533 = vmatpush1.bf16.msra.mxu0 %v2217_v41  ;;  %2247 = vmatprep.mubr.msk.bf16.mxu0 %vm1446_vm0, %v2720_v18  ;;  %v693_v41 = vld [vmem:[%s2726_s14 + $0x3a8] sm:$0xff]  ;;  %v588_v33 = vld [vmem:[%s2726_s14 + $0x60] sm:$0xff] }
  0x8e   : > { %1534 = vmatprep.subr.bf16.mxu0 %v2202_v43  ;;  %v2233_v43 = vcombine.low %v706_v30, %v714_v31  ;;  %v2224_v46 = vcombine.high %v693_v41, %v701_v42  ;;  %v2126_v30 = vcombine.high %v596_v24, %v604_v25 }
  0x8f   : > { %1576 = vmatpush1.bf16.msra.mxu1 %v2203_v49  ;;  %v685_v49 = vld [vmem:[%s2726_s14 + $0x368] sm:$0xff] }
  0x90   : > { %1577 = vmatprep.subr.bf16.mxu1 %v2188_v51  ;;  %v2223_v51 = vcombine.low %v693_v41, %v701_v42  ;;  %v708_v41 = vld [vmem:[%s2726_s14 + $0x420] sm:$0xff] }
  0x91   : > { %1535 = vmatpush1.bf16.msra.mxu0 %v2201_v48  ;;  %v677_v48 = vld [vmem:[%s2726_s14 + $0x328] sm:$0xff]  ;;  %v716_v42 = vld [vmem:[%s2726_s14 + $0x460] sm:$0xff] }
  0x92   : > { %1536 = vmatprep.subr.bf16.mxu0 %v2186_v50  ;;  %v2221_v50 = vcombine.low %v692_v39, %v700_v40  ;;  %v2208_v53 = vcombine.high %v677_v48, %v685_v49  ;;  %v2110_v39 = vcombine.high %v580_v32, %v588_v33 }
  0x93   : > { %1578 = vmatpush1.bf16.msra.mxu1 %v2187_v57  ;;  %v669_v57 = vld [vmem:[%s2726_s14 + $0x2e8] sm:$0xff] }
  0x94   : > { %1579 = vmatprep.subr.bf16.mxu1 %v2172_v59  ;;  %v2207_v59 = vcombine.low %v677_v48, %v685_v49  ;;  %v694_v48 = vld [vmem:[%s2726_s14 + $0x3b0] sm:$0xff] }
  0x95   : > { %1537 = vmatpush1.bf16.msra.mxu0 %v2185_v56  ;;  %v661_v56 = vld [vmem:[%s2726_s14 + $0x2a8] sm:$0xff]  ;;  %v702_v49 = vld [vmem:[%s2726_s14 + $0x3f0] sm:$0xff] }
  0x96   : > { %1538 = vmatprep.subr.bf16.mxu0 %v2170_v58  ;;  %v2205_v58 = vcombine.low %v676_v16, %v684_v47  ;;  %v2192_v61 = vcombine.high %v661_v56, %v669_v57  ;;  %v2238_v16 = vcombine.high %v708_v41, %v716_v42 }
  0x97   : > { %1580 = vmatpush1.bf16.msra.mxu1 %v2171_v1  ;;  %v653_v1 = vld [vmem:[%s2726_s14 + $0x268] sm:$0xff] }
  0x98   : > { %1581 = vmatprep.subr.bf16.mxu1 %v2156_v3  ;;  %v2191_v3 = vcombine.low %v661_v56, %v669_v57  ;;  %v678_v56 = vld [vmem:[%s2726_s14 + $0x330] sm:$0xff] }
  0x99   : > { %1539 = vmatpush1.bf16.msra.mxu0 %v2169_v0  ;;  %v645_v0 = vld [vmem:[%s2726_s14 + $0x228] sm:$0xff]  ;;  %v686_v57 = vld [vmem:[%s2726_s14 + $0x370] sm:$0xff] }
  0x9a   : > { %1540 = vmatprep.subr.bf16.mxu0 %v2154_v2  ;;  %v2189_v2 = vcombine.low %v660_v54, %v668_v55  ;;  %v2176_v5 = vcombine.high %v645_v0, %v653_v1  ;;  %v2226_v54 = vcombine.high %v694_v48, %v702_v49 }
  0x9b   : > { %1582 = vmatpush1.bf16.msra.mxu1 %v2155_v9  ;;  %v637_v9 = vld [vmem:[%s2726_s14 + $0x1e8] sm:$0xff] }
  0x9c   : > { %1583 = vmatprep.subr.bf16.mxu1 %v2140_v11  ;;  %v2175_v11 = vcombine.low %v645_v0, %v653_v1  ;;  %v662_v0 = vld [vmem:[%s2726_s14 + $0x2b0] sm:$0xff] }
  0x9d   : > { %1541 = vmatpush1.bf16.msra.mxu0 %v2153_v8  ;;  %v629_v8 = vld [vmem:[%s2726_s14 + $0x1a8] sm:$0xff]  ;;  %v670_v1 = vld [vmem:[%s2726_s14 + $0x2f0] sm:$0xff] }
  0x9e   : > { %1542 = vmatprep.subr.bf16.mxu0 %v2138_v10  ;;  %v2173_v10 = vcombine.low %v644_v62, %v652_v63  ;;  %v2160_v13 = vcombine.high %v629_v8, %v637_v9  ;;  %v2210_v62 = vcombine.high %v678_v56, %v686_v57 }
  0x9f   : > { %1584 = vmatpush1.bf16.msra.mxu1 %v2139_v19  ;;  %v621_v19 = vld [vmem:[%s2726_s14 + $0x168] sm:$0xff] }
  0xa0   : > { %1585 = vmatprep.subr.bf16.mxu1 %v2124_v21  ;;  %v2159_v21 = vcombine.low %v629_v8, %v637_v9  ;;  %v646_v8 = vld [vmem:[%s2726_s14 + $0x230] sm:$0xff] }
  0xa1   : > { %1543 = vmatpush1.bf16.msra.mxu0 %v2137_v17  ;;  %v613_v17 = vld [vmem:[%s2726_s14 + $0x128] sm:$0xff]  ;;  %v654_v9 = vld [vmem:[%s2726_s14 + $0x270] sm:$0xff] }
  0xa2   : > { %1544 = vmatprep.subr.bf16.mxu0 %v2122_v20  ;;  %v2157_v20 = vcombine.low %v628_v6, %v636_v7  ;;  %v2144_v23 = vcombine.high %v613_v17, %v621_v19  ;;  %v2194_v6 = vcombine.high %v662_v0, %v670_v1 }
  0xa3   : > { %1586 = vmatpush1.bf16.msra.mxu1 %v2123_v27  ;;  %v605_v27 = vld [vmem:[%s2726_s14 + $0xe8] sm:$0xff] }
  0xa4   : > { %1587 = vmatprep.subr.bf16.mxu1 %v2108_v29  ;;  %v2143_v29 = vcombine.low %v613_v17, %v621_v19  ;;  %v630_v17 = vld [vmem:[%s2726_s14 + $0x1b0] sm:$0xff] }
  0xa5   : > { %1545 = vmatpush1.bf16.msra.mxu0 %v2121_v26  ;;  %v597_v26 = vld [vmem:[%s2726_s14 + $0xa8] sm:$0xff]  ;;  %v638_v19 = vld [vmem:[%s2726_s14 + $0x1f0] sm:$0xff] }
  0xa6   : > { %1546 = vmatprep.subr.bf16.mxu0 %v2106_v28  ;;  %v2141_v28 = vcombine.low %v612_v14, %v620_v15  ;;  %v2128_v31 = vcombine.high %v597_v26, %v605_v27  ;;  %v2178_v14 = vcombine.high %v646_v8, %v654_v9 }
  0xa7   : > { %1588 = vmatpush1.bf16.msra.mxu1 %v2107_v35  ;;  %v589_v35 = vld [vmem:[%s2726_s14 + $0x68] sm:$0xff] }
  0xa8   : > { %1603 = vmatprep.subr.bf16.mxu1 %v2236_v37  ;;  %v2127_v37 = vcombine.low %v597_v26, %v605_v27  ;;  %v622_v26 = vld [vmem:[%s2726_s14 + $0x170] sm:$0xff]  ;;  %v615_v27 = vld [vmem:[%s2726_s14 + $0x138] sm:$0xff] }
  0xa9   : > { %1547 = vmatpush1.bf16.msra.mxu0 %v2105_v34  ;;  %v581_v34 = vld [vmem:[%s2726_s14 + $0x28] sm:$0xff] }
  0xaa   : > { %1562 = vmatprep.subr.bf16.mxu0 %v2234_v36  ;;  %v2125_v36 = vcombine.low %v596_v24, %v604_v25  ;;  %v2112_v40 = vcombine.high %v581_v34, %v589_v35  ;;  %v614_v25 = vld [vmem:[%s2726_s14 + $0x130] sm:$0xff] }
  0xab   : > { %1604 = vmatpush2.bf16.msra.mxu1 %v2235_v44  ;;  %v717_v44 = vld [vmem:[%s2726_s14 + $0x468] sm:$0xff] }
  0xac   : > { %1655 = vmatprep.subr.bf16.mxu1 %v2224_v46  ;;  %v2111_v46 = vcombine.low %v581_v34, %v589_v35  ;;  %v606_v34 = vld [vmem:[%s2726_s14 + $0xf0] sm:$0xff]  ;;  %v599_v35 = vld [vmem:[%s2726_s14 + $0xb8] sm:$0xff] }
  0xad   : > { %1563 = vmatpush2.bf16.msra.mxu0 %v2233_v43  ;;  %v709_v43 = vld [vmem:[%s2726_s14 + $0x428] sm:$0xff] }
  0xae   : > { %1614 = vmatprep.subr.bf16.mxu0 %v2222_v45  ;;  %1606 = vmatmul.mubr.bf16.vlgmr.msra.gmra.mxu1 %v2772_v38  ;;  %v2109_v45 = vcombine.low %v580_v32, %v588_v33  ;;  %v2240_v47 = vcombine.high %v709_v43, %v717_v44  ;;  %v598_v33 = vld [vmem:[%s2726_s14 + $0xb0] sm:$0xff] }
  0xaf   : > { %1656 = vmatpush1.bf16.msra.mxu1 %v2223_v51  ;;  %2250 = vmatprep.mubr.msk.bf16.mxu1 %vm1446_vm0, %v2720_v18  ;;  %v703_v51 = vld [vmem:[%s2726_s14 + $0x3f8] sm:$0xff] }
  0xb0   : > { %1565 = vmatmul.mubr.bf16.vlgmr.msra.gmra.mxu0 %v2772_v38  ;;  %1657 = vmatprep.subr.bf16.mxu1 %v2208_v53  ;;  %v2239_v53 = vcombine.low %v709_v43, %v717_v44  ;;  %v590_v43 = vld [vmem:[%s2726_s14 + $0x70] sm:$0xff]  ;;  %v583_v44 = vld [vmem:[%s2726_s14 + $0x38] sm:$0xff] }
  0xb1   : > { %1615 = vmatpush1.bf16.msra.mxu0 %v2221_v50  ;;  %2249 = vmatprep.mubr.msk.bf16.mxu0 %vm1446_vm0, %v2720_v18  ;;  %v695_v50 = vld [vmem:[%s2726_s14 + $0x3b8] sm:$0xff] }
  0xb2   : > { %1616 = vmatprep.subr.bf16.mxu0 %v2206_v52  ;;  %v2237_v52 = vcombine.low %v708_v41, %v716_v42  ;;  %v2228_v55 = vcombine.high %v695_v50, %v703_v51  ;;  %v582_v42 = vld [vmem:[%s2726_s14 + $0x30] sm:$0xff] }
  0xb3   : > { %1658 = vmatpush1.bf16.msra.mxu1 %v2207_v59  ;;  %v687_v59 = vld [vmem:[%s2726_s14 + $0x378] sm:$0xff] }
  0xb4   : > { %1659 = vmatprep.subr.bf16.mxu1 %v2192_v61  ;;  %v2227_v61 = vcombine.low %v695_v50, %v703_v51  ;;  %v718_v50 = vld [vmem:[%s2726_s14 + $0x470] sm:$0xff]  ;;  %v711_v51 = vld [vmem:[%s2726_s14 + $0x438] sm:$0xff] }
  0xb5   : > { %1617 = vmatpush1.bf16.msra.mxu0 %v2205_v58  ;;  %v679_v58 = vld [vmem:[%s2726_s14 + $0x338] sm:$0xff] }
  0xb6   : > { %1618 = vmatprep.subr.bf16.mxu0 %v2190_v60  ;;  %v2225_v60 = vcombine.low %v694_v48, %v702_v49  ;;  %v2212_v63 = vcombine.high %v679_v58, %v687_v59  ;;  %v710_v49 = vld [vmem:[%s2726_s14 + $0x430] sm:$0xff] }
  0xb7   : > { %1660 = vmatpush1.bf16.msra.mxu1 %v2191_v3  ;;  %v671_v3 = vld [vmem:[%s2726_s14 + $0x2f8] sm:$0xff] }
  0xb8   : > { %1661 = vmatprep.subr.bf16.mxu1 %v2176_v5  ;;  %v2211_v5 = vcombine.low %v679_v58, %v687_v59 }
  0xb9   : > { %1619 = vmatpush1.bf16.msra.mxu0 %v2189_v2  ;;  %v663_v2 = vld [vmem:[%s2726_s14 + $0x2b8] sm:$0xff] }
  0xba   : > { %1620 = vmatprep.subr.bf16.mxu0 %v2174_v4  ;;  %v2209_v4 = vcombine.low %v678_v56, %v686_v57  ;;  %v2196_v7 = vcombine.high %v663_v2, %v671_v3  ;;  %v2241_v57 = vcombine.low %v710_v49, %v718_v50 }
  0xbb   : > { %1662 = vmatpush1.bf16.msra.mxu1 %v2175_v11  ;;  %v655_v11 = vld [vmem:[%s2726_s14 + $0x278] sm:$0xff] }
  0xbc   : > { %1663 = vmatprep.subr.bf16.mxu1 %v2160_v13  ;;  %v2195_v13 = vcombine.low %v663_v2, %v671_v3 }
  0xbd   : > { %1621 = vmatpush1.bf16.msra.mxu0 %v2173_v10  ;;  %v647_v10 = vld [vmem:[%s2726_s14 + $0x238] sm:$0xff] }
  0xbe   : > { %1622 = vmatprep.subr.bf16.mxu0 %v2158_v12  ;;  %v2193_v12 = vcombine.low %v662_v0, %v670_v1  ;;  %v2180_v15 = vcombine.high %v647_v10, %v655_v11 }
  0xbf   : > { %1664 = vmatpush1.bf16.msra.mxu1 %v2159_v21  ;;  %v639_v21 = vld [vmem:[%s2726_s14 + $0x1f8] sm:$0xff] }
  0xc0   : > { %1665 = vmatprep.subr.bf16.mxu1 %v2144_v23  ;;  %v2162_v23 = vcombine.high %v630_v17, %v638_v19 }
  0xc1   : > { %1623 = vmatpush1.bf16.msra.mxu0 %v2157_v20  ;;  %v631_v20 = vld [vmem:[%s2726_s14 + $0x1b8] sm:$0xff] }
  0xc2   : > { %1624 = vmatprep.subr.bf16.mxu0 %v2142_v22  ;;  %v2177_v22 = vcombine.low %v646_v8, %v654_v9  ;;  %v2164_v24 = vcombine.high %v631_v20, %v639_v21 }
  0xc3   : > { %1666 = vmatpush1.bf16.msra.mxu1 %v2143_v29  ;;  %v2161_v29 = vcombine.low %v630_v17, %v638_v19 }
  0xc4   : > { %1667 = vmatprep.subr.bf16.mxu1 %v2128_v31  ;;  %v2146_v31 = vcombine.high %v614_v25, %v622_v26 }
  0xc5   : > { %1625 = vmatpush1.bf16.msra.mxu0 %v2141_v28  ;;  %v623_v28 = vld [vmem:[%s2726_s14 + $0x178] sm:$0xff] }
  0xc6   : > { %1626 = vmatprep.subr.bf16.mxu0 %v2126_v30  ;;  %v2163_v30 = vcombine.low %v631_v20, %v639_v21  ;;  %v2148_v32 = vcombine.high %v615_v27, %v623_v28  ;;  %v1917_v20 = vld [vmem:[%s2921_s24 + $0x8] sm:$0x77] }
  0xc7   : > { %1668 = vmatpush1.bf16.msra.mxu1 %v2127_v37  ;;  %v2145_v37 = vcombine.low %v614_v25, %v622_v26 }
  0xc8   : > { %1669 = vmatprep.subr.bf16.mxu1 %v2112_v40  ;;  %v2130_v40 = vcombine.high %v598_v33, %v606_v34 }
  0xc9   : > { %1627 = vmatpush1.bf16.msra.mxu0 %v2125_v36  ;;  %v607_v36 = vld [vmem:[%s2726_s14 + $0xf8] sm:$0xff] }
  0xca   : > { %1628 = vmatprep.subr.bf16.mxu0 %v2110_v39  ;;  %v2147_v39 = vcombine.low %v615_v27, %v623_v28  ;;  %v2132_v41 = vcombine.high %v599_v35, %v607_v36  ;;  %v1933_v27 = vcombine.high %v1917_v20, %v1917_v20 }
  0xcb   : > { %1670 = vmatpush1.bf16.msra.mxu1 %v2111_v46  ;;  %v2129_v46 = vcombine.low %v598_v33, %v606_v34 }
  0xcc   : > { %1685 = vmatprep.subr.bf16.mxu1 %v2240_v47  ;;  %v2114_v47 = vcombine.high %v582_v42, %v590_v43 }
  0xcd   : > { %1629 = vmatpush1.bf16.msra.mxu0 %v2109_v45  ;;  %v591_v45 = vld [vmem:[%s2726_s14 + $0x78] sm:$0xff] }
  0xce   : > { %1644 = vmatprep.subr.bf16.mxu0 %v2238_v16  ;;  %v2131_v16 = vcombine.low %v599_v35, %v607_v36  ;;  %v2116_v48 = vcombine.high %v583_v44, %v591_v45 }
  0xcf   : > { %1686 = vmatpush2.bf16.msra.mxu1 %v2239_v53  ;;  %v2113_v53 = vcombine.low %v582_v42, %v590_v43 }
  0xd0   : > { %1737 = vmatprep.subr.bf16.mxu1 %v2228_v55  ;;  %v2242_v55 = vcombine.high %v710_v49, %v718_v50 }
  0xd1   : > { %1645 = vmatpush2.bf16.msra.mxu0 %v2237_v52  ;;  %v719_v52 = vld [vmem:[%s2726_s14 + $0x478] sm:$0xff] }
  0xd2   : > { %1696 = vmatprep.subr.bf16.mxu0 %v2226_v54  ;;  %1688 = vmatmul.mubr.bf16.vlgmr.msra.gmra.mxu1 %v2772_v38  ;;  %v2115_v54 = vcombine.low %v583_v44, %v591_v45  ;;  %v2244_v56 = vcombine.high %v711_v51, %v719_v52  ;;  %v2243_v58 = vcombine.low %v711_v51, %v719_v52 }
  0xd3   : > { %1738 = vmatpush1.bf16.msra.mxu1 %v2227_v61  ;;  %2252 = vmatprep.mubr.msk.bf16.mxu1 %vm1446_vm0, %v2720_v18 }
  0xd4   : > { %1647 = vmatmul.mubr.bf16.vlgmr.msra.gmra.mxu0 %v2772_v38  ;;  %1739 = vmatprep.subr.bf16.mxu1 %v2212_v63  ;;  %v1820_v63 = vlaneseq }
  0xd5   : > { %1697 = vmatpush1.bf16.msra.mxu0 %v2225_v60  ;;  %2251 = vmatprep.mubr.msk.bf16.mxu0 %vm1446_vm0, %v2720_v18  ;;  %v2179_v18 = vcombine.low %v647_v10, %v655_v11  ;;  %v1816_v10 = vld [vmem:[%s2912_s18] sm:$0xff] }
  0xd6   : > { %1698 = vmatprep.subr.bf16.mxu0 %v2210_v62 }
  0xd7   : > { %1740 = vmatpush1.bf16.msra.mxu1 %v2211_v5  ;;  %v2906_v5 = vshrl.u32 %v1820_v63, 7 }
  0xd8   : > { %1741 = vmatprep.subr.bf16.mxu1 %v2196_v7 }
  0xd9   : > { %1699 = vmatpush1.bf16.msra.mxu0 %v2209_v4  ;;  %v1822_v9 = vsub.s32 0, %v2906_v5  ;;  %v1830_v11 = vsub.s32 2, %v2906_v5  ;;  %v1838_v49 = vsub.s32 4, %v2906_v5  ;;  %v1846_v50 = vsub.s32 6, %v2906_v5 }
  0xda   : > { %1700 = vmatprep.subr.bf16.mxu0 %v2194_v6  ;;  %v1842_v51 = vsub.s32 5, %v2906_v5  ;;  %v1850_v52 = vsub.s32 7, %v2906_v5 }
  0xdb   : > { %1742 = vmatpush1.bf16.msra.mxu1 %v2195_v13  ;;  %v1834_v13 = vsub.s32 3, %v2906_v5  ;;  %v1831_v17 = vrot.slane %v1816_v10, %v1830_v11 }
  0xdc   : > { %1743 = vmatprep.subr.bf16.mxu1 %v2180_v15  ;;  %v1916_v15 = vld [vmem:[%s2921_s24] sm:$0x77] }
  0xdd   : > { %1701 = vmatpush1.bf16.msra.mxu0 %v2193_v12  ;;  %v1826_v12 = vsub.s32 1, %v2906_v5 }
  0xde   : > { %1702 = vmatprep.subr.bf16.mxu0 %v2178_v14  ;;  %v1823_v14 = vrot.slane %v1816_v10, %v1822_v9 }
  0xdf   : > { %1744 = vmatpush1.bf16.msra.mxu1 %v2179_v18  ;;  %v2898_v59 = vpop.permute.xlu0 %1781  ;;  %v1827_v19 = vrot.slane %v1816_v10, %v1826_v12 }
  0xe0   : > { %1745 = vmatprep.subr.bf16.mxu1 %v2164_v24  ;;  %v1932_v24 = vcombine.high %v1916_v15, %v1916_v15 }
  0xe1   : > { %1703 = vmatpush1.bf16.msra.mxu0 %v2177_v22  ;;  %v1835_v22 = vrot.slane %v1816_v10, %v1834_v13 }
  0xe2   : > { %1704 = vmatprep.subr.bf16.mxu0 %v2162_v23 }
  0xe3   : > { %1746 = vmatpush1.bf16.msra.mxu1 %v2163_v30 }
  0xe4   : > { %1747 = vmatprep.subr.bf16.mxu1 %v2148_v32 }
  0xe5   : > { %1705 = vmatpush1.bf16.msra.mxu0 %v2161_v29 }
  0xe6   : > { %1706 = vmatprep.subr.bf16.mxu0 %v2146_v31 }
  0xe7   : > { %1748 = vmatpush1.bf16.msra.mxu1 %v2147_v39 }
  0xe8   : > { %1749 = vmatprep.subr.bf16.mxu1 %v2132_v41 }
  0xe9   : > { %1707 = vmatpush1.bf16.msra.mxu0 %v2145_v37 }
  0xea   : > { %1708 = vmatprep.subr.bf16.mxu0 %v2130_v40 }
  0xeb   : > { %1750 = vmatpush1.bf16.msra.mxu1 %v2131_v16 }
  0xec   : > { %1751 = vmatprep.subr.bf16.mxu1 %v2116_v48 }
  0xed   : > { %1709 = vmatpush1.bf16.msra.mxu0 %v2129_v46 }
  0xee   : > { %1710 = vmatprep.subr.bf16.mxu0 %v2114_v47 }
  0xef   : > { %1752 = vmatpush1.bf16.msra.mxu1 %v2115_v54  ;;  %v1918_v54 = vld [vmem:[%s2921_s24 + $0x10] sm:$0x77] }
  0xf0   : > { %1767 = vmatprep.subr.bf16.mxu1 %v2244_v56  ;;  %v1919_v56 = vld [vmem:[%s2921_s24 + $0x18] sm:$0x77]  ;;  %v1934_v63 = vcombine.high %v1918_v54, %v1918_v54 }
  0xf1   : > { %1711 = vmatpush1.bf16.msra.mxu0 %v2113_v53  ;;  %v1839_v53 = vrot.slane %v1816_v10, %v1838_v49 }
  0xf2   : > { %1726 = vmatprep.subr.bf16.mxu0 %v2242_v55  ;;  %v1847_v55 = vrot.slane %v1816_v10, %v1846_v50 }
  0xf3   : > { %1768 = vmatpush2.bf16.msra.mxu1 %v2243_v58 }
  0xf5   : > { %1727 = vmatpush2.bf16.msra.mxu0 %v2241_v57  ;;  %v1843_v57 = vrot.slane %v1816_v10, %v1842_v51 }
  0xf6   : > { %1770 = vmatmul.mubr.bf16.vlgmr.msra.gmra.mxu1 %v2772_v38 }
  0xf8   : > { %1729 = vmatmul.mubr.bf16.vlgmr.msra.gmra.mxu0 %v2772_v38 }
 0x14a   : > { %v1525_v61 = vpop.f32.mrf.mxu1 }
 0x14b   : > { %v1786_v1 = vadd.f32 %v2898_v59, %v1525_v61 }
 0x14c   : > { %v1484_v60 = vpop.f32.mrf.mxu0  ;;  %v1527_v38 = vpop.f32.mrf.mxu1 }
 0x14d   : > { %v1784_v62 = vadd.f32 %v2898_v59, %v1484_v60  ;;  %v1787_v3 = vadd.f32 %v2898_v59, %v1527_v38  ;;  %v1851_v60 = vrot.slane %v1816_v10, %v1850_v52 }
 0x14e   : > { %v1486_v0 = vpop.f32.mrf.mxu0  ;;  %v1529_v6 = vpop.f32.mrf.mxu1 }
 0x14f   : > { %v1785_v2 = vadd.f32 %v2898_v59, %v1486_v0  ;;  %2294 = vtanh.f32 %v1784_v62 }
 0x150   : > { %2296 = vtanh.f32 %v1786_v1  ;;  %v1488_v4 = vpop.f32.mrf.mxu0  ;;  %v1530_v8 = vpop.f32.mrf.mxu1 }
 0x151   : > { %2298 = vtanh.f32 %v1785_v2  ;;  %v1935_v2 = vcombine.high %v1919_v56, %v1919_v56 }
 0x152   : > { %2300 = vtanh.f32 %v1787_v3  ;;  %v1489_v7 = vpop.f32.mrf.mxu0 }
 0x15c   : > { %v2295_v21 = vpop.eup %2294 }
 0x15d   : > { %v2297_v18 = vpop.eup %2296  ;;  %v1900_v23 = vmul.f32 %v2295_v21, %v1823_v14 }
 0x15e   : > { %v2299_v25 = vpop.eup %2298  ;;  %v1902_v26 = vmul.f32 %v2297_v18, %v1831_v17 }
 0x15f   : > { %v2301_v28 = vpop.eup %2300  ;;  %v1901_v29 = vmul.f32 %v2299_v25, %v1827_v19  ;;  %v1948_v30 = vadd.f32 %v1916_v15, %v1900_v23 }
 0x160   : > { %v1903_v31 = vmul.f32 %v2301_v28, %v1835_v22  ;;  %v1950_v32 = vadd.f32 %v1917_v20, %v1902_v26 }
 0x161   : > { %v1949_v33 = vadd.f32 %v1932_v24, %v1901_v29  ;;  %v1817_v29 = vld [vmem:[%s2912_s18 + $0x8] sm:$0xff] }
 0x162   : > { %v1951_v34 = vadd.f32 %v1933_v27, %v1903_v31  ;;  %v1920_v31 = vld [vmem:[%s2921_s24 + $0x20] sm:$0x77] }
 0x163   : > { %v1980_v35 = vcombine.low %v1948_v30, %v1949_v33  ;;  %v1855_v30 = vrot.slane %v1817_v29, %v1822_v9  ;;  %v1921_v33 = vld [vmem:[%s2921_s24 + $0x28] sm:$0x77] }
 0x164   : > { %v1981_v36 = vcombine.low %v1950_v32, %v1951_v34  ;;  %v1863_v32 = vrot.slane %v1817_v29, %v1830_v11  ;;  %v1859_v34 = vrot.slane %v1817_v29, %v1826_v12  ;;  %v1937_v9 = vcombine.high %v1921_v33, %v1921_v33 }
 0x165   : > { %1996 = vst [vmem:[%s2938_s28] sm:$0x77] %v1980_v35 }
 0x166   : > { %1997 = vst [vmem:[%s2938_s28 + $0x8] sm:$0x77] %v1981_v36  ;;  %v1867_v36 = vrot.slane %v1817_v29, %v1834_v13 }
 0x16e   : > { %v1607_v40 = vpop.f32.mrf.mxu1 }
 0x16f   : > { %v1790_v41 = vadd.f32 %v2898_v59, %v1607_v40  ;;  %v1936_v40 = vcombine.high %v1920_v31, %v1920_v31 }
 0x170   : > { %v1566_v37 = vpop.f32.mrf.mxu0  ;;  %v1609_v44 = vpop.f32.mrf.mxu1 }
 0x171   : > { %v1788_v39 = vadd.f32 %v2898_v59, %v1566_v37  ;;  %v1791_v45 = vadd.f32 %v2898_v59, %v1609_v44 }
 0x172   : > { %v1568_v42 = vpop.f32.mrf.mxu0  ;;  %v1611_v16 = vpop.f32.mrf.mxu1 }
 0x173   : > { %2302 = vtanh.f32 %v1788_v39  ;;  %v1789_v43 = vadd.f32 %v2898_v59, %v1568_v42 }
 0x174   : > { %2304 = vtanh.f32 %v1790_v41  ;;  %v1570_v46 = vpop.f32.mrf.mxu0  ;;  %v1612_v48 = vpop.f32.mrf.mxu1 }
 0x175   : > { %2306 = vtanh.f32 %v1789_v43 }
 0x176   : > { %2308 = vtanh.f32 %v1791_v45  ;;  %v1571_v47 = vpop.f32.mrf.mxu0 }
 0x180   : > { %v2303_v58 = vpop.eup %2302 }
 0x181   : > { %v2305_v61 = vpop.eup %2304  ;;  %v1904_v62 = vmul.f32 %v2303_v58, %v1839_v53 }
 0x182   : > { %v2307_v0 = vpop.eup %2306  ;;  %v1906_v1 = vmul.f32 %v2305_v61, %v1847_v55 }
 0x183   : > { %v2309_v38 = vpop.eup %2308  ;;  %v1952_v3 = vadd.f32 %v1918_v54, %v1904_v62  ;;  %v1905_v4 = vmul.f32 %v2307_v0, %v1843_v57 }
 0x184   : > { %v1954_v6 = vadd.f32 %v1919_v56, %v1906_v1  ;;  %v1907_v7 = vmul.f32 %v2309_v38, %v1851_v60  ;;  %v1871_v1 = vrot.slane %v1817_v29, %v1838_v49  ;;  %v1879_v38 = vrot.slane %v1817_v29, %v1846_v50 }
 0x185   : > { %v1953_v8 = vadd.f32 %v1934_v63, %v1905_v4  ;;  %v1875_v4 = vrot.slane %v1817_v29, %v1842_v51 }
 0x186   : > { %v1955_v14 = vadd.f32 %v1935_v2, %v1907_v7  ;;  %v1922_v2 = vld [vmem:[%s2921_s24 + $0x30] sm:$0x77] }
 0x187   : > { %v1982_v15 = vcombine.low %v1952_v3, %v1953_v8  ;;  %v1923_v3 = vld [vmem:[%s2921_s24 + $0x38] sm:$0x77] }
 0x188   : > { %v1983_v17 = vcombine.low %v1954_v6, %v1955_v14  ;;  %v1938_v14 = vcombine.high %v1922_v2, %v1922_v2  ;;  %v1939_v49 = vcombine.high %v1923_v3, %v1923_v3 }
 0x189   : > { %1998 = vst [vmem:[%s2938_s28 + $0x10] sm:$0x77] %v1982_v15 }
 0x18a   : > { %1999 = vst [vmem:[%s2938_s28 + $0x18] sm:$0x77] %v1983_v17 }
 0x192   : > { %v1689_v20 = vpop.f32.mrf.mxu1 }
 0x193   : > { %v1794_v21 = vadd.f32 %v2898_v59, %v1689_v20 }
 0x194   : > { %v1648_v10 = vpop.f32.mrf.mxu0  ;;  %v1691_v23 = vpop.f32.mrf.mxu1 }
 0x195   : > { %v1792_v19 = vadd.f32 %v2898_v59, %v1648_v10  ;;  %v1795_v24 = vadd.f32 %v2898_v59, %v1691_v23 }
 0x196   : > { %v1650_v22 = vpop.f32.mrf.mxu0  ;;  %v1693_v26 = vpop.f32.mrf.mxu1 }
 0x197   : > { %2310 = vtanh.f32 %v1792_v19  ;;  %v1793_v18 = vadd.f32 %v2898_v59, %v1650_v22 }
 0x198   : > { %2312 = vtanh.f32 %v1794_v21  ;;  %v1652_v25 = vpop.f32.mrf.mxu0  ;;  %v1694_v28 = vpop.f32.mrf.mxu1 }
 0x199   : > { %2314 = vtanh.f32 %v1793_v18 }
 0x19a   : > { %2316 = vtanh.f32 %v1795_v24  ;;  %v1653_v27 = vpop.f32.mrf.mxu0 }
 0x1a4   : > { %v2311_v35 = vpop.eup %2310 }
 0x1a5   : > { %v2313_v37 = vpop.eup %2312  ;;  %v1908_v39 = vmul.f32 %v2311_v35, %v1855_v30 }
 0x1a6   : > { %v2315_v41 = vpop.eup %2314  ;;  %v1910_v42 = vmul.f32 %v2313_v37, %v1863_v32 }
 0x1a7   : > { %v2317_v43 = vpop.eup %2316  ;;  %v1956_v44 = vadd.f32 %v1920_v31, %v1908_v39  ;;  %v1909_v45 = vmul.f32 %v2315_v41, %v1859_v34 }
 0x1a8   : > { %v1958_v11 = vadd.f32 %v1921_v33, %v1910_v42  ;;  %v1911_v46 = vmul.f32 %v2317_v43, %v1867_v36 }
 0x1a9   : > { %v1957_v16 = vadd.f32 %v1936_v40, %v1909_v45 }
 0x1aa   : > { %v1959_v47 = vadd.f32 %v1937_v9, %v1911_v46 }
 0x1ab   : > { %v1984_v12 = vcombine.low %v1956_v44, %v1957_v16 }
 0x1ac   : > { %v1985_v48 = vcombine.low %v1958_v11, %v1959_v47 }
 0x1ad   : > { %2000 = vst [vmem:[%s2938_s28 + $0x20] sm:$0x77] %v1984_v12 }
 0x1ae   : > { %2001 = vst [vmem:[%s2938_s28 + $0x28] sm:$0x77] %v1985_v48 }
 0x1b6   : > { %v1771_v54 = vpop.f32.mrf.mxu1 }
 0x1b7   : > { %v1798_v55 = vadd.f32 %v2898_v59, %v1771_v54 }
 0x1b8   : > { %v1730_v13 = vpop.f32.mrf.mxu0  ;;  %v1773_v58 = vpop.f32.mrf.mxu1 }
 0x1b9   : > { %v1796_v53 = vadd.f32 %v2898_v59, %v1730_v13  ;;  %v1799_v60 = vadd.f32 %v2898_v59, %v1773_v58 }
 0x1ba   : > { %v1732_v56 = vpop.f32.mrf.mxu0  ;;  %v1775_v62 = vpop.f32.mrf.mxu1 }
 0x1bb   : > { %2318 = vtanh.f32 %v1796_v53  ;;  %v1797_v57 = vadd.f32 %v2898_v59, %v1732_v56  ;;  %v1883_v59 = vrot.slane %v1817_v29, %v1850_v52 }
 0x1bc   : > { %2320 = vtanh.f32 %v1798_v55  ;;  %v1734_v61 = vpop.f32.mrf.mxu0  ;;  %v1776_v0 = vpop.f32.mrf.mxu1 }
 0x1bd   : > { %2322 = vtanh.f32 %v1797_v57 }
 0x1be   : > { %2324 = vtanh.f32 %v1799_v60  ;;  %v1735_v63 = vpop.f32.mrf.mxu0 }
 0x1c8   : > { %v2319_v6 = vpop.eup %2318 }
 0x1c9   : > { %v2321_v7 = vpop.eup %2320  ;;  %v1912_v8 = vmul.f32 %v2319_v6, %v1871_v1 }
 0x1ca   : > { %v2323_v15 = vpop.eup %2322  ;;  %v1914_v17 = vmul.f32 %v2321_v7, %v1879_v38 }
 0x1cb   : > { %v2325_v10 = vpop.eup %2324  ;;  %v1913_v19 = vmul.f32 %v2323_v15, %v1875_v4  ;;  %v1960_v50 = vadd.f32 %v1922_v2, %v1912_v8 }
 0x1cc   : > { %v1915_v20 = vmul.f32 %v2325_v10, %v1883_v59  ;;  %v1962_v22 = vadd.f32 %v1923_v3, %v1914_v17 }
 0x1cd   : > { %v1961_v21 = vadd.f32 %v1938_v14, %v1913_v19 }
 0x1ce   : > { %v1963_v18 = vadd.f32 %v1939_v49, %v1915_v20 }
 0x1cf   : > { %v1986_v51 = vcombine.low %v1960_v50, %v1961_v21 }
 0x1d0   : > { %v1987_v23 = vcombine.low %v1962_v22, %v1963_v18 }
 0x1d1   : > { %2002 = vst [vmem:[%s2938_s28 + $0x30] sm:$0x77] %v1986_v51 }
 0x1d2   : > { %2003 = vst [vmem:[%s2938_s28 + $0x38] sm:$0x77] %v1987_v23 }
 0x1d3 PF: > { %p12_p9 = scmp.ge.s32.totalorder %s2398_s22, 51   ;;  %s3011_s18 = smov %s2344_s19 }
 0x1d4   : > { %s3012_s19 = smov %s2407_s25  ;;  %s3013_s20 = smov %s2398_s22 }
 0x1d5   :  { %14 = sbr.rel (!%p12_p9) target bundleno = 2 (0x2), region = 104 }

</bundles_post_ra>
